<compile_context>
chip_gen: v7x
topology: tpu7x:2x2x1
jax: 0.10.0
libtpu: 0.0.40
codegen_flags: <defaults>
</compile_context>

<pallas_src>
import functools

import numpy as np
import jax
import jax.numpy as jnp
from jax.experimental import pallas as pl
from jax.experimental.pallas import tpu as pltpu


# ----------------------------------------------------------------------------
# small helpers
# ----------------------------------------------------------------------------
def _round_up(x, m):
    return ((x + m - 1) // m) * m


def _conv_out(h, k=3, s=2, p=2):
    return (h + 2 * p - k) // s + 1


def _m_tiling(m, max_tm=128, align=16):
    """Adaptive M tiling: pad to `align` (bf16-friendly sublane multiple) and
    split into >=1 blocks of at most ~max_tm rows (parallel grid axis)."""
    ma = _round_up(m, align)
    nblk = max(1, (ma + max_tm - 1) // max_tm)
    tm = _round_up((ma + nblk - 1) // nblk, align)
    return tm, tm * nblk, nblk


# ----------------------------------------------------------------------------
# Pallas kernels
# ----------------------------------------------------------------------------
def _matmul_shift_relu_kernel(a_ref, w_ref, shift_ref, o_ref):
    # a: (tm, Kp) bf16   w: (Kp, Cout) bf16 (BN scale already folded in)
    # shift: (1, Cout) f32   o: (tm, Cout) bf16
    acc = jnp.dot(a_ref[...], w_ref[...], preferred_element_type=jnp.float32)
    o_ref[...] = jnp.maximum(acc + shift_ref[...], 0.0).astype(o_ref.dtype)


def _fused_tail_kernel(z_ref, w4_ref, b4_ref, w5_ref, b5_ref, w6_ref, b6_ref,
                       wfc_ref, bfc_ref, o_ref):
    # Entire post-maxpool tail (block4/5/6 + avgpool + fc) with activations
    # kept resident in VMEM: 4 chained bf16 matmuls, fp32 accumulation.
    h = z_ref[...]                                          # (Bp, Q*C) bf16
    for w_ref, b_ref in ((w4_ref, b4_ref), (w5_ref, b5_ref), (w6_ref, b6_ref)):
        acc = jnp.dot(h, w_ref[...], preferred_element_type=jnp.float32)
        h = jnp.maximum(acc + b_ref[...], 0.0).astype(jnp.bfloat16)
    o_ref[...] = (jnp.dot(h, wfc_ref[...], preferred_element_type=jnp.float32)
                  + bfc_ref[...])


# ----------------------------------------------------------------------------
# Head conv block: im2col (bf16, JAX glue) + fused matmul/shift/ReLU kernel
# ----------------------------------------------------------------------------
def conv_bn_relu(x_nhwc, wmat_bf16, shift_f32,
                 *, stride=2, padding=2, kh=3, kw=3, max_tm=128):
    B, H, W, Cin = x_nhwc.shape
    Kp, Cout = wmat_bf16.shape
    K = kh * kw * Cin
    Ho, Wo = _conv_out(H, kh, stride, padding), _conv_out(W, kw, stride, padding)

    # --- im2col directly in bf16 (plain JAX glue, fused by XLA) ---
    xp = jnp.pad(x_nhwc, ((0, 0), (padding, padding), (padding, padding), (0, 0)))
    xp = xp.astype(jnp.bfloat16)
    patches = [xp[:, di:di + stride * Ho:stride, dj:dj + stride * Wo:stride, :]
               for di in range(kh) for dj in range(kw)]
    A = jnp.concatenate(patches, axis=-1).reshape(B * Ho * Wo, K)

    M = B * Ho * Wo
    tm, Mp, nblk = _m_tiling(M, max_tm=max_tm)
    # pad rows to the tile grid and K up to the (lane-friendly) padded Kp
    A = jnp.pad(A, ((0, Mp - M), (0, Kp - K)))

    out = pl.pallas_call(
        _matmul_shift_relu_kernel,
        out_shape=jax.ShapeDtypeStruct((Mp, Cout), jnp.bfloat16),
        grid=(nblk,),
        in_specs=[
            pl.BlockSpec((tm, Kp), lambda i: (i, 0)),
            pl.BlockSpec((Kp, Cout), lambda i: (0, 0)),
            pl.BlockSpec((1, Cout), lambda i: (0, 0)),
        ],
        out_specs=pl.BlockSpec((tm, Cout), lambda i: (i, 0)),
        compiler_params=pltpu.CompilerParams(dimension_semantics=("parallel",)),
    )(A, wmat_bf16, shift_f32)

    return out[:M].reshape(B, Ho, Wo, Cout)


def maxpool2x2(z):
    """MaxPool2d(2,2) (floor mode) as a fused XLA reduce; Dropout2d = identity."""
    B, H, W, C = z.shape
    Ho, Wo = H // 2, W // 2
    z = z[:, :Ho * 2, :Wo * 2, :].reshape(B, Ho, 2, Wo, 2, C)
    return z.max(axis=(2, 4))


def fused_tail(z_pooled, tail):
    """block4 -> block5 -> block6 -> avgpool -> fc in a single Pallas kernel."""
    B, Hs, Ws, C = z_pooled.shape
    z = z_pooled.reshape(B, Hs * Ws * C).astype(jnp.bfloat16)
    Bp = _round_up(B, 8)
    z = jnp.pad(z, ((0, Bp - B), (0, 0)))
    ncols = tail["bfc"].shape[1]
    args = (z, tail["w4"], tail["b4"], tail["w5"], tail["b5"],
            tail["w6"], tail["b6"], tail["wfc"], tail["bfc"])
    out = pl.pallas_call(
        _fused_tail_kernel,
        out_shape=jax.ShapeDtypeStruct((Bp, ncols), jnp.float32),
        grid=(1,),
        in_specs=[pl.BlockSpec(a.shape, lambda i: (0, 0)) for a in args],
        out_specs=pl.BlockSpec((Bp, ncols), lambda i: (0, 0)),
    )(*args)
    return out[:B]


# ----------------------------------------------------------------------------
# Host-side parameter folding (BN -> scale/shift; dense tail matrices)
# ----------------------------------------------------------------------------
def _fold_bn(w, gamma, beta, mean, var, eps=1e-5):
    inv_std = 1.0 / jnp.sqrt(var + eps)
    scale = gamma * inv_std
    shift = beta - mean * scale
    return w * scale[:, None, None, None], shift


def _head_weights(w, gamma, beta, mean, var):
    w_scaled, shift = _fold_bn(w, gamma, beta, mean, var)
    Cout, Cin, kh, kw = w.shape
    K = kh * kw * Cin
    Kp = _round_up(K, 128)                   # lane-friendly K (Cin=1 layer -> 128)
    Wmat = jnp.transpose(w_scaled, (2, 3, 1, 0)).reshape(K, Cout)
    Wmat = jnp.pad(Wmat, ((0, Kp - K), (0, 0))).astype(jnp.bfloat16)
    return Wmat, shift.reshape(1, Cout).astype(jnp.float32)


def _tap_select(Hi, Wi, kh, kw, stride, pad):
    """0/1 tensor S[p, di, dj, q]: output pos p, tap (di,dj) reads input pos q."""
    Ho = (Hi + 2 * pad - kh) // stride + 1
    Wo = (Wi + 2 * pad - kw) // stride + 1
    S = np.zeros((Ho * Wo, kh, kw, Hi * Wi), np.float32)
    for ho in range(Ho):
        for wo in range(Wo):
            p = ho * Wo + wo
            for di in range(kh):
                for dj in range(kw):
                    hi = ho * stride - pad + di
                    wi = wo * stride - pad + dj
                    if 0 <= hi < Hi and 0 <= wi < Wi:
                        S[p, di, dj, hi * Wi + wi] = 1.0
    return S, Ho, Wo


def _dense_conv_weights(w_scaled, shift, Hi, Wi, stride=2, pad=2):
    """Conv (k=3,s=2,p=2) on a tiny spatial grid as one dense matmul:
    out_flat[b, p*Cout+co] = z_flat[b, q*Cin+ci] @ Weff + tile(shift)."""
    Cout, Cin, kh, kw = w_scaled.shape
    S, Ho, Wo = _tap_select(Hi, Wi, kh, kw, stride, pad)
    Weff = jnp.einsum("pijq,ocij->qcpo", jnp.asarray(S), w_scaled)
    Weff = Weff.reshape(Hi * Wi * Cin, Ho * Wo * Cout).astype(jnp.bfloat16)
    beff = jnp.tile(shift, Ho * Wo).reshape(1, Ho * Wo * Cout).astype(jnp.float32)
    return Weff, beff, Ho, Wo


def prepare_params(params, num_classes, input_hw):
    """Fold BN into weights once; build bf16 matmul weights for all Pallas calls."""
    H, W = input_hw
    head = []
    for name in ("b1", "b2", "b3"):
        head.append(_head_weights(*params[name]))
        H, W = _conv_out(H), _conv_out(W)
    H, W = H // 2, W // 2                     # maxpool(2,2)

    # Tail fusion is specialized to small post-pool spatial sizes (2x2 here):
    # each conv becomes a dense (Hi*Wi*Cin, Ho*Wo*Cout) effective matrix.
    tail = {}
    for idx, name in ((4, "b4"), (5, "b5"), (6, "b6")):
        w_scaled, shift = _fold_bn(*params[name])
        Weff, beff, H, W = _dense_conv_weights(w_scaled, shift, H, W)
        tail[f"w{idx}"] = Weff
        tail[f"b{idx}"] = beff

    # avgpool + fc folded into one matrix: mean over P positions = tiled fc_w / P
    P = H * W
    ncls_p = _round_up(num_classes, 128)      # lane-dense output tile
    wfc = jnp.tile(params["fc_w"].T, (P, 1)) / float(P)        # (P*128, ncls)
    tail["wfc"] = jnp.pad(wfc, ((0, 0), (0, ncls_p - num_classes))).astype(jnp.bfloat16)
    tail["bfc"] = jnp.pad(params["fc_b"], (0, ncls_p - num_classes)
                          ).reshape(1, ncls_p).astype(jnp.float32)
    return {"head": head, "tail": tail}


# ----------------------------------------------------------------------------
# Parameter initialization (deterministic, synthetic)
# ----------------------------------------------------------------------------
def init_conv_block(key, cin, cout):
    k1, k2, k3, k4, k5 = jax.random.split(key, 5)
    fan_in = cin * 3 * 3
    w = jax.random.normal(k1, (cout, cin, 3, 3), jnp.float32) / jnp.sqrt(float(fan_in))
    gamma = 1.0 + 0.1 * jax.random.normal(k2, (cout,), jnp.float32)
    beta = 0.1 * jax.random.normal(k3, (cout,), jnp.float32)
    mean = 0.1 * jax.random.normal(k4, (cout,), jnp.float32)
    var = 1.0 + 0.1 * jnp.abs(jax.random.normal(k5, (cout,), jnp.float32))
    return (w, gamma, beta, mean, var)


def init_params(key, num_classes):
    ks = jax.random.split(key, 8)
    params = {
        "b1": init_conv_block(ks[0], 1, 128),
        "b2": init_conv_block(ks[1], 128, 128),
        "b3": init_conv_block(ks[2], 128, 128),
        "b4": init_conv_block(ks[3], 128, 256),
        "b5": init_conv_block(ks[4], 256, 256),
        "b6": init_conv_block(ks[5], 256, 128),
    }
    params["fc_w"] = jax.random.normal(ks[6], (num_classes, 128), jnp.float32) / jnp.sqrt(128.0)
    params["fc_b"] = 0.1 * jax.random.normal(ks[7], (num_classes,), jnp.float32)
    return params


# ----------------------------------------------------------------------------
# Forward (mirrors ConvLarge.forward)
# ----------------------------------------------------------------------------
def conv_large_forward(x_nchw, prep, num_classes):
    x = jnp.transpose(x_nchw, (0, 2, 3, 1))              # NCHW -> NHWC
    for wmat, shift in prep["head"]:
        x = conv_bn_relu(x, wmat, shift)                 # block1..block3
    x = maxpool2x2(x)                                    # MaxPool2d(2,2); Dropout2d(eval)=id
    logits = fused_tail(x, prep["tail"])                 # block4..6 + avgpool + fc
    return logits[:, :num_classes]


if __name__ == "__main__":
    num_classes = 10
    key = jax.random.PRNGKey(0)
    k_inp, k_par = jax.random.split(key)
    x = jax.random.normal(k_inp, (2, 1, 16, 16), jnp.float32)   # NCHW, 1 input channel
    params = init_params(k_par, num_classes)

    prep = prepare_params(params, num_classes, input_hw=(16, 16))
    fwd = jax.jit(functools.partial(conv_large_forward, num_classes=num_classes))
    out = jax.block_until_ready(fwd(x, prep))

    assert out.shape == (2, num_classes)
    assert jnp.all(jnp.isfinite(out))
    print("KERNEL_OK")
</pallas_src>

<mosaic_0001>
module attributes {stable_mosaic.version = 11 : i64} {
  func.func @_matmul_shift_relu_kernel(%arg0: i32, %arg1: memref<96x128xbf16, #tpu.memory_space<vmem>>, %arg2: memref<128x128xbf16, #tpu.memory_space<vmem>>, %arg3: memref<1x128xf32, #tpu.memory_space<vmem>>, %arg4: memref<96x128xbf16, #tpu.memory_space<vmem>>) attributes {dimension_semantics = [#tpu.dimension_semantics<parallel>], iteration_bounds = array<i64: 2>, scalar_prefetch = 0 : i64, scratch_operands = 0 : i64, tpu.core_type = #tpu.core_type<tc>, window_params = [{transform_indices = @transform_0, window_bounds = array<i64: 96, 128>}, {pipeline_mode = #tpu.pipeline_mode<synchronous>, transform_indices = @transform_1, window_bounds = array<i64: 128, 128>}, {pipeline_mode = #tpu.pipeline_mode<synchronous>, transform_indices = @transform_2, window_bounds = array<i64: 1, 128>}, {transform_indices = @transform_3, window_bounds = array<i64: 96, 128>}]} {
    %c0 = arith.constant 0 : index
    %c0_0 = arith.constant 0 : index
    %0 = vector.load %arg1[%c0, %c0_0] : memref<96x128xbf16, #tpu.memory_space<vmem>>, vector<96x128xbf16>
    %c0_1 = arith.constant 0 : index
    %c0_2 = arith.constant 0 : index
    %1 = vector.load %arg2[%c0_1, %c0_2] : memref<128x128xbf16, #tpu.memory_space<vmem>>, vector<128x128xbf16>
    %cst = arith.constant dense<0.000000e+00> : vector<96x128xf32>
    %2 = tpu.matmul %0, %1, %cst {dimension_numbers = #tpu.dot_dimension_numbers<[1], [0], [0], [1], [0, 0, 1, 1], [], []>} : vector<96x128xbf16>, vector<128x128xbf16>, vector<96x128xf32> -> vector<96x128xf32>
    %c0_3 = arith.constant 0 : index
    %c0_4 = arith.constant 0 : index
    %3 = vector.load %arg3[%c0_3, %c0_4] : memref<1x128xf32, #tpu.memory_space<vmem>>, vector<1x128xf32>
    %4 = vector.broadcast %3 : vector<1x128xf32> to vector<96x128xf32>
    %5 = arith.addf %2, %4 : vector<96x128xf32>
    %cst_5 = arith.constant 0.000000e+00 : f32
    %6 = vector.broadcast %cst_5 : f32 to vector<96x128xf32>
    %7 = arith.maximumf %5, %6 : vector<96x128xf32>
    %8 = arith.truncf %7 : vector<96x128xf32> to vector<96x128xbf16>
    %c0_6 = arith.constant 0 : index
    %c0_7 = arith.constant 0 : index
    %9 = vector.load %arg4[%c0_6, %c0_7] : memref<96x128xbf16, #tpu.memory_space<vmem>>, vector<96x128xbf16>
    tpu.vector_store %arg4[%c0_6, %c0_7], %8 {strides = array<i32>} : memref<96x128xbf16, #tpu.memory_space<vmem>>, vector<96x128xbf16>,
    return
  }
  func.func @transform_0(%arg0: i32) -> (i32, i32) {
    %c0_i32 = arith.constant 0 : i32
    %c0_i32_0 = arith.constant 0 : i32
    return %arg0, %c0_i32 : i32, i32
  }
  func.func @transform_1(%arg0: i32) -> (i32, i32) {
    %c0_i32 = arith.constant 0 : i32
    %c0_i32_0 = arith.constant 0 : i32
    %c0_i32_1 = arith.constant 0 : i32
    return %c0_i32, %c0_i32_0 : i32, i32
  }
  func.func @transform_2(%arg0: i32) -> (i32, i32) {
    %c0_i32 = arith.constant 0 : i32
    %c0_i32_0 = arith.constant 0 : i32
    %c0_i32_1 = arith.constant 0 : i32
    return %c0_i32, %c0_i32_0 : i32, i32
  }
  func.func @transform_3(%arg0: i32) -> (i32, i32) {
    %c0_i32 = arith.constant 0 : i32
    %c0_i32_0 = arith.constant 0 : i32
    return %arg0, %c0_i32 : i32, i32
  }
}

module attributes {stable_mosaic.version = 11 : i64} {
  func.func @_matmul_shift_relu_kernel(%arg0: i32, %arg1: memref<80x1152xbf16, #tpu.memory_space<vmem>>, %arg2: memref<1152x128xbf16, #tpu.memory_space<vmem>>, %arg3: memref<1x128xf32, #tpu.memory_space<vmem>>, %arg4: memref<80x128xbf16, #tpu.memory_space<vmem>>) attributes {dimension_semantics = [#tpu.dimension_semantics<parallel>], iteration_bounds = array<i64: 1>, scalar_prefetch = 0 : i64, scratch_operands = 0 : i64, tpu.core_type = #tpu.core_type<tc>, window_params = [{transform_indices = @transform_0, window_bounds = array<i64: 80, 1152>}, {pipeline_mode = #tpu.pipeline_mode<synchronous>, transform_indices = @transform_1, window_bounds = array<i64: 1152, 128>}, {pipeline_mode = #tpu.pipeline_mode<synchronous>, transform_indices = @transform_2, window_bounds = array<i64: 1, 128>}, {transform_indices = @transform_3, window_bounds = array<i64: 80, 128>}]} {
    %c0 = arith.constant 0 : index
    %c0_0 = arith.constant 0 : index
    %0 = vector.load %arg1[%c0, %c0_0] : memref<80x1152xbf16, #tpu.memory_space<vmem>>, vector<80x1152xbf16>
    %c0_1 = arith.constant 0 : index
    %c0_2 = arith.constant 0 : index
    %1 = vector.load %arg2[%c0_1, %c0_2] : memref<1152x128xbf16, #tpu.memory_space<vmem>>, vector<1152x128xbf16>
    %cst = arith.constant dense<0.000000e+00> : vector<80x128xf32>
    %2 = tpu.matmul %0, %1, %cst {dimension_numbers = #tpu.dot_dimension_numbers<[1], [0], [0], [1], [0, 0, 1, 1], [], []>} : vector<80x1152xbf16>, vector<1152x128xbf16>, vector<80x128xf32> -> vector<80x128xf32>
    %c0_3 = arith.constant 0 : index
    %c0_4 = arith.constant 0 : index
    %3 = vector.load %arg3[%c0_3, %c0_4] : memref<1x128xf32, #tpu.memory_space<vmem>>, vector<1x128xf32>
    %4 = vector.broadcast %3 : vector<1x128xf32> to vector<80x128xf32>
    %5 = arith.addf %2, %4 : vector<80x128xf32>
    %cst_5 = arith.constant 0.000000e+00 : f32
    %6 = vector.broadcast %cst_5 : f32 to vector<80x128xf32>
    %7 = arith.maximumf %5, %6 : vector<80x128xf32>
    %8 = arith.truncf %7 : vector<80x128xf32> to vector<80x128xbf16>
    %c0_6 = arith.constant 0 : index
    %c0_7 = arith.constant 0 : index
    %9 = vector.load %arg4[%c0_6, %c0_7] : memref<80x128xbf16, #tpu.memory_space<vmem>>, vector<80x128xbf16>
    tpu.vector_store %arg4[%c0_6, %c0_7], %8 {strides = array<i32>} : memref<80x128xbf16, #tpu.memory_space<vmem>>, vector<80x128xbf16>,
    return
  }
  func.func @transform_0(%arg0: i32) -> (i32, i32) {
    %c0_i32 = arith.constant 0 : i32
    %c0_i32_0 = arith.constant 0 : i32
    return %arg0, %c0_i32 : i32, i32
  }
  func.func @transform_1(%arg0: i32) -> (i32, i32) {
    %c0_i32 = arith.constant 0 : i32
    %c0_i32_0 = arith.constant 0 : i32
    %c0_i32_1 = arith.constant 0 : i32
    return %c0_i32, %c0_i32_0 : i32, i32
  }
  func.func @transform_2(%arg0: i32) -> (i32, i32) {
    %c0_i32 = arith.constant 0 : i32
    %c0_i32_0 = arith.constant 0 : i32
    %c0_i32_1 = arith.constant 0 : i32
    return %c0_i32, %c0_i32_0 : i32, i32
  }
  func.func @transform_3(%arg0: i32) -> (i32, i32) {
    %c0_i32 = arith.constant 0 : i32
    %c0_i32_0 = arith.constant 0 : i32
    return %arg0, %c0_i32 : i32, i32
  }
}

module attributes {stable_mosaic.version = 11 : i64} {
  func.func @_matmul_shift_relu_kernel(%arg0: i32, %arg1: memref<32x1152xbf16, #tpu.memory_space<vmem>>, %arg2: memref<1152x128xbf16, #tpu.memory_space<vmem>>, %arg3: memref<1x128xf32, #tpu.memory_space<vmem>>, %arg4: memref<32x128xbf16, #tpu.memory_space<vmem>>) attributes {dimension_semantics = [#tpu.dimension_semantics<parallel>], iteration_bounds = array<i64: 1>, scalar_prefetch = 0 : i64, scratch_operands = 0 : i64, tpu.core_type = #tpu.core_type<tc>, window_params = [{transform_indices = @transform_0, window_bounds = array<i64: 32, 1152>}, {pipeline_mode = #tpu.pipeline_mode<synchronous>, transform_indices = @transform_1, window_bounds = array<i64: 1152, 128>}, {pipeline_mode = #tpu.pipeline_mode<synchronous>, transform_indices = @transform_2, window_bounds = array<i64: 1, 128>}, {transform_indices = @transform_3, window_bounds = array<i64: 32, 128>}]} {
    %c0 = arith.constant 0 : index
    %c0_0 = arith.constant 0 : index
    %0 = vector.load %arg1[%c0, %c0_0] : memref<32x1152xbf16, #tpu.memory_space<vmem>>, vector<32x1152xbf16>
    %c0_1 = arith.constant 0 : index
    %c0_2 = arith.constant 0 : index
    %1 = vector.load %arg2[%c0_1, %c0_2] : memref<1152x128xbf16, #tpu.memory_space<vmem>>, vector<1152x128xbf16>
    %cst = arith.constant dense<0.000000e+00> : vector<32x128xf32>
    %2 = tpu.matmul %0, %1, %cst {dimension_numbers = #tpu.dot_dimension_numbers<[1], [0], [0], [1], [0, 0, 1, 1], [], []>} : vector<32x1152xbf16>, vector<1152x128xbf16>, vector<32x128xf32> -> vector<32x128xf32>
    %c0_3 = arith.constant 0 : index
    %c0_4 = arith.constant 0 : index
    %3 = vector.load %arg3[%c0_3, %c0_4] : memref<1x128xf32, #tpu.memory_space<vmem>>, vector<1x128xf32>
    %4 = vector.broadcast %3 : vector<1x128xf32> to vector<32x128xf32>
    %5 = arith.addf %2, %4 : vector<32x128xf32>
    %cst_5 = arith.constant 0.000000e+00 : f32
    %6 = vector.broadcast %cst_5 : f32 to vector<32x128xf32>
    %7 = arith.maximumf %5, %6 : vector<32x128xf32>
    %8 = arith.truncf %7 : vector<32x128xf32> to vector<32x128xbf16>
    %c0_6 = arith.constant 0 : index
    %c0_7 = arith.constant 0 : index
    %9 = vector.load %arg4[%c0_6, %c0_7] : memref<32x128xbf16, #tpu.memory_space<vmem>>, vector<32x128xbf16>
    tpu.vector_store %arg4[%c0_6, %c0_7], %8 {strides = array<i32>} : memref<32x128xbf16, #tpu.memory_space<vmem>>, vector<32x128xbf16>,
    return
  }
  func.func @transform_0(%arg0: i32) -> (i32, i32) {
    %c0_i32 = arith.constant 0 : i32
    %c0_i32_0 = arith.constant 0 : i32
    return %arg0, %c0_i32 : i32, i32
  }
  func.func @transform_1(%arg0: i32) -> (i32, i32) {
    %c0_i32 = arith.constant 0 : i32
    %c0_i32_0 = arith.constant 0 : i32
    %c0_i32_1 = arith.constant 0 : i32
    return %c0_i32, %c0_i32_0 : i32, i32
  }
  func.func @transform_2(%arg0: i32) -> (i32, i32) {
    %c0_i32 = arith.constant 0 : i32
    %c0_i32_0 = arith.constant 0 : i32
    %c0_i32_1 = arith.constant 0 : i32
    return %c0_i32, %c0_i32_0 : i32, i32
  }
  func.func @transform_3(%arg0: i32) -> (i32, i32) {
    %c0_i32 = arith.constant 0 : i32
    %c0_i32_0 = arith.constant 0 : i32
    return %arg0, %c0_i32 : i32, i32
  }
}

module attributes {stable_mosaic.version = 11 : i64} {
  func.func @_fused_tail_kernel(%arg0: i32, %arg1: memref<8x512xbf16, #tpu.memory_space<vmem>>, %arg2: memref<512x1024xbf16, #tpu.memory_space<vmem>>, %arg3: memref<1x1024xf32, #tpu.memory_space<vmem>>, %arg4: memref<1024x1024xbf16, #tpu.memory_space<vmem>>, %arg5: memref<1x1024xf32, #tpu.memory_space<vmem>>, %arg6: memref<1024x512xbf16, #tpu.memory_space<vmem>>, %arg7: memref<1x512xf32, #tpu.memory_space<vmem>>, %arg8: memref<512x128xbf16, #tpu.memory_space<vmem>>, %arg9: memref<1x128xf32, #tpu.memory_space<vmem>>, %arg10: memref<8x128xf32, #tpu.memory_space<vmem>>) attributes {dimension_semantics = [#tpu.dimension_semantics<arbitrary>], iteration_bounds = array<i64: 1>, scalar_prefetch = 0 : i64, scratch_operands = 0 : i64, tpu.core_type = #tpu.core_type<tc>, window_params = [{pipeline_mode = #tpu.pipeline_mode<synchronous>, transform_indices = @transform_0, window_bounds = array<i64: 8, 512>}, {pipeline_mode = #tpu.pipeline_mode<synchronous>, transform_indices = @transform_1, window_bounds = array<i64: 512, 1024>}, {pipeline_mode = #tpu.pipeline_mode<synchronous>, transform_indices = @transform_2, window_bounds = array<i64: 1, 1024>}, {pipeline_mode = #tpu.pipeline_mode<synchronous>, transform_indices = @transform_3, window_bounds = array<i64: 1024, 1024>}, {pipeline_mode = #tpu.pipeline_mode<synchronous>, transform_indices = @transform_4, window_bounds = array<i64: 1, 1024>}, {pipeline_mode = #tpu.pipeline_mode<synchronous>, transform_indices = @transform_5, window_bounds = array<i64: 1024, 512>}, {pipeline_mode = #tpu.pipeline_mode<synchronous>, transform_indices = @transform_6, window_bounds = array<i64: 1, 512>}, {pipeline_mode = #tpu.pipeline_mode<synchronous>, transform_indices = @transform_7, window_bounds = array<i64: 512, 128>}, {pipeline_mode = #tpu.pipeline_mode<synchronous>, transform_indices = @transform_8, window_bounds = array<i64: 1, 128>}, {pipeline_mode = #tpu.pipeline_mode<synchronous>, transform_indices = @transform_9, window_bounds = array<i64: 8, 128>}]} {
    %c0 = arith.constant 0 : index
    %c0_0 = arith.constant 0 : index
    %0 = vector.load %arg1[%c0, %c0_0] : memref<8x512xbf16, #tpu.memory_space<vmem>>, vector<8x512xbf16>
    %c0_1 = arith.constant 0 : index
    %c0_2 = arith.constant 0 : index
    %1 = vector.load %arg2[%c0_1, %c0_2] : memref<512x1024xbf16, #tpu.memory_space<vmem>>, vector<512x1024xbf16>
    %cst = arith.constant dense<0.000000e+00> : vector<8x1024xf32>
    %2 = tpu.matmul %0, %1, %cst {dimension_numbers = #tpu.dot_dimension_numbers<[1], [0], [0], [1], [0, 0, 1, 1], [], []>} : vector<8x512xbf16>, vector<512x1024xbf16>, vector<8x1024xf32> -> vector<8x1024xf32>
    %c0_3 = arith.constant 0 : index
    %c0_4 = arith.constant 0 : index
    %3 = vector.load %arg3[%c0_3, %c0_4] : memref<1x1024xf32, #tpu.memory_space<vmem>>, vector<1x1024xf32>
    %4 = vector.broadcast %3 : vector<1x1024xf32> to vector<8x1024xf32>
    %5 = arith.addf %2, %4 : vector<8x1024xf32>
    %cst_5 = arith.constant 0.000000e+00 : f32
    %6 = vector.broadcast %cst_5 : f32 to vector<8x1024xf32>
    %7 = arith.maximumf %5, %6 : vector<8x1024xf32>
    %8 = arith.truncf %7 : vector<8x1024xf32> to vector<8x1024xbf16>
    %c0_6 = arith.constant 0 : index
    %c0_7 = arith.constant 0 : index
    %9 = vector.load %arg4[%c0_6, %c0_7] : memref<1024x1024xbf16, #tpu.memory_space<vmem>>, vector<1024x1024xbf16>
    %cst_8 = arith.constant dense<0.000000e+00> : vector<8x1024xf32>
    %10 = tpu.matmul %8, %9, %cst_8 {dimension_numbers = #tpu.dot_dimension_numbers<[1], [0], [0], [1], [0, 0, 1, 1], [], []>} : vector<8x1024xbf16>, vector<1024x1024xbf16>, vector<8x1024xf32> -> vector<8x1024xf32>
    %c0_9 = arith.constant 0 : index
    %c0_10 = arith.constant 0 : index
    %11 = vector.load %arg5[%c0_9, %c0_10] : memref<1x1024xf32, #tpu.memory_space<vmem>>, vector<1x1024xf32>
    %12 = vector.broadcast %11 : vector<1x1024xf32> to vector<8x1024xf32>
    %13 = arith.addf %10, %12 : vector<8x1024xf32>
    %cst_11 = arith.constant 0.000000e+00 : f32
    %14 = vector.broadcast %cst_11 : f32 to vector<8x1024xf32>
    %15 = arith.maximumf %13, %14 : vector<8x1024xf32>
    %16 = arith.truncf %15 : vector<8x1024xf32> to vector<8x1024xbf16>
    %c0_12 = arith.constant 0 : index
    %c0_13 = arith.constant 0 : index
    %17 = vector.load %arg6[%c0_12, %c0_13] : memref<1024x512xbf16, #tpu.memory_space<vmem>>, vector<1024x512xbf16>
    %cst_14 = arith.constant dense<0.000000e+00> : vector<8x512xf32>
    %18 = tpu.matmul %16, %17, %cst_14 {dimension_numbers = #tpu.dot_dimension_numbers<[1], [0], [0], [1], [0, 0, 1, 1], [], []>} : vector<8x1024xbf16>, vector<1024x512xbf16>, vector<8x512xf32> -> vector<8x512xf32>
    %c0_15 = arith.constant 0 : index
    %c0_16 = arith.constant 0 : index
    %19 = vector.load %arg7[%c0_15, %c0_16] : memref<1x512xf32, #tpu.memory_space<vmem>>, vector<1x512xf32>
    %20 = vector.broadcast %19 : vector<1x512xf32> to vector<8x512xf32>
    %21 = arith.addf %18, %20 : vector<8x512xf32>
    %cst_17 = arith.constant 0.000000e+00 : f32
    %22 = vector.broadcast %cst_17 : f32 to vector<8x512xf32>
    %23 = arith.maximumf %21, %22 : vector<8x512xf32>
    %24 = arith.truncf %23 : vector<8x512xf32> to vector<8x512xbf16>
    %c0_18 = arith.constant 0 : index
    %c0_19 = arith.constant 0 : index
    %25 = vector.load %arg8[%c0_18, %c0_19] : memref<512x128xbf16, #tpu.memory_space<vmem>>, vector<512x128xbf16>
    %cst_20 = arith.constant dense<0.000000e+00> : vector<8x128xf32>
    %26 = tpu.matmul %24, %25, %cst_20 {dimension_numbers = #tpu.dot_dimension_numbers<[1], [0], [0], [1], [0, 0, 1, 1], [], []>} : vector<8x512xbf16>, vector<512x128xbf16>, vector<8x128xf32> -> vector<8x128xf32>
    %c0_21 = arith.constant 0 : index
    %c0_22 = arith.constant 0 : index
    %27 = vector.load %arg9[%c0_21, %c0_22] : memref<1x128xf32, #tpu.memory_space<vmem>>, vector<1x128xf32>
    %28 = vector.broadcast %27 : vector<1x128xf32> to vector<8x128xf32>
    %29 = arith.addf %26, %28 : vector<8x128xf32>
    %c0_23 = arith.constant 0 : index
    %c0_24 = arith.constant 0 : index
    %30 = vector.load %arg10[%c0_23, %c0_24] : memref<8x128xf32, #tpu.memory_space<vmem>>, vector<8x128xf32>
    tpu.vector_store %arg10[%c0_23, %c0_24], %29 {strides = array<i32>} : memref<8x128xf32, #tpu.memory_space<vmem>>, vector<8x128xf32>,
    return
  }
  func.func @transform_0(%arg0: i32) -> (i32, i32) {
    %c0_i32 = arith.constant 0 : i32
    %c0_i32_0 = arith.constant 0 : i32
    %c0_i32_1 = arith.constant 0 : i32
    return %c0_i32, %c0_i32_0 : i32, i32
  }
  func.func @transform_1(%arg0: i32) -> (i32, i32) {
    %c0_i32 = arith.constant 0 : i32
    %c0_i32_0 = arith.constant 0 : i32
    %c0_i32_1 = arith.constant 0 : i32
    return %c0_i32, %c0_i32_0 : i32, i32
  }
  func.func @transform_2(%arg0: i32) -> (i32, i32) {
    %c0_i32 = arith.constant 0 : i32
    %c0_i32_0 = arith.constant 0 : i32
    %c0_i32_1 = arith.constant 0 : i32
    return %c0_i32, %c0_i32_0 : i32, i32
  }
  func.func @transform_3(%arg0: i32) -> (i32, i32) {
    %c0_i32 = arith.constant 0 : i32
    %c0_i32_0 = arith.constant 0 : i32
    %c0_i32_1 = arith.constant 0 : i32
    return %c0_i32, %c0_i32_0 : i32, i32
  }
  func.func @transform_4(%arg0: i32) -> (i32, i32) {
    %c0_i32 = arith.constant 0 : i32
    %c0_i32_0 = arith.constant 0 : i32
    %c0_i32_1 = arith.constant 0 : i32
    return %c0_i32, %c0_i32_0 : i32, i32
  }
  func.func @transform_5(%arg0: i32) -> (i32, i32) {
    %c0_i32 = arith.constant 0 : i32
    %c0_i32_0 = arith.constant 0 : i32
    %c0_i32_1 = arith.constant 0 : i32
    return %c0_i32, %c0_i32_0 : i32, i32
  }
  func.func @transform_6(%arg0: i32) -> (i32, i32) {
    %c0_i32 = arith.constant 0 : i32
    %c0_i32_0 = arith.constant 0 : i32
    %c0_i32_1 = arith.constant 0 : i32
    return %c0_i32, %c0_i32_0 : i32, i32
  }
  func.func @transform_7(%arg0: i32) -> (i32, i32) {
    %c0_i32 = arith.constant 0 : i32
    %c0_i32_0 = arith.constant 0 : i32
    %c0_i32_1 = arith.constant 0 : i32
    return %c0_i32, %c0_i32_0 : i32, i32
  }
  func.func @transform_8(%arg0: i32) -> (i32, i32) {
    %c0_i32 = arith.constant 0 : i32
    %c0_i32_0 = arith.constant 0 : i32
    %c0_i32_1 = arith.constant 0 : i32
    return %c0_i32, %c0_i32_0 : i32, i32
  }
  func.func @transform_9(%arg0: i32) -> (i32, i32) {
    %c0_i32 = arith.constant 0 : i32
    %c0_i32_0 = arith.constant 0 : i32
    %c0_i32_1 = arith.constant 0 : i32
    return %c0_i32, %c0_i32_0 : i32, i32
  }
}

</mosaic_0001>

<bundles_post_ra>
// kernel: conv_large_forward.4
= control target key start
LH: loop header
LB: loop body
LE: loop exit
PB: predicated region body
PF: predicated region fallthrough
CT: control target
= control target key end

     0   :  { %8 = vsyncpa [#allocation3], 0  ;;  %s951_s0 = inlined_call_operand.vmem [shape: bf16[192,128], index: 0, kind: input, shape index: {}]   ;;  %s952_s1 = inlined_call_operand.hbm [shape: bf16[128,128], index: 1, kind: input, shape index: {}]   ;;  %s953_s2 = inlined_call_operand.hbm [shape: f32[1,128], index: 2, kind: input, shape index: {}]   ;;  %s954_s3 = inlined_call_operand.vmem [shape: bf16[192,128], index: 3, kind: output, shape index: {}]  }
   0x1   :  { %9 = vsyncpa [#allocation5], 0  ;;  %s839_s12 = smov 0  }
   0x2 LB: > { %s553_s13 = sadd.s32 4294967295, %s813_s12   ;;  %p555_p0 = scmp.ge.s32.totalorder %s813_s12, 1  ;;  %s813_s12 = sphi %s839_s12, %s15_s12  }
   0x3   : > { %p114_p1 = scmp.lt.s32.totalorder %s813_s12, 3  ;;  %s815_s14 = smov [#allocation2]  }
   0x4   : > { %s126_s15 = sshll.u32 %s815_s14, 4  ;;  %p853_p3 = scmp.eq.s32.totalorder %s553_s13, 0  ;;  %s127_s15 = int_to_ptr.vmem [resolvable:$true] %s126_s15 }
   0x5   : > { %p847_p2 = pnand %p555_p0, %p114_p1  ;;  %s816_s18 = smov [#allocation4]  }
   0x6   : > { %s959_s17 = scalar_select %p853_p3, 1, 0 }
   0x7   : > { %s958_s16 = scalar_select %p847_p2, 1, 0 }
   0x8   : > { %p706_p4 = pneg %p847_p2  ;;  %s140_s19 = sshll.u32 %s816_s18, 4  ;;  %s865_s19 = int_to_ptr.vmem [resolvable:$true] %s140_s19 }
   0x9   : > { %s743_s23 = scalar_lea.hbm %s952_s1, 1024 }
   0xa   : > { %p861_p5 = pnand %p853_p3, %p706_p4  ;;  %p744_p6 = scmp.ne.s32.totalorder %s952_s1, %s743_s23 }
   0xb   : > { %p750_p10 = scmp.lt.u32.totalorder %s743_s23, %s952_s1 }
   0xc   : > { %p745_p7 = pneg %p861_p5 }
   0xe   : > { %p746_p8 = pnand %p745_p7, %p744_p6 }
  0x10   : > { %p747_p9 = pneg %p746_p8 }
  0x12   : > { %p752_p11 = pnand %p750_p10, %p747_p9 }
  0x14   : > { %755 = shalt.err (!%p752_p11)
}
  0x15   : > { %s756_s28 = scalar_lea.vmem %s127_s15, 1024  ;;  %p764_p1 = scmp.lt.s32.totalorder %s127_s15, %s127_s15 }
  0x16   : > { %p757_p12 = scmp.ne.s32.totalorder %s127_s15, %s756_s28  ;;  %p765_p4 = scmp.lt.s32.totalorder %s756_s28, %s756_s28 }
  0x18   : > { %p759_p13 = pnand %p757_p12, %p745_p7  ;;  %p766_p3 = por %p765_p4, %p764_p1 }
  0x1a   : > { %p760_p0 = pneg %p759_p13 }
  0x1c   : > { %p767_p2 = pnand %p766_p3, %p760_p0 }
  0x1e   : > { %770 = shalt.err (!%p767_p2)
}
  0x1f   : > { %s817_s29 = smov 64   ;;  %s818_s30 = smov 4  }
  0x20   : > { %709 = dma.hbm_to_vmem [thread:$0]  (!%p861_p5), %s952_s1, 1024, %s127_s15, [#allocation3], %s817_s29, %s817_s29, %s818_s30  }
  0x21   : > { %s771_s8 = scalar_lea.hbm %s953_s2, 16 }
  0x22   : > { %p772_p6 = scmp.ne.s32.totalorder %s953_s2, %s771_s8  ;;  %p778_p8 = scmp.lt.u32.totalorder %s771_s8, %s953_s2 }
  0x24   : > { %p774_p2 = pnand %p772_p6, %p745_p7 }
  0x26   : > { %p775_p3 = pneg %p774_p2 }
  0x28   : > { %p780_p9 = pnand %p778_p8, %p775_p3 }
  0x2a   : > { %783 = shalt.err (!%p780_p9)
}
  0x2b   : > { %s784_s15 = scalar_lea.vmem %s865_s19, 16  ;;  %s791_s18 = scalar_lea.vmem %s865_s19, 32 }
  0x2c   : > { %p785_p10 = scmp.ne.s32.totalorder %s865_s19, %s784_s15  ;;  %p792_p13 = scmp.lt.s32.totalorder %s865_s19, %s865_s19 }
  0x2d   : > { %p793_p0 = scmp.lt.s32.totalorder %s791_s18, %s784_s15 }
  0x2e   : > { %p787_p11 = pnand %p785_p10, %p745_p7 }
  0x2f   : > { %p794_p1 = por %p793_p0, %p792_p13 }
  0x30   : > { %p788_p12 = pneg %p787_p11 }
  0x32   : > { %p795_p4 = pnand %p794_p1, %p788_p12 }
  0x34   : > { %798 = shalt.err (!%p795_p4)
}
  0x35   : > { %712 = dma.hbm_to_vmem [thread:$0]  (!%p861_p5), %s953_s2, 16, %s865_s19, [#allocation5]  }
  0x36   : > { %p961_p6 = scmp.ne.s32.totalorder %s958_s16, 0 }
  0x37   : > { %p962_p7 = scmp.ne.s32.totalorder (!%p961_p6), %s959_s17, 0 }
  0x38   : > { %162 = sbr.rel (%p961_p6) target bundleno = 329 (0x149), region = 32 }
  0x3f   : > { %804 = dma.done.wait (%p962_p7), [#allocation3], 1024  }
  0x40   : > { %806 = vsyncadd (%p962_p7), [#allocation3], 4294966272 }
  0x41   : > { %808 = dma.done.wait (%p962_p7), [#allocation5], 16  }
  0x42   : > { %810 = vsyncadd (%p962_p7), [#allocation5], 4294967280  ;;  %s190_s20 = smul.u32 12, %s553_s13  ;;  %v729_v0 = vld [vmem:[#allocation2] sm:$0xff]   ;;  %v730_v1 = vld [vmem:[#allocation2 + $0x8] sm:$0xff]  }
  0x43   : > { %682 = vmatprep.subr.bf16.mxu1 %v729_v0  ;;  %654 = vmatprep.subr.bf16.mxu0 %v729_v0  ;;  %v731_v2 = vld [vmem:[#allocation2 + $0x10] sm:$0xff]   ;;  %v732_v3 = vld [vmem:[#allocation2 + $0x18] sm:$0xff]   ;;  %v733_v6 = vld [vmem:[#allocation2 + $0x20] sm:$0xff]  }
  0x44   : > { %p191_p2 = scmp.lt.s32.totalorder %s190_s20, 23  ;;  %690 = vmatpush3.bf16.msra.mxu1 %v729_v0  ;;  %655 = vmatpush3.bf16.msra.mxu0 %v729_v0  ;;  %v734_v7 = vld [vmem:[#allocation2 + $0x28] sm:$0xff]   ;;  %v735_v8 = vld [vmem:[#allocation2 + $0x30] sm:$0xff]   ;;  %v736_v9 = vld [vmem:[#allocation2 + $0x38] sm:$0xff]  }
  0x45   : > { %683 = vmatprep.subr.bf16.mxu1 %v730_v1  ;;  %656 = vmatprep.subr.bf16.mxu0 %v730_v1  ;;  %v564_v14 = vld [vmem:[#allocation4] ss:$0 sm:$0xff] }
  0x46   : > { %s964_s20 = smov (!%p191_p2, %s190_s20), 23 }
  0x47   : > { %s562_s16 = sshll.u32 %s964_s20, 2 }
  0x48   : > { %s935_s13 = scalar_lea.vmem %s951_s0, %s562_s16  ;;  %691 = vmatpush3.bf16.msra.mxu1 %v730_v1  ;;  %657 = vmatpush3.bf16.msra.mxu0 %v730_v1  ;;  %s200_s25 = scalar_lea.vmem %s954_s3, %s562_s16 }
  0x49   : > { %684 = vmatprep.subr.bf16.mxu1 %v731_v2  ;;  %658 = vmatprep.subr.bf16.mxu0 %v731_v2  ;;  %v737_v4 = vld [vmem:[%s935_s13 + $0x10] sm:$0xff]   ;;  %v739_v5 = vld [vmem:[%s935_s13] sm:$0xff]   ;;  %v738_v10 = vld [vmem:[%s935_s13 + $0x18] sm:$0xff]  }
  0x4a   : > { %674 = vmatprep.mubr.bf16.mxu1 %v737_v4  ;;  %670 = vmatprep.mubr.bf16.mxu0 %v739_v5  ;;  %v740_v11 = vld [vmem:[%s935_s13 + $0x8] sm:$0xff]   ;;  %v741_v12 = vld [vmem:[%s935_s13 + $0x20] sm:$0xff]  }
  0x4b   : > { %v742_v13 = vld [vmem:[%s935_s13 + $0x28] sm:$0xff]  }
  0x4c   : > { %692 = vmatpush3.bf16.msra.mxu1 %v731_v2  ;;  %659 = vmatpush3.bf16.msra.mxu0 %v731_v2 }
  0x4d   : > { %685 = vmatprep.subr.bf16.mxu1 %v732_v3  ;;  %660 = vmatprep.subr.bf16.mxu0 %v732_v3 }
  0x50   : > { %693 = vmatpush3.bf16.msra.mxu1 %v732_v3  ;;  %661 = vmatpush3.bf16.msra.mxu0 %v732_v3 }
  0x51   : > { %686 = vmatprep.subr.bf16.mxu1 %v733_v6  ;;  %662 = vmatprep.subr.bf16.mxu0 %v733_v6 }
  0x54   : > { %694 = vmatpush3.bf16.msra.mxu1 %v733_v6  ;;  %663 = vmatpush3.bf16.msra.mxu0 %v733_v6 }
  0x55   : > { %687 = vmatprep.subr.bf16.mxu1 %v734_v7  ;;  %664 = vmatprep.subr.bf16.mxu0 %v734_v7 }
  0x58   : > { %695 = vmatpush3.bf16.msra.mxu1 %v734_v7  ;;  %665 = vmatpush3.bf16.msra.mxu0 %v734_v7 }
  0x59   : > { %688 = vmatprep.subr.bf16.mxu1 %v735_v8  ;;  %666 = vmatprep.subr.bf16.mxu0 %v735_v8 }
  0x5c   : > { %696 = vmatpush3.bf16.msra.mxu1 %v735_v8  ;;  %667 = vmatpush3.bf16.msra.mxu0 %v735_v8 }
  0x5d   : > { %689 = vmatprep.subr.bf16.mxu1 %v736_v9  ;;  %668 = vmatprep.subr.bf16.mxu0 %v736_v9 }
  0x60   : > { %697 = vmatpush3.bf16.msra.mxu1 %v736_v9  ;;  %669 = vmatpush3.bf16.msra.mxu0 %v736_v9 }
  0x63   : > { %675 = vmatmul.mubr.bf16.vlgmr.msra.gmra.mrb[0].mxu1 %v738_v10  ;;  %671 = vmatmul.mubr.bf16.vlgmr.msra.gmra.mrb[0].mxu0 %v740_v11 }
  0x64   : > { %678 = vmatprep.mubr.bf16.mxu1 %v741_v12 }
  0x6b   : > { %679 = vmatmul.mubr.bf16.gmra.mrb[4].mxu1 %v742_v13 }
 0x136   : > { %v676_v15 = vpop.f32.mrb[0].mxu1  ;;  %v672_v16 = vpop.f32.mrb[0].mxu0 }
 0x137   : > { %v381_v17 = vadd.f32 %v676_v15, %v564_v14  ;;  %v372_v18 = vpop.f32.mrb[1].mxu1  ;;  %v365_v19 = vadd.f32 %v672_v16, %v564_v14  ;;  %v356_v20 = vpop.f32.mrb[1].mxu0 }
 0x138   : > { %v373_v21 = vadd.f32 %v564_v14, %v372_v18  ;;  %v677_v22 = vpop.f32.mrb[2].mxu1  ;;  %v357_v23 = vadd.f32 %v564_v14, %v356_v20  ;;  %v673_v24 = vpop.f32.mrb[2].mxu0 }
 0x139   : > { %v384_v25 = vadd.f32 %v677_v22, %v564_v14  ;;  %v375_v26 = vpop.f32.mrb[3].mxu1  ;;  %v405_v27 = vmax.f32 %v365_v19, 0.0  ;;  %v368_v28 = vadd.f32 %v673_v24, %v564_v14  ;;  %v359_v29 = vpop.f32.mrb[3].mxu0  ;;  %v409_v33 = vmax.f32 %v381_v17, 0.0 }
 0x13a   : > { %v376_v30 = vadd.f32 %v564_v14, %v375_v26  ;;  %v403_v31 = vmax.f32 %v357_v23, 0.0  ;;  %v360_v32 = vadd.f32 %v564_v14, %v359_v29  ;;  %v407_v36 = vmax.f32 %v373_v21, 0.0 }
 0x13b   : > { %v410_v34 = vmax.f32 %v384_v25, 0.0  ;;  %v406_v35 = vmax.f32 %v368_v28, 0.0 }
 0x13c   : > { %v408_v37 = vmax.f32 %v376_v30, 0.0  ;;  %v404_v38 = vmax.f32 %v360_v32, 0.0 }
 0x13d   : > { %v623_v39 = vpack.c.bf16 %v410_v34, %v409_v33  ;;  %v613_v40 = vpack.c.bf16 %v406_v35, %v405_v27 }
 0x13e   : > { %v618_v41 = vpack.c.bf16 %v408_v37, %v407_v36  ;;  %v608_v42 = vpack.c.bf16 %v404_v38, %v403_v31  ;;  %v680_v43 = vpop.f32.mrb[4].mxu1 }
 0x13f   : > { %637 = vst [vmem:[%s200_s25 + $0x18] sm:$0xff] %v623_v39   ;;  %635 = vst [vmem:[%s200_s25 + $0x8] sm:$0xff] %v613_v40   ;;  %v397_v44 = vadd.f32 %v680_v43, %v564_v14  ;;  %v388_v45 = vpop.f32.mrb[5].mxu1 }
 0x140   : > { %636 = vst [vmem:[%s200_s25 + $0x10] sm:$0xff] %v618_v41   ;;  %609 = vst [vmem:[%s200_s25] sm:$0xff] %v608_v42   ;;  %v389_v46 = vadd.f32 %v564_v14, %v388_v45  ;;  %v681_v47 = vpop.f32.mrb[6].mxu1 }
 0x141   : > { %v400_v48 = vadd.f32 %v681_v47, %v564_v14  ;;  %v391_v49 = vpop.f32.mrb[7].mxu1  ;;  %v413_v51 = vmax.f32 %v397_v44, 0.0 }
 0x142   : > { %v392_v50 = vadd.f32 %v564_v14, %v391_v49  ;;  %v411_v53 = vmax.f32 %v389_v46, 0.0 }
 0x143   : > { %v414_v52 = vmax.f32 %v400_v48, 0.0 }
 0x144   : > { %v412_v54 = vmax.f32 %v392_v50, 0.0 }
 0x145   : > { %v633_v55 = vpack.c.bf16 %v414_v52, %v413_v51 }
 0x146   : > { %v628_v56 = vpack.c.bf16 %v412_v54, %v411_v53 }
 0x147   : > { %639 = vst [vmem:[%s200_s25 + $0x28] sm:$0xff] %v633_v55  }
 0x148   : > { %638 = vst [vmem:[%s200_s25 + $0x20] sm:$0xff] %v628_v56  }
 0x149 PF: > { %s15_s12 = sadd.s32 1, %s813_s12  }
 0x14a   : > { %p12_p5 = scmp.ge.s32.totalorder %s15_s12, 4  }
 0x14c   :  { %14 = sbr.rel (!%p12_p5) target bundleno = 2 (0x2), region = 71 }
 0x153   :  { %497 = vsyncpa [#allocation3], 1 }
 0x154   :  { %499 = vsyncpa [#allocation3 + $0x1], 1 }
 0x155   :  { %500 = vsyncpa [#allocation5], 1 }

// kernel: conv_large_forward.5
= control target key start
LH: loop header
LB: loop body
LE: loop exit
PB: predicated region body
PF: predicated region fallthrough
CT: control target
= control target key end

     0   :  { %8 = vsyncpa [#allocation3], 0  ;;  %s1904_s12 = smov [#allocation2]   ;;  %s2175_s0 = inlined_call_operand.vmem [shape: bf16[80,1152], index: 0, kind: input, shape index: {}]   ;;  %s2176_s1 = inlined_call_operand.hbm [shape: bf16[1152,128], index: 1, kind: input, shape index: {}]   ;;  %s2177_s2 = inlined_call_operand.vmem [shape: f32[1,128], index: 2, kind: input, shape index: {}]   ;;  %s2178_s3 = inlined_call_operand.vmem [shape: bf16[80,128], index: 3, kind: output, shape index: {}]  }
   0x1   :  { %s16_s13 = sshll.u32 %s1904_s12, 4  ;;  %s1880_s16 = scalar_lea.hbm %s2176_s1, 9216  ;;  %s17_s13 = int_to_ptr.vmem [resolvable:$true] %s16_s13 }
   0x2   :  { %p1881_p0 = scmp.ne.s32.totalorder %s2176_s1, %s1880_s16  ;;  %p1884_p1 = scmp.lt.u32.totalorder %s1880_s16, %s2176_s1 }
   0x4   :  { %p1886_p2 = pnand %p1884_p1, %p1881_p0 }
   0x6   :  { %1889 = shalt.err (!%p1886_p2)
}
   0x7   :  { %s1890_s21 = scalar_lea.vmem %s17_s13, 9216  ;;  %p1895_p4 = scmp.lt.s32.totalorder %s17_s13, %s17_s13 }
   0x8   :  { %p1891_p3 = scmp.ne.s32.totalorder %s17_s13, %s1890_s21  ;;  %p1896_p5 = scmp.lt.s32.totalorder %s1890_s21, %s1890_s21 }
   0xa   :  { %p1897_p6 = por %p1896_p5, %p1895_p4 }
   0xc   :  { %p1898_p7 = pnand %p1897_p6, %p1891_p3 }
   0xe   :  { %1901 = shalt.err (!%p1898_p7)
}
   0xf   :  { %s1905_s22 = smov 64   ;;  %s1906_s23 = smov 4  }
  0x10   :  { %22 = dma.hbm_to_vmem [thread:$0]  %s2176_s1, 9216, %s17_s13, [#allocation3], %s1905_s22, %s1905_s22, %s1906_s23  }
  0x11   :  { %1902 = dma.done.wait [#allocation3], 9216  }
  0x12   :  { %1903 = vsyncadd [#allocation3], 4294958080  ;;  %v1743_v0 = vld [vmem:[#allocation2 + $0x40] sm:$0xff]   ;;  %v1747_v4 = vld [vmem:[#allocation2 + $0x48] sm:$0xff]   ;;  %vm1908_vm0 = vmmov 0  }
  0x13   :  { %v1744_v1 = vld [vmem:[#allocation2 + $0xc0] sm:$0xff]   ;;  %1489 = vmatprep.subr.bf16.mxu0 %v1743_v0  ;;  %v1748_v5 = vld [vmem:[#allocation2 + $0xc8] sm:$0xff]   ;;  %v1751_v8 = vld [vmem:[#allocation2 + $0x50] sm:$0xff]  }
  0x14   :  { %v1745_v2 = vld [vmem:[#allocation2] sm:$0xff]   ;;  %1535 = vmatprep.subr.bf16.mxu1 %v1744_v1  ;;  %v1749_v6 = vld [vmem:[#allocation2 + $0x8] sm:$0xff]   ;;  %v1752_v9 = vld [vmem:[#allocation2 + $0xd0] sm:$0xff]  }
  0x15   :  { %v1746_v3 = vld [vmem:[#allocation2 + $0x80] sm:$0xff]   ;;  %1490 = vmatpush3.bf16.msra.mxu0 %v1745_v2  ;;  %v1750_v7 = vld [vmem:[#allocation2 + $0x88] sm:$0xff]   ;;  %v1753_v10 = vld [vmem:[#allocation2 + $0x10] sm:$0xff]  }
  0x16   :  { %1536 = vmatpush3.bf16.msra.mxu1 %v1746_v3  ;;  %1491 = vmatprep.subr.bf16.mxu0 %v1747_v4  ;;  %v1754_v11 = vld [vmem:[#allocation2 + $0x90] sm:$0xff]   ;;  %v1755_v12 = vld [vmem:[#allocation2 + $0x58] sm:$0xff]   ;;  %v1759_v16 = vld [vmem:[#allocation2 + $0x60] sm:$0xff]  }
  0x17   :  { %1537 = vmatprep.subr.bf16.mxu1 %v1748_v5  ;;  %v1756_v13 = vld [vmem:[#allocation2 + $0xd8] sm:$0xff]   ;;  %v1760_v17 = vld [vmem:[#allocation2 + $0xe0] sm:$0xff]   ;;  %v1763_v20 = vld [vmem:[#allocation2 + $0x68] sm:$0xff]  }
  0x18   :  { %v1757_v14 = vld [vmem:[#allocation2 + $0x18] sm:$0xff]   ;;  %v1761_v18 = vld [vmem:[#allocation2 + $0x20] sm:$0xff]   ;;  %v1764_v21 = vld [vmem:[#allocation2 + $0xe8] sm:$0xff]  }
  0x19   :  { %1492 = vmatpush3.bf16.msra.mxu0 %v1749_v6  ;;  %v1758_v15 = vld [vmem:[#allocation2 + $0x98] sm:$0xff]   ;;  %v1762_v19 = vld [vmem:[#allocation2 + $0xa0] sm:$0xff]   ;;  %v1765_v22 = vld [vmem:[#allocation2 + $0x28] sm:$0xff]  }
  0x1a   :  { %1538 = vmatpush3.bf16.msra.mxu1 %v1750_v7  ;;  %1493 = vmatprep.subr.bf16.mxu0 %v1751_v8  ;;  %v1766_v23 = vld [vmem:[#allocation2 + $0xa8] sm:$0xff]   ;;  %v1767_v24 = vld [vmem:[#allocation2 + $0x70] sm:$0xff]   ;;  %v1771_v28 = vld [vmem:[#allocation2 + $0x78] sm:$0xff]  }
  0x1b   :  { %1539 = vmatprep.subr.bf16.mxu1 %v1752_v9  ;;  %v1768_v25 = vld [vmem:[#allocation2 + $0xf0] sm:$0xff]   ;;  %v1772_v29 = vld [vmem:[#allocation2 + $0xf8] sm:$0xff]   ;;  %v1775_v32 = vld [vmem:[%s2175_s0] ss:$36 sps:$4 sm:$0xff]  }
  0x1c   :  { %v1769_v26 = vld [vmem:[#allocation2 + $0x30] sm:$0xff]   ;;  %v1773_v30 = vld [vmem:[#allocation2 + $0x38] sm:$0xff]   ;;  %v1777_v33 = vld [vmem:[%s2175_s0 + $0x4] ss:$36 sps:$4 sm:$0xff]  }
  0x1d   :  { %1494 = vmatpush3.bf16.msra.mxu0 %v1753_v10  ;;  %v1770_v27 = vld [vmem:[#allocation2 + $0xb0] sm:$0xff]   ;;  %v1774_v31 = vld [vmem:[#allocation2 + $0xb8] sm:$0xff]   ;;  %v1778_v34 = vld [vmem:[%s2175_s0 + $0x8] ss:$36 sps:$4 sm:$0xff]   ;;  %924 = vmatprep.mubr.bf16.mxu0 %v1777_v33 }
  0x1e   :  { %1540 = vmatpush3.bf16.msra.mxu1 %v1754_v11  ;;  %1495 = vmatprep.subr.bf16.mxu0 %v1755_v12  ;;  %v1780_v35 = vld [vmem:[%s2175_s0 + $0xc] ss:$36 sps:$4 sm:$0xff]   ;;  %v1781_v36 = vld [vmem:[#allocation2 + $0x140] sm:$0xff]   ;;  %v1787_v41 = vld [vmem:[%s2175_s0 + $0x54] ss:$36 sps:$4 sm:$0xff]  }
  0x1f   :  { %1541 = vmatprep.subr.bf16.mxu1 %v1756_v13  ;;  %997 = vmatprep.mubr.bf16.mxu1 %v1780_v35  ;;  %v1782_v37 = vld [vmem:[#allocation2 + $0x100] sm:$0xff]   ;;  %v1783_v38 = vld [vmem:[#allocation2 + $0x148] sm:$0xff]   ;;  %v1790_v43 = vld [vmem:[%s2175_s0 + $0x50] ss:$36 sps:$4 sm:$0xff]  }
  0x20   :  { %v1784_v39 = vld [vmem:[#allocation2 + $0x108] sm:$0xff]   ;;  %v1791_v44 = vld [vmem:[#allocation2 + $0x1c0] sm:$0xff]   ;;  %v1793_v46 = vld [vmem:[#allocation2 + $0x150] sm:$0xff]  }
  0x21   :  { %1496 = vmatpush3.bf16.msra.mxu0 %v1757_v14  ;;  %v1785_v40 = vld [vmem:[%s2175_s0 + $0x4c] ss:$36 sps:$4 sm:$0xff]   ;;  %v1792_v45 = vld [vmem:[#allocation2 + $0x180] sm:$0xff]   ;;  %v1797_v50 = vld [vmem:[%s2175_s0 + $0x94] ss:$36 sps:$4 sm:$0xff]  }
  0x22   :  { %1542 = vmatpush3.bf16.msra.mxu1 %v1758_v15  ;;  %1497 = vmatprep.subr.bf16.mxu0 %v1759_v16  ;;  %v1789_v42 = vld [vmem:[%s2175_s0 + $0x48] ss:$36 sps:$4 sm:$0xff]   ;;  %v1794_v47 = vld [vmem:[#allocation2 + $0x110] sm:$0xff]   ;;  %v1799_v51 = vld [vmem:[%s2175_s0 + $0x9c] ss:$36 sps:$4 sm:$0xff]  }
  0x23   :  { %1543 = vmatprep.subr.bf16.mxu1 %v1760_v17  ;;  %v1795_v48 = vld [vmem:[#allocation2 + $0x1c8] sm:$0xff]   ;;  %v1801_v52 = vld [vmem:[#allocation2 + $0x158] sm:$0xff]   ;;  %v1802_v53 = vld [vmem:[%s2175_s0 + $0x90] ss:$36 sps:$4 sm:$0xff]  }
  0x24   :  { %v1796_v49 = vld [vmem:[#allocation2 + $0x188] sm:$0xff]   ;;  %v1803_v54 = vld [vmem:[%s2175_s0 + $0x98] ss:$36 sps:$4 sm:$0xff]   ;;  %v1805_v56 = vld [vmem:[#allocation2 + $0x1d0] sm:$0xff]  }
  0x25   :  { %1498 = vmatpush3.bf16.msra.mxu0 %v1761_v18  ;;  %v1804_v55 = vld [vmem:[#allocation2 + $0x118] sm:$0xff]   ;;  %v1806_v57 = vld [vmem:[#allocation2 + $0x190] sm:$0xff]   ;;  %v1807_v58 = vld [vmem:[#allocation2 + $0x160] sm:$0xff]  }
  0x26   :  { %1544 = vmatpush3.bf16.msra.mxu1 %v1762_v19  ;;  %1499 = vmatprep.subr.bf16.mxu0 %v1763_v20  ;;  %v1808_v59 = vld [vmem:[#allocation2 + $0x1d8] sm:$0xff]   ;;  %v1809_v60 = vld [vmem:[#allocation2 + $0x120] sm:$0xff]   ;;  %v1818_v3 = vld [vmem:[#allocation2 + $0x168] sm:$0xff]  }
  0x27   :  { %1545 = vmatprep.subr.bf16.mxu1 %v1764_v21  ;;  %v1810_v61 = vld [vmem:[#allocation2 + $0x198] sm:$0xff]   ;;  %v1813_v63 = vld [vmem:[%s2175_s0 + $0xe4] ss:$36 sps:$4 sm:$0xff]   ;;  %v1823_v8 = vld [vmem:[#allocation2 + $0x170] sm:$0xff]  }
  0x28   :  { %v1811_v62 = vld [vmem:[%s2175_s0 + $0xdc] ss:$36 sps:$4 sm:$0xff]   ;;  %v1820_v5 = vld [vmem:[#allocation2 + $0x128] sm:$0xff]   ;;  %v1828_v11 = vld [vmem:[#allocation2 + $0x130] sm:$0xff]  }
  0x29   :  { %1500 = vmatpush3.bf16.msra.mxu0 %v1765_v22  ;;  %v1815_v0 = vld [vmem:[%s2175_s0 + $0xd8] ss:$36 sps:$4 sm:$0xff]   ;;  %v1816_v1 = vld [vmem:[%s2175_s0 + $0xe0] ss:$36 sps:$4 sm:$0xff]   ;;  %v1821_v6 = vld [vmem:[#allocation2 + $0x1e8] sm:$0xff]   ;;  %v1907_v22 = vmov 0.0  }
  0x2a   :  { %1546 = vmatpush3.bf16.msra.mxu1 %v1766_v23  ;;  %1501 = vmatprep.subr.bf16.mxu0 %v1767_v24  ;;  %v1817_v2 = vld [vmem:[#allocation2 + $0x1e0] sm:$0xff]   ;;  %v1822_v7 = vld [vmem:[#allocation2 + $0x1a8] sm:$0xff]   ;;  %v1831_v14 = vld [vmem:[#allocation2 + $0x1f0] sm:$0xff]  }
  0x2b   :  { %1547 = vmatprep.subr.bf16.mxu1 %v1768_v25  ;;  %v1819_v4 = vld [vmem:[#allocation2 + $0x1a0] sm:$0xff]   ;;  %v1826_v10 = vld [vmem:[%s2175_s0 + $0x12c] ss:$36 sps:$4 sm:$0xff]   ;;  %v1833_v16 = vld [vmem:[#allocation2 + $0x178] sm:$0xff]  }
  0x2c   :  { %v1824_v9 = vld [vmem:[%s2175_s0 + $0x124] ss:$36 sps:$4 sm:$0xff]   ;;  %v1832_v15 = vld [vmem:[#allocation2 + $0x1b0] sm:$0xff]   ;;  %v1834_v17 = vld [vmem:[#allocation2 + $0x138] sm:$0xff]  }
  0x2d   :  { %1502 = vmatpush3.bf16.msra.mxu0 %v1769_v26  ;;  %v1829_v12 = vld [vmem:[%s2175_s0 + $0x120] ss:$36 sps:$4 sm:$0xff]   ;;  %v1830_v13 = vld [vmem:[%s2175_s0 + $0x128] ss:$36 sps:$4 sm:$0xff]   ;;  %v1835_v18 = vld [vmem:[#allocation2 + $0x1f8] sm:$0xff]  }
  0x2e   :  { %1548 = vmatpush3.bf16.msra.mxu1 %v1770_v27  ;;  %1503 = vmatprep.subr.bf16.mxu0 %v1771_v28  ;;  %v1836_v19 = vld [vmem:[#allocation2 + $0x1b8] sm:$0xff]   ;;  %v1837_v20 = vld [vmem:[%s2175_s0 + $0x10] ss:$36 sps:$4 sm:$0xff]   ;;  %v1843_v25 = vld [vmem:[#allocation2 + $0x200] sm:$0xff]  }
  0x2f   :  { %1549 = vmatprep.subr.bf16.mxu1 %v1772_v29  ;;  %v1839_v21 = vld [vmem:[%s2175_s0 + $0x14] ss:$36 sps:$4 sm:$0xff]   ;;  %v1842_v24 = vld [vmem:[%s2175_s0 + $0x1c] ss:$36 sps:$4 sm:$0xff]   ;;  %v1844_v26 = vld [vmem:[#allocation2 + $0x208] sm:$0xff]  }
  0x30   :  { %v1840_v23 = vld [vmem:[%s2175_s0 + $0x18] ss:$36 sps:$4 sm:$0xff]   ;;  %v1847_v28 = vld [vmem:[%s2175_s0 + $0x64] ss:$36 sps:$4 sm:$0xff]   ;;  %v1854_v33 = vld [vmem:[%s2175_s0 + $0xac] ss:$36 sps:$4 sm:$0xff]  }
  0x31   :  { %1504 = vmatpush3.bf16.msra.mxu0 %v1773_v30  ;;  %v1845_v27 = vld [vmem:[%s2175_s0 + $0x5c] ss:$36 sps:$4 sm:$0xff]  }
  0x32   :  { %1550 = vmatpush3.bf16.msra.mxu1 %v1774_v31  ;;  %1581 = vmatprep.subr.bf16.mxu0 %v1781_v36  ;;  %v1849_v29 = vld [vmem:[%s2175_s0 + $0x58] ss:$36 sps:$4 sm:$0xff]   ;;  %v1850_v30 = vld [vmem:[%s2175_s0 + $0x60] ss:$36 sps:$4 sm:$0xff]   ;;  %v1851_v31 = vld [vmem:[#allocation2 + $0x210] sm:$0xff]  }
  0x33   :  { %1627 = vmatprep.subr.bf16.mxu1 %v1791_v44  ;;  %v1856_v35 = vld [vmem:[%s2175_s0 + $0xa0] ss:$36 sps:$4 sm:$0xff]   ;;  %v1857_v36 = vld [vmem:[%s2175_s0 + $0xa8] ss:$36 sps:$4 sm:$0xff]  }
  0x34   :  { %925 = vmatmul.mubr.bf16.vlgmr.msra.gmra.mrb[0].mxu0 %v1775_v32  ;;  %v1852_v32 = vld [vmem:[%s2175_s0 + $0xa4] ss:$36 sps:$4 sm:$0xff]   ;;  %v1869_v44 = vld [vmem:[%s2175_s0 + $0x13c] ss:$36 sps:$4 sm:$0xff]  }
  0x35   :  { %998 = vmatmul.mubr.bf16.vlgmr.msra.gmra.mrb[0].mxu1 %v1778_v34  ;;  %1582 = vmatpush3.bf16.msra.mxu0 %v1782_v37  ;;  %v1858_v34 = vld [vmem:[#allocation2 + $0x218] sm:$0xff]   ;;  %v1859_v37 = vld [vmem:[#allocation2 + $0x220] sm:$0xff]  }
  0x36   :  { %1583 = vmatprep.subr.bf16.mxu0 %v1783_v38  ;;  %932 = vmatprep.mubr.bf16.mxu0 %v1785_v40  ;;  %v1860_v38 = vld [vmem:[%s2175_s0 + $0xec] ss:$36 sps:$4 sm:$0xff]  }
  0x37   :  { %1005 = vmatprep.mubr.bf16.mxu1 %v1787_v41  ;;  %1628 = vmatpush3.bf16.msra.mxu1 %v1792_v45  ;;  %v1866_v40 = vld [vmem:[#allocation2 + $0x228] sm:$0xff]   ;;  %v1871_v45 = vld [vmem:[#allocation2 + $0x230] sm:$0xff]  }
  0x38   :  { %1629 = vmatprep.subr.bf16.mxu1 %v1795_v48  ;;  %v1864_v41 = vld [vmem:[%s2175_s0 + $0xe8] ss:$36 sps:$4 sm:$0xff]   ;;  %v1873_v48 = vld [vmem:[%s2175_s0 + $0x138] ss:$36 sps:$4 sm:$0xff]  }
  0x39   :  { %1584 = vmatpush3.bf16.msra.mxu0 %v1784_v39  ;;  %v1862_v39 = vld [vmem:[%s2175_s0 + $0xf4] ss:$36 sps:$4 sm:$0xff]  }
  0x3a   :  { %1585 = vmatprep.subr.bf16.mxu0 %v1793_v46  ;;  %v1874_v46 = vld [vmem:[#allocation2 + $0x238] sm:$0xff]  }
  0x3b   :  { %1630 = vmatpush3.bf16.msra.mxu1 %v1796_v49  ;;  %v1875_v49 = vld [vmem:[%s2175_s0 + $0x20] ss:$36 sps:$4 sm:$0xff]  }
  0x3c   :  { %933 = vmatmul.mubr.bf16.gmra.mrb[4].mxu0 %v1789_v42  ;;  %1631 = vmatprep.subr.bf16.mxu1 %v1805_v56  ;;  %v1865_v42 = vld [vmem:[%s2175_s0 + $0xf0] ss:$36 sps:$4 sm:$0xff]  }
  0x3d   :  { %1006 = vmatmul.mubr.bf16.gmra.mrb[4].mxu1 %v1790_v43  ;;  %1586 = vmatpush3.bf16.msra.mxu0 %v1794_v47  ;;  %v1867_v43 = vld [vmem:[%s2175_s0 + $0x134] ss:$36 sps:$4 sm:$0xff]  }
  0x3e   :  { %940 = vmatprep.mubr.bf16.mxu0 %v1797_v50  ;;  %1013 = vmatprep.mubr.bf16.mxu1 %v1799_v51  ;;  %v1872_v47 = vld [vmem:[%s2175_s0 + $0x130] ss:$36 sps:$4 sm:$0xff]   ;;  %v1876_v50 = vld [vmem:[%s2175_s0 + $0xf8] ss:$36 sps:$4 sm:$0xff]   ;;  %v1877_v51 = vld [vmem:[%s2175_s0 + $0x68] ss:$36 sps:$4 sm:$0xff]  }
  0x3f   :  { %1587 = vmatprep.subr.bf16.mxu0 %v1801_v52  ;;  %1632 = vmatpush3.bf16.msra.mxu1 %v1806_v57  ;;  %v1878_v52 = vld [vmem:[%s2175_s0 + $0x140] ss:$36 sps:$4 sm:$0xff]  }
  0x40   :  { %1633 = vmatprep.subr.bf16.mxu1 %v1808_v59 }
  0x41   :  { %1588 = vmatpush3.bf16.msra.mxu0 %v1804_v55  ;;  %v2100_v55 = vld [vmem:[%s2177_s2] ss:$0 sm:$0xff] }
  0x42   :  { %1589 = vmatprep.subr.bf16.mxu0 %v1807_v58 }
  0x43   :  { %1634 = vmatpush3.bf16.msra.mxu1 %v1810_v61 }
  0x44   :  { %941 = vmatmul.mubr.bf16.gmra.mrb[8].mxu0 %v1802_v53  ;;  %1635 = vmatprep.subr.bf16.mxu1 %v1817_v2  ;;  %v1879_v53 = vld [vmem:[%s2175_s0 + $0xb0] ss:$36 sps:$4 sm:$0xff]  }
  0x45   :  { %1014 = vmatmul.mubr.bf16.gmra.mrb[8].mxu1 %v1803_v54  ;;  %1590 = vmatpush3.bf16.msra.mxu0 %v1809_v60 }
  0x46   :  { %948 = vmatprep.mubr.bf16.mxu0 %v1811_v62  ;;  %1021 = vmatprep.mubr.bf16.mxu1 %v1813_v63 }
  0x47   :  { %1591 = vmatprep.subr.bf16.mxu0 %v1818_v3  ;;  %1636 = vmatpush3.bf16.msra.mxu1 %v1819_v4 }
  0x48   :  { %1637 = vmatprep.subr.bf16.mxu1 %v1821_v6 }
  0x49   :  { %1592 = vmatpush3.bf16.msra.mxu0 %v1820_v5 }
  0x4a   :  { %1593 = vmatprep.subr.bf16.mxu0 %v1823_v8 }
  0x4b   :  { %1638 = vmatpush3.bf16.msra.mxu1 %v1822_v7 }
  0x4c   :  { %949 = vmatmul.mubr.bf16.gmra.mrb[12].mxu0 %v1815_v0  ;;  %1639 = vmatprep.subr.bf16.mxu1 %v1831_v14 }
  0x4d   :  { %1022 = vmatmul.mubr.bf16.gmra.mrb[12].mxu1 %v1816_v1  ;;  %956 = vmatprep.mubr.bf16.mxu0 %v1824_v9 }
  0x4e   :  { %1029 = vmatprep.mubr.bf16.mxu1 %v1826_v10  ;;  %1594 = vmatpush3.bf16.msra.mxu0 %v1828_v11 }
  0x4f   :  { %1640 = vmatpush3.bf16.msra.mxu1 %v1832_v15  ;;  %1595 = vmatprep.subr.bf16.mxu0 %v1833_v16 }
  0x50   :  { %1641 = vmatprep.subr.bf16.mxu1 %v1835_v18 }
  0x52   :  { %1596 = vmatpush3.bf16.msra.mxu0 %v1834_v17 }
  0x53   :  { %1686 = vmatprep.subr.bf16.mxu0 %v1907_v22  ;;  %1642 = vmatpush3.bf16.msra.mxu1 %v1836_v19 }
  0x54   :  { %957 = vmatmul.mubr.bf16.gmra.mrb[16].mxu0 %v1829_v12  ;;  %1722 = vmatprep.subr.bf16.mxu1 %v1907_v22 }
  0x55   :  { %1030 = vmatmul.mubr.bf16.gmra.mrb[16].mxu1 %v1830_v13  ;;  %1070 = vmatprep.mubr.bf16.mxu0 %v1839_v21 }
  0x56   :  { %1143 = vmatprep.mubr.bf16.mxu1 %v1842_v24 }
  0x5c   :  { %1071 = vmatmul.mubr.bf16.vlgmr.msra.gmra.mrb[20].mxu0 %v1837_v20 }
  0x5d   :  { %1144 = vmatmul.mubr.bf16.vlgmr.msra.gmra.mrb[20].mxu1 %v1840_v23  ;;  %1687 = vmatpush3.bf16.msra.mxu0 %v1843_v25 }
  0x5e   :  { %1688 = vmatprep.subr.bf16.mxu0 %v1907_v22  ;;  %1730 = vmatpush3.bf16.msra.mxu1 %v1843_v25 }
  0x5f   :  { %1078 = vmatprep.mubr.bf16.mxu0 %v1845_v27  ;;  %1723 = vmatprep.subr.bf16.mxu1 %v1907_v22 }
  0x60   :  { %1151 = vmatprep.mubr.bf16.mxu1 %v1847_v28 }
  0x61   :  { %1689 = vmatpush3.bf16.msra.mxu0 %v1844_v26 }
  0x62   :  { %1690 = vmatprep.subr.bf16.mxu0 %v1907_v22  ;;  %1731 = vmatpush3.bf16.msra.mxu1 %v1844_v26 }
  0x63   :  { %1724 = vmatprep.subr.bf16.mxu1 %v1907_v22 }
  0x64   :  { %1079 = vmatmul.mubr.bf16.gmra.mrb[24].mxu0 %v1849_v29 }
  0x65   :  { %1152 = vmatmul.mubr.bf16.gmra.mrb[24].mxu1 %v1850_v30  ;;  %1691 = vmatpush3.bf16.msra.mxu0 %v1851_v31 }
  0x66   :  { %1086 = vmatprep.mubr.bf16.mxu0 %v1852_v32  ;;  %1159 = vmatprep.mubr.bf16.mxu1 %v1854_v33 }
  0x67   :  { %1692 = vmatprep.subr.bf16.mxu0 %v1907_v22  ;;  %1732 = vmatpush3.bf16.msra.mxu1 %v1851_v31 }
  0x68   :  { %1725 = vmatprep.subr.bf16.mxu1 %v1907_v22 }
  0x69   :  { %1693 = vmatpush3.bf16.msra.mxu0 %v1858_v34 }
  0x6a   :  { %1694 = vmatprep.subr.bf16.mxu0 %v1907_v22 }
  0x6b   :  { %1733 = vmatpush3.bf16.msra.mxu1 %v1858_v34 }
  0x6c   :  { %1087 = vmatmul.mubr.bf16.gmra.mrb[28].mxu0 %v1856_v35  ;;  %1726 = vmatprep.subr.bf16.mxu1 %v1907_v22 }
  0x6d   :  { %1160 = vmatmul.mubr.bf16.gmra.mrb[28].mxu1 %v1857_v36  ;;  %1695 = vmatpush3.bf16.msra.mxu0 %v1859_v37 }
  0x6e   :  { %1094 = vmatprep.mubr.bf16.mxu0 %v1860_v38  ;;  %1167 = vmatprep.mubr.bf16.mxu1 %v1862_v39 }
  0x6f   :  { %1734 = vmatpush3.bf16.msra.mxu1 %v1859_v37  ;;  %1696 = vmatprep.subr.bf16.mxu0 %v1907_v22 }
  0x70   :  { %1727 = vmatprep.subr.bf16.mxu1 %v1907_v22 }
  0x71   :  { %1697 = vmatpush3.bf16.msra.mxu0 %v1866_v40 }
  0x72   :  { %1698 = vmatprep.subr.bf16.mxu0 %v1907_v22 }
  0x73   :  { %1735 = vmatpush3.bf16.msra.mxu1 %v1866_v40 }
  0x74   :  { %1095 = vmatmul.mubr.bf16.gmra.mrb[32].mxu0 %v1864_v41  ;;  %1728 = vmatprep.subr.bf16.mxu1 %v1907_v22 }
  0x75   :  { %1168 = vmatmul.mubr.bf16.gmra.mrb[32].mxu1 %v1865_v42  ;;  %1102 = vmatprep.mubr.bf16.mxu0 %v1867_v43 }
  0x76   :  { %1175 = vmatprep.mubr.bf16.mxu1 %v1869_v44  ;;  %1699 = vmatpush3.bf16.msra.mxu0 %v1871_v45 }
  0x77   :  { %1736 = vmatpush3.bf16.msra.mxu1 %v1871_v45  ;;  %1700 = vmatprep.subr.bf16.mxu0 %v1907_v22 }
  0x78   :  { %1729 = vmatprep.subr.bf16.mxu1 %v1907_v22 }
  0x7a   :  { %1701 = vmatpush3.bf16.msra.mxu0 %v1874_v46 }
  0x7b   :  { %1737 = vmatpush3.bf16.msra.mxu1 %v1874_v46 }
  0x7c   :  { %1103 = vmatmul.mubr.bf16.gmra.mrb[36].mxu0 %v1872_v47 }
  0x7d   :  { %1176 = vmatmul.mubr.bf16.gmra.mrb[36].mxu1 %v1873_v48  ;;  %1702 = vmatprep.mubr.msk.bf16.mxu0 %vm1908_vm0, %v1907_v22 }
  0x7e   :  { %1714 = vmatprep.mubr.msk.bf16.mxu1 %vm1908_vm0, %v1907_v22 }
  0x84   :  { %1703 = vmatmul.mubr.bf16.vlgmr.msra.gmra.mrb[40].mxu0 %v1875_v49 }
  0x85   :  { %1715 = vmatmul.mubr.bf16.vlgmr.msra.gmra.mrb[40].mxu1 %v1876_v50  ;;  %1706 = vmatprep.mubr.msk.bf16.mxu0 %vm1908_vm0, %v1907_v22 }
  0x86   :  { %1718 = vmatprep.mubr.msk.bf16.mxu1 %vm1908_vm0, %v1907_v22 }
  0x8c   :  { %1707 = vmatmul.mubr.bf16.gmra.mrb[44].mxu0 %v1877_v51 }
  0x8d   :  { %1719 = vmatmul.mubr.bf16.gmra.mrb[44].mxu1 %v1878_v52  ;;  %1710 = vmatprep.mubr.msk.bf16.mxu0 %vm1908_vm0, %v1907_v22 }
  0x94   :  { %1711 = vmatmul.mubr.bf16.gmra.mrb[48].mxu0 %v1879_v53 }
 0x107   :  { %v1505_v54 = vpop.f32.mrb[0].mxu0 }
 0x108   :  { %v1506_v56 = vpop.f32.mrb[1].mxu0  ;;  %v1551_v57 = vpop.f32.mrb[0].mxu1 }
 0x109   :  { %v1507_v58 = vadd.f32 %v1506_v56, %v1505_v54  ;;  %v1508_v59 = vpop.f32.mrb[2].mxu0  ;;  %v1552_v60 = vpop.f32.mrb[1].mxu1 }
 0x10a   :  { %v1509_v61 = vpop.f32.mrb[3].mxu0  ;;  %v1553_v62 = vadd.f32 %v1552_v60, %v1551_v57  ;;  %v1554_v63 = vpop.f32.mrb[2].mxu1 }
 0x10b   :  { %v927_v0 = vadd.f32 %v1507_v58, %v2100_v55  ;;  %v1510_v1 = vadd.f32 %v1509_v61, %v1508_v59  ;;  %v1555_v2 = vpop.f32.mrb[3].mxu1 }
 0x10c   :  { %v1556_v3 = vadd.f32 %v1555_v2, %v1554_v63 }
 0x10d   :  { %v930_v4 = vadd.f32 %v1510_v1, %v2100_v55  ;;  %v2104_v5 = vadd.f32 %v1553_v62, %v927_v0 }
 0x10f   :  { %v2106_v6 = vadd.f32 %v1556_v3, %v930_v4  ;;  %v1511_v7 = vpop.f32.mrb[4].mxu0 }
 0x110   :  { %v1512_v8 = vpop.f32.mrb[5].mxu0  ;;  %v1557_v9 = vpop.f32.mrb[4].mxu1 }
 0x111   :  { %v1513_v10 = vadd.f32 %v1512_v8, %v1511_v7  ;;  %v1514_v11 = vpop.f32.mrb[6].mxu0  ;;  %v1558_v12 = vpop.f32.mrb[5].mxu1 }
 0x112   :  { %v1515_v13 = vpop.f32.mrb[7].mxu0  ;;  %v1559_v14 = vadd.f32 %v1558_v12, %v1557_v9  ;;  %v1560_v15 = vpop.f32.mrb[6].mxu1 }
 0x113   :  { %v935_v16 = vadd.f32 %v1513_v10, %v2100_v55  ;;  %v1516_v17 = vadd.f32 %v1515_v13, %v1514_v11  ;;  %v1561_v18 = vpop.f32.mrb[7].mxu1 }
 0x114   :  { %v1562_v19 = vadd.f32 %v1561_v18, %v1560_v15 }
 0x115   :  { %v938_v20 = vadd.f32 %v1516_v17, %v2100_v55  ;;  %v2110_v21 = vadd.f32 %v1559_v14, %v935_v16 }
 0x117   :  { %v2112_v22 = vadd.f32 %v1562_v19, %v938_v20  ;;  %v1517_v23 = vpop.f32.mrb[8].mxu0 }
 0x118   :  { %v1518_v24 = vpop.f32.mrb[9].mxu0  ;;  %v1563_v25 = vpop.f32.mrb[8].mxu1 }
 0x119   :  { %v1519_v26 = vadd.f32 %v1518_v24, %v1517_v23  ;;  %v1520_v27 = vpop.f32.mrb[10].mxu0  ;;  %v1564_v28 = vpop.f32.mrb[9].mxu1 }
 0x11a   :  { %v1521_v29 = vpop.f32.mrb[11].mxu0  ;;  %v1565_v30 = vadd.f32 %v1564_v28, %v1563_v25  ;;  %v1566_v31 = vpop.f32.mrb[10].mxu1 }
 0x11b   :  { %v943_v32 = vadd.f32 %v1519_v26, %v2100_v55  ;;  %v1522_v33 = vadd.f32 %v1521_v29, %v1520_v27  ;;  %v1567_v34 = vpop.f32.mrb[11].mxu1 }
 0x11c   :  { %v1568_v35 = vadd.f32 %v1567_v34, %v1566_v31 }
 0x11d   :  { %v946_v36 = vadd.f32 %v1522_v33, %v2100_v55  ;;  %v2116_v37 = vadd.f32 %v1565_v30, %v943_v32 }
 0x11f   :  { %v2118_v38 = vadd.f32 %v1568_v35, %v946_v36  ;;  %v1523_v39 = vpop.f32.mrb[12].mxu0 }
 0x120   :  { %v1569_v40 = vpop.f32.mrb[12].mxu1  ;;  %v1524_v41 = vpop.f32.mrb[13].mxu0 }
 0x121   :  { %v1570_v42 = vpop.f32.mrb[13].mxu1  ;;  %v1525_v43 = vadd.f32 %v1524_v41, %v1523_v39  ;;  %v1526_v44 = vpop.f32.mrb[14].mxu0 }
 0x122   :  { %v1571_v45 = vadd.f32 %v1570_v42, %v1569_v40  ;;  %v1572_v46 = vpop.f32.mrb[14].mxu1  ;;  %v1527_v47 = vpop.f32.mrb[15].mxu0 }
 0x123   :  { %v1573_v48 = vpop.f32.mrb[15].mxu1  ;;  %v951_v49 = vadd.f32 %v1525_v43, %v2100_v55  ;;  %v1528_v50 = vadd.f32 %v1527_v47, %v1526_v44 }
 0x124   :  { %v1574_v51 = vadd.f32 %v1573_v48, %v1572_v46 }
 0x125   :  { %v954_v52 = vadd.f32 %v1528_v50, %v2100_v55  ;;  %v2122_v53 = vadd.f32 %v1571_v45, %v951_v49 }
 0x127   :  { %v2124_v54 = vadd.f32 %v1574_v51, %v954_v52  ;;  %v1529_v56 = vpop.f32.mrb[16].mxu0 }
 0x128   :  { %v1575_v57 = vpop.f32.mrb[16].mxu1  ;;  %v1530_v58 = vpop.f32.mrb[17].mxu0 }
 0x129   :  { %v1576_v59 = vpop.f32.mrb[17].mxu1  ;;  %v1531_v60 = vadd.f32 %v1530_v58, %v1529_v56  ;;  %v1532_v61 = vpop.f32.mrb[18].mxu0 }
 0x12a   :  { %v1577_v62 = vadd.f32 %v1576_v59, %v1575_v57  ;;  %v1578_v63 = vpop.f32.mrb[18].mxu1  ;;  %v1533_v0 = vpop.f32.mrb[19].mxu0 }
 0x12b   :  { %v1579_v1 = vpop.f32.mrb[19].mxu1  ;;  %v959_v2 = vadd.f32 %v1531_v60, %v2100_v55  ;;  %v1534_v3 = vadd.f32 %v1533_v0, %v1532_v61 }
 0x12c   :  { %v1580_v4 = vadd.f32 %v1579_v1, %v1578_v63 }
 0x12d   :  { %v962_v7 = vadd.f32 %v1534_v3, %v2100_v55  ;;  %v2128_v8 = vadd.f32 %v1577_v62, %v959_v2 }
 0x12f   :  { %v2130_v9 = vadd.f32 %v1580_v4, %v962_v7  ;;  %v1597_v10 = vpop.f32.mrb[20].mxu0 }
 0x130   :  { %v1598_v11 = vpop.f32.mrb[21].mxu0  ;;  %v1643_v12 = vpop.f32.mrb[20].mxu1 }
 0x131   :  { %v1599_v13 = vadd.f32 %v1598_v11, %v1597_v10  ;;  %v1600_v14 = vpop.f32.mrb[22].mxu0  ;;  %v1644_v15 = vpop.f32.mrb[21].mxu1 }
 0x132   :  { %v1601_v16 = vpop.f32.mrb[23].mxu0  ;;  %v1645_v17 = vadd.f32 %v1644_v15, %v1643_v12  ;;  %v1646_v18 = vpop.f32.mrb[22].mxu1 }
 0x133   :  { %v1073_v19 = vadd.f32 %v1599_v13, %v2104_v5  ;;  %v1602_v20 = vadd.f32 %v1601_v16, %v1600_v14  ;;  %v1647_v23 = vpop.f32.mrb[23].mxu1 }
 0x134   :  { %v1648_v24 = vadd.f32 %v1647_v23, %v1646_v18 }
 0x135   :  { %v1076_v55 = vadd.f32 %v1602_v20, %v2106_v6  ;;  %v2134_v25 = vadd.f32 %v1645_v17, %v1073_v19 }
 0x137   :  { %v1603_v26 = vpop.f32.mrb[24].mxu0  ;;  %v2136_v27 = vadd.f32 %v1648_v24, %v1076_v55 }
 0x138   :  { %v1604_v28 = vpop.f32.mrb[25].mxu0  ;;  %v1649_v29 = vpop.f32.mrb[24].mxu1 }
 0x139   :  { %v1605_v30 = vadd.f32 %v1604_v28, %v1603_v26  ;;  %v1606_v31 = vpop.f32.mrb[26].mxu0  ;;  %v1650_v32 = vpop.f32.mrb[25].mxu1 }
 0x13a   :  { %v1607_v33 = vpop.f32.mrb[27].mxu0  ;;  %v1651_v34 = vadd.f32 %v1650_v32, %v1649_v29  ;;  %v1652_v35 = vpop.f32.mrb[26].mxu1 }
 0x13b   :  { %v1081_v5 = vadd.f32 %v1605_v30, %v2110_v21  ;;  %v1608_v36 = vadd.f32 %v1607_v33, %v1606_v31  ;;  %v1653_v39 = vpop.f32.mrb[27].mxu1 }
 0x13c   :  { %v1654_v40 = vadd.f32 %v1653_v39, %v1652_v35 }
 0x13d   :  { %v1084_v6 = vadd.f32 %v1608_v36, %v2112_v22  ;;  %v2140_v41 = vadd.f32 %v1651_v34, %v1081_v5 }
 0x13f   :  { %v1609_v42 = vpop.f32.mrb[28].mxu0  ;;  %v2142_v43 = vadd.f32 %v1654_v40, %v1084_v6 }
 0x140   :  { %v1610_v44 = vpop.f32.mrb[29].mxu0  ;;  %v1655_v45 = vpop.f32.mrb[28].mxu1 }
 0x141   :  { %v1611_v46 = vadd.f32 %v1610_v44, %v1609_v42  ;;  %v1612_v47 = vpop.f32.mrb[30].mxu0  ;;  %v1656_v48 = vpop.f32.mrb[29].mxu1 }
 0x142   :  { %v1613_v49 = vpop.f32.mrb[31].mxu0  ;;  %v1657_v50 = vadd.f32 %v1656_v48, %v1655_v45  ;;  %v1658_v51 = vpop.f32.mrb[30].mxu1 }
 0x143   :  { %v1089_v21 = vadd.f32 %v1611_v46, %v2116_v37  ;;  %v1614_v52 = vadd.f32 %v1613_v49, %v1612_v47  ;;  %v1659_v56 = vpop.f32.mrb[31].mxu1 }
 0x144   :  { %v1660_v57 = vadd.f32 %v1659_v56, %v1658_v51 }
 0x145   :  { %v1092_v22 = vadd.f32 %v1614_v52, %v2118_v38  ;;  %v2146_v58 = vadd.f32 %v1657_v50, %v1089_v21 }
 0x147   :  { %v1615_v59 = vpop.f32.mrb[32].mxu0  ;;  %v2148_v60 = vadd.f32 %v1660_v57, %v1092_v22 }
 0x148   :  { %v1616_v61 = vpop.f32.mrb[33].mxu0  ;;  %v1661_v62 = vpop.f32.mrb[32].mxu1 }
 0x149   :  { %v1617_v63 = vadd.f32 %v1616_v61, %v1615_v59  ;;  %v1618_v0 = vpop.f32.mrb[34].mxu0  ;;  %v1662_v1 = vpop.f32.mrb[33].mxu1 }
 0x14a   :  { %v1619_v2 = vpop.f32.mrb[35].mxu0  ;;  %v1663_v3 = vadd.f32 %v1662_v1, %v1661_v62  ;;  %v1664_v4 = vpop.f32.mrb[34].mxu1 }
 0x14b   :  { %v1097_v37 = vadd.f32 %v1617_v63, %v2122_v53  ;;  %v1620_v7 = vadd.f32 %v1619_v2, %v1618_v0  ;;  %v1665_v10 = vpop.f32.mrb[35].mxu1 }
 0x14c   :  { %v1666_v11 = vadd.f32 %v1665_v10, %v1664_v4 }
 0x14d   :  { %v1100_v38 = vadd.f32 %v1620_v7, %v2124_v54  ;;  %v1170_v12 = vadd.f32 %v1663_v3, %v1097_v37 }
 0x14f   :  { %v1621_v13 = vpop.f32.mrb[36].mxu0  ;;  %v1173_v14 = vadd.f32 %v1666_v11, %v1100_v38 }
 0x150   :  { %v1622_v15 = vpop.f32.mrb[37].mxu0  ;;  %v1667_v16 = vpop.f32.mrb[36].mxu1 }
 0x151   :  { %v1623_v17 = vadd.f32 %v1622_v15, %v1621_v13  ;;  %v1624_v18 = vpop.f32.mrb[38].mxu0  ;;  %v1668_v19 = vpop.f32.mrb[37].mxu1 }
 0x152   :  { %v1625_v20 = vpop.f32.mrb[39].mxu0  ;;  %v1669_v23 = vadd.f32 %v1668_v19, %v1667_v16  ;;  %v1670_v24 = vpop.f32.mrb[38].mxu1 }
 0x153   :  { %v1105_v55 = vadd.f32 %v1623_v17, %v2128_v8  ;;  %v1626_v26 = vadd.f32 %v1625_v20, %v1624_v18  ;;  %v1671_v53 = vpop.f32.mrb[39].mxu1 }
 0x154   :  { %v1672_v28 = vadd.f32 %v1671_v53, %v1670_v24 }
 0x155   :  { %v1108_v29 = vadd.f32 %v1626_v26, %v2130_v9  ;;  %v1178_v30 = vadd.f32 %v1669_v23, %v1105_v55 }
 0x157   :  { %v1218_v54 = vpop.f32.mrb[40].mxu0  ;;  %v1181_v31 = vadd.f32 %v1672_v28, %v1108_v29 }
 0x158   :  { %v1219_v32 = vadd.f32 %v1218_v54, %v2134_v25  ;;  %v1242_v33 = vpop.f32.mrb[40].mxu1  ;;  %v1704_v34 = vpop.f32.mrb[41].mxu0 }
 0x159   :  { %v1243_v35 = vadd.f32 %v1242_v33, %v1170_v12  ;;  %v1716_v5 = vpop.f32.mrb[41].mxu1  ;;  %v1221_v36 = vpop.f32.mrb[42].mxu0 }
 0x15a   :  { %v1222_v39 = vadd.f32 %v1221_v36, %v2136_v27  ;;  %v1245_v40 = vpop.f32.mrb[42].mxu1  ;;  %v1705_v6 = vpop.f32.mrb[43].mxu0  ;;  %v1257_v44 = vmax.f32 %v1219_v32, 0.0 }
 0x15b   :  { %v1246_v8 = vadd.f32 %v1245_v40, %v1173_v14  ;;  %v1717_v42 = vpop.f32.mrb[43].mxu1  ;;  %v1263_v46 = vmax.f32 %v1243_v35, 0.0 }
 0x15c   :  { %v1258_v45 = vmax.f32 %v1222_v39, 0.0 }
 0x15d   :  { %v1264_v9 = vmax.f32 %v1246_v8, 0.0 }
 0x15e   :  { %v1463_v47 = vpack.c.bf16 %v1258_v45, %v1257_v44 }
 0x15f   :  { %v1478_v48 = vpack.c.bf16 %v1264_v9, %v1263_v46  ;;  %v1226_v49 = vpop.f32.mrb[44].mxu0 }
 0x160   :  { %1464 = vst [vmem:[%s2178_s3] sm:$0xff] %v1463_v47   ;;  %v1227_v25 = vadd.f32 %v1226_v49, %v2140_v41  ;;  %v1250_v50 = vpop.f32.mrb[44].mxu1  ;;  %v1708_v51 = vpop.f32.mrb[45].mxu0 }
 0x161   :  { %1487 = vst [vmem:[%s2178_s3 + $0x18] sm:$0xff] %v1478_v48   ;;  %v1251_v27 = vadd.f32 %v1250_v50, %v1178_v30  ;;  %v1720_v21 = vpop.f32.mrb[45].mxu1  ;;  %v1229_v52 = vpop.f32.mrb[46].mxu0 }
 0x162   :  { %v1230_v56 = vadd.f32 %v1229_v52, %v2142_v43  ;;  %v1253_v57 = vpop.f32.mrb[46].mxu1  ;;  %v1709_v22 = vpop.f32.mrb[47].mxu0  ;;  %v1259_v62 = vmax.f32 %v1227_v25, 0.0 }
 0x163   :  { %v1254_v59 = vadd.f32 %v1253_v57, %v1181_v31  ;;  %v1721_v61 = vpop.f32.mrb[47].mxu1  ;;  %v1265_v0 = vmax.f32 %v1251_v27, 0.0 }
 0x164   :  { %v1260_v63 = vmax.f32 %v1230_v56, 0.0 }
 0x165   :  { %v1266_v1 = vmax.f32 %v1254_v59, 0.0 }
 0x166   :  { %v1468_v41 = vpack.c.bf16 %v1260_v63, %v1259_v62 }
 0x167   :  { %v1483_v2 = vpack.c.bf16 %v1266_v1, %v1265_v0  ;;  %v1234_v3 = vpop.f32.mrb[48].mxu0 }
 0x168   :  { %1485 = vst [vmem:[%s2178_s3 + $0x8] sm:$0xff] %v1468_v41   ;;  %v1235_v4 = vadd.f32 %v1234_v3, %v2146_v58  ;;  %v1712_v37 = vpop.f32.mrb[49].mxu0 }
 0x169   :  { %1488 = vst [vmem:[%s2178_s3 + $0x20] sm:$0xff] %v1483_v2   ;;  %v1237_v43 = vpop.f32.mrb[50].mxu0 }
 0x16a   :  { %v1238_v7 = vadd.f32 %v1237_v43, %v2148_v60  ;;  %v1713_v10 = vpop.f32.mrb[51].mxu0  ;;  %v1261_v11 = vmax.f32 %v1235_v4, 0.0 }
 0x16c   :  { %v1262_v38 = vmax.f32 %v1238_v7, 0.0 }
 0x16e   :  { %v1473_v12 = vpack.c.bf16 %v1262_v38, %v1261_v11 }
 0x170   :  { %1486 = vst [vmem:[%s2178_s3 + $0x10] sm:$0xff] %v1473_v12  }
 0x171   :  { %1321 = vsyncpa [#allocation3], 1 }

// kernel: conv_large_forward.6
= control target key start
LH: loop header
LB: loop body
LE: loop exit
PB: predicated region body
PF: predicated region fallthrough
CT: control target
= control target key end

     0   :  { %8 = vsyncpa [#allocation3], 0  ;;  %s1375_s12 = smov [#allocation2]   ;;  %s1473_s0 = inlined_call_operand.vmem [shape: bf16[32,1152], index: 0, kind: input, shape index: {}]   ;;  %s1474_s1 = inlined_call_operand.hbm [shape: bf16[1152,128], index: 1, kind: input, shape index: {}]   ;;  %s1475_s2 = inlined_call_operand.vmem [shape: f32[1,128], index: 2, kind: input, shape index: {}]   ;;  %s1476_s3 = inlined_call_operand.vmem [shape: bf16[32,128], index: 3, kind: output, shape index: {}]  }
   0x1   :  { %s16_s13 = sshll.u32 %s1375_s12, 4  ;;  %s1351_s16 = scalar_lea.hbm %s1474_s1, 9216  ;;  %s17_s13 = int_to_ptr.vmem [resolvable:$true] %s16_s13 }
   0x2   :  { %p1352_p0 = scmp.ne.s32.totalorder %s1474_s1, %s1351_s16  ;;  %p1355_p1 = scmp.lt.u32.totalorder %s1351_s16, %s1474_s1 }
   0x4   :  { %p1357_p2 = pnand %p1355_p1, %p1352_p0 }
   0x6   :  { %1360 = shalt.err (!%p1357_p2)
}
   0x7   :  { %s1361_s21 = scalar_lea.vmem %s17_s13, 9216  ;;  %p1366_p4 = scmp.lt.s32.totalorder %s17_s13, %s17_s13 }
   0x8   :  { %p1362_p3 = scmp.ne.s32.totalorder %s17_s13, %s1361_s21  ;;  %p1367_p5 = scmp.lt.s32.totalorder %s1361_s21, %s1361_s21 }
   0xa   :  { %p1368_p6 = por %p1367_p5, %p1366_p4 }
   0xc   :  { %p1369_p7 = pnand %p1368_p6, %p1362_p3 }
   0xe   :  { %1372 = shalt.err (!%p1369_p7)
}
   0xf   :  { %s1376_s22 = smov 64   ;;  %s1377_s23 = smov 4  }
  0x10   :  { %22 = dma.hbm_to_vmem [thread:$0]  %s1474_s1, 9216, %s17_s13, [#allocation3], %s1376_s22, %s1376_s22, %s1377_s23  }
  0x11   :  { %1373 = dma.done.wait [#allocation3], 9216  }
  0x12   :  { %1374 = vsyncadd [#allocation3], 4294958080  ;;  %v1253_v0 = vld [vmem:[#allocation2 + $0x40] sm:$0xff]   ;;  %v1257_v4 = vld [vmem:[#allocation2 + $0x48] sm:$0xff]  }
  0x13   :  { %v1254_v1 = vld [vmem:[#allocation2] sm:$0xff]   ;;  %1108 = vmatprep.subr.bf16.mxu0 %v1253_v0  ;;  %v1258_v5 = vld [vmem:[#allocation2 + $0x8] sm:$0xff]   ;;  %v1261_v8 = vld [vmem:[#allocation2 + $0x50] sm:$0xff]  }
  0x14   :  { %v1255_v2 = vld [vmem:[#allocation2 + $0xc0] sm:$0xff]   ;;  %1109 = vmatpush3.bf16.msra.mxu0 %v1254_v1  ;;  %v1259_v6 = vld [vmem:[#allocation2 + $0xc8] sm:$0xff]   ;;  %v1262_v9 = vld [vmem:[#allocation2 + $0x10] sm:$0xff]  }
  0x15   :  { %v1256_v3 = vld [vmem:[#allocation2 + $0x80] sm:$0xff]   ;;  %1136 = vmatprep.subr.bf16.mxu1 %v1255_v2  ;;  %1110 = vmatprep.subr.bf16.mxu0 %v1257_v4  ;;  %v1260_v7 = vld [vmem:[#allocation2 + $0x88] sm:$0xff]   ;;  %v1263_v10 = vld [vmem:[#allocation2 + $0xd0] sm:$0xff]  }
  0x16   :  { %1137 = vmatpush3.bf16.msra.mxu1 %v1256_v3  ;;  %v1264_v11 = vld [vmem:[#allocation2 + $0x90] sm:$0xff]   ;;  %v1265_v12 = vld [vmem:[#allocation2 + $0x58] sm:$0xff]   ;;  %v1269_v16 = vld [vmem:[#allocation2 + $0x60] sm:$0xff]  }
  0x17   :  { %1138 = vmatprep.subr.bf16.mxu1 %v1259_v6  ;;  %v1266_v13 = vld [vmem:[#allocation2 + $0x18] sm:$0xff]   ;;  %v1270_v17 = vld [vmem:[#allocation2 + $0x20] sm:$0xff]   ;;  %v1273_v20 = vld [vmem:[#allocation2 + $0x68] sm:$0xff]  }
  0x18   :  { %1111 = vmatpush3.bf16.msra.mxu0 %v1258_v5  ;;  %v1267_v14 = vld [vmem:[#allocation2 + $0xd8] sm:$0xff]   ;;  %v1271_v18 = vld [vmem:[#allocation2 + $0xe0] sm:$0xff]   ;;  %v1274_v21 = vld [vmem:[#allocation2 + $0x28] sm:$0xff]  }
  0x19   :  { %1112 = vmatprep.subr.bf16.mxu0 %v1261_v8  ;;  %v1268_v15 = vld [vmem:[#allocation2 + $0x98] sm:$0xff]   ;;  %v1272_v19 = vld [vmem:[#allocation2 + $0xa0] sm:$0xff]   ;;  %v1275_v22 = vld [vmem:[#allocation2 + $0xe8] sm:$0xff]  }
  0x1a   :  { %1139 = vmatpush3.bf16.msra.mxu1 %v1260_v7  ;;  %v1276_v23 = vld [vmem:[#allocation2 + $0xa8] sm:$0xff]   ;;  %v1277_v24 = vld [vmem:[#allocation2 + $0x70] sm:$0xff]   ;;  %v1281_v28 = vld [vmem:[#allocation2 + $0x78] sm:$0xff]  }
  0x1b   :  { %1140 = vmatprep.subr.bf16.mxu1 %v1263_v10  ;;  %v1278_v25 = vld [vmem:[#allocation2 + $0x30] sm:$0xff]   ;;  %v1282_v29 = vld [vmem:[#allocation2 + $0x38] sm:$0xff]   ;;  %v1284_v31 = vld [vmem:[%s1473_s0] ss:$36 sps:$4 sm:$0xff]  }
  0x1c   :  { %1113 = vmatpush3.bf16.msra.mxu0 %v1262_v9  ;;  %v1279_v26 = vld [vmem:[#allocation2 + $0xf0] sm:$0xff]   ;;  %v1283_v30 = vld [vmem:[#allocation2 + $0xf8] sm:$0xff]   ;;  %v1286_v32 = vld [vmem:[%s1473_s0 + $0x4] ss:$36 sps:$4 sm:$0xff]  }
  0x1d   :  { %1114 = vmatprep.subr.bf16.mxu0 %v1265_v12  ;;  %v1280_v27 = vld [vmem:[#allocation2 + $0xb0] sm:$0xff]   ;;  %v1287_v33 = vld [vmem:[#allocation2 + $0xb8] sm:$0xff]   ;;  %756 = vmatprep.mubr.bf16.mxu0 %v1286_v32  ;;  %v1288_v34 = vld [vmem:[#allocation2 + $0x140] sm:$0xff]  }
  0x1e   :  { %1141 = vmatpush3.bf16.msra.mxu1 %v1264_v11  ;;  %v1289_v35 = vld [vmem:[%s1473_s0 + $0x8] ss:$36 sps:$4 sm:$0xff]   ;;  %v1292_v37 = vld [vmem:[#allocation2 + $0x100] sm:$0xff]   ;;  %v1299_v44 = vld [vmem:[#allocation2 + $0x150] sm:$0xff]  }
  0x1f   :  { %1142 = vmatprep.subr.bf16.mxu1 %v1267_v14  ;;  %v1291_v36 = vld [vmem:[%s1473_s0 + $0xc] ss:$36 sps:$4 sm:$0xff]   ;;  %v1293_v38 = vld [vmem:[#allocation2 + $0x1c0] sm:$0xff]   ;;  %v1303_v48 = vld [vmem:[#allocation2 + $0x158] sm:$0xff]  }
  0x20   :  { %1115 = vmatpush3.bf16.msra.mxu0 %v1266_v13  ;;  %805 = vmatprep.mubr.bf16.mxu1 %v1291_v36  ;;  %v1294_v39 = vld [vmem:[#allocation2 + $0x180] sm:$0xff]   ;;  %v1295_v40 = vld [vmem:[#allocation2 + $0x148] sm:$0xff]   ;;  %v1300_v45 = vld [vmem:[#allocation2 + $0x110] sm:$0xff]  }
  0x21   :  { %1116 = vmatprep.subr.bf16.mxu0 %v1269_v16  ;;  %v1296_v41 = vld [vmem:[#allocation2 + $0x108] sm:$0xff]   ;;  %v1301_v46 = vld [vmem:[#allocation2 + $0x1d0] sm:$0xff]   ;;  %v1304_v49 = vld [vmem:[#allocation2 + $0x118] sm:$0xff]  }
  0x22   :  { %1143 = vmatpush3.bf16.msra.mxu1 %v1268_v15  ;;  %v1297_v42 = vld [vmem:[#allocation2 + $0x1c8] sm:$0xff]   ;;  %v1302_v47 = vld [vmem:[#allocation2 + $0x190] sm:$0xff]   ;;  %v1305_v50 = vld [vmem:[#allocation2 + $0x1d8] sm:$0xff]  }
  0x23   :  { %1144 = vmatprep.subr.bf16.mxu1 %v1271_v18  ;;  %v1298_v43 = vld [vmem:[#allocation2 + $0x188] sm:$0xff]   ;;  %v1306_v51 = vld [vmem:[#allocation2 + $0x198] sm:$0xff]   ;;  %v1307_v52 = vld [vmem:[#allocation2 + $0x160] sm:$0xff]  }
  0x24   :  { %1117 = vmatpush3.bf16.msra.mxu0 %v1270_v17  ;;  %v1308_v53 = vld [vmem:[#allocation2 + $0x120] sm:$0xff]   ;;  %v1311_v56 = vld [vmem:[#allocation2 + $0x168] sm:$0xff]   ;;  %v1317_v61 = vld [vmem:[%s1473_s0 + $0x54] ss:$36 sps:$4 sm:$0xff]  }
  0x25   :  { %1118 = vmatprep.subr.bf16.mxu0 %v1273_v20  ;;  %v1309_v54 = vld [vmem:[#allocation2 + $0x1e0] sm:$0xff]   ;;  %v1312_v57 = vld [vmem:[%s1473_s0 + $0x4c] ss:$36 sps:$4 sm:$0xff]   ;;  %v1325_v4 = vld [vmem:[#allocation2 + $0x178] sm:$0xff]  }
  0x26   :  { %1145 = vmatpush3.bf16.msra.mxu1 %v1272_v19  ;;  %v1310_v55 = vld [vmem:[#allocation2 + $0x1a0] sm:$0xff]   ;;  %v1314_v58 = vld [vmem:[#allocation2 + $0x128] sm:$0xff]   ;;  %v1320_v63 = vld [vmem:[%s1473_s0 + $0x50] ss:$36 sps:$4 sm:$0xff]  }
  0x27   :  { %1146 = vmatprep.subr.bf16.mxu1 %v1275_v22  ;;  %v1315_v59 = vld [vmem:[%s1473_s0 + $0x48] ss:$36 sps:$4 sm:$0xff]   ;;  %v1321_v0 = vld [vmem:[#allocation2 + $0x170] sm:$0xff]   ;;  %v1326_v5 = vld [vmem:[#allocation2 + $0x138] sm:$0xff]  }
  0x28   :  { %1119 = vmatpush3.bf16.msra.mxu0 %v1274_v21  ;;  %v1316_v60 = vld [vmem:[#allocation2 + $0x1e8] sm:$0xff]   ;;  %v1322_v1 = vld [vmem:[#allocation2 + $0x130] sm:$0xff]   ;;  %v1327_v6 = vld [vmem:[#allocation2 + $0x1f8] sm:$0xff]  }
  0x29   :  { %1120 = vmatprep.subr.bf16.mxu0 %v1277_v24  ;;  %v1319_v62 = vld [vmem:[#allocation2 + $0x1a8] sm:$0xff]   ;;  %v1323_v2 = vld [vmem:[#allocation2 + $0x1f0] sm:$0xff]   ;;  %v1331_v9 = vld [vmem:[#allocation2 + $0x1b8] sm:$0xff]  }
  0x2a   :  { %1147 = vmatpush3.bf16.msra.mxu1 %v1276_v23  ;;  %v1324_v3 = vld [vmem:[#allocation2 + $0x1b0] sm:$0xff]   ;;  %v1332_v10 = vld [vmem:[#allocation2 + $0x200] sm:$0xff]   ;;  %v1333_v11 = vld [vmem:[%s1473_s0 + $0x18] ss:$36 sps:$4 sm:$0xff]  }
  0x2b   :  { %1148 = vmatprep.subr.bf16.mxu1 %v1279_v26  ;;  %v1328_v7 = vld [vmem:[%s1473_s0 + $0x10] ss:$36 sps:$4 sm:$0xff]   ;;  %v1335_v12 = vld [vmem:[%s1473_s0 + $0x1c] ss:$36 sps:$4 sm:$0xff]   ;;  %v1336_v13 = vld [vmem:[#allocation2 + $0x208] sm:$0xff]  }
  0x2c   :  { %1121 = vmatpush3.bf16.msra.mxu0 %v1278_v25  ;;  %v1330_v8 = vld [vmem:[%s1473_s0 + $0x14] ss:$36 sps:$4 sm:$0xff]   ;;  %v1337_v14 = vld [vmem:[%s1473_s0 + $0x5c] ss:$36 sps:$4 sm:$0xff]   ;;  %v1341_v17 = vld [vmem:[%s1473_s0 + $0x64] ss:$36 sps:$4 sm:$0xff]  }
  0x2d   :  { %1122 = vmatprep.subr.bf16.mxu0 %v1281_v28  ;;  %v1339_v15 = vld [vmem:[%s1473_s0 + $0x58] ss:$36 sps:$4 sm:$0xff]   ;;  %v1340_v16 = vld [vmem:[#allocation2 + $0x210] sm:$0xff]   ;;  %v1343_v18 = vld [vmem:[%s1473_s0 + $0x60] ss:$36 sps:$4 sm:$0xff]  }
  0x2e   :  { %1149 = vmatpush3.bf16.msra.mxu1 %v1280_v27  ;;  %v1344_v19 = vld [vmem:[#allocation2 + $0x218] sm:$0xff]   ;;  %v1345_v20 = vld [vmem:[#allocation2 + $0x220] sm:$0xff]   ;;  %v1346_v22 = vld [vmem:[#allocation2 + $0x228] sm:$0xff]  }
  0x2f   :  { %1150 = vmatprep.subr.bf16.mxu1 %v1283_v30  ;;  %v1349_v21 = vld [vmem:[%s1473_s0 + $0x20] ss:$36 sps:$4 sm:$0xff]   ;;  %v1347_v23 = vld [vmem:[#allocation2 + $0x230] sm:$0xff]   ;;  %v1348_v24 = vld [vmem:[#allocation2 + $0x238] sm:$0xff]  }
  0x30   :  { %1123 = vmatpush3.bf16.msra.mxu0 %v1282_v29  ;;  %v1350_v25 = vld [vmem:[%s1473_s0 + $0x68] ss:$36 sps:$4 sm:$0xff]   ;;  %v998_v27 = vld [vmem:[%s1475_s2] ss:$0 sm:$0xff] }
  0x31   :  { %1164 = vmatprep.subr.bf16.mxu0 %v1288_v34 }
  0x32   :  { %1151 = vmatpush3.bf16.msra.mxu1 %v1287_v33 }
  0x33   :  { %757 = vmatmul.mubr.bf16.vlgmr.msra.gmra.mrb[0].mxu0 %v1284_v31  ;;  %1192 = vmatprep.subr.bf16.mxu1 %v1293_v38 }
  0x34   :  { %1165 = vmatpush3.bf16.msra.mxu0 %v1292_v37  ;;  %764 = vmatprep.mubr.bf16.mxu0 %v1312_v57 }
  0x35   :  { %806 = vmatmul.mubr.bf16.vlgmr.msra.gmra.mrb[0].mxu1 %v1289_v35  ;;  %1166 = vmatprep.subr.bf16.mxu0 %v1295_v40 }
  0x36   :  { %1193 = vmatpush3.bf16.msra.mxu1 %v1294_v39  ;;  %813 = vmatprep.mubr.bf16.mxu1 %v1317_v61 }
  0x37   :  { %1194 = vmatprep.subr.bf16.mxu1 %v1297_v42 }
  0x38   :  { %1167 = vmatpush3.bf16.msra.mxu0 %v1296_v41 }
  0x39   :  { %1168 = vmatprep.subr.bf16.mxu0 %v1299_v44 }
  0x3a   :  { %1195 = vmatpush3.bf16.msra.mxu1 %v1298_v43 }
  0x3b   :  { %1196 = vmatprep.subr.bf16.mxu1 %v1301_v46  ;;  %765 = vmatmul.mubr.bf16.gmra.mrb[4].mxu0 %v1315_v59 }
  0x3c   :  { %1169 = vmatpush3.bf16.msra.mxu0 %v1300_v45  ;;  %854 = vmatprep.mubr.bf16.mxu0 %v1330_v8 }
  0x3d   :  { %1170 = vmatprep.subr.bf16.mxu0 %v1303_v48  ;;  %814 = vmatmul.mubr.bf16.gmra.mrb[4].mxu1 %v1320_v63 }
  0x3e   :  { %1197 = vmatpush3.bf16.msra.mxu1 %v1302_v47  ;;  %903 = vmatprep.mubr.bf16.mxu1 %v1335_v12 }
  0x3f   :  { %1198 = vmatprep.subr.bf16.mxu1 %v1305_v50 }
  0x40   :  { %1171 = vmatpush3.bf16.msra.mxu0 %v1304_v49 }
  0x41   :  { %1172 = vmatprep.subr.bf16.mxu0 %v1307_v52 }
  0x42   :  { %1199 = vmatpush3.bf16.msra.mxu1 %v1306_v51 }
  0x43   :  { %1200 = vmatprep.subr.bf16.mxu1 %v1309_v54 }
  0x44   :  { %1173 = vmatpush3.bf16.msra.mxu0 %v1308_v53 }
  0x45   :  { %1174 = vmatprep.subr.bf16.mxu0 %v1311_v56 }
  0x46   :  { %1201 = vmatpush3.bf16.msra.mxu1 %v1310_v55 }
  0x47   :  { %1202 = vmatprep.subr.bf16.mxu1 %v1316_v60 }
  0x48   :  { %1175 = vmatpush3.bf16.msra.mxu0 %v1314_v58 }
  0x49   :  { %1176 = vmatprep.subr.bf16.mxu0 %v1321_v0 }
  0x4a   :  { %1203 = vmatpush3.bf16.msra.mxu1 %v1319_v62 }
  0x4b   :  { %1204 = vmatprep.subr.bf16.mxu1 %v1323_v2 }
  0x4c   :  { %1177 = vmatpush3.bf16.msra.mxu0 %v1322_v1 }
  0x4d   :  { %1178 = vmatprep.subr.bf16.mxu0 %v1325_v4 }
  0x4e   :  { %1205 = vmatpush3.bf16.msra.mxu1 %v1324_v3 }
  0x4f   :  { %1206 = vmatprep.subr.bf16.mxu1 %v1327_v6 }
  0x50   :  { %1179 = vmatpush3.bf16.msra.mxu0 %v1326_v5 }
  0x51   :  { %1230 = vmatprep.subr.bf16.mxu0 %v1332_v10 }
  0x52   :  { %1207 = vmatpush3.bf16.msra.mxu1 %v1331_v9 }
  0x53   :  { %855 = vmatmul.mubr.bf16.vlgmr.msra.gmra.mrb[8].mxu0 %v1328_v7 }
  0x54   :  { %1231 = vmatpush3.bf16.msra.mxu0 %v1332_v10  ;;  %862 = vmatprep.mubr.bf16.mxu0 %v1337_v14 }
  0x55   :  { %904 = vmatmul.mubr.bf16.vlgmr.msra.gmra.mrb[8].mxu1 %v1333_v11  ;;  %1232 = vmatprep.subr.bf16.mxu0 %v1336_v13 }
  0x56   :  { %911 = vmatprep.mubr.bf16.mxu1 %v1341_v17 }
  0x58   :  { %1233 = vmatpush3.bf16.msra.mxu0 %v1336_v13 }
  0x59   :  { %1234 = vmatprep.subr.bf16.mxu0 %v1340_v16 }
  0x5b   :  { %863 = vmatmul.mubr.bf16.gmra.mrb[12].mxu0 %v1339_v15 }
  0x5c   :  { %1235 = vmatpush3.bf16.msra.mxu0 %v1340_v16  ;;  %1246 = vmatprep.mubr.bf16.mxu0 %v1349_v21 }
  0x5d   :  { %912 = vmatmul.mubr.bf16.gmra.mrb[12].mxu1 %v1343_v18  ;;  %1236 = vmatprep.subr.bf16.mxu0 %v1344_v19 }
  0x60   :  { %1237 = vmatpush3.bf16.msra.mxu0 %v1344_v19 }
  0x61   :  { %1238 = vmatprep.subr.bf16.mxu0 %v1345_v20 }
  0x64   :  { %1239 = vmatpush3.bf16.msra.mxu0 %v1345_v20 }
  0x65   :  { %1240 = vmatprep.subr.bf16.mxu0 %v1346_v22 }
  0x68   :  { %1241 = vmatpush3.bf16.msra.mxu0 %v1346_v22 }
  0x69   :  { %1242 = vmatprep.subr.bf16.mxu0 %v1347_v23 }
  0x6c   :  { %1243 = vmatpush3.bf16.msra.mxu0 %v1347_v23 }
  0x6d   :  { %1244 = vmatprep.subr.bf16.mxu0 %v1348_v24 }
  0x70   :  { %1245 = vmatpush3.bf16.msra.mxu0 %v1348_v24 }
  0x73   :  { %1247 = vmatmul.mubr.bf16.vlgmr.msra.gmra.mrb[16].mxu0 %v1350_v25 }
 0x106   :  { %v1124_v26 = vpop.f32.mrb[0].mxu0 }
 0x107   :  { %v1125_v28 = vpop.f32.mrb[1].mxu0 }
 0x108   :  { %v1126_v29 = vadd.f32 %v1125_v28, %v1124_v26  ;;  %v1127_v30 = vpop.f32.mrb[2].mxu0  ;;  %v1152_v31 = vpop.f32.mrb[0].mxu1 }
 0x109   :  { %v1128_v32 = vpop.f32.mrb[3].mxu0  ;;  %v1153_v35 = vpop.f32.mrb[1].mxu1 }
 0x10a   :  { %v759_v33 = vadd.f32 %v1126_v29, %v998_v27  ;;  %v1129_v34 = vadd.f32 %v1128_v32, %v1127_v30  ;;  %v1154_v36 = vadd.f32 %v1153_v35, %v1152_v31  ;;  %v1155_v37 = vpop.f32.mrb[2].mxu1 }
 0x10b   :  { %v1156_v39 = vpop.f32.mrb[3].mxu1 }
 0x10c   :  { %v762_v38 = vadd.f32 %v1129_v34, %v998_v27  ;;  %v808_v40 = vadd.f32 %v1154_v36, %v759_v33  ;;  %v1157_v41 = vadd.f32 %v1156_v39, %v1155_v37 }
 0x10e   :  { %v811_v42 = vadd.f32 %v1157_v41, %v762_v38  ;;  %v1130_v43 = vpop.f32.mrb[4].mxu0 }
 0x10f   :  { %v1131_v44 = vpop.f32.mrb[5].mxu0 }
 0x110   :  { %v1132_v45 = vadd.f32 %v1131_v44, %v1130_v43  ;;  %v1133_v46 = vpop.f32.mrb[6].mxu0  ;;  %v1158_v47 = vpop.f32.mrb[4].mxu1 }
 0x111   :  { %v1134_v48 = vpop.f32.mrb[7].mxu0  ;;  %v1159_v51 = vpop.f32.mrb[5].mxu1 }
 0x112   :  { %v767_v49 = vadd.f32 %v1132_v45, %v998_v27  ;;  %v1135_v50 = vadd.f32 %v1134_v48, %v1133_v46  ;;  %v1160_v52 = vadd.f32 %v1159_v51, %v1158_v47  ;;  %v1161_v53 = vpop.f32.mrb[6].mxu1 }
 0x113   :  { %v1162_v55 = vpop.f32.mrb[7].mxu1 }
 0x114   :  { %v770_v54 = vadd.f32 %v1135_v50, %v998_v27  ;;  %v816_v56 = vadd.f32 %v1160_v52, %v767_v49  ;;  %v1163_v57 = vadd.f32 %v1162_v55, %v1161_v53 }
 0x116   :  { %v819_v58 = vadd.f32 %v1163_v57, %v770_v54 }
 0x126   :  { %v1180_v59 = vpop.f32.mrb[8].mxu0 }
 0x127   :  { %v1181_v60 = vpop.f32.mrb[9].mxu0 }
 0x128   :  { %v1182_v61 = vadd.f32 %v1181_v60, %v1180_v59  ;;  %v1183_v62 = vpop.f32.mrb[10].mxu0  ;;  %v1208_v63 = vpop.f32.mrb[8].mxu1 }
 0x129   :  { %v1184_v0 = vpop.f32.mrb[11].mxu0  ;;  %v1209_v3 = vpop.f32.mrb[9].mxu1 }
 0x12a   :  { %v857_v1 = vadd.f32 %v1182_v61, %v808_v40  ;;  %v1185_v2 = vadd.f32 %v1184_v0, %v1183_v62  ;;  %v1210_v4 = vadd.f32 %v1209_v3, %v1208_v63  ;;  %v1211_v5 = vpop.f32.mrb[10].mxu1 }
 0x12b   :  { %v1212_v7 = vpop.f32.mrb[11].mxu1 }
 0x12c   :  { %v860_v6 = vadd.f32 %v1185_v2, %v811_v42  ;;  %v1213_v8 = vadd.f32 %v1212_v7, %v1211_v5  ;;  %v906_v9 = vadd.f32 %v1210_v4, %v857_v1 }
 0x12e   :  { %v1186_v10 = vpop.f32.mrb[12].mxu0  ;;  %v909_v12 = vadd.f32 %v1213_v8, %v860_v6 }
 0x12f   :  { %v1187_v11 = vpop.f32.mrb[13].mxu0 }
 0x130   :  { %v1188_v13 = vadd.f32 %v1187_v11, %v1186_v10  ;;  %v1189_v14 = vpop.f32.mrb[14].mxu0  ;;  %v1214_v15 = vpop.f32.mrb[12].mxu1 }
 0x131   :  { %v1190_v16 = vpop.f32.mrb[15].mxu0  ;;  %v1215_v19 = vpop.f32.mrb[13].mxu1 }
 0x132   :  { %v865_v17 = vadd.f32 %v1188_v13, %v816_v56  ;;  %v1191_v18 = vadd.f32 %v1190_v16, %v1189_v14  ;;  %v1216_v20 = vadd.f32 %v1215_v19, %v1214_v15  ;;  %v1217_v21 = vpop.f32.mrb[14].mxu1 }
 0x133   :  { %v1218_v23 = vpop.f32.mrb[15].mxu1 }
 0x134   :  { %v868_v22 = vadd.f32 %v1191_v18, %v819_v58  ;;  %v1219_v24 = vadd.f32 %v1218_v23, %v1217_v21  ;;  %v914_v25 = vadd.f32 %v1216_v20, %v865_v17 }
 0x136   :  { %v917_v26 = vadd.f32 %v1219_v24, %v868_v22 }
 0x146   :  { %v1248_v27 = vpop.f32.mrb[16].mxu0 }
 0x147   :  { %v963_v28 = vadd.f32 %v1248_v27, %v914_v25  ;;  %v954_v29 = vpop.f32.mrb[17].mxu0 }
 0x148   :  { %v955_v30 = vadd.f32 %v954_v29, %v906_v9  ;;  %v1249_v31 = vpop.f32.mrb[18].mxu0 }
 0x149   :  { %v966_v32 = vadd.f32 %v1249_v31, %v917_v26  ;;  %v957_v33 = vpop.f32.mrb[19].mxu0  ;;  %v971_v35 = vmax.f32 %v963_v28, 0.0 }
 0x14a   :  { %v958_v34 = vadd.f32 %v957_v33, %v909_v12  ;;  %v969_v37 = vmax.f32 %v955_v30, 0.0 }
 0x14b   :  { %v972_v36 = vmax.f32 %v966_v32, 0.0 }
 0x14c   :  { %v970_v38 = vmax.f32 %v958_v34, 0.0 }
 0x14d   :  { %v1105_v39 = vpack.c.bf16 %v972_v36, %v971_v35 }
 0x14e   :  { %v1100_v40 = vpack.c.bf16 %v970_v38, %v969_v37 }
 0x14f   :  { %1107 = vst [vmem:[%s1476_s3 + $0x8] sm:$0xff] %v1105_v39  }
 0x150   :  { %1101 = vst [vmem:[%s1476_s3] sm:$0xff] %v1100_v40  }
 0x151   :  { %997 = vsyncpa [#allocation3], 1 }

// kernel: conv_large_forward.7
= control target key start
LH: loop header
LB: loop body
LE: loop exit
PB: predicated region body
PF: predicated region fallthrough
CT: control target
= control target key end

     0   :  { %14 = vsyncpa [#allocation3], 0  ;;  %s9676_s30 = smov [#allocation2]   ;;  %s13009_s0 = inlined_call_operand.vmem [shape: bf16[8,512], index: 0, kind: input, shape index: {}]   ;;  %s13010_s1 = inlined_call_operand.vmem [shape: bf16[512,1024], index: 1, kind: input, shape index: {}]   ;;  %s13011_s2 = inlined_call_operand.vmem [shape: f32[1,1024], index: 2, kind: input, shape index: {}]   ;;  %s13012_s3 = inlined_call_operand.vmem [shape: bf16[1024,1024], index: 3, kind: input, shape index: {}]   ;;  %s13013_s4 = inlined_call_operand.vmem [shape: f32[1,1024], index: 4, kind: input, shape index: {}]   ;;  %s13014_s5 = inlined_call_operand.vmem [shape: bf16[1024,512], index: 5, kind: input, shape index: {}]   ;;  %s13015_s6 = inlined_call_operand.vmem [shape: f32[1,512], index: 6, kind: input, shape index: {}]   ;;  %s13016_s7 = inlined_call_operand.hbm [shape: bf16[512,128], index: 7, kind: input, shape index: {}]   ;;  %s13017_s8 = inlined_call_operand.vmem [shape: f32[1,128], index: 8, kind: input, shape index: {}]   ;;  %s13018_s9 = inlined_call_operand.vmem [shape: f32[8,128], index: 9, kind: output, shape index: {}]  }
   0x1   :  { %s34_s10 = sshll.u32 %s9676_s30, 4  ;;  %s9652_s13 = scalar_lea.hbm %s13016_s7, 4096  ;;  %s35_s10 = int_to_ptr.vmem [resolvable:$true] %s34_s10 }
   0x2   :  { %p9653_p0 = scmp.ne.s32.totalorder %s13016_s7, %s9652_s13  ;;  %p9656_p1 = scmp.lt.u32.totalorder %s9652_s13, %s13016_s7 }
   0x4   :  { %p9658_p2 = pnand %p9656_p1, %p9653_p0 }
   0x6   :  { %9661 = shalt.err (!%p9658_p2)
}
   0x7   :  { %s9662_s18 = scalar_lea.vmem %s35_s10, 4096  ;;  %p9667_p4 = scmp.lt.s32.totalorder %s35_s10, %s35_s10 }
   0x8   :  { %p9663_p3 = scmp.ne.s32.totalorder %s35_s10, %s9662_s18  ;;  %p9668_p5 = scmp.lt.s32.totalorder %s9662_s18, %s9662_s18 }
   0xa   :  { %p9669_p6 = por %p9668_p5, %p9667_p4 }
   0xc   :  { %p9670_p7 = pnand %p9669_p6, %p9663_p3 }
   0xe   :  { %9673 = shalt.err (!%p9670_p7)
}
   0xf   :  { %s9677_s19 = smov 64   ;;  %s9678_s20 = smov 4  }
  0x10   :  { %40 = dma.hbm_to_vmem [thread:$0]  %s13016_s7, 4096, %s35_s10, [#allocation3], %s9677_s19, %s9677_s19, %s9678_s20  }
  0x11   :  { %9674 = dma.done.wait [#allocation3], 4096  }
  0x12   :  { %9675 = vsyncadd [#allocation3], 4294963200  ;;  %v49_v0 = vld [vmem:[%s13010_s1] sm:$0xff]  ;;  %v50_v2 = vld [vmem:[%s13010_s1 + $0x8] sm:$0xff] }
  0x13   :  { %v53_v1 = vld [vmem:[%s13010_s1 + $0x20] sm:$0xff]  ;;  %v54_v4 = vld [vmem:[%s13010_s1 + $0x28] sm:$0xff] }
  0x14   :  { %v8019_v3 = vcombine.high %v49_v0, %v53_v1  ;;  %v8018_v5 = vcombine.low %v49_v0, %v53_v1  ;;  %v57_v6 = vld [vmem:[%s13010_s1 + $0x40] sm:$0xff]  ;;  %v8021_v8 = vcombine.high %v50_v2, %v54_v4  ;;  %v8020_v9 = vcombine.low %v50_v2, %v54_v4  ;;  %v58_v11 = vld [vmem:[%s13010_s1 + $0x48] sm:$0xff] }
  0x15   :  { %v61_v7 = vld [vmem:[%s13010_s1 + $0x60] sm:$0xff]  ;;  %v62_v12 = vld [vmem:[%s13010_s1 + $0x68] sm:$0xff] }
  0x16   :  { %v8027_v10 = vcombine.high %v57_v6, %v61_v7  ;;  %v65_v13 = vld [vmem:[%s13010_s1 + $0x80] sm:$0xff]  ;;  %1641 = vmatprep.subr.bf16.mxu0 %v8019_v3  ;;  %v8029_v14 = vcombine.high %v58_v11, %v62_v12  ;;  %v66_v16 = vld [vmem:[%s13010_s1 + $0x88] sm:$0xff]  ;;  %1723 = vmatprep.subr.bf16.mxu1 %v8021_v8  ;;  %v8026_v18 = vcombine.low %v57_v6, %v61_v7 }
  0x17   :  { %v69_v15 = vld [vmem:[%s13010_s1 + $0xa0] sm:$0xff]  ;;  %v70_v17 = vld [vmem:[%s13010_s1 + $0xa8] sm:$0xff]  ;;  %1642 = vmatpush1.bf16.msra.mxu0 %v8018_v5  ;;  %1724 = vmatpush1.bf16.msra.mxu1 %v8020_v9  ;;  %v8028_v19 = vcombine.low %v58_v11, %v62_v12 }
  0x18   :  { %1643 = vmatprep.subr.bf16.mxu0 %v8027_v10  ;;  %v8035_v20 = vcombine.high %v65_v13, %v69_v15  ;;  %1725 = vmatprep.subr.bf16.mxu1 %v8029_v14  ;;  %v8037_v21 = vcombine.high %v66_v16, %v70_v17  ;;  %v73_v22 = vld [vmem:[%s13010_s1 + $0xc0] sm:$0xff]  ;;  %v74_v24 = vld [vmem:[%s13010_s1 + $0xc8] sm:$0xff]  ;;  %v8034_v26 = vcombine.low %v65_v13, %v69_v15 }
  0x19   :  { %v77_v23 = vld [vmem:[%s13010_s1 + $0xe0] sm:$0xff]  ;;  %v78_v25 = vld [vmem:[%s13010_s1 + $0xe8] sm:$0xff]  ;;  %v8036_v27 = vcombine.low %v66_v16, %v70_v17 }
  0x1a   :  { %v8043_v28 = vcombine.high %v73_v22, %v77_v23  ;;  %v8045_v29 = vcombine.high %v74_v24, %v78_v25  ;;  %v81_v30 = vld [vmem:[%s13010_s1 + $0x100] sm:$0xff]  ;;  %v82_v32 = vld [vmem:[%s13010_s1 + $0x108] sm:$0xff]  ;;  %v8042_v34 = vcombine.low %v73_v22, %v77_v23  ;;  %v8044_v35 = vcombine.low %v74_v24, %v78_v25 }
  0x1b   :  { %1644 = vmatpush1.bf16.msra.mxu0 %v8026_v18  ;;  %1726 = vmatpush1.bf16.msra.mxu1 %v8028_v19  ;;  %v85_v31 = vld [vmem:[%s13010_s1 + $0x120] sm:$0xff]  ;;  %v86_v33 = vld [vmem:[%s13010_s1 + $0x128] sm:$0xff] }
  0x1c   :  { %1645 = vmatprep.subr.bf16.mxu0 %v8035_v20  ;;  %1727 = vmatprep.subr.bf16.mxu1 %v8037_v21  ;;  %v8051_v36 = vcombine.high %v81_v30, %v85_v31  ;;  %v8053_v37 = vcombine.high %v82_v32, %v86_v33  ;;  %v89_v38 = vld [vmem:[%s13010_s1 + $0x140] sm:$0xff]  ;;  %v90_v40 = vld [vmem:[%s13010_s1 + $0x148] sm:$0xff]  ;;  %v8050_v42 = vcombine.low %v81_v30, %v85_v31 }
  0x1d   :  { %v93_v39 = vld [vmem:[%s13010_s1 + $0x160] sm:$0xff]  ;;  %v94_v41 = vld [vmem:[%s13010_s1 + $0x168] sm:$0xff]  ;;  %v8052_v43 = vcombine.low %v82_v32, %v86_v33 }
  0x1e   :  { %v8059_v44 = vcombine.high %v89_v38, %v93_v39  ;;  %v8061_v45 = vcombine.high %v90_v40, %v94_v41  ;;  %v97_v46 = vld [vmem:[%s13010_s1 + $0x180] sm:$0xff]  ;;  %v98_v48 = vld [vmem:[%s13010_s1 + $0x188] sm:$0xff]  ;;  %v8058_v50 = vcombine.low %v89_v38, %v93_v39  ;;  %v8060_v51 = vcombine.low %v90_v40, %v94_v41 }
  0x1f   :  { %1646 = vmatpush1.bf16.msra.mxu0 %v8034_v26  ;;  %1728 = vmatpush1.bf16.msra.mxu1 %v8036_v27  ;;  %v101_v47 = vld [vmem:[%s13010_s1 + $0x1a0] sm:$0xff]  ;;  %v102_v49 = vld [vmem:[%s13010_s1 + $0x1a8] sm:$0xff] }
  0x20   :  { %1647 = vmatprep.subr.bf16.mxu0 %v8043_v28  ;;  %1729 = vmatprep.subr.bf16.mxu1 %v8045_v29  ;;  %v8067_v52 = vcombine.high %v97_v46, %v101_v47  ;;  %v9828_v53 = vld [vmem:[%s13009_s0] sm:$0xff]  ;;  %v8069_v54 = vcombine.high %v98_v48, %v102_v49  ;;  %v106_v58 = vld [vmem:[%s13010_s1 + $0x1c8] sm:$0xff]  ;;  %v8066_v60 = vcombine.low %v97_v46, %v101_v47 }
  0x21   :  { %v105_v55 = vld [vmem:[%s13010_s1 + $0x1c0] sm:$0xff]  ;;  %v9838_v57 = vcombine.high %v9828_v53, %v9828_v53  ;;  %v110_v59 = vld [vmem:[%s13010_s1 + $0x1e8] sm:$0xff]  ;;  %v8068_v61 = vcombine.low %v98_v48, %v102_v49 }
  0x22   :  { %v109_v56 = vld [vmem:[%s13010_s1 + $0x1e0] sm:$0xff]  ;;  %v8077_v63 = vcombine.high %v106_v58, %v110_v59  ;;  %v114_v2 = vld [vmem:[%s13010_s1 + $0x208] sm:$0xff]  ;;  %v8076_v5 = vcombine.low %v106_v58, %v110_v59 }
  0x23   :  { %1648 = vmatpush1.bf16.msra.mxu0 %v8042_v34  ;;  %1730 = vmatpush1.bf16.msra.mxu1 %v8044_v35  ;;  %v8075_v62 = vcombine.high %v105_v55, %v109_v56  ;;  %v113_v0 = vld [vmem:[%s13010_s1 + $0x200] sm:$0xff]  ;;  %v118_v3 = vld [vmem:[%s13010_s1 + $0x228] sm:$0xff]  ;;  %v8074_v4 = vcombine.low %v105_v55, %v109_v56 }
  0x24   :  { %1649 = vmatprep.subr.bf16.mxu0 %v8051_v36  ;;  %1731 = vmatprep.subr.bf16.mxu1 %v8053_v37  ;;  %v117_v1 = vld [vmem:[%s13010_s1 + $0x220] sm:$0xff]  ;;  %v8085_v7 = vcombine.high %v114_v2, %v118_v3  ;;  %v122_v10 = vld [vmem:[%s13010_s1 + $0x248] sm:$0xff]  ;;  %v8084_v13 = vcombine.low %v114_v2, %v118_v3 }
  0x25   :  { %1673 = vmatprep.mubr.bf16.mxu0 %v9838_v57  ;;  %1755 = vmatprep.mubr.bf16.mxu1 %v9838_v57  ;;  %v8083_v6 = vcombine.high %v113_v0, %v117_v1  ;;  %v121_v8 = vld [vmem:[%s13010_s1 + $0x240] sm:$0xff]  ;;  %v126_v11 = vld [vmem:[%s13010_s1 + $0x268] sm:$0xff]  ;;  %v8082_v12 = vcombine.low %v113_v0, %v117_v1 }
  0x26   :  { %v125_v9 = vld [vmem:[%s13010_s1 + $0x260] sm:$0xff]  ;;  %v8093_v15 = vcombine.high %v122_v10, %v126_v11  ;;  %v130_v18 = vld [vmem:[%s13010_s1 + $0x288] sm:$0xff]  ;;  %v8092_v21 = vcombine.low %v122_v10, %v126_v11 }
  0x27   :  { %1650 = vmatpush1.bf16.msra.mxu0 %v8050_v42  ;;  %1732 = vmatpush1.bf16.msra.mxu1 %v8052_v43  ;;  %v8091_v14 = vcombine.high %v121_v8, %v125_v9  ;;  %v129_v16 = vld [vmem:[%s13010_s1 + $0x280] sm:$0xff]  ;;  %v134_v19 = vld [vmem:[%s13010_s1 + $0x2a8] sm:$0xff]  ;;  %v8090_v20 = vcombine.low %v121_v8, %v125_v9 }
  0x28   :  { %1651 = vmatprep.subr.bf16.mxu0 %v8059_v44  ;;  %1733 = vmatprep.subr.bf16.mxu1 %v8061_v45  ;;  %v133_v17 = vld [vmem:[%s13010_s1 + $0x2a0] sm:$0xff]  ;;  %v8101_v23 = vcombine.high %v130_v18, %v134_v19  ;;  %v138_v26 = vld [vmem:[%s13010_s1 + $0x2c8] sm:$0xff]  ;;  %v8100_v29 = vcombine.low %v130_v18, %v134_v19 }
  0x29   :  { %v8099_v22 = vcombine.high %v129_v16, %v133_v17  ;;  %v137_v24 = vld [vmem:[%s13010_s1 + $0x2c0] sm:$0xff]  ;;  %v142_v27 = vld [vmem:[%s13010_s1 + $0x2e8] sm:$0xff]  ;;  %v8098_v28 = vcombine.low %v129_v16, %v133_v17 }
  0x2a   :  { %v141_v25 = vld [vmem:[%s13010_s1 + $0x2e0] sm:$0xff]  ;;  %v8109_v31 = vcombine.high %v138_v26, %v142_v27  ;;  %v146_v34 = vld [vmem:[%s13010_s1 + $0x308] sm:$0xff]  ;;  %v8108_v37 = vcombine.low %v138_v26, %v142_v27 }
  0x2b   :  { %1652 = vmatpush1.bf16.msra.mxu0 %v8058_v50  ;;  %1734 = vmatpush1.bf16.msra.mxu1 %v8060_v51  ;;  %v8107_v30 = vcombine.high %v137_v24, %v141_v25  ;;  %v145_v32 = vld [vmem:[%s13010_s1 + $0x300] sm:$0xff]  ;;  %v150_v35 = vld [vmem:[%s13010_s1 + $0x328] sm:$0xff]  ;;  %v8106_v36 = vcombine.low %v137_v24, %v141_v25 }
  0x2c   :  { %1653 = vmatprep.subr.bf16.mxu0 %v8067_v52  ;;  %1735 = vmatprep.subr.bf16.mxu1 %v8069_v54  ;;  %v149_v33 = vld [vmem:[%s13010_s1 + $0x320] sm:$0xff]  ;;  %v8117_v39 = vcombine.high %v146_v34, %v150_v35  ;;  %v154_v42 = vld [vmem:[%s13010_s1 + $0x348] sm:$0xff]  ;;  %v8116_v45 = vcombine.low %v146_v34, %v150_v35 }
  0x2d   :  { %v8115_v38 = vcombine.high %v145_v32, %v149_v33  ;;  %v153_v40 = vld [vmem:[%s13010_s1 + $0x340] sm:$0xff]  ;;  %v158_v43 = vld [vmem:[%s13010_s1 + $0x368] sm:$0xff]  ;;  %v8114_v44 = vcombine.low %v145_v32, %v149_v33 }
  0x2e   :  { %v157_v41 = vld [vmem:[%s13010_s1 + $0x360] sm:$0xff]  ;;  %v8125_v47 = vcombine.high %v154_v42, %v158_v43  ;;  %v162_v50 = vld [vmem:[%s13010_s1 + $0x388] sm:$0xff]  ;;  %v8124_v54 = vcombine.low %v154_v42, %v158_v43 }
  0x2f   :  { %1654 = vmatpush1.bf16.msra.mxu0 %v8066_v60  ;;  %1736 = vmatpush1.bf16.msra.mxu1 %v8068_v61  ;;  %v8123_v46 = vcombine.high %v153_v40, %v157_v41  ;;  %v161_v48 = vld [vmem:[%s13010_s1 + $0x380] sm:$0xff]  ;;  %v166_v51 = vld [vmem:[%s13010_s1 + $0x3a8] sm:$0xff]  ;;  %v8122_v52 = vcombine.low %v153_v40, %v157_v41 }
  0x30   :  { %1655 = vmatprep.subr.bf16.mxu0 %v8075_v62  ;;  %1737 = vmatprep.subr.bf16.mxu1 %v8077_v63  ;;  %v165_v49 = vld [vmem:[%s13010_s1 + $0x3a0] sm:$0xff]  ;;  %v8133_v56 = vcombine.high %v162_v50, %v166_v51  ;;  %v170_v60 = vld [vmem:[%s13010_s1 + $0x3c8] sm:$0xff]  ;;  %v8132_v63 = vcombine.low %v162_v50, %v166_v51 }
  0x31   :  { %v8131_v55 = vcombine.high %v161_v48, %v165_v49  ;;  %v169_v58 = vld [vmem:[%s13010_s1 + $0x3c0] sm:$0xff]  ;;  %v174_v61 = vld [vmem:[%s13010_s1 + $0x3e8] sm:$0xff]  ;;  %v8130_v62 = vcombine.low %v161_v48, %v165_v49 }
  0x32   :  { %v173_v59 = vld [vmem:[%s13010_s1 + $0x3e0] sm:$0xff]  ;;  %v8141_v1 = vcombine.high %v170_v60, %v174_v61 }
  0x33   :  { %1656 = vmatpush1.bf16.msra.mxu0 %v8074_v4  ;;  %1738 = vmatpush1.bf16.msra.mxu1 %v8076_v5  ;;  %v8139_v0 = vcombine.high %v169_v58, %v173_v59  ;;  %v177_v2 = vld [vmem:[%s13010_s1 + $0x400] sm:$0xff]  ;;  %v178_v4 = vld [vmem:[%s13010_s1 + $0x408] sm:$0xff] }
  0x34   :  { %1657 = vmatprep.subr.bf16.mxu0 %v8083_v6  ;;  %1739 = vmatprep.subr.bf16.mxu1 %v8085_v7  ;;  %v181_v3 = vld [vmem:[%s13010_s1 + $0x420] sm:$0xff]  ;;  %v182_v5 = vld [vmem:[%s13010_s1 + $0x428] sm:$0xff]  ;;  %v8138_v6 = vcombine.low %v169_v58, %v173_v59  ;;  %v8140_v7 = vcombine.low %v170_v60, %v174_v61 }
  0x35   :  { %v8147_v8 = vcombine.high %v177_v2, %v181_v3  ;;  %v8149_v9 = vcombine.high %v178_v4, %v182_v5  ;;  %v185_v10 = vld [vmem:[%s13010_s1 + $0x440] sm:$0xff]  ;;  %v8146_v16 = vcombine.low %v177_v2, %v181_v3  ;;  %v8148_v17 = vcombine.low %v178_v4, %v182_v5 }
  0x36   :  { %v189_v11 = vld [vmem:[%s13010_s1 + $0x460] sm:$0xff] }
  0x37   :  { %1658 = vmatpush1.bf16.msra.mxu0 %v8082_v12  ;;  %1740 = vmatpush1.bf16.msra.mxu1 %v8084_v13  ;;  %v9964_v12 = vcombine.low %v9828_v53, %v9828_v53  ;;  %v186_v13 = vld [vmem:[%s13010_s1 + $0x448] sm:$0xff]  ;;  %v8155_v53 = vcombine.high %v185_v10, %v189_v11  ;;  %v193_v18 = vld [vmem:[%s13010_s1 + $0x480] sm:$0xff]  ;;  %v8154_v24 = vcombine.low %v185_v10, %v189_v11 }
  0x38   :  { %1659 = vmatprep.subr.bf16.mxu0 %v8091_v14  ;;  %1741 = vmatprep.subr.bf16.mxu1 %v8093_v15  ;;  %v190_v14 = vld [vmem:[%s13010_s1 + $0x468] sm:$0xff]  ;;  %v197_v19 = vld [vmem:[%s13010_s1 + $0x4a0] sm:$0xff] }
  0x39   :  { %v9975_v15 = vld [vmem:[%s13009_s0 + $0x8] sm:$0xff]  ;;  %v8156_v25 = vcombine.low %v186_v13, %v190_v14  ;;  %v8163_v26 = vcombine.high %v193_v18, %v197_v19  ;;  %v201_v27 = vld [vmem:[%s13010_s1 + $0x4c0] sm:$0xff]  ;;  %v8162_v32 = vcombine.low %v193_v18, %v197_v19 }
  0x3a   :  { %v209_v35 = vld [vmem:[%s13010_s1 + $0x500] sm:$0xff]  ;;  %v254_v18 = vld [vmem:[%s13010_s1 + $0x668] sm:$0xff] }
  0x3b   :  { %1660 = vmatpush1.bf16.msra.mxu0 %v8090_v20  ;;  %1742 = vmatpush1.bf16.msra.mxu1 %v8092_v21  ;;  %v194_v20 = vld [vmem:[%s13010_s1 + $0x488] sm:$0xff]  ;;  %v8157_v21 = vcombine.high %v186_v13, %v190_v14  ;;  %v217_v43 = vld [vmem:[%s13010_s1 + $0x540] sm:$0xff] }
  0x3c   :  { %1661 = vmatprep.subr.bf16.mxu0 %v8099_v22  ;;  %1743 = vmatprep.subr.bf16.mxu1 %v8101_v23  ;;  %v198_v22 = vld [vmem:[%s13010_s1 + $0x4a8] sm:$0xff]  ;;  %v9991_v23 = vcombine.high %v9975_v15, %v9975_v15  ;;  %v225_v51 = vld [vmem:[%s13010_s1 + $0x580] sm:$0xff] }
  0x3d   :  { %v8164_v33 = vcombine.low %v194_v20, %v198_v22  ;;  %v233_v61 = vld [vmem:[%s13010_s1 + $0x5c0] sm:$0xff] }
  0x3e   :  { %v241_v5 = vld [vmem:[%s13010_s1 + $0x600] sm:$0xff] }
  0x3f   :  { %1662 = vmatpush1.bf16.msra.mxu0 %v8098_v28  ;;  %1744 = vmatpush1.bf16.msra.mxu1 %v8100_v29  ;;  %v205_v28 = vld [vmem:[%s13010_s1 + $0x4e0] sm:$0xff]  ;;  %v202_v29 = vld [vmem:[%s13010_s1 + $0x4c8] sm:$0xff] }
  0x40   :  { %1663 = vmatprep.subr.bf16.mxu0 %v8107_v30  ;;  %1745 = vmatprep.subr.bf16.mxu1 %v8109_v31  ;;  %v8165_v30 = vcombine.high %v194_v20, %v198_v22  ;;  %v206_v31 = vld [vmem:[%s13010_s1 + $0x4e8] sm:$0xff]  ;;  %v8171_v34 = vcombine.high %v201_v27, %v205_v28  ;;  %v8170_v40 = vcombine.low %v201_v27, %v205_v28  ;;  %v249_v14 = vld [vmem:[%s13010_s1 + $0x640] sm:$0xff] }
  0x41   :  { %v8172_v41 = vcombine.low %v202_v29, %v206_v31  ;;  %v257_v22 = vld [vmem:[%s13010_s1 + $0x680] sm:$0xff]  ;;  %v262_v27 = vld [vmem:[%s13010_s1 + $0x6a8] sm:$0xff] }
  0x43   :  { %1664 = vmatpush1.bf16.msra.mxu0 %v8106_v36  ;;  %1746 = vmatpush1.bf16.msra.mxu1 %v8108_v37  ;;  %v213_v36 = vld [vmem:[%s13010_s1 + $0x520] sm:$0xff]  ;;  %v210_v37 = vld [vmem:[%s13010_s1 + $0x508] sm:$0xff] }
  0x44   :  { %1665 = vmatprep.subr.bf16.mxu0 %v8115_v38  ;;  %1747 = vmatprep.subr.bf16.mxu1 %v8117_v39  ;;  %v8173_v38 = vcombine.high %v202_v29, %v206_v31  ;;  %v214_v39 = vld [vmem:[%s13010_s1 + $0x528] sm:$0xff]  ;;  %v8179_v42 = vcombine.high %v209_v35, %v213_v36  ;;  %v8178_v48 = vcombine.low %v209_v35, %v213_v36  ;;  %v265_v31 = vld [vmem:[%s13010_s1 + $0x6c0] sm:$0xff] }
  0x45   :  { %v8180_v49 = vcombine.low %v210_v37, %v214_v39  ;;  %v270_v35 = vld [vmem:[%s13010_s1 + $0x6e8] sm:$0xff] }
  0x47   :  { %1666 = vmatpush1.bf16.msra.mxu0 %v8114_v44  ;;  %1748 = vmatpush1.bf16.msra.mxu1 %v8116_v45  ;;  %v221_v44 = vld [vmem:[%s13010_s1 + $0x560] sm:$0xff]  ;;  %v218_v45 = vld [vmem:[%s13010_s1 + $0x548] sm:$0xff] }
  0x48   :  { %1667 = vmatprep.subr.bf16.mxu0 %v8123_v46  ;;  %1749 = vmatprep.subr.bf16.mxu1 %v8125_v47  ;;  %v8181_v46 = vcombine.high %v210_v37, %v214_v39  ;;  %v222_v47 = vld [vmem:[%s13010_s1 + $0x568] sm:$0xff]  ;;  %v8187_v50 = vcombine.high %v217_v43, %v221_v44  ;;  %v8186_v58 = vcombine.low %v217_v43, %v221_v44  ;;  %v273_v39 = vld [vmem:[%s13010_s1 + $0x700] sm:$0xff] }
  0x49   :  { %v8188_v59 = vcombine.low %v218_v45, %v222_v47  ;;  %v278_v43 = vld [vmem:[%s13010_s1 + $0x728] sm:$0xff] }
  0x4b   :  { %1668 = vmatpush1.bf16.msra.mxu0 %v8122_v52  ;;  %1750 = vmatpush1.bf16.msra.mxu1 %v8124_v54  ;;  %v229_v52 = vld [vmem:[%s13010_s1 + $0x5a0] sm:$0xff]  ;;  %v226_v54 = vld [vmem:[%s13010_s1 + $0x588] sm:$0xff] }
  0x4c   :  { %1669 = vmatprep.subr.bf16.mxu0 %v8131_v55  ;;  %1751 = vmatprep.subr.bf16.mxu1 %v8133_v56  ;;  %v8189_v55 = vcombine.high %v218_v45, %v222_v47  ;;  %v230_v56 = vld [vmem:[%s13010_s1 + $0x5a8] sm:$0xff]  ;;  %v8195_v60 = vcombine.high %v225_v51, %v229_v52  ;;  %v8194_v2 = vcombine.low %v225_v51, %v229_v52  ;;  %v281_v47 = vld [vmem:[%s13010_s1 + $0x740] sm:$0xff] }
  0x4d   :  { %v8196_v3 = vcombine.low %v226_v54, %v230_v56  ;;  %v286_v51 = vld [vmem:[%s13010_s1 + $0x768] sm:$0xff] }
  0x4f   :  { %1670 = vmatpush1.bf16.msra.mxu0 %v8130_v62  ;;  %1752 = vmatpush1.bf16.msra.mxu1 %v8132_v63  ;;  %v237_v62 = vld [vmem:[%s13010_s1 + $0x5e0] sm:$0xff]  ;;  %v234_v63 = vld [vmem:[%s13010_s1 + $0x5c8] sm:$0xff] }
  0x50   :  { %1671 = vmatprep.subr.bf16.mxu0 %v8139_v0  ;;  %1753 = vmatprep.subr.bf16.mxu1 %v8141_v1  ;;  %v8197_v0 = vcombine.high %v226_v54, %v230_v56  ;;  %v238_v1 = vld [vmem:[%s13010_s1 + $0x5e8] sm:$0xff]  ;;  %v8203_v4 = vcombine.high %v233_v61, %v237_v62  ;;  %v8202_v10 = vcombine.low %v233_v61, %v237_v62  ;;  %v289_v56 = vld [vmem:[%s13010_s1 + $0x780] sm:$0xff] }
  0x51   :  { %v8204_v11 = vcombine.low %v234_v63, %v238_v1  ;;  %v294_v61 = vld [vmem:[%s13010_s1 + $0x7a8] sm:$0xff] }
  0x53   :  { %1672 = vmatpush1.bf16.msra.mxu0 %v8138_v6  ;;  %1754 = vmatpush1.bf16.msra.mxu1 %v8140_v7  ;;  %v245_v6 = vld [vmem:[%s13010_s1 + $0x620] sm:$0xff]  ;;  %v242_v7 = vld [vmem:[%s13010_s1 + $0x608] sm:$0xff] }
  0x54   :  { %1682 = vmatprep.subr.bf16.mxu0 %v8147_v8  ;;  %1764 = vmatprep.subr.bf16.mxu1 %v8149_v9  ;;  %v8205_v8 = vcombine.high %v234_v63, %v238_v1  ;;  %v246_v9 = vld [vmem:[%s13010_s1 + $0x628] sm:$0xff]  ;;  %v8211_v13 = vcombine.high %v241_v5, %v245_v6  ;;  %v8210_v19 = vcombine.low %v241_v5, %v245_v6  ;;  %v297_v1 = vld [vmem:[%s13010_s1 + $0x7c0] sm:$0xff] }
  0x55   :  { %v8212_v20 = vcombine.low %v242_v7, %v246_v9  ;;  %v302_v5 = vld [vmem:[%s13010_s1 + $0x7e8] sm:$0xff] }
  0x56   :  { %1674 = vmatmul.mubr.bf16.vlgmr.msra.gmra.mrb[0].mxu0 %v9964_v12  ;;  %1756 = vmatmul.mubr.bf16.vlgmr.msra.gmra.mrb[0].mxu1 %v9964_v12 }
  0x57   :  { %1683 = vmatpush1.bf16.msra.mxu0 %v8146_v16  ;;  %1765 = vmatpush1.bf16.msra.mxu1 %v8148_v17  ;;  %v253_v16 = vld [vmem:[%s13010_s1 + $0x660] sm:$0xff]  ;;  %v250_v17 = vld [vmem:[%s13010_s1 + $0x648] sm:$0xff] }
  0x58   :  { %1684 = vmatprep.subr.bf16.mxu0 %v8155_v53  ;;  %1766 = vmatprep.subr.bf16.mxu1 %v8157_v21  ;;  %v8213_v53 = vcombine.high %v242_v7, %v246_v9  ;;  %v8219_v21 = vcombine.high %v249_v14, %v253_v16  ;;  %v8218_v28 = vcombine.low %v249_v14, %v253_v16  ;;  %v51_v9 = vld [vmem:[%s13010_s1 + $0x10] sm:$0xff]  ;;  %v56_v14 = vld [vmem:[%s13010_s1 + $0x38] sm:$0xff] }
  0x59   :  { %1714 = vmatprep.mubr.bf16.mxu0 %v9991_v23  ;;  %1796 = vmatprep.mubr.bf16.mxu1 %v9991_v23  ;;  %v8220_v29 = vcombine.low %v250_v17, %v254_v18 }
  0x5b   :  { %1685 = vmatpush1.bf16.msra.mxu0 %v8154_v24  ;;  %1767 = vmatpush1.bf16.msra.mxu1 %v8156_v25  ;;  %v261_v24 = vld [vmem:[%s13010_s1 + $0x6a0] sm:$0xff]  ;;  %v258_v25 = vld [vmem:[%s13010_s1 + $0x688] sm:$0xff] }
  0x5c   :  { %1686 = vmatprep.subr.bf16.mxu0 %v8163_v26  ;;  %1768 = vmatprep.subr.bf16.mxu1 %v8165_v30  ;;  %v8221_v26 = vcombine.high %v250_v17, %v254_v18  ;;  %v8227_v30 = vcombine.high %v257_v22, %v261_v24  ;;  %v8226_v36 = vcombine.low %v257_v22, %v261_v24  ;;  %v59_v18 = vld [vmem:[%s13010_s1 + $0x50] sm:$0xff]  ;;  %v64_v22 = vld [vmem:[%s13010_s1 + $0x78] sm:$0xff] }
  0x5d   :  { %v8228_v37 = vcombine.low %v258_v25, %v262_v27  ;;  %v10179_v24 = vcombine.low %v9975_v15, %v9975_v15  ;;  %v72_v15 = vld [vmem:[%s13010_s1 + $0xb8] sm:$0xff] }
  0x5f   :  { %1687 = vmatpush1.bf16.msra.mxu0 %v8162_v32  ;;  %1769 = vmatpush1.bf16.msra.mxu1 %v8164_v33  ;;  %v269_v32 = vld [vmem:[%s13010_s1 + $0x6e0] sm:$0xff]  ;;  %v266_v33 = vld [vmem:[%s13010_s1 + $0x6c8] sm:$0xff] }
  0x60   :  { %1688 = vmatprep.subr.bf16.mxu0 %v8171_v34  ;;  %1770 = vmatprep.subr.bf16.mxu1 %v8173_v38  ;;  %v8229_v34 = vcombine.high %v258_v25, %v262_v27  ;;  %v8235_v38 = vcombine.high %v265_v31, %v269_v32  ;;  %v8234_v44 = vcombine.low %v265_v31, %v269_v32  ;;  %v71_v27 = vld [vmem:[%s13010_s1 + $0xb0] sm:$0xff] }
  0x61   :  { %v8236_v45 = vcombine.low %v266_v33, %v270_v35 }
  0x63   :  { %1689 = vmatpush1.bf16.msra.mxu0 %v8170_v40  ;;  %1771 = vmatpush1.bf16.msra.mxu1 %v8172_v41  ;;  %v277_v40 = vld [vmem:[%s13010_s1 + $0x720] sm:$0xff]  ;;  %v274_v41 = vld [vmem:[%s13010_s1 + $0x708] sm:$0xff] }
  0x64   :  { %1690 = vmatprep.subr.bf16.mxu0 %v8179_v42  ;;  %1772 = vmatprep.subr.bf16.mxu1 %v8181_v46  ;;  %v8237_v42 = vcombine.high %v266_v33, %v270_v35  ;;  %v8243_v46 = vcombine.high %v273_v39, %v277_v40  ;;  %v8242_v52 = vcombine.low %v273_v39, %v277_v40  ;;  %v75_v35 = vld [vmem:[%s13010_s1 + $0xd0] sm:$0xff]  ;;  %v80_v39 = vld [vmem:[%s13010_s1 + $0xf8] sm:$0xff] }
  0x65   :  { %v8244_v54 = vcombine.low %v274_v41, %v278_v43 }
  0x67   :  { %1691 = vmatpush1.bf16.msra.mxu0 %v8178_v48  ;;  %1773 = vmatpush1.bf16.msra.mxu1 %v8180_v49  ;;  %v285_v48 = vld [vmem:[%s13010_s1 + $0x760] sm:$0xff]  ;;  %v282_v49 = vld [vmem:[%s13010_s1 + $0x748] sm:$0xff] }
  0x68   :  { %1692 = vmatprep.subr.bf16.mxu0 %v8187_v50  ;;  %1774 = vmatprep.subr.bf16.mxu1 %v8189_v55  ;;  %v8245_v50 = vcombine.high %v274_v41, %v278_v43  ;;  %v8251_v55 = vcombine.high %v281_v47, %v285_v48  ;;  %v8250_v62 = vcombine.low %v281_v47, %v285_v48  ;;  %v83_v43 = vld [vmem:[%s13010_s1 + $0x110] sm:$0xff] }
  0x69   :  { %v8252_v63 = vcombine.low %v282_v49, %v286_v51 }
  0x6b   :  { %1693 = vmatpush1.bf16.msra.mxu0 %v8186_v58  ;;  %1775 = vmatpush1.bf16.msra.mxu1 %v8188_v59  ;;  %v293_v58 = vld [vmem:[%s13010_s1 + $0x7a0] sm:$0xff]  ;;  %v290_v59 = vld [vmem:[%s13010_s1 + $0x788] sm:$0xff] }
  0x6c   :  { %1694 = vmatprep.subr.bf16.mxu0 %v8195_v60  ;;  %1776 = vmatprep.subr.bf16.mxu1 %v8197_v0  ;;  %v8253_v60 = vcombine.high %v282_v49, %v286_v51  ;;  %v8259_v0 = vcombine.high %v289_v56, %v293_v58  ;;  %v8258_v6 = vcombine.low %v289_v56, %v293_v58  ;;  %v95_v51 = vld [vmem:[%s13010_s1 + $0x170] sm:$0xff] }
  0x6d   :  { %v8260_v7 = vcombine.low %v290_v59, %v294_v61 }
  0x6f   :  { %1695 = vmatpush1.bf16.msra.mxu0 %v8194_v2  ;;  %1777 = vmatpush1.bf16.msra.mxu1 %v8196_v3  ;;  %v301_v2 = vld [vmem:[%s13010_s1 + $0x7e0] sm:$0xff]  ;;  %v298_v3 = vld [vmem:[%s13010_s1 + $0x7c8] sm:$0xff] }
  0x70   :  { %1696 = vmatprep.subr.bf16.mxu0 %v8203_v4  ;;  %1778 = vmatprep.subr.bf16.mxu1 %v8205_v8  ;;  %v8261_v4 = vcombine.high %v290_v59, %v294_v61  ;;  %v8267_v8 = vcombine.high %v297_v1, %v301_v2  ;;  %v8266_v16 = vcombine.low %v297_v1, %v301_v2  ;;  %v103_v61 = vld [vmem:[%s13010_s1 + $0x1b0] sm:$0xff] }
  0x71   :  { %v8268_v17 = vcombine.low %v298_v3, %v302_v5 }
  0x73   :  { %1697 = vmatpush1.bf16.msra.mxu0 %v8202_v10  ;;  %1779 = vmatpush1.bf16.msra.mxu1 %v8204_v11  ;;  %v55_v10 = vld [vmem:[%s13010_s1 + $0x30] sm:$0xff]  ;;  %v52_v11 = vld [vmem:[%s13010_s1 + $0x18] sm:$0xff] }
  0x74   :  { %1698 = vmatprep.subr.bf16.mxu0 %v8211_v13  ;;  %1780 = vmatprep.subr.bf16.mxu1 %v8213_v53  ;;  %v8269_v13 = vcombine.high %v298_v3, %v302_v5  ;;  %v8023_v53 = vcombine.high %v51_v9, %v55_v10  ;;  %v8022_v25 = vcombine.low %v51_v9, %v55_v10  ;;  %v111_v5 = vld [vmem:[%s13010_s1 + $0x1f0] sm:$0xff] }
  0x77   :  { %1699 = vmatpush1.bf16.msra.mxu0 %v8210_v19  ;;  %1781 = vmatpush1.bf16.msra.mxu1 %v8212_v20  ;;  %v63_v19 = vld [vmem:[%s13010_s1 + $0x70] sm:$0xff]  ;;  %v60_v20 = vld [vmem:[%s13010_s1 + $0x58] sm:$0xff] }
  0x78   :  { %1700 = vmatprep.subr.bf16.mxu0 %v8219_v21  ;;  %1782 = vmatprep.subr.bf16.mxu1 %v8221_v26  ;;  %v8025_v21 = vcombine.high %v52_v11, %v56_v14  ;;  %v67_v26 = vld [vmem:[%s13010_s1 + $0x90] sm:$0xff]  ;;  %v8033_v31 = vcombine.high %v60_v20, %v64_v22  ;;  %v8030_v32 = vcombine.low %v59_v18, %v63_v19 }
  0x79   :  { %v8032_v33 = vcombine.low %v60_v20, %v64_v22  ;;  %v8038_v40 = vcombine.low %v67_v26, %v71_v27  ;;  %v127_v22 = vld [vmem:[%s13010_s1 + $0x270] sm:$0xff] }
  0x7b   :  { %1701 = vmatpush1.bf16.msra.mxu0 %v8218_v28  ;;  %1783 = vmatpush1.bf16.msra.mxu1 %v8220_v29  ;;  %v8024_v28 = vcombine.low %v52_v11, %v56_v14  ;;  %v8031_v29 = vcombine.high %v59_v18, %v63_v19  ;;  %v119_v14 = vld [vmem:[%s13010_s1 + $0x230] sm:$0xff] }
  0x7c   :  { %1702 = vmatprep.subr.bf16.mxu0 %v8227_v30  ;;  %1784 = vmatprep.subr.bf16.mxu1 %v8229_v34  ;;  %v68_v30 = vld [vmem:[%s13010_s1 + $0x98] sm:$0xff]  ;;  %v8039_v34 = vcombine.high %v67_v26, %v71_v27 }
  0x7d   :  { %v8040_v41 = vcombine.low %v68_v30, %v72_v15  ;;  %v128_v27 = vld [vmem:[%s13010_s1 + $0x278] sm:$0xff] }
  0x7f   :  { %1703 = vmatpush1.bf16.msra.mxu0 %v8226_v36  ;;  %1785 = vmatpush1.bf16.msra.mxu1 %v8228_v37  ;;  %v79_v36 = vld [vmem:[%s13010_s1 + $0xf0] sm:$0xff]  ;;  %v8041_v37 = vcombine.high %v68_v30, %v72_v15 }
  0x80   :  { %1704 = vmatprep.subr.bf16.mxu0 %v8235_v38  ;;  %1786 = vmatprep.subr.bf16.mxu1 %v8237_v42  ;;  %v76_v38 = vld [vmem:[%s13010_s1 + $0xd8] sm:$0xff]  ;;  %v8047_v42 = vcombine.high %v75_v35, %v79_v36  ;;  %v8046_v47 = vcombine.low %v75_v35, %v79_v36  ;;  %v131_v15 = vld [vmem:[%s13010_s1 + $0x290] sm:$0xff] }
  0x81   :  { %v8048_v48 = vcombine.low %v76_v38, %v80_v39 }
  0x83   :  { %1705 = vmatpush1.bf16.msra.mxu0 %v8234_v44  ;;  %1787 = vmatpush1.bf16.msra.mxu1 %v8236_v45  ;;  %v87_v44 = vld [vmem:[%s13010_s1 + $0x130] sm:$0xff]  ;;  %v84_v45 = vld [vmem:[%s13010_s1 + $0x118] sm:$0xff] }
  0x84   :  { %1706 = vmatprep.subr.bf16.mxu0 %v8243_v46  ;;  %1788 = vmatprep.subr.bf16.mxu1 %v8245_v50  ;;  %v88_v46 = vld [vmem:[%s13010_s1 + $0x138] sm:$0xff]  ;;  %v8055_v49 = vcombine.high %v83_v43, %v87_v44  ;;  %v91_v50 = vld [vmem:[%s13010_s1 + $0x150] sm:$0xff]  ;;  %v8054_v56 = vcombine.low %v83_v43, %v87_v44 }
  0x85   :  { %v8056_v58 = vcombine.low %v84_v45, %v88_v46  ;;  %v8063_v59 = vcombine.high %v91_v50, %v95_v51  ;;  %v8062_v1 = vcombine.low %v91_v50, %v95_v51 }
  0x87   :  { %1707 = vmatpush1.bf16.msra.mxu0 %v8242_v52  ;;  %1789 = vmatpush1.bf16.msra.mxu1 %v8244_v54  ;;  %v92_v52 = vld [vmem:[%s13010_s1 + $0x158] sm:$0xff]  ;;  %v8057_v54 = vcombine.high %v84_v45, %v88_v46  ;;  %v151_v46 = vld [vmem:[%s13010_s1 + $0x330] sm:$0xff] }
  0x88   :  { %1708 = vmatprep.subr.bf16.mxu0 %v8251_v55  ;;  %1790 = vmatprep.subr.bf16.mxu1 %v8253_v60  ;;  %v96_v55 = vld [vmem:[%s13010_s1 + $0x178] sm:$0xff]  ;;  %v99_v60 = vld [vmem:[%s13010_s1 + $0x190] sm:$0xff] }
  0x89   :  { %v8064_v2 = vcombine.low %v92_v52, %v96_v55  ;;  %v8071_v3 = vcombine.high %v99_v60, %v103_v61  ;;  %v8070_v9 = vcombine.low %v99_v60, %v103_v61 }
  0x8b   :  { %1709 = vmatpush1.bf16.msra.mxu0 %v8250_v62  ;;  %1791 = vmatpush1.bf16.msra.mxu1 %v8252_v63  ;;  %v100_v62 = vld [vmem:[%s13010_s1 + $0x198] sm:$0xff]  ;;  %v8065_v63 = vcombine.high %v92_v52, %v96_v55  ;;  %v159_v55 = vld [vmem:[%s13010_s1 + $0x370] sm:$0xff] }
  0x8c   :  { %1710 = vmatprep.subr.bf16.mxu0 %v8259_v0  ;;  %1792 = vmatprep.subr.bf16.mxu1 %v8261_v4  ;;  %v104_v0 = vld [vmem:[%s13010_s1 + $0x1b8] sm:$0xff]  ;;  %v107_v4 = vld [vmem:[%s13010_s1 + $0x1d0] sm:$0xff] }
  0x8d   :  { %v8072_v10 = vcombine.low %v100_v62, %v104_v0  ;;  %v8079_v11 = vcombine.high %v107_v4, %v111_v5  ;;  %v8078_v18 = vcombine.low %v107_v4, %v111_v5 }
  0x8f   :  { %1711 = vmatpush1.bf16.msra.mxu0 %v8258_v6  ;;  %1793 = vmatpush1.bf16.msra.mxu1 %v8260_v7  ;;  %v108_v6 = vld [vmem:[%s13010_s1 + $0x1d8] sm:$0xff]  ;;  %v8073_v7 = vcombine.high %v100_v62, %v104_v0  ;;  %v167_v0 = vld [vmem:[%s13010_s1 + $0x3b0] sm:$0xff] }
  0x90   :  { %1712 = vmatprep.subr.bf16.mxu0 %v8267_v8  ;;  %1794 = vmatprep.subr.bf16.mxu1 %v8269_v13  ;;  %v112_v8 = vld [vmem:[%s13010_s1 + $0x1f8] sm:$0xff]  ;;  %v115_v13 = vld [vmem:[%s13010_s1 + $0x210] sm:$0xff] }
  0x91   :  { %v8080_v19 = vcombine.low %v108_v6, %v112_v8  ;;  %v8087_v20 = vcombine.high %v115_v13, %v119_v14 }
  0x93   :  { %1713 = vmatpush1.bf16.msra.mxu0 %v8266_v16  ;;  %1795 = vmatpush1.bf16.msra.mxu1 %v8268_v17  ;;  %v116_v16 = vld [vmem:[%s13010_s1 + $0x218] sm:$0xff]  ;;  %v8081_v17 = vcombine.high %v108_v6, %v112_v8  ;;  %v175_v8 = vld [vmem:[%s13010_s1 + $0x3f0] sm:$0xff] }
  0x94   :  { %1805 = vmatprep.subr.bf16.mxu0 %v8023_v53  ;;  %1887 = vmatprep.subr.bf16.mxu1 %v8025_v21  ;;  %v120_v53 = vld [vmem:[%s13010_s1 + $0x238] sm:$0xff]  ;;  %v123_v21 = vld [vmem:[%s13010_s1 + $0x250] sm:$0xff] }
  0x95   :  { %v8089_v26 = vcombine.high %v116_v16, %v120_v53  ;;  %v8095_v30 = vcombine.high %v123_v21, %v127_v22  ;;  %v8094_v35 = vcombine.low %v123_v21, %v127_v22  ;;  %v187_v22 = vld [vmem:[%s13010_s1 + $0x450] sm:$0xff] }
  0x96   :  { %1715 = vmatmul.mubr.bf16.vlgmr.msra.gmra.mrb[0].mxu0 %v10179_v24  ;;  %1797 = vmatmul.mubr.bf16.vlgmr.msra.gmra.mrb[0].mxu1 %v10179_v24 }
  0x97   :  { %1806 = vmatpush1.bf16.msra.mxu0 %v8022_v25  ;;  %1888 = vmatpush1.bf16.msra.mxu1 %v8024_v28  ;;  %v124_v25 = vld [vmem:[%s13010_s1 + $0x258] sm:$0xff]  ;;  %v8086_v28 = vcombine.low %v115_v13, %v119_v14  ;;  %v179_v14 = vld [vmem:[%s13010_s1 + $0x410] sm:$0xff] }
  0x98   :  { %1807 = vmatprep.subr.bf16.mxu0 %v8031_v29  ;;  %1889 = vmatprep.subr.bf16.mxu1 %v8033_v31  ;;  %v8088_v29 = vcombine.low %v116_v16, %v120_v53  ;;  %v135_v31 = vld [vmem:[%s13010_s1 + $0x2b0] sm:$0xff]  ;;  %v8096_v36 = vcombine.low %v124_v25, %v128_v27 }
  0x99   :  { %1837 = vmatprep.mubr.bf16.mxu0 %v9838_v57  ;;  %1919 = vmatprep.mubr.bf16.mxu1 %v9838_v57  ;;  %v8049_v57 = vcombine.high %v76_v38, %v80_v39  ;;  %v139_v38 = vld [vmem:[%s13010_s1 + $0x2d0] sm:$0xff]  ;;  %v8102_v43 = vcombine.low %v131_v15, %v135_v31 }
  0x9a   :  { %v143_v39 = vld [vmem:[%s13010_s1 + $0x2f0] sm:$0xff] }
  0x9b   :  { %1808 = vmatpush1.bf16.msra.mxu0 %v8030_v32  ;;  %1890 = vmatpush1.bf16.msra.mxu1 %v8032_v33  ;;  %v132_v32 = vld [vmem:[%s13010_s1 + $0x298] sm:$0xff]  ;;  %v8097_v33 = vcombine.high %v124_v25, %v128_v27  ;;  %v8111_v45 = vcombine.high %v139_v38, %v143_v39  ;;  %v8110_v50 = vcombine.low %v139_v38, %v143_v39  ;;  %v183_v16 = vld [vmem:[%s13010_s1 + $0x430] sm:$0xff] }
  0x9c   :  { %1809 = vmatprep.subr.bf16.mxu0 %v8039_v34  ;;  %1891 = vmatprep.subr.bf16.mxu1 %v8041_v37  ;;  %v136_v34 = vld [vmem:[%s13010_s1 + $0x2b8] sm:$0xff]  ;;  %v8103_v37 = vcombine.high %v131_v15, %v135_v31  ;;  %v191_v25 = vld [vmem:[%s13010_s1 + $0x470] sm:$0xff]  ;;  %v8151_v27 = vcombine.high %v179_v14, %v183_v16  ;;  %v8150_v15 = vcombine.low %v179_v14, %v183_v16 }
  0x9d   :  { %v8104_v44 = vcombine.low %v132_v32, %v136_v34  ;;  %v195_v31 = vld [vmem:[%s13010_s1 + $0x490] sm:$0xff]  ;;  %v8158_v38 = vcombine.low %v187_v22, %v191_v25 }
  0x9e   :  { %v203_v39 = vld [vmem:[%s13010_s1 + $0x4d0] sm:$0xff] }
  0x9f   :  { %1810 = vmatpush1.bf16.msra.mxu0 %v8038_v40  ;;  %1892 = vmatpush1.bf16.msra.mxu1 %v8040_v41  ;;  %v140_v40 = vld [vmem:[%s13010_s1 + $0x2d8] sm:$0xff]  ;;  %v8105_v41 = vcombine.high %v132_v32, %v136_v34  ;;  %v199_v32 = vld [vmem:[%s13010_s1 + $0x4b0] sm:$0xff]  ;;  %v8159_v34 = vcombine.high %v187_v22, %v191_v25 }
  0xa0   :  { %1811 = vmatprep.subr.bf16.mxu0 %v8047_v42  ;;  %1893 = vmatprep.subr.bf16.mxu1 %v8049_v57  ;;  %v144_v42 = vld [vmem:[%s13010_s1 + $0x2f8] sm:$0xff]  ;;  %v147_v57 = vld [vmem:[%s13010_s1 + $0x310] sm:$0xff] }
  0xa1   :  { %v8112_v51 = vcombine.low %v140_v40, %v144_v42  ;;  %v8119_v52 = vcombine.high %v147_v57, %v151_v46  ;;  %v8118_v60 = vcombine.low %v147_v57, %v151_v46  ;;  %v211_v57 = vld [vmem:[%s13010_s1 + $0x510] sm:$0xff] }
  0xa2   :  { %v215_v46 = vld [vmem:[%s13010_s1 + $0x530] sm:$0xff] }
  0xa3   :  { %1812 = vmatpush1.bf16.msra.mxu0 %v8046_v47  ;;  %1894 = vmatpush1.bf16.msra.mxu1 %v8048_v48  ;;  %v148_v47 = vld [vmem:[%s13010_s1 + $0x318] sm:$0xff]  ;;  %v8113_v48 = vcombine.high %v140_v40, %v144_v42  ;;  %v207_v40 = vld [vmem:[%s13010_s1 + $0x4f0] sm:$0xff]  ;;  %v8167_v42 = vcombine.high %v195_v31, %v199_v32 }
  0xa4   :  { %1813 = vmatprep.subr.bf16.mxu0 %v8055_v49  ;;  %1895 = vmatprep.subr.bf16.mxu1 %v8057_v54  ;;  %v152_v49 = vld [vmem:[%s13010_s1 + $0x338] sm:$0xff]  ;;  %v155_v54 = vld [vmem:[%s13010_s1 + $0x350] sm:$0xff] }
  0xa5   :  { %v8120_v61 = vcombine.low %v148_v47, %v152_v49  ;;  %v8127_v62 = vcombine.high %v155_v54, %v159_v55  ;;  %v8126_v4 = vcombine.low %v155_v54, %v159_v55  ;;  %v223_v54 = vld [vmem:[%s13010_s1 + $0x570] sm:$0xff] }
  0xa7   :  { %1814 = vmatpush1.bf16.msra.mxu0 %v8054_v56  ;;  %1896 = vmatpush1.bf16.msra.mxu1 %v8056_v58  ;;  %v156_v56 = vld [vmem:[%s13010_s1 + $0x358] sm:$0xff]  ;;  %v8121_v58 = vcombine.high %v148_v47, %v152_v49 }
  0xa8   :  { %1815 = vmatprep.subr.bf16.mxu0 %v8063_v59  ;;  %1897 = vmatprep.subr.bf16.mxu1 %v8065_v63  ;;  %v160_v59 = vld [vmem:[%s13010_s1 + $0x378] sm:$0xff]  ;;  %v163_v63 = vld [vmem:[%s13010_s1 + $0x390] sm:$0xff] }
  0xa9   :  { %v8128_v5 = vcombine.low %v156_v56, %v160_v59  ;;  %v8135_v6 = vcombine.high %v163_v63, %v167_v0  ;;  %v8134_v13 = vcombine.low %v163_v63, %v167_v0  ;;  %v212_v49 = vld [vmem:[%s13010_s1 + $0x518] sm:$0xff]  ;;  %v231_v63 = vld [vmem:[%s13010_s1 + $0x5b0] sm:$0xff] }
  0xab   :  { %1816 = vmatpush1.bf16.msra.mxu0 %v8062_v1  ;;  %1898 = vmatpush1.bf16.msra.mxu1 %v8064_v2  ;;  %v164_v1 = vld [vmem:[%s13010_s1 + $0x398] sm:$0xff]  ;;  %v8129_v2 = vcombine.high %v156_v56, %v160_v59  ;;  %v8183_v56 = vcombine.high %v211_v57, %v215_v46 }
  0xac   :  { %1817 = vmatprep.subr.bf16.mxu0 %v8071_v3  ;;  %1899 = vmatprep.subr.bf16.mxu1 %v8073_v7  ;;  %v168_v3 = vld [vmem:[%s13010_s1 + $0x3b8] sm:$0xff]  ;;  %v171_v7 = vld [vmem:[%s13010_s1 + $0x3d0] sm:$0xff] }
  0xad   :  { %v8143_v53 = vcombine.high %v171_v7, %v175_v8  ;;  %v8142_v21 = vcombine.low %v171_v7, %v175_v8  ;;  %v224_v59 = vld [vmem:[%s13010_s1 + $0x578] sm:$0xff] }
  0xaf   :  { %1818 = vmatpush1.bf16.msra.mxu0 %v8070_v9  ;;  %1900 = vmatpush1.bf16.msra.mxu1 %v8072_v10  ;;  %v172_v9 = vld [vmem:[%s13010_s1 + $0x3d8] sm:$0xff]  ;;  %v8137_v10 = vcombine.high %v164_v1, %v168_v3 }
  0xb0   :  { %1819 = vmatprep.subr.bf16.mxu0 %v8079_v11  ;;  %1901 = vmatprep.subr.bf16.mxu1 %v8081_v17  ;;  %v176_v11 = vld [vmem:[%s13010_s1 + $0x3f8] sm:$0xff]  ;;  %v8136_v17 = vcombine.low %v164_v1, %v168_v3 }
  0xb3   :  { %1820 = vmatpush1.bf16.msra.mxu0 %v8078_v18  ;;  %1902 = vmatpush1.bf16.msra.mxu1 %v8080_v19  ;;  %v180_v18 = vld [vmem:[%s13010_s1 + $0x418] sm:$0xff] }
  0xb4   :  { %1821 = vmatprep.subr.bf16.mxu0 %v8087_v20  ;;  %1903 = vmatprep.subr.bf16.mxu1 %v8089_v26  ;;  %v184_v19 = vld [vmem:[%s13010_s1 + $0x438] sm:$0xff]  ;;  %v8145_v20 = vcombine.high %v172_v9, %v176_v11  ;;  %v8144_v26 = vcombine.low %v172_v9, %v176_v11  ;;  %v235_v9 = vld [vmem:[%s13010_s1 + $0x5d0] sm:$0xff] }
  0xb5   :  { %v236_v11 = vld [vmem:[%s13010_s1 + $0x5d8] sm:$0xff] }
  0xb7   :  { %1822 = vmatpush1.bf16.msra.mxu0 %v8086_v28  ;;  %1904 = vmatpush1.bf16.msra.mxu1 %v8088_v29  ;;  %v188_v28 = vld [vmem:[%s13010_s1 + $0x458] sm:$0xff] }
  0xb8   :  { %1823 = vmatprep.subr.bf16.mxu0 %v8095_v30  ;;  %1905 = vmatprep.subr.bf16.mxu1 %v8097_v33  ;;  %v192_v29 = vld [vmem:[%s13010_s1 + $0x478] sm:$0xff]  ;;  %v8153_v30 = vcombine.high %v180_v18, %v184_v19  ;;  %v8152_v33 = vcombine.low %v180_v18, %v184_v19  ;;  %v243_v18 = vld [vmem:[%s13010_s1 + $0x610] sm:$0xff] }
  0xb9   :  { %v247_v19 = vld [vmem:[%s13010_s1 + $0x630] sm:$0xff] }
  0xbb   :  { %1824 = vmatpush1.bf16.msra.mxu0 %v8094_v35  ;;  %1906 = vmatpush1.bf16.msra.mxu1 %v8096_v36  ;;  %v196_v35 = vld [vmem:[%s13010_s1 + $0x498] sm:$0xff] }
  0xbc   :  { %1825 = vmatprep.subr.bf16.mxu0 %v8103_v37  ;;  %1907 = vmatprep.subr.bf16.mxu1 %v8105_v41  ;;  %v200_v36 = vld [vmem:[%s13010_s1 + $0x4b8] sm:$0xff]  ;;  %v8161_v37 = vcombine.high %v188_v28, %v192_v29  ;;  %v8160_v41 = vcombine.low %v188_v28, %v192_v29  ;;  %v251_v28 = vld [vmem:[%s13010_s1 + $0x650] sm:$0xff] }
  0xbd   :  { %v8168_v47 = vcombine.low %v196_v35, %v200_v36  ;;  %v255_v29 = vld [vmem:[%s13010_s1 + $0x670] sm:$0xff] }
  0xbf   :  { %1826 = vmatpush1.bf16.msra.mxu0 %v8102_v43  ;;  %1908 = vmatpush1.bf16.msra.mxu1 %v8104_v44  ;;  %v204_v43 = vld [vmem:[%s13010_s1 + $0x4d8] sm:$0xff]  ;;  %v8169_v44 = vcombine.high %v196_v35, %v200_v36  ;;  %v259_v35 = vld [vmem:[%s13010_s1 + $0x690] sm:$0xff] }
  0xc0   :  { %1827 = vmatprep.subr.bf16.mxu0 %v8111_v45  ;;  %1909 = vmatprep.subr.bf16.mxu1 %v8113_v48  ;;  %v8166_v45 = vcombine.low %v195_v31, %v199_v32  ;;  %v8175_v48 = vcombine.high %v203_v39, %v207_v40  ;;  %v8214_v31 = vcombine.low %v243_v18, %v247_v19  ;;  %v263_v36 = vld [vmem:[%s13010_s1 + $0x6b0] sm:$0xff] }
  0xc3   :  { %1828 = vmatpush1.bf16.msra.mxu0 %v8110_v50  ;;  %1910 = vmatpush1.bf16.msra.mxu1 %v8112_v51  ;;  %v8174_v51 = vcombine.low %v203_v39, %v207_v40  ;;  %v8222_v39 = vcombine.low %v251_v28, %v255_v29 }
  0xc4   :  { %1829 = vmatprep.subr.bf16.mxu0 %v8119_v52  ;;  %1911 = vmatprep.subr.bf16.mxu1 %v8121_v58  ;;  %v219_v52 = vld [vmem:[%s13010_s1 + $0x550] sm:$0xff]  ;;  %v220_v58 = vld [vmem:[%s13010_s1 + $0x558] sm:$0xff] }
  0xc5   :  { %v8191_v1 = vcombine.high %v219_v52, %v223_v54  ;;  %v8193_v3 = vcombine.high %v220_v58, %v224_v59 }
  0xc7   :  { %1830 = vmatpush1.bf16.msra.mxu0 %v8118_v60  ;;  %1912 = vmatpush1.bf16.msra.mxu1 %v8120_v61  ;;  %v8182_v61 = vcombine.low %v211_v57, %v215_v46  ;;  %v8230_v57 = vcombine.low %v259_v35, %v263_v36 }
  0xc8   :  { %1831 = vmatprep.subr.bf16.mxu0 %v8127_v62  ;;  %1913 = vmatprep.subr.bf16.mxu1 %v8129_v2  ;;  %v227_v62 = vld [vmem:[%s13010_s1 + $0x590] sm:$0xff]  ;;  %v228_v2 = vld [vmem:[%s13010_s1 + $0x598] sm:$0xff] }
  0xc9   :  { %v8199_v7 = vcombine.high %v227_v62, %v231_v63  ;;  %v8198_v14 = vcombine.low %v227_v62, %v231_v63 }
  0xcb   :  { %1832 = vmatpush1.bf16.msra.mxu0 %v8126_v4  ;;  %1914 = vmatpush1.bf16.msra.mxu1 %v8128_v5  ;;  %v232_v4 = vld [vmem:[%s13010_s1 + $0x5b8] sm:$0xff]  ;;  %v8190_v5 = vcombine.low %v219_v52, %v223_v54 }
  0xcc   :  { %1833 = vmatprep.subr.bf16.mxu0 %v8135_v6  ;;  %1915 = vmatprep.subr.bf16.mxu1 %v8137_v10  ;;  %v8192_v6 = vcombine.low %v220_v58, %v224_v59  ;;  %v8201_v8 = vcombine.high %v228_v2, %v232_v4  ;;  %v239_v10 = vld [vmem:[%s13010_s1 + $0x5f0] sm:$0xff]  ;;  %v8200_v16 = vcombine.low %v228_v2, %v232_v4  ;;  %v292_v4 = vld [vmem:[%s13010_s1 + $0x798] sm:$0xff] }
  0xcd   :  { %v8206_v22 = vcombine.low %v235_v9, %v239_v10  ;;  %v283_v58 = vld [vmem:[%s13010_s1 + $0x750] sm:$0xff] }
  0xce   :  { %v287_v59 = vld [vmem:[%s13010_s1 + $0x770] sm:$0xff] }
  0xcf   :  { %1834 = vmatpush1.bf16.msra.mxu0 %v8134_v13  ;;  %1916 = vmatpush1.bf16.msra.mxu1 %v8136_v17  ;;  %v240_v13 = vld [vmem:[%s13010_s1 + $0x5f8] sm:$0xff]  ;;  %v8207_v17 = vcombine.high %v235_v9, %v239_v10  ;;  %v291_v2 = vld [vmem:[%s13010_s1 + $0x790] sm:$0xff] }
  0xd0   :  { %1835 = vmatprep.subr.bf16.mxu0 %v8143_v53  ;;  %1917 = vmatprep.subr.bf16.mxu1 %v8145_v20  ;;  %v8209_v53 = vcombine.high %v236_v11, %v240_v13  ;;  %v244_v20 = vld [vmem:[%s13010_s1 + $0x618] sm:$0xff]  ;;  %v8208_v25 = vcombine.low %v236_v11, %v240_v13  ;;  %v299_v10 = vld [vmem:[%s13010_s1 + $0x7d0] sm:$0xff] }
  0xd1   :  { %v303_v11 = vld [vmem:[%s13010_s1 + $0x7f0] sm:$0xff]  ;;  %v300_v13 = vld [vmem:[%s13010_s1 + $0x7d8] sm:$0xff] }
  0xd3   :  { %1836 = vmatpush1.bf16.msra.mxu0 %v8142_v21  ;;  %1918 = vmatpush1.bf16.msra.mxu1 %v8144_v26  ;;  %v248_v21 = vld [vmem:[%s13010_s1 + $0x638] sm:$0xff]  ;;  %v8215_v26 = vcombine.high %v243_v18, %v247_v19  ;;  %v1985_v19 = vld [vmem:[%s13012_s3] sm:$0xff] }
  0xd4   :  { %1846 = vmatprep.subr.bf16.mxu0 %v8151_v27  ;;  %1928 = vmatprep.subr.bf16.mxu1 %v8153_v30  ;;  %v8217_v27 = vcombine.high %v244_v20, %v248_v21  ;;  %v252_v30 = vld [vmem:[%s13010_s1 + $0x658] sm:$0xff]  ;;  %v8216_v32 = vcombine.low %v244_v20, %v248_v21  ;;  %v1989_v20 = vld [vmem:[%s13012_s3 + $0x20] sm:$0xff]  ;;  %v1986_v21 = vld [vmem:[%s13012_s3 + $0x8] sm:$0xff] }
  0xd6   :  { %1838 = vmatmul.mubr.bf16.vlgmr.msra.gmra.mrb[4].mxu0 %v9964_v12  ;;  %1920 = vmatmul.mubr.bf16.vlgmr.msra.gmra.mrb[4].mxu1 %v9964_v12  ;;  %v208_v12 = vld [vmem:[%s13010_s1 + $0x4f8] sm:$0xff] }
  0xd7   :  { %1847 = vmatpush1.bf16.msra.mxu0 %v8150_v15  ;;  %1929 = vmatpush1.bf16.msra.mxu1 %v8152_v33  ;;  %v8177_v50 = vcombine.high %v204_v43, %v208_v12  ;;  %v8176_v55 = vcombine.low %v204_v43, %v208_v12  ;;  %v256_v15 = vld [vmem:[%s13010_s1 + $0x678] sm:$0xff]  ;;  %v8223_v33 = vcombine.high %v251_v28, %v255_v29  ;;  %v267_v43 = vld [vmem:[%s13010_s1 + $0x6d0] sm:$0xff]  ;;  %v1993_v29 = vld [vmem:[%s13012_s3 + $0x40] sm:$0xff] }
  0xd8   :  { %1848 = vmatprep.subr.bf16.mxu0 %v8159_v34  ;;  %1930 = vmatprep.subr.bf16.mxu1 %v8161_v37  ;;  %v8225_v34 = vcombine.high %v252_v30, %v256_v15  ;;  %v260_v37 = vld [vmem:[%s13010_s1 + $0x698] sm:$0xff]  ;;  %v8224_v40 = vcombine.low %v252_v30, %v256_v15  ;;  %v271_v12 = vld [vmem:[%s13010_s1 + $0x6f0] sm:$0xff]  ;;  %v1997_v30 = vld [vmem:[%s13012_s3 + $0x60] sm:$0xff] }
  0xd9   :  { %1878 = vmatprep.mubr.bf16.mxu0 %v9991_v23  ;;  %1960 = vmatprep.mubr.bf16.mxu1 %v9991_v23  ;;  %v216_v23 = vld [vmem:[%s13010_s1 + $0x538] sm:$0xff]  ;;  %v8238_v52 = vcombine.low %v267_v43, %v271_v12  ;;  %v1994_v15 = vld [vmem:[%s13012_s3 + $0x48] sm:$0xff] }
  0xda   :  { %v8185_v60 = vcombine.high %v212_v49, %v216_v23  ;;  %v8184_v0 = vcombine.low %v212_v49, %v216_v23  ;;  %v275_v49 = vld [vmem:[%s13010_s1 + $0x710] sm:$0xff] }
  0xdb   :  { %1849 = vmatpush1.bf16.msra.mxu0 %v8158_v38  ;;  %1931 = vmatpush1.bf16.msra.mxu1 %v8160_v41  ;;  %v264_v38 = vld [vmem:[%s13010_s1 + $0x6b8] sm:$0xff]  ;;  %v8231_v41 = vcombine.high %v259_v35, %v263_v36  ;;  %v279_v23 = vld [vmem:[%s13010_s1 + $0x730] sm:$0xff]  ;;  %v2001_v36 = vld [vmem:[%s13012_s3 + $0x80] sm:$0xff] }
  0xdc   :  { %1850 = vmatprep.subr.bf16.mxu0 %v8167_v42  ;;  %1932 = vmatprep.subr.bf16.mxu1 %v8169_v44  ;;  %v8233_v42 = vcombine.high %v260_v37, %v264_v38  ;;  %v268_v44 = vld [vmem:[%s13010_s1 + $0x6d8] sm:$0xff]  ;;  %v8232_v46 = vcombine.low %v260_v37, %v264_v38  ;;  %v8246_v62 = vcombine.low %v275_v49, %v279_v23  ;;  %v2005_v37 = vld [vmem:[%s13012_s3 + $0xa0] sm:$0xff]  ;;  %v2002_v38 = vld [vmem:[%s13012_s3 + $0x88] sm:$0xff] }
  0xdf   :  { %1851 = vmatpush1.bf16.msra.mxu0 %v8166_v45  ;;  %1933 = vmatpush1.bf16.msra.mxu1 %v8168_v47  ;;  %v272_v45 = vld [vmem:[%s13010_s1 + $0x6f8] sm:$0xff]  ;;  %v8239_v47 = vcombine.high %v267_v43, %v271_v12  ;;  %v2009_v12 = vld [vmem:[%s13012_s3 + $0xc0] sm:$0xff] }
  0xe0   :  { %1852 = vmatprep.subr.bf16.mxu0 %v8175_v48  ;;  %1934 = vmatprep.subr.bf16.mxu1 %v8177_v50  ;;  %v8241_v48 = vcombine.high %v268_v44, %v272_v45  ;;  %v276_v50 = vld [vmem:[%s13010_s1 + $0x718] sm:$0xff]  ;;  %v8240_v54 = vcombine.low %v268_v44, %v272_v45  ;;  %v2013_v44 = vld [vmem:[%s13012_s3 + $0xe0] sm:$0xff]  ;;  %v2014_v45 = vld [vmem:[%s13012_s3 + $0xe8] sm:$0xff] }
  0xe3   :  { %1853 = vmatpush1.bf16.msra.mxu0 %v8174_v51  ;;  %1935 = vmatpush1.bf16.msra.mxu1 %v8176_v55  ;;  %v280_v51 = vld [vmem:[%s13010_s1 + $0x738] sm:$0xff]  ;;  %v8247_v55 = vcombine.high %v275_v49, %v279_v23  ;;  %v2017_v49 = vld [vmem:[%s13012_s3 + $0x100] sm:$0xff] }
  0xe4   :  { %1854 = vmatprep.subr.bf16.mxu0 %v8183_v56  ;;  %1936 = vmatprep.subr.bf16.mxu1 %v8185_v60  ;;  %v8249_v56 = vcombine.high %v276_v50, %v280_v51  ;;  %v284_v60 = vld [vmem:[%s13010_s1 + $0x758] sm:$0xff]  ;;  %v8248_v63 = vcombine.low %v276_v50, %v280_v51  ;;  %v2021_v23 = vld [vmem:[%s13012_s3 + $0x120] sm:$0xff]  ;;  %v2018_v50 = vld [vmem:[%s13012_s3 + $0x108] sm:$0xff] }
  0xe5   :  { %v2022_v51 = vld [vmem:[%s13012_s3 + $0x128] sm:$0xff] }
  0xe7   :  { %1855 = vmatpush1.bf16.msra.mxu0 %v8182_v61  ;;  %1937 = vmatpush1.bf16.msra.mxu1 %v8184_v0  ;;  %v288_v61 = vld [vmem:[%s13010_s1 + $0x778] sm:$0xff]  ;;  %v8255_v0 = vcombine.high %v283_v58, %v287_v59 }
  0xe8   :  { %1856 = vmatprep.subr.bf16.mxu0 %v8191_v1  ;;  %1938 = vmatprep.subr.bf16.mxu1 %v8193_v3  ;;  %v8257_v1 = vcombine.high %v284_v60, %v288_v61  ;;  %v295_v3 = vld [vmem:[%s13010_s1 + $0x7b0] sm:$0xff] }
  0xeb   :  { %1857 = vmatpush1.bf16.msra.mxu0 %v8190_v5  ;;  %1939 = vmatpush1.bf16.msra.mxu1 %v8192_v6  ;;  %v296_v5 = vld [vmem:[%s13010_s1 + $0x7b8] sm:$0xff]  ;;  %v8254_v6 = vcombine.low %v283_v58, %v287_v59  ;;  %v2025_v58 = vld [vmem:[%s13012_s3 + $0x140] sm:$0xff] }
  0xec   :  { %1858 = vmatprep.subr.bf16.mxu0 %v8199_v7  ;;  %1940 = vmatprep.subr.bf16.mxu1 %v8201_v8  ;;  %v8256_v7 = vcombine.low %v284_v60, %v288_v61  ;;  %v8263_v8 = vcombine.high %v291_v2, %v295_v3  ;;  %v8265_v9 = vcombine.high %v292_v4, %v296_v5  ;;  %v2029_v59 = vld [vmem:[%s13012_s3 + $0x160] sm:$0xff]  ;;  %v2026_v60 = vld [vmem:[%s13012_s3 + $0x148] sm:$0xff] }
  0xed   :  { %v2030_v61 = vld [vmem:[%s13012_s3 + $0x168] sm:$0xff] }
  0xef   :  { %1859 = vmatpush1.bf16.msra.mxu0 %v8198_v14  ;;  %1941 = vmatpush1.bf16.msra.mxu1 %v8200_v16  ;;  %v304_v14 = vld [vmem:[%s13010_s1 + $0x7f8] sm:$0xff]  ;;  %v8262_v16 = vcombine.low %v291_v2, %v295_v3  ;;  %v2033_v2 = vld [vmem:[%s13012_s3 + $0x180] sm:$0xff] }
  0xf0   :  { %1860 = vmatprep.subr.bf16.mxu0 %v8207_v17  ;;  %1942 = vmatprep.subr.bf16.mxu1 %v8209_v53  ;;  %v8264_v17 = vcombine.low %v292_v4, %v296_v5  ;;  %v8271_v53 = vcombine.high %v299_v10, %v303_v11  ;;  %v8273_v18 = vcombine.high %v300_v13, %v304_v14  ;;  %v2037_v3 = vld [vmem:[%s13012_s3 + $0x1a0] sm:$0xff]  ;;  %v2034_v4 = vld [vmem:[%s13012_s3 + $0x188] sm:$0xff] }
  0xf1   :  { %v2038_v5 = vld [vmem:[%s13012_s3 + $0x1a8] sm:$0xff] }
  0xf3   :  { %1861 = vmatpush1.bf16.msra.mxu0 %v8206_v22  ;;  %1943 = vmatpush1.bf16.msra.mxu1 %v8208_v25  ;;  %v1990_v22 = vld [vmem:[%s13012_s3 + $0x28] sm:$0xff]  ;;  %v8270_v25 = vcombine.low %v299_v10, %v303_v11  ;;  %v2041_v10 = vld [vmem:[%s13012_s3 + $0x1c0] sm:$0xff] }
  0xf4   :  { %1862 = vmatprep.subr.bf16.mxu0 %v8215_v26  ;;  %1944 = vmatprep.subr.bf16.mxu1 %v8217_v27  ;;  %v8272_v26 = vcombine.low %v300_v13, %v304_v14  ;;  %v8275_v27 = vcombine.high %v1985_v19, %v1989_v20  ;;  %v8277_v28 = vcombine.high %v1986_v21, %v1990_v22  ;;  %v2045_v11 = vld [vmem:[%s13012_s3 + $0x1e0] sm:$0xff]  ;;  %v2042_v13 = vld [vmem:[%s13012_s3 + $0x1c8] sm:$0xff] }
  0xf5   :  { %v2046_v14 = vld [vmem:[%s13012_s3 + $0x1e8] sm:$0xff] }
  0xf7   :  { %1863 = vmatpush1.bf16.msra.mxu0 %v8214_v31  ;;  %1945 = vmatpush1.bf16.msra.mxu1 %v8216_v32  ;;  %v1998_v31 = vld [vmem:[%s13012_s3 + $0x68] sm:$0xff]  ;;  %v8274_v32 = vcombine.low %v1985_v19, %v1989_v20  ;;  %v2049_v19 = vld [vmem:[%s13012_s3 + $0x200] sm:$0xff] }
  0xf8   :  { %1864 = vmatprep.subr.bf16.mxu0 %v8223_v33  ;;  %1946 = vmatprep.subr.bf16.mxu1 %v8225_v34  ;;  %v8276_v33 = vcombine.low %v1986_v21, %v1990_v22  ;;  %v8283_v34 = vcombine.high %v1993_v29, %v1997_v30  ;;  %v8285_v35 = vcombine.high %v1994_v15, %v1998_v31  ;;  %v2053_v20 = vld [vmem:[%s13012_s3 + $0x220] sm:$0xff]  ;;  %v2050_v21 = vld [vmem:[%s13012_s3 + $0x208] sm:$0xff] }
  0xf9   :  { %v2054_v22 = vld [vmem:[%s13012_s3 + $0x228] sm:$0xff] }
  0xfb   :  { %1865 = vmatpush1.bf16.msra.mxu0 %v8222_v39  ;;  %1947 = vmatpush1.bf16.msra.mxu1 %v8224_v40  ;;  %v2006_v39 = vld [vmem:[%s13012_s3 + $0xa8] sm:$0xff]  ;;  %v8282_v40 = vcombine.low %v1993_v29, %v1997_v30  ;;  %v2057_v29 = vld [vmem:[%s13012_s3 + $0x240] sm:$0xff] }
  0xfc   :  { %1866 = vmatprep.subr.bf16.mxu0 %v8231_v41  ;;  %1948 = vmatprep.subr.bf16.mxu1 %v8233_v42  ;;  %v8284_v41 = vcombine.low %v1994_v15, %v1998_v31  ;;  %v8291_v42 = vcombine.high %v2001_v36, %v2005_v37  ;;  %v8293_v43 = vcombine.high %v2002_v38, %v2006_v39  ;;  %v2061_v30 = vld [vmem:[%s13012_s3 + $0x260] sm:$0xff]  ;;  %v2058_v15 = vld [vmem:[%s13012_s3 + $0x248] sm:$0xff] }
  0xfd   :  { %v2062_v31 = vld [vmem:[%s13012_s3 + $0x268] sm:$0xff] }
  0xff   :  { %1867 = vmatpush1.bf16.msra.mxu0 %v8230_v57  ;;  %1949 = vmatpush1.bf16.msra.mxu1 %v8232_v46  ;;  %v8290_v57 = vcombine.low %v2001_v36, %v2005_v37  ;;  %v8292_v46 = vcombine.low %v2002_v38, %v2006_v39  ;;  %v2065_v36 = vld [vmem:[%s13012_s3 + $0x280] sm:$0xff]  ;;  %v2066_v38 = vld [vmem:[%s13012_s3 + $0x288] sm:$0xff] }
 0x100   :  { %1868 = vmatprep.subr.bf16.mxu0 %v8239_v47  ;;  %1950 = vmatprep.subr.bf16.mxu1 %v8241_v48  ;;  %v8299_v47 = vcombine.high %v2009_v12, %v2013_v44  ;;  %v2069_v37 = vld [vmem:[%s13012_s3 + $0x2a0] sm:$0xff]  ;;  %v2070_v39 = vld [vmem:[%s13012_s3 + $0x2a8] sm:$0xff] }
 0x103   :  { %1869 = vmatpush1.bf16.msra.mxu0 %v8238_v52  ;;  %1951 = vmatpush1.bf16.msra.mxu1 %v8240_v54  ;;  %v8298_v52 = vcombine.low %v2009_v12, %v2013_v44  ;;  %v2073_v12 = vld [vmem:[%s13012_s3 + $0x2c0] sm:$0xff] }
 0x104   :  { %1870 = vmatprep.subr.bf16.mxu0 %v8247_v55  ;;  %1952 = vmatprep.subr.bf16.mxu1 %v8249_v56  ;;  %v8307_v55 = vcombine.high %v2017_v49, %v2021_v23  ;;  %v8309_v56 = vcombine.high %v2018_v50, %v2022_v51  ;;  %v2077_v44 = vld [vmem:[%s13012_s3 + $0x2e0] sm:$0xff] }
 0x107   :  { %1871 = vmatpush1.bf16.msra.mxu0 %v8246_v62  ;;  %1953 = vmatpush1.bf16.msra.mxu1 %v8248_v63  ;;  %v8306_v62 = vcombine.low %v2017_v49, %v2021_v23  ;;  %v8308_v63 = vcombine.low %v2018_v50, %v2022_v51  ;;  %v2081_v49 = vld [vmem:[%s13012_s3 + $0x300] sm:$0xff]  ;;  %v2082_v50 = vld [vmem:[%s13012_s3 + $0x308] sm:$0xff] }
 0x108   :  { %1872 = vmatprep.subr.bf16.mxu0 %v8255_v0  ;;  %1954 = vmatprep.subr.bf16.mxu1 %v8257_v1  ;;  %v8315_v0 = vcombine.high %v2025_v58, %v2029_v59  ;;  %v8317_v1 = vcombine.high %v2026_v60, %v2030_v61  ;;  %v2085_v23 = vld [vmem:[%s13012_s3 + $0x320] sm:$0xff]  ;;  %v2086_v51 = vld [vmem:[%s13012_s3 + $0x328] sm:$0xff] }
 0x10b   :  { %1873 = vmatpush1.bf16.msra.mxu0 %v8254_v6  ;;  %1955 = vmatpush1.bf16.msra.mxu1 %v8256_v7  ;;  %v8314_v6 = vcombine.low %v2025_v58, %v2029_v59  ;;  %v8316_v7 = vcombine.low %v2026_v60, %v2030_v61  ;;  %v2089_v58 = vld [vmem:[%s13012_s3 + $0x340] sm:$0xff]  ;;  %v2090_v60 = vld [vmem:[%s13012_s3 + $0x348] sm:$0xff] }
 0x10c   :  { %1874 = vmatprep.subr.bf16.mxu0 %v8263_v8  ;;  %1956 = vmatprep.subr.bf16.mxu1 %v8265_v9  ;;  %v8323_v8 = vcombine.high %v2033_v2, %v2037_v3  ;;  %v8325_v9 = vcombine.high %v2034_v4, %v2038_v5  ;;  %v2093_v59 = vld [vmem:[%s13012_s3 + $0x360] sm:$0xff]  ;;  %v2094_v61 = vld [vmem:[%s13012_s3 + $0x368] sm:$0xff] }
 0x10f   :  { %1875 = vmatpush1.bf16.msra.mxu0 %v8262_v16  ;;  %1957 = vmatpush1.bf16.msra.mxu1 %v8264_v17  ;;  %v8322_v16 = vcombine.low %v2033_v2, %v2037_v3  ;;  %v8324_v17 = vcombine.low %v2034_v4, %v2038_v5  ;;  %v2097_v2 = vld [vmem:[%s13012_s3 + $0x380] sm:$0xff]  ;;  %v2098_v4 = vld [vmem:[%s13012_s3 + $0x388] sm:$0xff] }
 0x110   :  { %1876 = vmatprep.subr.bf16.mxu0 %v8271_v53  ;;  %1958 = vmatprep.subr.bf16.mxu1 %v8273_v18  ;;  %v8331_v53 = vcombine.high %v2041_v10, %v2045_v11  ;;  %v8333_v18 = vcombine.high %v2042_v13, %v2046_v14  ;;  %v2101_v3 = vld [vmem:[%s13012_s3 + $0x3a0] sm:$0xff]  ;;  %v2102_v5 = vld [vmem:[%s13012_s3 + $0x3a8] sm:$0xff] }
 0x113   :  { %1877 = vmatpush1.bf16.msra.mxu0 %v8270_v25  ;;  %1959 = vmatpush1.bf16.msra.mxu1 %v8272_v26  ;;  %v8330_v25 = vcombine.low %v2041_v10, %v2045_v11  ;;  %v8332_v26 = vcombine.low %v2042_v13, %v2046_v14  ;;  %v2105_v10 = vld [vmem:[%s13012_s3 + $0x3c0] sm:$0xff]  ;;  %v2106_v13 = vld [vmem:[%s13012_s3 + $0x3c8] sm:$0xff] }
 0x114   :  { %5099 = vmatprep.subr.bf16.mxu0 %v8275_v27  ;;  %5263 = vmatprep.subr.bf16.mxu1 %v8277_v28  ;;  %v8339_v27 = vcombine.high %v2049_v19, %v2053_v20  ;;  %v8341_v28 = vcombine.high %v2050_v21, %v2054_v22  ;;  %v2109_v11 = vld [vmem:[%s13012_s3 + $0x3e0] sm:$0xff]  ;;  %v2110_v14 = vld [vmem:[%s13012_s3 + $0x3e8] sm:$0xff] }
 0x116   :  { %1879 = vmatmul.mubr.bf16.vlgmr.msra.gmra.mrb[4].mxu0 %v10179_v24  ;;  %1961 = vmatmul.mubr.bf16.vlgmr.msra.gmra.mrb[4].mxu1 %v10179_v24  ;;  %v2010_v24 = vld [vmem:[%s13012_s3 + $0xc8] sm:$0xff] }
 0x117   :  { %5100 = vmatpush1.bf16.msra.mxu0 %v8274_v32  ;;  %5264 = vmatpush1.bf16.msra.mxu1 %v8276_v33  ;;  %v8301_v48 = vcombine.high %v2010_v24, %v2014_v45  ;;  %v8300_v54 = vcombine.low %v2010_v24, %v2014_v45  ;;  %v8338_v32 = vcombine.low %v2049_v19, %v2053_v20  ;;  %v2074_v24 = vld [vmem:[%s13012_s3 + $0x2c8] sm:$0xff]  ;;  %v2113_v19 = vld [vmem:[%s13012_s3 + $0x400] sm:$0xff] }
 0x118   :  { %5101 = vmatprep.subr.bf16.mxu0 %v8283_v34  ;;  %5265 = vmatprep.subr.bf16.mxu1 %v8285_v35  ;;  %v8340_v33 = vcombine.low %v2050_v21, %v2054_v22  ;;  %v8347_v34 = vcombine.high %v2057_v29, %v2061_v30  ;;  %v8349_v35 = vcombine.high %v2058_v15, %v2062_v31  ;;  %v2078_v45 = vld [vmem:[%s13012_s3 + $0x2e8] sm:$0xff]  ;;  %v2117_v20 = vld [vmem:[%s13012_s3 + $0x420] sm:$0xff] }
 0x119   :  { %v2114_v21 = vld [vmem:[%s13012_s3 + $0x408] sm:$0xff] }
 0x11a   :  { %v2118_v22 = vld [vmem:[%s13012_s3 + $0x428] sm:$0xff] }
 0x11b   :  { %5102 = vmatpush1.bf16.msra.mxu0 %v8282_v40  ;;  %5266 = vmatpush1.bf16.msra.mxu1 %v8284_v41  ;;  %v8346_v40 = vcombine.low %v2057_v29, %v2061_v30  ;;  %v8348_v41 = vcombine.low %v2058_v15, %v2062_v31  ;;  %v307_v29 = vlaneseq  ;;  %v10763_v31 = vld [vmem:[%s13011_s2] sm:$0xff] }
 0x11c   :  { %5103 = vmatprep.subr.bf16.mxu0 %v8291_v42  ;;  %5267 = vmatprep.subr.bf16.mxu1 %v8293_v43  ;;  %v8355_v42 = vcombine.high %v2065_v36, %v2069_v37  ;;  %v8357_v43 = vcombine.high %v2066_v38, %v2070_v39 }
 0x11d   :  { %v10755_v30 = vshrl.u32 %v307_v29, 7 }
 0x11f   :  { %5104 = vmatpush1.bf16.msra.mxu0 %v8290_v57  ;;  %5268 = vmatpush1.bf16.msra.mxu1 %v8292_v46  ;;  %v8354_v57 = vcombine.low %v2065_v36, %v2069_v37  ;;  %v8356_v46 = vcombine.low %v2066_v38, %v2070_v39  ;;  %v10758_v15 = vsub.s32 0, %v10755_v30 }
 0x120   :  { %5105 = vmatprep.subr.bf16.mxu0 %v8299_v47  ;;  %5269 = vmatprep.subr.bf16.mxu1 %v8301_v48  ;;  %v8363_v47 = vcombine.high %v2073_v12, %v2077_v44  ;;  %v8365_v48 = vcombine.high %v2074_v24, %v2078_v45 }
 0x123   :  { %5106 = vmatpush1.bf16.msra.mxu0 %v8298_v52  ;;  %5270 = vmatpush1.bf16.msra.mxu1 %v8300_v54  ;;  %v8362_v52 = vcombine.low %v2073_v12, %v2077_v44  ;;  %v8364_v54 = vcombine.low %v2074_v24, %v2078_v45 }
 0x124   :  { %5107 = vmatprep.subr.bf16.mxu0 %v8307_v55  ;;  %5271 = vmatprep.subr.bf16.mxu1 %v8309_v56  ;;  %v8371_v55 = vcombine.high %v2081_v49, %v2085_v23  ;;  %v8373_v56 = vcombine.high %v2082_v50, %v2086_v51 }
 0x127   :  { %5108 = vmatpush1.bf16.msra.mxu0 %v8306_v62  ;;  %5272 = vmatpush1.bf16.msra.mxu1 %v8308_v63  ;;  %v8370_v62 = vcombine.low %v2081_v49, %v2085_v23  ;;  %v8372_v63 = vcombine.low %v2082_v50, %v2086_v51  ;;  %v2125_v49 = vld [vmem:[%s13012_s3 + $0x460] sm:$0xff]  ;;  %v2122_v23 = vld [vmem:[%s13012_s3 + $0x448] sm:$0xff] }
 0x128   :  { %5109 = vmatprep.subr.bf16.mxu0 %v8315_v0  ;;  %5273 = vmatprep.subr.bf16.mxu1 %v8317_v1  ;;  %v8379_v0 = vcombine.high %v2089_v58, %v2093_v59  ;;  %v8381_v1 = vcombine.high %v2090_v60, %v2094_v61  ;;  %v2126_v50 = vld [vmem:[%s13012_s3 + $0x468] sm:$0xff] }
 0x12b   :  { %5110 = vmatpush1.bf16.msra.mxu0 %v8314_v6  ;;  %5274 = vmatpush1.bf16.msra.mxu1 %v8316_v7  ;;  %v8378_v6 = vcombine.low %v2089_v58, %v2093_v59  ;;  %v8380_v7 = vcombine.low %v2090_v60, %v2094_v61  ;;  %v8413_v59 = vcombine.high %v2122_v23, %v2126_v50  ;;  %v2133_v60 = vld [vmem:[%s13012_s3 + $0x4a0] sm:$0xff]  ;;  %v2130_v61 = vld [vmem:[%s13012_s3 + $0x488] sm:$0xff] }
 0x12c   :  { %5111 = vmatprep.subr.bf16.mxu0 %v8323_v8  ;;  %5275 = vmatprep.subr.bf16.mxu1 %v8325_v9  ;;  %v8387_v8 = vcombine.high %v2097_v2, %v2101_v3  ;;  %v8389_v9 = vcombine.high %v2098_v4, %v2102_v5 }
 0x12f   :  { %5112 = vmatpush1.bf16.msra.mxu0 %v8322_v16  ;;  %5276 = vmatpush1.bf16.msra.mxu1 %v8324_v17  ;;  %v8386_v16 = vcombine.low %v2097_v2, %v2101_v3  ;;  %v8388_v17 = vcombine.low %v2098_v4, %v2102_v5  ;;  %v2137_v4 = vld [vmem:[%s13012_s3 + $0x4c0] sm:$0xff] }
 0x130   :  { %5113 = vmatprep.subr.bf16.mxu0 %v8331_v53  ;;  %5277 = vmatprep.subr.bf16.mxu1 %v8333_v18  ;;  %v8395_v53 = vcombine.high %v2105_v10, %v2109_v11  ;;  %v8397_v18 = vcombine.high %v2106_v13, %v2110_v14  ;;  %v2141_v5 = vld [vmem:[%s13012_s3 + $0x4e0] sm:$0xff] }
 0x133   :  { %5114 = vmatpush1.bf16.msra.mxu0 %v8330_v25  ;;  %5278 = vmatpush1.bf16.msra.mxu1 %v8332_v26  ;;  %v8394_v25 = vcombine.low %v2105_v10, %v2109_v11  ;;  %v8396_v26 = vcombine.low %v2106_v13, %v2110_v14  ;;  %v8427_v10 = vcombine.high %v2137_v4, %v2141_v5  ;;  %v2145_v13 = vld [vmem:[%s13012_s3 + $0x500] sm:$0xff] }
 0x134   :  { %5115 = vmatprep.subr.bf16.mxu0 %v8339_v27  ;;  %5279 = vmatprep.subr.bf16.mxu1 %v8341_v28  ;;  %v8403_v27 = vcombine.high %v2113_v19, %v2117_v20  ;;  %v8405_v28 = vcombine.high %v2114_v21, %v2118_v22  ;;  %v2149_v14 = vld [vmem:[%s13012_s3 + $0x520] sm:$0xff] }
 0x137   :  { %5116 = vmatpush1.bf16.msra.mxu0 %v8338_v32  ;;  %5280 = vmatpush1.bf16.msra.mxu1 %v8340_v33  ;;  %v10766_v32 = vsub.s32 1, %v10755_v30  ;;  %v10769_v33 = vsub.s32 3, %v10755_v30 }
 0x138   :  { %5117 = vmatprep.subr.bf16.mxu0 %v8347_v34  ;;  %5281 = vmatprep.subr.bf16.mxu1 %v8349_v35  ;;  %v310_v34 = vrot.slane %v10763_v31, %v10758_v15 }
 0x139   :  { %v314_v35 = vrot.slane %v10763_v31, %v10766_v32  ;;  %v322_v36 = vrot.slane %v10763_v31, %v10769_v33 }
 0x13b   :  { %5118 = vmatpush1.bf16.msra.mxu0 %v8346_v40  ;;  %5282 = vmatpush1.bf16.msra.mxu1 %v8348_v41 }
 0x13c   :  { %5119 = vmatprep.subr.bf16.mxu0 %v8355_v42  ;;  %5283 = vmatprep.subr.bf16.mxu1 %v8357_v43 }
 0x13f   :  { %5120 = vmatpush1.bf16.msra.mxu0 %v8354_v57  ;;  %5284 = vmatpush1.bf16.msra.mxu1 %v8356_v46 }
 0x140   :  { %5121 = vmatprep.subr.bf16.mxu0 %v8363_v47  ;;  %5285 = vmatprep.subr.bf16.mxu1 %v8365_v48  ;;  %v2121_v47 = vld [vmem:[%s13012_s3 + $0x440] sm:$0xff] }
 0x141   :  { %v8411_v58 = vcombine.high %v2121_v47, %v2125_v49 }
 0x143   :  { %5122 = vmatpush1.bf16.msra.mxu0 %v8362_v52  ;;  %5286 = vmatpush1.bf16.msra.mxu1 %v8364_v54  ;;  %v8402_v52 = vcombine.low %v2113_v19, %v2117_v20  ;;  %v8404_v54 = vcombine.low %v2114_v21, %v2118_v22  ;;  %v8435_v19 = vcombine.high %v2145_v13, %v2149_v14  ;;  %v2153_v21 = vld [vmem:[%s13012_s3 + $0x540] sm:$0xff] }
 0x144   :  { %5123 = vmatprep.subr.bf16.mxu0 %v8371_v55  ;;  %5287 = vmatprep.subr.bf16.mxu1 %v8373_v56  ;;  %v2129_v56 = vld [vmem:[%s13012_s3 + $0x480] sm:$0xff] }
 0x145   :  { %v8419_v2 = vcombine.high %v2129_v56, %v2133_v60  ;;  %v2157_v22 = vld [vmem:[%s13012_s3 + $0x560] sm:$0xff] }
 0x146   :  { %v8443_v29 = vcombine.high %v2153_v21, %v2157_v22 }
 0x147   :  { %5124 = vmatpush1.bf16.msra.mxu0 %v8370_v62  ;;  %5288 = vmatpush1.bf16.msra.mxu1 %v8372_v63  ;;  %v2134_v62 = vld [vmem:[%s13012_s3 + $0x4a8] sm:$0xff] }
 0x148   :  { %5125 = vmatprep.subr.bf16.mxu0 %v8379_v0  ;;  %5289 = vmatprep.subr.bf16.mxu1 %v8381_v1  ;;  %v8410_v0 = vcombine.low %v2121_v47, %v2125_v49  ;;  %v8412_v1 = vcombine.low %v2122_v23, %v2126_v50  ;;  %v8421_v3 = vcombine.high %v2130_v61, %v2134_v62  ;;  %v2177_v49 = vld [vmem:[%s13012_s3 + $0x600] sm:$0xff]  ;;  %v2178_v50 = vld [vmem:[%s13012_s3 + $0x608] sm:$0xff] }
 0x149   :  { %v2181_v23 = vld [vmem:[%s13012_s3 + $0x620] sm:$0xff] }
 0x14b   :  { %5126 = vmatpush1.bf16.msra.mxu0 %v8378_v6  ;;  %5290 = vmatpush1.bf16.msra.mxu1 %v8380_v7  ;;  %v2138_v6 = vld [vmem:[%s13012_s3 + $0x4c8] sm:$0xff] }
 0x14c   :  { %5127 = vmatprep.subr.bf16.mxu0 %v8387_v8  ;;  %5291 = vmatprep.subr.bf16.mxu1 %v8389_v9  ;;  %v2142_v7 = vld [vmem:[%s13012_s3 + $0x4e8] sm:$0xff]  ;;  %v8418_v8 = vcombine.low %v2129_v56, %v2133_v60  ;;  %v8420_v9 = vcombine.low %v2130_v61, %v2134_v62  ;;  %v2185_v60 = vld [vmem:[%s13012_s3 + $0x640] sm:$0xff] }
 0x14d   :  { %v8429_v11 = vcombine.high %v2138_v6, %v2142_v7  ;;  %v2189_v61 = vld [vmem:[%s13012_s3 + $0x660] sm:$0xff]  ;;  %v2186_v62 = vld [vmem:[%s13012_s3 + $0x648] sm:$0xff] }
 0x14f   :  { %5128 = vmatpush1.bf16.msra.mxu0 %v8386_v16  ;;  %5292 = vmatpush1.bf16.msra.mxu1 %v8388_v17  ;;  %v2146_v16 = vld [vmem:[%s13012_s3 + $0x508] sm:$0xff] }
 0x150   :  { %5129 = vmatprep.subr.bf16.mxu0 %v8395_v53  ;;  %5293 = vmatprep.subr.bf16.mxu1 %v8397_v18  ;;  %v2150_v17 = vld [vmem:[%s13012_s3 + $0x528] sm:$0xff]  ;;  %v8426_v53 = vcombine.low %v2137_v4, %v2141_v5  ;;  %v8428_v18 = vcombine.low %v2138_v6, %v2142_v7  ;;  %v2193_v5 = vld [vmem:[%s13012_s3 + $0x680] sm:$0xff] }
 0x151   :  { %v8437_v20 = vcombine.high %v2146_v16, %v2150_v17  ;;  %v2197_v6 = vld [vmem:[%s13012_s3 + $0x6a0] sm:$0xff]  ;;  %v2194_v7 = vld [vmem:[%s13012_s3 + $0x688] sm:$0xff] }
 0x153   :  { %5130 = vmatpush1.bf16.msra.mxu0 %v8394_v25  ;;  %5294 = vmatpush1.bf16.msra.mxu1 %v8396_v26  ;;  %v2154_v25 = vld [vmem:[%s13012_s3 + $0x548] sm:$0xff] }
 0x154   :  { %5140 = vmatprep.subr.bf16.mxu0 %v8403_v27  ;;  %5304 = vmatprep.subr.bf16.mxu1 %v8405_v28  ;;  %v2158_v26 = vld [vmem:[%s13012_s3 + $0x568] sm:$0xff]  ;;  %v8434_v27 = vcombine.low %v2145_v13, %v2149_v14  ;;  %v8436_v28 = vcombine.low %v2146_v16, %v2150_v17  ;;  %v2201_v14 = vld [vmem:[%s13012_s3 + $0x6c0] sm:$0xff] }
 0x155   :  { %v2205_v16 = vld [vmem:[%s13012_s3 + $0x6e0] sm:$0xff]  ;;  %v2202_v17 = vld [vmem:[%s13012_s3 + $0x6c8] sm:$0xff] }
 0x169   :  { %v1716_v37 = vpop.f32.mrb[0].mxu0  ;;  %v10777_v39 = vpop.f32.mrb[0].mxu1 }
 0x16a   :  { %v9119_v38 = vadd.f32 %v1716_v37, %v310_v34  ;;  %v1718_v40 = vpop.f32.mrb[1].mxu0  ;;  %v1800_v42 = vpop.f32.mrb[1].mxu1  ;;  %v8445_v34 = vcombine.high %v2154_v25, %v2158_v26  ;;  %v2162_v37 = vld [vmem:[%s13012_s3 + $0x588] sm:$0xff] }
 0x16b   :  { %v9120_v41 = vadd.f32 %v1718_v40, %v314_v35  ;;  %v1720_v43 = vpop.f32.mrb[2].mxu0  ;;  %v9122_v44 = vadd.f32 %v1800_v42, %v322_v36  ;;  %v1802_v24 = vpop.f32.mrb[2].mxu1  ;;  %v2161_v35 = vld [vmem:[%s13012_s3 + $0x580] sm:$0xff]  ;;  %v8442_v40 = vcombine.low %v2153_v21, %v2157_v22 }
 0x16c   :  { %v1969_v12 = vmax.f32 %v9119_v38, 0.0  ;;  %v1721_v45 = vpop.f32.mrb[3].mxu0  ;;  %v1803_v46 = vpop.f32.mrb[3].mxu1  ;;  %v2165_v36 = vld [vmem:[%s13012_s3 + $0x5a0] sm:$0xff]  ;;  %v2166_v38 = vld [vmem:[%s13012_s3 + $0x5a8] sm:$0xff] }
 0x16d   :  { %v1970_v57 = vmax.f32 %v9120_v41, 0.0  ;;  %v1972_v48 = vmax.f32 %v9122_v44, 0.0  ;;  %v8444_v41 = vcombine.low %v2154_v25, %v2158_v26  ;;  %v8451_v42 = vcombine.high %v2161_v35, %v2165_v36  ;;  %v2173_v44 = vld [vmem:[%s13012_s3 + $0x5e0] sm:$0xff]  ;;  %v2170_v24 = vld [vmem:[%s13012_s3 + $0x5c8] sm:$0xff] }
 0x16e   :  { %v10793_v55 = vpack.c.bf16 %v1969_v12, %v1969_v12  ;;  %v8453_v43 = vcombine.high %v2162_v37, %v2166_v38  ;;  %v2169_v12 = vld [vmem:[%s13012_s3 + $0x5c0] sm:$0xff]  ;;  %v2174_v45 = vld [vmem:[%s13012_s3 + $0x5e8] sm:$0xff]  ;;  %v8452_v46 = vcombine.low %v2162_v37, %v2166_v38 }
 0x16f   :  { %v10791_v51 = vpack.c.bf16 %v1970_v57, %v1970_v57  ;;  %v10809_v63 = vpack.c.bf16 %v1972_v48, %v1972_v48  ;;  %v8450_v57 = vcombine.low %v2161_v35, %v2165_v36  ;;  %v8459_v47 = vcombine.high %v2169_v12, %v2173_v44  ;;  %v2209_v22 = vld [vmem:[%s13012_s3 + $0x700] sm:$0xff]  ;;  %v2210_v26 = vld [vmem:[%s13012_s3 + $0x708] sm:$0xff] }
 0x170   :  { %v8461_v48 = vcombine.high %v2170_v24, %v2174_v45  ;;  %v8460_v56 = vcombine.low %v2170_v24, %v2174_v45  ;;  %v2213_v25 = vld [vmem:[%s13012_s3 + $0x720] sm:$0xff]  ;;  %v2218_v38 = vld [vmem:[%s13012_s3 + $0x748] sm:$0xff] }
 0x171   :  { %5131 = vmatprep.mubr.bf16.mxu0 %v10791_v51  ;;  %5295 = vmatprep.mubr.bf16.mxu1 %v10791_v51  ;;  %v2217_v36 = vld [vmem:[%s13012_s3 + $0x740] sm:$0xff] }
 0x172   :  { %5132 = vmatmul.mubr.bf16.vlgmr.msra.gmra.mrb[8].mxu0 %v10793_v55  ;;  %5296 = vmatmul.mubr.bf16.vlgmr.msra.gmra.mrb[8].mxu1 %v10793_v55  ;;  %v2221_v37 = vld [vmem:[%s13012_s3 + $0x760] sm:$0xff] }
 0x173   :  { %5141 = vmatpush1.bf16.msra.mxu0 %v8402_v52  ;;  %5305 = vmatpush1.bf16.msra.mxu1 %v8404_v54  ;;  %v2182_v52 = vld [vmem:[%s13012_s3 + $0x628] sm:$0xff]  ;;  %v8458_v54 = vcombine.low %v2169_v12, %v2173_v44  ;;  %v8507_v12 = vcombine.high %v2217_v36, %v2221_v37  ;;  %v2225_v24 = vld [vmem:[%s13012_s3 + $0x780] sm:$0xff] }
 0x174   :  { %5172 = vmatprep.mubr.bf16.mxu0 %v10809_v63  ;;  %5336 = vmatprep.mubr.bf16.mxu1 %v10809_v63  ;;  %v2229_v45 = vld [vmem:[%s13012_s3 + $0x7a0] sm:$0xff] }
 0x175   :  { %5142 = vmatprep.subr.bf16.mxu0 %v8411_v58  ;;  %5306 = vmatprep.subr.bf16.mxu1 %v8413_v59  ;;  %v8467_v58 = vcombine.high %v2177_v49, %v2181_v23  ;;  %v8469_v59 = vcombine.high %v2178_v50, %v2182_v52 }
 0x177   :  { %5143 = vmatpush1.bf16.msra.mxu0 %v8410_v0  ;;  %5307 = vmatpush1.bf16.msra.mxu1 %v8412_v1  ;;  %v2190_v0 = vld [vmem:[%s13012_s3 + $0x668] sm:$0xff]  ;;  %v8466_v1 = vcombine.low %v2177_v49, %v2181_v23  ;;  %v8515_v23 = vcombine.high %v2225_v24, %v2229_v45 }
 0x178   :  { %5144 = vmatprep.subr.bf16.mxu0 %v8419_v2  ;;  %5308 = vmatprep.subr.bf16.mxu1 %v8421_v3  ;;  %v8468_v2 = vcombine.low %v2178_v50, %v2182_v52  ;;  %v8475_v3 = vcombine.high %v2185_v60, %v2189_v61  ;;  %v8477_v4 = vcombine.high %v2186_v62, %v2190_v0  ;;  %v2233_v52 = vld [vmem:[%s13012_s3 + $0x7c0] sm:$0xff] }
 0x17b   :  { %5145 = vmatpush1.bf16.msra.mxu0 %v8418_v8  ;;  %5309 = vmatpush1.bf16.msra.mxu1 %v8420_v9  ;;  %v2198_v8 = vld [vmem:[%s13012_s3 + $0x6a8] sm:$0xff]  ;;  %v8474_v9 = vcombine.low %v2185_v60, %v2189_v61 }
 0x17c   :  { %5146 = vmatprep.subr.bf16.mxu0 %v8427_v10  ;;  %5310 = vmatprep.subr.bf16.mxu1 %v8429_v11  ;;  %v8476_v10 = vcombine.low %v2186_v62, %v2190_v0  ;;  %v8483_v11 = vcombine.high %v2193_v5, %v2197_v6  ;;  %v8485_v13 = vcombine.high %v2194_v7, %v2198_v8 }
 0x17f   :  { %5147 = vmatpush1.bf16.msra.mxu0 %v8426_v53  ;;  %5311 = vmatpush1.bf16.msra.mxu1 %v8428_v18  ;;  %v2206_v53 = vld [vmem:[%s13012_s3 + $0x6e8] sm:$0xff]  ;;  %v8482_v18 = vcombine.low %v2193_v5, %v2197_v6 }
 0x180   :  { %5148 = vmatprep.subr.bf16.mxu0 %v8435_v19  ;;  %5312 = vmatprep.subr.bf16.mxu1 %v8437_v20  ;;  %v8484_v19 = vcombine.low %v2194_v7, %v2198_v8  ;;  %v8491_v20 = vcombine.high %v2201_v14, %v2205_v16  ;;  %v8493_v21 = vcombine.high %v2202_v17, %v2206_v53 }
 0x183   :  { %5149 = vmatpush1.bf16.msra.mxu0 %v8434_v27  ;;  %5313 = vmatpush1.bf16.msra.mxu1 %v8436_v28  ;;  %v2214_v27 = vld [vmem:[%s13012_s3 + $0x728] sm:$0xff]  ;;  %v8490_v28 = vcombine.low %v2201_v14, %v2205_v16 }
 0x184   :  { %5150 = vmatprep.subr.bf16.mxu0 %v8443_v29  ;;  %5314 = vmatprep.subr.bf16.mxu1 %v8445_v34  ;;  %v8492_v29 = vcombine.low %v2202_v17, %v2206_v53  ;;  %v8499_v34 = vcombine.high %v2209_v22, %v2213_v25  ;;  %v8501_v35 = vcombine.high %v2210_v26, %v2214_v27 }
 0x187   :  { %5151 = vmatpush1.bf16.msra.mxu0 %v8442_v40  ;;  %5315 = vmatpush1.bf16.msra.mxu1 %v8444_v41  ;;  %v2222_v40 = vld [vmem:[%s13012_s3 + $0x768] sm:$0xff]  ;;  %v8498_v41 = vcombine.low %v2209_v22, %v2213_v25 }
 0x188   :  { %5152 = vmatprep.subr.bf16.mxu0 %v8451_v42  ;;  %5316 = vmatprep.subr.bf16.mxu1 %v8453_v43  ;;  %v8500_v42 = vcombine.low %v2210_v26, %v2214_v27  ;;  %v10948_v43 = vsub.s32 2, %v10755_v30  ;;  %v8509_v44 = vcombine.high %v2218_v38, %v2222_v40  ;;  %v2262_v22 = vld [vmem:[%s13012_s3 + $0x8a8] sm:$0xff] }
 0x18a   :  { %v318_v49 = vrot.slane %v10763_v31, %v10948_v43 }
 0x18b   :  { %5153 = vmatpush1.bf16.msra.mxu0 %v8450_v57  ;;  %5317 = vmatpush1.bf16.msra.mxu1 %v8452_v46  ;;  %v2226_v57 = vld [vmem:[%s13012_s3 + $0x788] sm:$0xff] }
 0x18c   :  { %5154 = vmatprep.subr.bf16.mxu0 %v8459_v47  ;;  %5318 = vmatprep.subr.bf16.mxu1 %v8461_v48  ;;  %v2230_v46 = vld [vmem:[%s13012_s3 + $0x7a8] sm:$0xff]  ;;  %v8506_v47 = vcombine.low %v2217_v36, %v2221_v37  ;;  %v8508_v48 = vcombine.low %v2218_v38, %v2222_v40  ;;  %v9121_v61 = vadd.f32 %v10777_v39, %v318_v49  ;;  %v2285_v49 = vld [vmem:[%s13012_s3 + $0x960] sm:$0xff] }
 0x18d   :  { %v8517_v50 = vcombine.high %v2226_v57, %v2230_v46  ;;  %v8516_v60 = vcombine.low %v2226_v57, %v2230_v46  ;;  %v2246_v39 = vld [vmem:[%s13012_s3 + $0x828] sm:$0xff] }
 0x18e   :  { %v1971_v6 = vmax.f32 %v9121_v61, 0.0  ;;  %v2270_v36 = vld [vmem:[%s13012_s3 + $0x8e8] sm:$0xff] }
 0x18f   :  { %5155 = vmatpush1.bf16.msra.mxu0 %v8458_v54  ;;  %5319 = vmatpush1.bf16.msra.mxu1 %v8460_v56  ;;  %v2237_v54 = vld [vmem:[%s13012_s3 + $0x7e0] sm:$0xff]  ;;  %v2234_v56 = vld [vmem:[%s13012_s3 + $0x7c8] sm:$0xff] }
 0x190   :  { %5156 = vmatprep.subr.bf16.mxu0 %v8467_v58  ;;  %5320 = vmatprep.subr.bf16.mxu1 %v8469_v59  ;;  %v2238_v58 = vld [vmem:[%s13012_s3 + $0x7e8] sm:$0xff]  ;;  %v8514_v59 = vcombine.low %v2225_v24, %v2229_v45  ;;  %v8523_v62 = vcombine.high %v2233_v52, %v2237_v54  ;;  %v11001_v17 = vpack.c.bf16 %v1971_v6, %v1971_v6 }
 0x191   :  { %v8525_v0 = vcombine.high %v2234_v56, %v2238_v58  ;;  %v8524_v5 = vcombine.low %v2234_v56, %v2238_v58  ;;  %v2278_v24 = vld [vmem:[%s13012_s3 + $0x928] sm:$0xff] }
 0x192   :  { %v2290_v61 = vld [vmem:[%s13012_s3 + $0x988] sm:$0xff] }
 0x193   :  { %5157 = vmatpush1.bf16.msra.mxu0 %v8466_v1  ;;  %5321 = vmatpush1.bf16.msra.mxu1 %v8468_v2  ;;  %v2241_v1 = vld [vmem:[%s13012_s3 + $0x800] sm:$0xff]  ;;  %v2302_v6 = vld [vmem:[%s13012_s3 + $0x9e8] sm:$0xff] }
 0x194   :  { %5158 = vmatprep.subr.bf16.mxu0 %v8475_v3  ;;  %5322 = vmatprep.subr.bf16.mxu1 %v8477_v4  ;;  %v2245_v2 = vld [vmem:[%s13012_s3 + $0x820] sm:$0xff]  ;;  %v2242_v3 = vld [vmem:[%s13012_s3 + $0x808] sm:$0xff]  ;;  %v8522_v4 = vcombine.low %v2233_v52, %v2237_v54 }
 0x195   :  { %v8531_v7 = vcombine.high %v2241_v1, %v2245_v2  ;;  %v8533_v8 = vcombine.high %v2242_v3, %v2246_v39  ;;  %v8530_v14 = vcombine.low %v2241_v1, %v2245_v2  ;;  %v8532_v16 = vcombine.low %v2242_v3, %v2246_v39  ;;  %v2297_v39 = vld [vmem:[%s13012_s3 + $0x9c0] sm:$0xff] }
 0x197   :  { %5159 = vmatpush1.bf16.msra.mxu0 %v8474_v9  ;;  %5323 = vmatpush1.bf16.msra.mxu1 %v8476_v10  ;;  %v2249_v9 = vld [vmem:[%s13012_s3 + $0x840] sm:$0xff] }
 0x198   :  { %5160 = vmatprep.subr.bf16.mxu0 %v8483_v11  ;;  %5324 = vmatprep.subr.bf16.mxu1 %v8485_v13  ;;  %v2253_v10 = vld [vmem:[%s13012_s3 + $0x860] sm:$0xff]  ;;  %v2250_v11 = vld [vmem:[%s13012_s3 + $0x848] sm:$0xff] }
 0x199   :  { %v2254_v13 = vld [vmem:[%s13012_s3 + $0x868] sm:$0xff]  ;;  %v8539_v53 = vcombine.high %v2249_v9, %v2253_v10  ;;  %v8538_v25 = vcombine.low %v2249_v9, %v2253_v10 }
 0x19a   :  { %v8540_v26 = vcombine.low %v2250_v11, %v2254_v13 }
 0x19b   :  { %5161 = vmatpush1.bf16.msra.mxu0 %v8482_v18  ;;  %5325 = vmatpush1.bf16.msra.mxu1 %v8484_v19  ;;  %v8541_v18 = vcombine.high %v2250_v11, %v2254_v13  ;;  %v2257_v19 = vld [vmem:[%s13012_s3 + $0x880] sm:$0xff] }
 0x19c   :  { %5162 = vmatprep.subr.bf16.mxu0 %v8491_v20  ;;  %5326 = vmatprep.subr.bf16.mxu1 %v8493_v21  ;;  %v2261_v20 = vld [vmem:[%s13012_s3 + $0x8a0] sm:$0xff]  ;;  %v2258_v21 = vld [vmem:[%s13012_s3 + $0x888] sm:$0xff] }
 0x19d   :  { %v8547_v27 = vcombine.high %v2257_v19, %v2261_v20  ;;  %v8546_v37 = vcombine.low %v2257_v19, %v2261_v20  ;;  %v8548_v38 = vcombine.low %v2258_v21, %v2262_v22  ;;  %v2305_v11 = vld [vmem:[%s13012_s3 + $0xa00] sm:$0xff] }
 0x19e   :  { %v2309_v13 = vld [vmem:[%s13012_s3 + $0xa20] sm:$0xff] }
 0x19f   :  { %5163 = vmatpush1.bf16.msra.mxu0 %v8490_v28  ;;  %5327 = vmatpush1.bf16.msra.mxu1 %v8492_v29  ;;  %v8549_v28 = vcombine.high %v2258_v21, %v2262_v22  ;;  %v2265_v29 = vld [vmem:[%s13012_s3 + $0x8c0] sm:$0xff]  ;;  %v8595_v19 = vcombine.high %v2305_v11, %v2309_v13 }
 0x1a0   :  { %5164 = vmatprep.subr.bf16.mxu0 %v8499_v34  ;;  %5328 = vmatprep.subr.bf16.mxu1 %v8501_v35  ;;  %v2269_v34 = vld [vmem:[%s13012_s3 + $0x8e0] sm:$0xff]  ;;  %v2266_v35 = vld [vmem:[%s13012_s3 + $0x8c8] sm:$0xff] }
 0x1a1   :  { %v8555_v40 = vcombine.high %v2265_v29, %v2269_v34  ;;  %v8554_v45 = vcombine.low %v2265_v29, %v2269_v34  ;;  %v8556_v57 = vcombine.low %v2266_v35, %v2270_v36  ;;  %v2313_v21 = vld [vmem:[%s13012_s3 + $0xa40] sm:$0xff] }
 0x1a2   :  { %v2317_v22 = vld [vmem:[%s13012_s3 + $0xa60] sm:$0xff] }
 0x1a3   :  { %5165 = vmatpush1.bf16.msra.mxu0 %v8498_v41  ;;  %5329 = vmatpush1.bf16.msra.mxu1 %v8500_v42  ;;  %v8557_v41 = vcombine.high %v2266_v35, %v2270_v36  ;;  %v2273_v42 = vld [vmem:[%s13012_s3 + $0x900] sm:$0xff]  ;;  %v8603_v29 = vcombine.high %v2313_v21, %v2317_v22 }
 0x1a4   :  { %5166 = vmatprep.subr.bf16.mxu0 %v8507_v12  ;;  %5330 = vmatprep.subr.bf16.mxu1 %v8509_v44  ;;  %v2277_v12 = vld [vmem:[%s13012_s3 + $0x920] sm:$0xff]  ;;  %v2274_v44 = vld [vmem:[%s13012_s3 + $0x908] sm:$0xff] }
 0x1a5   :  { %v8563_v46 = vcombine.high %v2273_v42, %v2277_v12  ;;  %v8562_v52 = vcombine.low %v2273_v42, %v2277_v12  ;;  %v8564_v54 = vcombine.low %v2274_v44, %v2278_v24  ;;  %v2321_v35 = vld [vmem:[%s13012_s3 + $0xa80] sm:$0xff] }
 0x1a6   :  { %v2325_v36 = vld [vmem:[%s13012_s3 + $0xaa0] sm:$0xff] }
 0x1a7   :  { %5167 = vmatpush1.bf16.msra.mxu0 %v8506_v47  ;;  %5331 = vmatpush1.bf16.msra.mxu1 %v8508_v48  ;;  %v8565_v47 = vcombine.high %v2274_v44, %v2278_v24  ;;  %v2281_v48 = vld [vmem:[%s13012_s3 + $0x940] sm:$0xff]  ;;  %v8611_v42 = vcombine.high %v2321_v35, %v2325_v36 }
 0x1a8   :  { %5168 = vmatprep.subr.bf16.mxu0 %v8515_v23  ;;  %5332 = vmatprep.subr.bf16.mxu1 %v8517_v50  ;;  %v2282_v23 = vld [vmem:[%s13012_s3 + $0x948] sm:$0xff]  ;;  %v8571_v56 = vcombine.high %v2281_v48, %v2285_v49  ;;  %v2329_v44 = vld [vmem:[%s13012_s3 + $0xac0] sm:$0xff] }
 0x1a9   :  { %v2286_v50 = vld [vmem:[%s13012_s3 + $0x968] sm:$0xff]  ;;  %v2333_v24 = vld [vmem:[%s13012_s3 + $0xae0] sm:$0xff] }
 0x1aa   :  { %v8573_v58 = vcombine.high %v2282_v23, %v2286_v50  ;;  %v8572_v1 = vcombine.low %v2282_v23, %v2286_v50  ;;  %v2337_v23 = vld [vmem:[%s13012_s3 + $0xb00] sm:$0xff] }
 0x1ab   :  { %5169 = vmatpush1.bf16.msra.mxu0 %v8514_v59  ;;  %5333 = vmatpush1.bf16.msra.mxu1 %v8516_v60  ;;  %v2289_v59 = vld [vmem:[%s13012_s3 + $0x980] sm:$0xff] }
 0x1ac   :  { %5170 = vmatprep.subr.bf16.mxu0 %v8523_v62  ;;  %5334 = vmatprep.subr.bf16.mxu1 %v8525_v0  ;;  %v2293_v60 = vld [vmem:[%s13012_s3 + $0x9a0] sm:$0xff]  ;;  %v2294_v62 = vld [vmem:[%s13012_s3 + $0x9a8] sm:$0xff]  ;;  %v8570_v0 = vcombine.low %v2281_v48, %v2285_v49  ;;  %v8619_v48 = vcombine.high %v2329_v44, %v2333_v24 }
 0x1ad   :  { %v8579_v2 = vcombine.high %v2289_v59, %v2293_v60  ;;  %v8581_v3 = vcombine.high %v2290_v61, %v2294_v62  ;;  %v2341_v50 = vld [vmem:[%s13012_s3 + $0xb20] sm:$0xff] }
 0x1af   :  { %5171 = vmatpush1.bf16.msra.mxu0 %v8522_v4  ;;  %5335 = vmatpush1.bf16.msra.mxu1 %v8524_v5  ;;  %v2301_v4 = vld [vmem:[%s13012_s3 + $0x9e0] sm:$0xff]  ;;  %v2298_v5 = vld [vmem:[%s13012_s3 + $0x9c8] sm:$0xff] }
 0x1b0   :  { %5181 = vmatprep.subr.bf16.mxu0 %v8531_v7  ;;  %5345 = vmatprep.subr.bf16.mxu1 %v8533_v8  ;;  %v8578_v7 = vcombine.low %v2289_v59, %v2293_v60  ;;  %v8580_v8 = vcombine.low %v2290_v61, %v2294_v62  ;;  %v8587_v9 = vcombine.high %v2297_v39, %v2301_v4  ;;  %v2345_v61 = vld [vmem:[%s13012_s3 + $0xb40] sm:$0xff] }
 0x1b1   :  { %v8589_v10 = vcombine.high %v2298_v5, %v2302_v6  ;;  %v8627_v59 = vcombine.high %v2337_v23, %v2341_v50  ;;  %v2349_v62 = vld [vmem:[%s13012_s3 + $0xb60] sm:$0xff] }
 0x1b2   :  { %5173 = vmatmul.mubr.bf16.vlgmr.msra.gmra.mrb[8].mxu0 %v11001_v17  ;;  %5337 = vmatmul.mubr.bf16.vlgmr.msra.gmra.mrb[8].mxu1 %v11001_v17 }
 0x1b3   :  { %5182 = vmatpush1.bf16.msra.mxu0 %v8530_v14  ;;  %5346 = vmatpush1.bf16.msra.mxu1 %v8532_v16  ;;  %v2306_v14 = vld [vmem:[%s13012_s3 + $0xa08] sm:$0xff] }
 0x1b4   :  { %5183 = vmatprep.subr.bf16.mxu0 %v8539_v53  ;;  %5347 = vmatprep.subr.bf16.mxu1 %v8541_v18  ;;  %v2310_v16 = vld [vmem:[%s13012_s3 + $0xa28] sm:$0xff]  ;;  %v8586_v53 = vcombine.low %v2297_v39, %v2301_v4  ;;  %v8588_v18 = vcombine.low %v2298_v5, %v2302_v6  ;;  %v8635_v39 = vcombine.high %v2345_v61, %v2349_v62  ;;  %v2353_v5 = vld [vmem:[%s13012_s3 + $0xb80] sm:$0xff] }
 0x1b5   :  { %v8597_v20 = vcombine.high %v2306_v14, %v2310_v16  ;;  %v2357_v6 = vld [vmem:[%s13012_s3 + $0xba0] sm:$0xff] }
 0x1b7   :  { %5184 = vmatpush1.bf16.msra.mxu0 %v8538_v25  ;;  %5348 = vmatpush1.bf16.msra.mxu1 %v8540_v26  ;;  %v2314_v25 = vld [vmem:[%s13012_s3 + $0xa48] sm:$0xff] }
 0x1b8   :  { %5185 = vmatprep.subr.bf16.mxu0 %v8547_v27  ;;  %5349 = vmatprep.subr.bf16.mxu1 %v8549_v28  ;;  %v2318_v26 = vld [vmem:[%s13012_s3 + $0xa68] sm:$0xff]  ;;  %v8594_v27 = vcombine.low %v2305_v11, %v2309_v13  ;;  %v8596_v28 = vcombine.low %v2306_v14, %v2310_v16  ;;  %v329_v13 = vsub.s32 5, %v10755_v30  ;;  %v8643_v14 = vcombine.high %v2353_v5, %v2357_v6 }
 0x1b9   :  { %v8605_v34 = vcombine.high %v2314_v25, %v2318_v26 }
 0x1bb   :  { %5186 = vmatpush1.bf16.msra.mxu0 %v8546_v37  ;;  %5350 = vmatpush1.bf16.msra.mxu1 %v8548_v38  ;;  %v2322_v37 = vld [vmem:[%s13012_s3 + $0xa88] sm:$0xff] }
 0x1bc   :  { %5187 = vmatprep.subr.bf16.mxu0 %v8555_v40  ;;  %5351 = vmatprep.subr.bf16.mxu1 %v8557_v41  ;;  %v2326_v38 = vld [vmem:[%s13012_s3 + $0xaa8] sm:$0xff]  ;;  %v8602_v40 = vcombine.low %v2313_v21, %v2317_v22  ;;  %v8604_v41 = vcombine.low %v2314_v25, %v2318_v26  ;;  %v8642_v25 = vcombine.low %v2353_v5, %v2357_v6  ;;  %v2389_v5 = vld [vmem:[%s13012_s3 + $0xca0] sm:$0xff] }
 0x1bd   :  { %v8613_v12 = vcombine.high %v2322_v37, %v2326_v38  ;;  %v2366_v21 = vld [vmem:[%s13012_s3 + $0xbe8] sm:$0xff] }
 0x1be   :  { %v2386_v6 = vld [vmem:[%s13012_s3 + $0xc88] sm:$0xff] }
 0x1bf   :  { %5188 = vmatpush1.bf16.msra.mxu0 %v8554_v45  ;;  %5352 = vmatpush1.bf16.msra.mxu1 %v8556_v57  ;;  %v2330_v45 = vld [vmem:[%s13012_s3 + $0xac8] sm:$0xff] }
 0x1c0   :  { %5189 = vmatprep.subr.bf16.mxu0 %v8563_v46  ;;  %5353 = vmatprep.subr.bf16.mxu1 %v8565_v47  ;;  %v2334_v57 = vld [vmem:[%s13012_s3 + $0xae8] sm:$0xff]  ;;  %v8610_v46 = vcombine.low %v2321_v35, %v2325_v36  ;;  %v8612_v47 = vcombine.low %v2322_v37, %v2326_v38  ;;  %v2369_v35 = vld [vmem:[%s13012_s3 + $0xc00] sm:$0xff] }
 0x1c1   :  { %v8621_v49 = vcombine.high %v2330_v45, %v2334_v57  ;;  %v2373_v37 = vld [vmem:[%s13012_s3 + $0xc20] sm:$0xff]  ;;  %v2370_v38 = vld [vmem:[%s13012_s3 + $0xc08] sm:$0xff] }
 0x1c3   :  { %5190 = vmatpush1.bf16.msra.mxu0 %v8562_v52  ;;  %5354 = vmatpush1.bf16.msra.mxu1 %v8564_v54  ;;  %v2338_v52 = vld [vmem:[%s13012_s3 + $0xb08] sm:$0xff] }
 0x1c4   :  { %5191 = vmatprep.subr.bf16.mxu0 %v8571_v56  ;;  %5355 = vmatprep.subr.bf16.mxu1 %v8573_v58  ;;  %v2342_v54 = vld [vmem:[%s13012_s3 + $0xb28] sm:$0xff]  ;;  %v8618_v56 = vcombine.low %v2329_v44, %v2333_v24  ;;  %v8620_v58 = vcombine.low %v2330_v45, %v2334_v57 }
 0x1c5   :  { %v8629_v60 = vcombine.high %v2338_v52, %v2342_v54 }
 0x1c7   :  { %5192 = vmatpush1.bf16.msra.mxu0 %v8570_v0  ;;  %5356 = vmatpush1.bf16.msra.mxu1 %v8572_v1  ;;  %v2346_v0 = vld [vmem:[%s13012_s3 + $0xb48] sm:$0xff] }
 0x1c8   :  { %5193 = vmatprep.subr.bf16.mxu0 %v8579_v2  ;;  %5357 = vmatprep.subr.bf16.mxu1 %v8581_v3  ;;  %v2350_v1 = vld [vmem:[%s13012_s3 + $0xb68] sm:$0xff]  ;;  %v8626_v2 = vcombine.low %v2337_v23, %v2341_v50  ;;  %v8628_v3 = vcombine.low %v2338_v52, %v2342_v54  ;;  %v8659_v23 = vcombine.high %v2369_v35, %v2373_v37 }
 0x1c9   :  { %v8637_v4 = vcombine.high %v2346_v0, %v2350_v1  ;;  %v8636_v11 = vcombine.low %v2346_v0, %v2350_v1  ;;  %v8658_v0 = vcombine.low %v2369_v35, %v2373_v37  ;;  %v2406_v35 = vld [vmem:[%s13012_s3 + $0xd28] sm:$0xff] }
 0x1cb   :  { %5194 = vmatpush1.bf16.msra.mxu0 %v8578_v7  ;;  %5358 = vmatpush1.bf16.msra.mxu1 %v8580_v8  ;;  %v2354_v7 = vld [vmem:[%s13012_s3 + $0xb88] sm:$0xff] }
 0x1cc   :  { %5195 = vmatprep.subr.bf16.mxu0 %v8587_v9  ;;  %5359 = vmatprep.subr.bf16.mxu1 %v8589_v10  ;;  %v2358_v8 = vld [vmem:[%s13012_s3 + $0xba8] sm:$0xff]  ;;  %v325_v9 = vsub.s32 4, %v10755_v30  ;;  %v8634_v10 = vcombine.low %v2345_v61, %v2349_v62 }
 0x1cd   :  { %v8645_v16 = vcombine.high %v2354_v7, %v2358_v8  ;;  %v8644_v26 = vcombine.low %v2354_v7, %v2358_v8  ;;  %v2382_v61 = vld [vmem:[%s13012_s3 + $0xc68] sm:$0xff] }
 0x1ce   :  { %v326_v22 = vrot.slane %v10763_v31, %v325_v9  ;;  %v2390_v7 = vld [vmem:[%s13012_s3 + $0xca8] sm:$0xff] }
 0x1cf   :  { %5196 = vmatpush1.bf16.msra.mxu0 %v8586_v53  ;;  %5360 = vmatpush1.bf16.msra.mxu1 %v8588_v18  ;;  %v337_v53 = vsub.s32 7, %v10755_v30  ;;  %v2361_v18 = vld [vmem:[%s13012_s3 + $0xbc0] sm:$0xff] }
 0x1d0   :  { %5197 = vmatprep.subr.bf16.mxu0 %v8595_v19  ;;  %5361 = vmatprep.subr.bf16.mxu1 %v8597_v20  ;;  %v2365_v19 = vld [vmem:[%s13012_s3 + $0xbe0] sm:$0xff]  ;;  %v2362_v20 = vld [vmem:[%s13012_s3 + $0xbc8] sm:$0xff] }
 0x1d1   :  { %v8650_v45 = vcombine.low %v2361_v18, %v2365_v19  ;;  %v8652_v57 = vcombine.low %v2362_v20, %v2366_v21 }
 0x1d3   :  { %5198 = vmatpush1.bf16.msra.mxu0 %v8594_v27  ;;  %5362 = vmatpush1.bf16.msra.mxu1 %v8596_v28  ;;  %v330_v27 = vrot.slane %v10763_v31, %v329_v13  ;;  %v338_v28 = vrot.slane %v10763_v31, %v337_v53 }
 0x1d4   :  { %5199 = vmatprep.subr.bf16.mxu0 %v8603_v29  ;;  %5363 = vmatprep.subr.bf16.mxu1 %v8605_v34  ;;  %v8651_v29 = vcombine.high %v2361_v18, %v2365_v19  ;;  %v8653_v34 = vcombine.high %v2362_v20, %v2366_v21  ;;  %v2393_v18 = vld [vmem:[%s13012_s3 + $0xcc0] sm:$0xff]  ;;  %v2394_v20 = vld [vmem:[%s13012_s3 + $0xcc8] sm:$0xff] }
 0x1d5   :  { %v2397_v19 = vld [vmem:[%s13012_s3 + $0xce0] sm:$0xff]  ;;  %v2398_v21 = vld [vmem:[%s13012_s3 + $0xce8] sm:$0xff] }
 0x1d6   :  { %v8684_v37 = vcombine.low %v2394_v20, %v2398_v21 }
 0x1d7   :  { %5200 = vmatpush1.bf16.msra.mxu0 %v8602_v40  ;;  %5364 = vmatpush1.bf16.msra.mxu1 %v8604_v41  ;;  %v2374_v40 = vld [vmem:[%s13012_s3 + $0xc28] sm:$0xff] }
 0x1d8   :  { %5201 = vmatprep.subr.bf16.mxu0 %v8611_v42  ;;  %5365 = vmatprep.subr.bf16.mxu1 %v8613_v12  ;;  %v8661_v50 = vcombine.high %v2370_v38, %v2374_v40  ;;  %v8660_v1 = vcombine.low %v2370_v38, %v2374_v40 }
 0x1db   :  { %5202 = vmatpush1.bf16.msra.mxu0 %v8610_v46  ;;  %5366 = vmatpush1.bf16.msra.mxu1 %v8612_v47 }
 0x1dc   :  { %5203 = vmatprep.subr.bf16.mxu0 %v8619_v48  ;;  %5367 = vmatprep.subr.bf16.mxu1 %v8621_v49 }
 0x1df   :  { %5204 = vmatpush1.bf16.msra.mxu0 %v8618_v56  ;;  %5368 = vmatpush1.bf16.msra.mxu1 %v8620_v58  ;;  %v2377_v56 = vld [vmem:[%s13012_s3 + $0xc40] sm:$0xff] }
 0x1e0   :  { %5205 = vmatprep.subr.bf16.mxu0 %v8627_v59  ;;  %5369 = vmatprep.subr.bf16.mxu1 %v8629_v60  ;;  %v2381_v59 = vld [vmem:[%s13012_s3 + $0xc60] sm:$0xff]  ;;  %v2378_v60 = vld [vmem:[%s13012_s3 + $0xc48] sm:$0xff] }
 0x1e3   :  { %5206 = vmatpush1.bf16.msra.mxu0 %v8626_v2  ;;  %5370 = vmatpush1.bf16.msra.mxu1 %v8628_v3  ;;  %v2385_v3 = vld [vmem:[%s13012_s3 + $0xc80] sm:$0xff] }
 0x1e4   :  { %5207 = vmatprep.subr.bf16.mxu0 %v8635_v39  ;;  %5371 = vmatprep.subr.bf16.mxu1 %v8637_v4  ;;  %v8667_v39 = vcombine.high %v2377_v56, %v2381_v59  ;;  %v8669_v4 = vcombine.high %v2378_v60, %v2382_v61 }
 0x1e7   :  { %5208 = vmatpush1.bf16.msra.mxu0 %v8634_v10  ;;  %5372 = vmatpush1.bf16.msra.mxu1 %v8636_v11  ;;  %v8666_v10 = vcombine.low %v2377_v56, %v2381_v59  ;;  %v8668_v11 = vcombine.low %v2378_v60, %v2382_v61  ;;  %v2429_v59 = vld [vmem:[%s13012_s3 + $0xde0] sm:$0xff]  ;;  %v2426_v60 = vld [vmem:[%s13012_s3 + $0xdc8] sm:$0xff] }
 0x1e8   :  { %5209 = vmatprep.subr.bf16.mxu0 %v8643_v14  ;;  %5373 = vmatprep.subr.bf16.mxu1 %v8645_v16  ;;  %v8675_v14 = vcombine.high %v2385_v3, %v2389_v5  ;;  %v8677_v16 = vcombine.high %v2386_v6, %v2390_v7  ;;  %v2430_v61 = vld [vmem:[%s13012_s3 + $0xde8] sm:$0xff] }
 0x1e9   :  { %v1880_v36 = vpop.f32.mrb[4].mxu0  ;;  %v11197_v41 = vpop.f32.mrb[4].mxu1 }
 0x1ea   :  { %v9123_v31 = vadd.f32 %v1880_v36, %v326_v22  ;;  %v1882_v42 = vpop.f32.mrb[5].mxu0  ;;  %v1964_v44 = vpop.f32.mrb[5].mxu1  ;;  %v8674_v22 = vcombine.low %v2385_v3, %v2389_v5  ;;  %v8682_v36 = vcombine.low %v2393_v18, %v2397_v19  ;;  %v2437_v5 = vld [vmem:[%s13012_s3 + $0xe20] sm:$0xff] }
 0x1eb   :  { %v9124_v12 = vadd.f32 %v1882_v42, %v330_v27  ;;  %5210 = vmatpush1.bf16.msra.mxu0 %v8642_v25  ;;  %5374 = vmatpush1.bf16.msra.mxu1 %v8644_v26  ;;  %v1884_v24 = vpop.f32.mrb[6].mxu0  ;;  %v9126_v47 = vadd.f32 %v1964_v44, %v338_v28  ;;  %v1966_v48 = vpop.f32.mrb[6].mxu1  ;;  %v8676_v25 = vcombine.low %v2386_v6, %v2390_v7  ;;  %v2401_v28 = vld [vmem:[%s13012_s3 + $0xd00] sm:$0xff]  ;;  %v2414_v44 = vld [vmem:[%s13012_s3 + $0xd68] sm:$0xff] }
 0x1ec   :  { %v1973_v46 = vmax.f32 %v9123_v31, 0.0  ;;  %v1885_v49 = vpop.f32.mrb[7].mxu0  ;;  %5211 = vmatprep.subr.bf16.mxu0 %v8651_v29  ;;  %5375 = vmatprep.subr.bf16.mxu1 %v8653_v34  ;;  %v1967_v54 = vpop.f32.mrb[7].mxu1  ;;  %v8683_v26 = vcombine.high %v2393_v18, %v2397_v19  ;;  %v8685_v27 = vcombine.high %v2394_v20, %v2398_v21  ;;  %v2405_v29 = vld [vmem:[%s13012_s3 + $0xd20] sm:$0xff]  ;;  %v2402_v34 = vld [vmem:[%s13012_s3 + $0xd08] sm:$0xff] }
 0x1ed   :  { %v1974_v52 = vmax.f32 %v9124_v12, 0.0  ;;  %v1976_v58 = vmax.f32 %v9126_v47, 0.0  ;;  %v8691_v38 = vcombine.high %v2401_v28, %v2405_v29  ;;  %v8693_v40 = vcombine.high %v2402_v34, %v2406_v35  ;;  %v2409_v31 = vld [vmem:[%s13012_s3 + $0xd40] sm:$0xff]  ;;  %v2410_v12 = vld [vmem:[%s13012_s3 + $0xd48] sm:$0xff] }
 0x1ee   :  { %v11213_v2 = vpack.c.bf16 %v1973_v46, %v1973_v46  ;;  %v2413_v42 = vld [vmem:[%s13012_s3 + $0xd60] sm:$0xff]  ;;  %v8690_v24 = vcombine.low %v2401_v28, %v2405_v29  ;;  %v8701_v46 = vcombine.high %v2410_v12, %v2414_v44  ;;  %v2418_v49 = vld [vmem:[%s13012_s3 + $0xd88] sm:$0xff] }
 0x1ef   :  { %v11211_v62 = vpack.c.bf16 %v1974_v52, %v1974_v52  ;;  %5212 = vmatpush1.bf16.msra.mxu0 %v8650_v45  ;;  %5376 = vmatpush1.bf16.msra.mxu1 %v8652_v57  ;;  %v11229_v8 = vpack.c.bf16 %v1976_v58, %v1976_v58  ;;  %v8692_v45 = vcombine.low %v2402_v34, %v2406_v35  ;;  %v2417_v47 = vld [vmem:[%s13012_s3 + $0xd80] sm:$0xff]  ;;  %v2434_v6 = vld [vmem:[%s13012_s3 + $0xe08] sm:$0xff] }
 0x1f0   :  { %5222 = vmatprep.subr.bf16.mxu0 %v8659_v23  ;;  %5386 = vmatprep.subr.bf16.mxu1 %v8661_v50  ;;  %v8699_v57 = vcombine.high %v2409_v31, %v2413_v42  ;;  %v2421_v48 = vld [vmem:[%s13012_s3 + $0xda0] sm:$0xff]  ;;  %v2422_v23 = vld [vmem:[%s13012_s3 + $0xda8] sm:$0xff]  ;;  %v8698_v50 = vcombine.low %v2409_v31, %v2413_v42  ;;  %v8700_v52 = vcombine.low %v2410_v12, %v2414_v44 }
 0x1f1   :  { %5213 = vmatprep.mubr.bf16.mxu0 %v11211_v62  ;;  %5377 = vmatprep.mubr.bf16.mxu1 %v11211_v62  ;;  %v8707_v54 = vcombine.high %v2417_v47, %v2421_v48  ;;  %v8709_v56 = vcombine.high %v2418_v49, %v2422_v23  ;;  %v2425_v58 = vld [vmem:[%s13012_s3 + $0xdc0] sm:$0xff]  ;;  %v2438_v7 = vld [vmem:[%s13012_s3 + $0xe28] sm:$0xff] }
 0x1f2   :  { %5214 = vmatmul.mubr.bf16.vlgmr.msra.gmra.mrb[8].mxu0 %v11213_v2  ;;  %5378 = vmatmul.mubr.bf16.vlgmr.msra.gmra.mrb[8].mxu1 %v11213_v2  ;;  %v8715_v3 = vcombine.high %v2425_v58, %v2429_v59  ;;  %v2441_v18 = vld [vmem:[%s13012_s3 + $0xe40] sm:$0xff]  ;;  %v2442_v20 = vld [vmem:[%s13012_s3 + $0xe48] sm:$0xff] }
 0x1f3   :  { %5223 = vmatpush1.bf16.msra.mxu0 %v8658_v0  ;;  %5387 = vmatpush1.bf16.msra.mxu1 %v8660_v1  ;;  %v8706_v0 = vcombine.low %v2417_v47, %v2421_v48  ;;  %v8708_v1 = vcombine.low %v2418_v49, %v2422_v23  ;;  %v2445_v19 = vld [vmem:[%s13012_s3 + $0xe60] sm:$0xff]  ;;  %v2446_v21 = vld [vmem:[%s13012_s3 + $0xe68] sm:$0xff] }
 0x1f4   :  { %5254 = vmatprep.mubr.bf16.mxu0 %v11229_v8  ;;  %5418 = vmatprep.mubr.bf16.mxu1 %v11229_v8  ;;  %v2449_v28 = vld [vmem:[%s13012_s3 + $0xe80] sm:$0xff]  ;;  %v2450_v34 = vld [vmem:[%s13012_s3 + $0xe88] sm:$0xff] }
 0x1f5   :  { %5224 = vmatprep.subr.bf16.mxu0 %v8667_v39  ;;  %5388 = vmatprep.subr.bf16.mxu1 %v8669_v4  ;;  %v8717_v39 = vcombine.high %v2426_v60, %v2430_v61  ;;  %v2433_v4 = vld [vmem:[%s13012_s3 + $0xe00] sm:$0xff]  ;;  %v2454_v35 = vld [vmem:[%s13012_s3 + $0xea8] sm:$0xff] }
 0x1f6   :  { %v2453_v29 = vld [vmem:[%s13012_s3 + $0xea0] sm:$0xff]  ;;  %v2458_v12 = vld [vmem:[%s13012_s3 + $0xec8] sm:$0xff] }
 0x1f7   :  { %5225 = vmatpush1.bf16.msra.mxu0 %v8666_v10  ;;  %5389 = vmatpush1.bf16.msra.mxu1 %v8668_v11  ;;  %v8714_v10 = vcombine.low %v2425_v58, %v2429_v59  ;;  %v8716_v11 = vcombine.low %v2426_v60, %v2430_v61  ;;  %v2457_v31 = vld [vmem:[%s13012_s3 + $0xec0] sm:$0xff]  ;;  %v2462_v44 = vld [vmem:[%s13012_s3 + $0xee8] sm:$0xff] }
 0x1f8   :  { %5226 = vmatprep.subr.bf16.mxu0 %v8675_v14  ;;  %5390 = vmatprep.subr.bf16.mxu1 %v8677_v16  ;;  %v8723_v14 = vcombine.high %v2433_v4, %v2437_v5  ;;  %v8725_v16 = vcombine.high %v2434_v6, %v2438_v7  ;;  %v2461_v42 = vld [vmem:[%s13012_s3 + $0xee0] sm:$0xff]  ;;  %v2466_v49 = vld [vmem:[%s13012_s3 + $0xf08] sm:$0xff] }
 0x1f9   :  { %v2465_v47 = vld [vmem:[%s13012_s3 + $0xf00] sm:$0xff]  ;;  %v2470_v23 = vld [vmem:[%s13012_s3 + $0xf28] sm:$0xff] }
 0x1fa   :  { %v2469_v48 = vld [vmem:[%s13012_s3 + $0xf20] sm:$0xff]  ;;  %v2474_v60 = vld [vmem:[%s13012_s3 + $0xf48] sm:$0xff] }
 0x1fb   :  { %5227 = vmatpush1.bf16.msra.mxu0 %v8674_v22  ;;  %5391 = vmatpush1.bf16.msra.mxu1 %v8676_v25  ;;  %v8722_v22 = vcombine.low %v2433_v4, %v2437_v5  ;;  %v8724_v25 = vcombine.low %v2434_v6, %v2438_v7  ;;  %v2473_v58 = vld [vmem:[%s13012_s3 + $0xf40] sm:$0xff]  ;;  %v2478_v61 = vld [vmem:[%s13012_s3 + $0xf68] sm:$0xff] }
 0x1fc   :  { %5228 = vmatprep.subr.bf16.mxu0 %v8683_v26  ;;  %5392 = vmatprep.subr.bf16.mxu1 %v8685_v27  ;;  %v8731_v26 = vcombine.high %v2441_v18, %v2445_v19  ;;  %v8733_v27 = vcombine.high %v2442_v20, %v2446_v21  ;;  %v2477_v59 = vld [vmem:[%s13012_s3 + $0xf60] sm:$0xff]  ;;  %v8765_v4 = vcombine.high %v2474_v60, %v2478_v61  ;;  %v2482_v7 = vld [vmem:[%s13012_s3 + $0xf88] sm:$0xff] }
 0x1fd   :  { %v2481_v5 = vld [vmem:[%s13012_s3 + $0xf80] sm:$0xff] }
 0x1fe   :  { %v2485_v6 = vld [vmem:[%s13012_s3 + $0xfa0] sm:$0xff] }
 0x1ff   :  { %5229 = vmatpush1.bf16.msra.mxu0 %v8682_v36  ;;  %5393 = vmatpush1.bf16.msra.mxu1 %v8684_v37  ;;  %v8730_v36 = vcombine.low %v2441_v18, %v2445_v19  ;;  %v8732_v37 = vcombine.low %v2442_v20, %v2446_v21  ;;  %v8771_v19 = vcombine.high %v2481_v5, %v2485_v6  ;;  %v2489_v21 = vld [vmem:[%s13012_s3 + $0xfc0] sm:$0xff] }
 0x200   :  { %5230 = vmatprep.subr.bf16.mxu0 %v8691_v38  ;;  %5394 = vmatprep.subr.bf16.mxu1 %v8693_v40  ;;  %v8739_v38 = vcombine.high %v2449_v28, %v2453_v29  ;;  %v8741_v40 = vcombine.high %v2450_v34, %v2454_v35 }
 0x203   :  { %5231 = vmatpush1.bf16.msra.mxu0 %v8690_v24  ;;  %5395 = vmatpush1.bf16.msra.mxu1 %v8692_v45  ;;  %v8738_v24 = vcombine.low %v2449_v28, %v2453_v29  ;;  %v8740_v45 = vcombine.low %v2450_v34, %v2454_v35 }
 0x204   :  { %5232 = vmatprep.subr.bf16.mxu0 %v8699_v57  ;;  %5396 = vmatprep.subr.bf16.mxu1 %v8701_v46  ;;  %v8747_v57 = vcombine.high %v2457_v31, %v2461_v42  ;;  %v8749_v46 = vcombine.high %v2458_v12, %v2462_v44 }
 0x207   :  { %5233 = vmatpush1.bf16.msra.mxu0 %v8698_v50  ;;  %5397 = vmatpush1.bf16.msra.mxu1 %v8700_v52  ;;  %v8746_v50 = vcombine.low %v2457_v31, %v2461_v42  ;;  %v8748_v52 = vcombine.low %v2458_v12, %v2462_v44 }
 0x208   :  { %5234 = vmatprep.subr.bf16.mxu0 %v8707_v54  ;;  %5398 = vmatprep.subr.bf16.mxu1 %v8709_v56  ;;  %v8755_v54 = vcombine.high %v2465_v47, %v2469_v48  ;;  %v8757_v56 = vcombine.high %v2466_v49, %v2470_v23 }
 0x20b   :  { %5235 = vmatpush1.bf16.msra.mxu0 %v8706_v0  ;;  %5399 = vmatpush1.bf16.msra.mxu1 %v8708_v1  ;;  %v8754_v0 = vcombine.low %v2465_v47, %v2469_v48  ;;  %v8756_v1 = vcombine.low %v2466_v49, %v2470_v23 }
 0x20c   :  { %5236 = vmatprep.subr.bf16.mxu0 %v8715_v3  ;;  %5400 = vmatprep.subr.bf16.mxu1 %v8717_v39  ;;  %v333_v3 = vsub.s32 6, %v10755_v30  ;;  %v8763_v39 = vcombine.high %v2473_v58, %v2477_v59  ;;  %v9609_v30 = vld [vmem:[%s13014_s5 + $0x7c8] ss:$16 sps:$4 sm:$0xff]  }
 0x20f   :  { %5237 = vmatpush1.bf16.msra.mxu0 %v8714_v10  ;;  %5401 = vmatpush1.bf16.msra.mxu1 %v8716_v11  ;;  %v2486_v10 = vld [vmem:[%s13012_s3 + $0xfa8] sm:$0xff]  ;;  %v8762_v11 = vcombine.low %v2473_v58, %v2477_v59  ;;  %v2008_v58 = vld [vmem:[%s13012_s3 + $0xb8] sm:$0xff] }
 0x210   :  { %5238 = vmatprep.subr.bf16.mxu0 %v8723_v14  ;;  %5402 = vmatprep.subr.bf16.mxu1 %v8725_v16  ;;  %v8764_v14 = vcombine.low %v2474_v60, %v2478_v61  ;;  %v9650_v16 = vld [vmem:[%s13011_s2] sm:$0xff]  ;;  %v8773_v20 = vcombine.high %v2482_v7, %v2486_v10  ;;  %v8772_v28 = vcombine.low %v2482_v7, %v2486_v10 }
 0x211   :  { %v334_v18 = vrot.slane %v9650_v16, %v333_v3  ;;  %v2020_v16 = vld [vmem:[%s13012_s3 + $0x118] sm:$0xff] }
 0x213   :  { %5239 = vmatpush1.bf16.msra.mxu0 %v8722_v22  ;;  %5403 = vmatpush1.bf16.msra.mxu1 %v8724_v25  ;;  %v2493_v22 = vld [vmem:[%s13012_s3 + $0xfe0] sm:$0xff]  ;;  %v2490_v25 = vld [vmem:[%s13012_s3 + $0xfc8] sm:$0xff]  ;;  %v9125_v29 = vadd.f32 %v11197_v41, %v334_v18  ;;  %v1992_v41 = vld [vmem:[%s13012_s3 + $0x38] sm:$0xff] }
 0x214   :  { %5240 = vmatprep.subr.bf16.mxu0 %v8731_v26  ;;  %5404 = vmatprep.subr.bf16.mxu1 %v8733_v27  ;;  %v2494_v26 = vld [vmem:[%s13012_s3 + $0xfe8] sm:$0xff]  ;;  %v8770_v27 = vcombine.low %v2481_v5, %v2485_v6  ;;  %v8779_v34 = vcombine.high %v2489_v21, %v2493_v22  ;;  %v2024_v18 = vld [vmem:[%s13012_s3 + $0x138] sm:$0xff] }
 0x215   :  { %v8781_v35 = vcombine.high %v2490_v25, %v2494_v26  ;;  %v8780_v31 = vcombine.low %v2490_v25, %v2494_v26  ;;  %v1975_v42 = vmax.f32 %v9125_v29, 0.0  ;;  %v2027_v25 = vld [vmem:[%s13012_s3 + $0x150] sm:$0xff] }
 0x216   :  { %v2031_v26 = vld [vmem:[%s13012_s3 + $0x170] sm:$0xff] }
 0x217   :  { %5241 = vmatpush1.bf16.msra.mxu0 %v8730_v36  ;;  %5405 = vmatpush1.bf16.msra.mxu1 %v8732_v37  ;;  %v1987_v36 = vld [vmem:[%s13012_s3 + $0x10] sm:$0xff]  ;;  %v11422_v48 = vpack.c.bf16 %v1975_v42, %v1975_v42 }
 0x218   :  { %5242 = vmatprep.subr.bf16.mxu0 %v8739_v38  ;;  %5406 = vmatprep.subr.bf16.mxu1 %v8741_v40  ;;  %v1991_v37 = vld [vmem:[%s13012_s3 + $0x30] sm:$0xff]  ;;  %v1988_v38 = vld [vmem:[%s13012_s3 + $0x18] sm:$0xff]  ;;  %v8778_v40 = vcombine.low %v2489_v21, %v2493_v22  ;;  %v8313_v22 = vcombine.high %v2020_v16, %v2024_v18 }
 0x219   :  { %v8279_v12 = vcombine.high %v1987_v36, %v1991_v37  ;;  %v8281_v44 = vcombine.high %v1988_v38, %v1992_v41  ;;  %v8278_v47 = vcombine.low %v1987_v36, %v1991_v37  ;;  %v8280_v49 = vcombine.low %v1988_v38, %v1992_v41  ;;  %v2035_v37 = vld [vmem:[%s13012_s3 + $0x190] sm:$0xff]  ;;  %v2036_v41 = vld [vmem:[%s13012_s3 + $0x198] sm:$0xff] }
 0x21a   :  { %v2039_v38 = vld [vmem:[%s13012_s3 + $0x1b0] sm:$0xff] }
 0x21b   :  { %5243 = vmatpush1.bf16.msra.mxu0 %v8738_v24  ;;  %5407 = vmatpush1.bf16.msra.mxu1 %v8740_v45  ;;  %v1995_v24 = vld [vmem:[%s13012_s3 + $0x50] sm:$0xff] }
 0x21c   :  { %5244 = vmatprep.subr.bf16.mxu0 %v8747_v57  ;;  %5408 = vmatprep.subr.bf16.mxu1 %v8749_v46  ;;  %v1999_v45 = vld [vmem:[%s13012_s3 + $0x70] sm:$0xff]  ;;  %v1996_v57 = vld [vmem:[%s13012_s3 + $0x58] sm:$0xff] }
 0x21d   :  { %v2000_v46 = vld [vmem:[%s13012_s3 + $0x78] sm:$0xff]  ;;  %v8287_v23 = vcombine.high %v1995_v24, %v1999_v45  ;;  %v8286_v59 = vcombine.low %v1995_v24, %v1999_v45  ;;  %v2043_v24 = vld [vmem:[%s13012_s3 + $0x1d0] sm:$0xff] }
 0x21e   :  { %v8288_v60 = vcombine.low %v1996_v57, %v2000_v46  ;;  %v2047_v45 = vld [vmem:[%s13012_s3 + $0x1f0] sm:$0xff] }
 0x21f   :  { %5245 = vmatpush1.bf16.msra.mxu0 %v8746_v50  ;;  %5409 = vmatpush1.bf16.msra.mxu1 %v8748_v52  ;;  %v8289_v50 = vcombine.high %v1996_v57, %v2000_v46  ;;  %v2003_v52 = vld [vmem:[%s13012_s3 + $0x90] sm:$0xff]  ;;  %v2044_v57 = vld [vmem:[%s13012_s3 + $0x1d8] sm:$0xff] }
 0x220   :  { %5246 = vmatprep.subr.bf16.mxu0 %v8755_v54  ;;  %5410 = vmatprep.subr.bf16.mxu1 %v8757_v56  ;;  %v2007_v54 = vld [vmem:[%s13012_s3 + $0xb0] sm:$0xff]  ;;  %v2004_v56 = vld [vmem:[%s13012_s3 + $0x98] sm:$0xff] }
 0x221   :  { %v8295_v61 = vcombine.high %v2003_v52, %v2007_v54  ;;  %v8294_v5 = vcombine.low %v2003_v52, %v2007_v54  ;;  %v8296_v6 = vcombine.low %v2004_v56, %v2008_v58  ;;  %v2048_v46 = vld [vmem:[%s13012_s3 + $0x1f8] sm:$0xff]  ;;  %v2051_v52 = vld [vmem:[%s13012_s3 + $0x210] sm:$0xff] }
 0x222   :  { %v2055_v54 = vld [vmem:[%s13012_s3 + $0x230] sm:$0xff] }
 0x223   :  { %5247 = vmatpush1.bf16.msra.mxu0 %v8754_v0  ;;  %5411 = vmatpush1.bf16.msra.mxu1 %v8756_v1  ;;  %v8297_v0 = vcombine.high %v2004_v56, %v2008_v58  ;;  %v2011_v1 = vld [vmem:[%s13012_s3 + $0xd0] sm:$0xff]  ;;  %v2052_v56 = vld [vmem:[%s13012_s3 + $0x218] sm:$0xff] }
 0x224   :  { %5248 = vmatprep.subr.bf16.mxu0 %v8763_v39  ;;  %5412 = vmatprep.subr.bf16.mxu1 %v8765_v4  ;;  %v2015_v39 = vld [vmem:[%s13012_s3 + $0xf0] sm:$0xff]  ;;  %v2012_v4 = vld [vmem:[%s13012_s3 + $0xd8] sm:$0xff] }
 0x225   :  { %v8303_v7 = vcombine.high %v2011_v1, %v2015_v39  ;;  %v2056_v58 = vld [vmem:[%s13012_s3 + $0x238] sm:$0xff] }
 0x227   :  { %5249 = vmatpush1.bf16.msra.mxu0 %v8762_v11  ;;  %5413 = vmatpush1.bf16.msra.mxu1 %v8764_v14  ;;  %v2019_v11 = vld [vmem:[%s13012_s3 + $0x110] sm:$0xff] }
 0x228   :  { %5250 = vmatprep.subr.bf16.mxu0 %v8771_v19  ;;  %5414 = vmatprep.subr.bf16.mxu1 %v8773_v20  ;;  %v2023_v14 = vld [vmem:[%s13012_s3 + $0x130] sm:$0xff]  ;;  %v8302_v19 = vcombine.low %v2011_v1, %v2015_v39 }
 0x229   :  { %v8311_v21 = vcombine.high %v2019_v11, %v2023_v14  ;;  %v8310_v29 = vcombine.low %v2019_v11, %v2023_v14  ;;  %v2059_v1 = vld [vmem:[%s13012_s3 + $0x250] sm:$0xff] }
 0x22a   :  { %v2063_v39 = vld [vmem:[%s13012_s3 + $0x270] sm:$0xff] }
 0x22b   :  { %5251 = vmatpush1.bf16.msra.mxu0 %v8770_v27  ;;  %5415 = vmatpush1.bf16.msra.mxu1 %v8772_v28  ;;  %v2028_v27 = vld [vmem:[%s13012_s3 + $0x158] sm:$0xff]  ;;  %v2067_v11 = vld [vmem:[%s13012_s3 + $0x290] sm:$0xff] }
 0x22c   :  { %5252 = vmatprep.subr.bf16.mxu0 %v8779_v34  ;;  %5416 = vmatprep.subr.bf16.mxu1 %v8781_v35  ;;  %v2032_v28 = vld [vmem:[%s13012_s3 + $0x178] sm:$0xff]  ;;  %v8312_v34 = vcombine.low %v2020_v16, %v2024_v18  ;;  %v8319_v35 = vcombine.high %v2027_v25, %v2031_v26  ;;  %v2071_v14 = vld [vmem:[%s13012_s3 + $0x2b0] sm:$0xff] }
 0x22d   :  { %v8321_v36 = vcombine.high %v2028_v27, %v2032_v28  ;;  %v8320_v42 = vcombine.low %v2028_v27, %v2032_v28  ;;  %v2068_v16 = vld [vmem:[%s13012_s3 + $0x298] sm:$0xff] }
 0x22e   :  { %v2072_v18 = vld [vmem:[%s13012_s3 + $0x2b8] sm:$0xff] }
 0x22f   :  { %5253 = vmatpush1.bf16.msra.mxu0 %v8778_v40  ;;  %5417 = vmatpush1.bf16.msra.mxu1 %v8780_v31  ;;  %v2040_v40 = vld [vmem:[%s13012_s3 + $0x1b8] sm:$0xff]  ;;  %v8318_v31 = vcombine.low %v2027_v25, %v2031_v26  ;;  %v2075_v25 = vld [vmem:[%s13012_s3 + $0x2d0] sm:$0xff] }
 0x230   :  { %5427 = vmatprep.subr.bf16.mxu0 %v8279_v12  ;;  %5591 = vmatprep.subr.bf16.mxu1 %v8281_v44  ;;  %v8327_v12 = vcombine.high %v2035_v37, %v2039_v38  ;;  %v8329_v44 = vcombine.high %v2036_v41, %v2040_v40  ;;  %v2079_v26 = vld [vmem:[%s13012_s3 + $0x2f0] sm:$0xff]  ;;  %v2076_v27 = vld [vmem:[%s13012_s3 + $0x2d8] sm:$0xff] }
 0x231   :  { %v2080_v28 = vld [vmem:[%s13012_s3 + $0x2f8] sm:$0xff] }
 0x232   :  { %5255 = vmatmul.mubr.bf16.vlgmr.msra.gmra.mrb[8].mxu0 %v11422_v48  ;;  %5419 = vmatmul.mubr.bf16.vlgmr.msra.gmra.mrb[8].mxu1 %v11422_v48 }
 0x233   :  { %5428 = vmatpush1.bf16.msra.mxu0 %v8278_v47  ;;  %5459 = vmatprep.mubr.bf16.mxu0 %v10791_v51  ;;  %v8326_v47 = vcombine.low %v2035_v37, %v2039_v38  ;;  %v2083_v37 = vld [vmem:[%s13012_s3 + $0x310] sm:$0xff] }
 0x234   :  { %5592 = vmatpush1.bf16.msra.mxu1 %v8280_v49  ;;  %5623 = vmatprep.mubr.bf16.mxu1 %v10791_v51  ;;  %v2016_v51 = vld [vmem:[%s13012_s3 + $0xf8] sm:$0xff]  ;;  %v8328_v49 = vcombine.low %v2036_v41, %v2040_v40  ;;  %v2087_v38 = vld [vmem:[%s13012_s3 + $0x330] sm:$0xff] }
 0x235   :  { %5429 = vmatprep.subr.bf16.mxu0 %v8287_v23  ;;  %5593 = vmatprep.subr.bf16.mxu1 %v8289_v50  ;;  %v8305_v10 = vcombine.high %v2012_v4, %v2016_v51  ;;  %v8304_v20 = vcombine.low %v2012_v4, %v2016_v51  ;;  %v8335_v23 = vcombine.high %v2043_v24, %v2047_v45  ;;  %v2060_v4 = vld [vmem:[%s13012_s3 + $0x258] sm:$0xff] }
 0x236   :  { %v8337_v50 = vcombine.high %v2044_v57, %v2048_v46  ;;  %v2064_v51 = vld [vmem:[%s13012_s3 + $0x278] sm:$0xff] }
 0x237   :  { %5430 = vmatpush1.bf16.msra.mxu0 %v8286_v59  ;;  %v8334_v59 = vcombine.low %v2043_v24, %v2047_v45  ;;  %v2084_v41 = vld [vmem:[%s13012_s3 + $0x318] sm:$0xff]  ;;  %v2091_v24 = vld [vmem:[%s13012_s3 + $0x350] sm:$0xff] }
 0x238   :  { %5594 = vmatpush1.bf16.msra.mxu1 %v8288_v60  ;;  %5431 = vmatprep.subr.bf16.mxu0 %v8295_v61  ;;  %v8336_v60 = vcombine.low %v2044_v57, %v2048_v46  ;;  %v8343_v61 = vcombine.high %v2051_v52, %v2055_v54  ;;  %v2088_v40 = vld [vmem:[%s13012_s3 + $0x338] sm:$0xff]  ;;  %v2095_v45 = vld [vmem:[%s13012_s3 + $0x370] sm:$0xff] }
 0x239   :  { %5595 = vmatprep.subr.bf16.mxu1 %v8297_v0  ;;  %v8345_v0 = vcombine.high %v2052_v56, %v2056_v58  ;;  %v2092_v57 = vld [vmem:[%s13012_s3 + $0x358] sm:$0xff] }
 0x23a   :  { %v2096_v46 = vld [vmem:[%s13012_s3 + $0x378] sm:$0xff] }
 0x23b   :  { %5432 = vmatpush1.bf16.msra.mxu0 %v8294_v5  ;;  %v8342_v5 = vcombine.low %v2051_v52, %v2055_v54  ;;  %v2099_v52 = vld [vmem:[%s13012_s3 + $0x390] sm:$0xff] }
 0x23c   :  { %5596 = vmatpush1.bf16.msra.mxu1 %v8296_v6  ;;  %5433 = vmatprep.subr.bf16.mxu0 %v8303_v7  ;;  %v8344_v6 = vcombine.low %v2052_v56, %v2056_v58  ;;  %v8351_v7 = vcombine.high %v2059_v1, %v2063_v39  ;;  %v2103_v54 = vld [vmem:[%s13012_s3 + $0x3b0] sm:$0xff]  ;;  %v2100_v56 = vld [vmem:[%s13012_s3 + $0x398] sm:$0xff] }
 0x23d   :  { %5597 = vmatprep.subr.bf16.mxu1 %v8305_v10  ;;  %v8353_v10 = vcombine.high %v2060_v4, %v2064_v51  ;;  %v2104_v58 = vld [vmem:[%s13012_s3 + $0x3b8] sm:$0xff] }
 0x23f   :  { %5434 = vmatpush1.bf16.msra.mxu0 %v8302_v19  ;;  %v8350_v19 = vcombine.low %v2059_v1, %v2063_v39  ;;  %v2107_v1 = vld [vmem:[%s13012_s3 + $0x3d0] sm:$0xff] }
 0x240   :  { %5598 = vmatpush1.bf16.msra.mxu1 %v8304_v20  ;;  %5435 = vmatprep.subr.bf16.mxu0 %v8311_v21  ;;  %v8352_v20 = vcombine.low %v2060_v4, %v2064_v51  ;;  %v8359_v21 = vcombine.high %v2067_v11, %v2071_v14  ;;  %v2111_v39 = vld [vmem:[%s13012_s3 + $0x3f0] sm:$0xff]  ;;  %v2108_v4 = vld [vmem:[%s13012_s3 + $0x3d8] sm:$0xff] }
 0x241   :  { %5599 = vmatprep.subr.bf16.mxu1 %v8313_v22  ;;  %v8361_v22 = vcombine.high %v2068_v16, %v2072_v18  ;;  %v2112_v51 = vld [vmem:[%s13012_s3 + $0x3f8] sm:$0xff] }
 0x243   :  { %5436 = vmatpush1.bf16.msra.mxu0 %v8310_v29  ;;  %v8358_v29 = vcombine.low %v2067_v11, %v2071_v14  ;;  %v2115_v11 = vld [vmem:[%s13012_s3 + $0x410] sm:$0xff] }
 0x244   :  { %5600 = vmatpush1.bf16.msra.mxu1 %v8312_v34  ;;  %5437 = vmatprep.subr.bf16.mxu0 %v8319_v35  ;;  %v8360_v34 = vcombine.low %v2068_v16, %v2072_v18  ;;  %v8367_v35 = vcombine.high %v2075_v25, %v2079_v26  ;;  %v2119_v14 = vld [vmem:[%s13012_s3 + $0x430] sm:$0xff]  ;;  %v2116_v16 = vld [vmem:[%s13012_s3 + $0x418] sm:$0xff] }
 0x245   :  { %5601 = vmatprep.subr.bf16.mxu1 %v8321_v36  ;;  %v8369_v36 = vcombine.high %v2076_v27, %v2080_v28  ;;  %v2120_v18 = vld [vmem:[%s13012_s3 + $0x438] sm:$0xff] }
 0x247   :  { %5438 = vmatpush1.bf16.msra.mxu0 %v8318_v31  ;;  %v8366_v31 = vcombine.low %v2075_v25, %v2079_v26  ;;  %v2123_v25 = vld [vmem:[%s13012_s3 + $0x450] sm:$0xff] }
 0x248   :  { %5602 = vmatpush1.bf16.msra.mxu1 %v8320_v42  ;;  %5439 = vmatprep.subr.bf16.mxu0 %v8327_v12  ;;  %v8368_v42 = vcombine.low %v2076_v27, %v2080_v28  ;;  %v8375_v12 = vcombine.high %v2083_v37, %v2087_v38  ;;  %v2127_v26 = vld [vmem:[%s13012_s3 + $0x470] sm:$0xff]  ;;  %v8406_v27 = vcombine.low %v2115_v11, %v2119_v14  ;;  %v2124_v28 = vld [vmem:[%s13012_s3 + $0x458] sm:$0xff] }
 0x249   :  { %5603 = vmatprep.subr.bf16.mxu1 %v8329_v44  ;;  %v8377_v44 = vcombine.high %v2084_v41, %v2088_v40 }
 0x24b   :  { %5440 = vmatpush1.bf16.msra.mxu0 %v8326_v47  ;;  %v8374_v47 = vcombine.low %v2083_v37, %v2087_v38  ;;  %v2135_v37 = vld [vmem:[%s13012_s3 + $0x4b0] sm:$0xff] }
 0x24c   :  { %5604 = vmatpush1.bf16.msra.mxu1 %v8328_v49  ;;  %5441 = vmatprep.subr.bf16.mxu0 %v8335_v23  ;;  %v8376_v49 = vcombine.low %v2084_v41, %v2088_v40  ;;  %v8383_v23 = vcombine.high %v2091_v24, %v2095_v45  ;;  %v2132_v41 = vld [vmem:[%s13012_s3 + $0x498] sm:$0xff] }
 0x24d   :  { %5605 = vmatprep.subr.bf16.mxu1 %v8337_v50  ;;  %v8385_v50 = vcombine.high %v2092_v57, %v2096_v46  ;;  %v2136_v40 = vld [vmem:[%s13012_s3 + $0x4b8] sm:$0xff] }
 0x24f   :  { %5442 = vmatpush1.bf16.msra.mxu0 %v8334_v59  ;;  %v8382_v59 = vcombine.low %v2091_v24, %v2095_v45  ;;  %v2139_v24 = vld [vmem:[%s13012_s3 + $0x4d0] sm:$0xff] }
 0x250   :  { %5606 = vmatpush1.bf16.msra.mxu1 %v8336_v60  ;;  %5443 = vmatprep.subr.bf16.mxu0 %v8343_v61  ;;  %v8384_v60 = vcombine.low %v2092_v57, %v2096_v46  ;;  %v8391_v61 = vcombine.high %v2099_v52, %v2103_v54  ;;  %v2143_v45 = vld [vmem:[%s13012_s3 + $0x4f0] sm:$0xff]  ;;  %v2144_v57 = vld [vmem:[%s13012_s3 + $0x4f8] sm:$0xff]  ;;  %v8424_v46 = vcombine.low %v2132_v41, %v2136_v40 }
 0x251   :  { %5607 = vmatprep.subr.bf16.mxu1 %v8345_v0  ;;  %v8393_v0 = vcombine.high %v2100_v56, %v2104_v58 }
 0x253   :  { %5444 = vmatpush1.bf16.msra.mxu0 %v8342_v5  ;;  %v8390_v5 = vcombine.low %v2099_v52, %v2103_v54  ;;  %v2148_v52 = vld [vmem:[%s13012_s3 + $0x518] sm:$0xff] }
 0x254   :  { %5608 = vmatpush1.bf16.msra.mxu1 %v8344_v6  ;;  %5445 = vmatprep.subr.bf16.mxu0 %v8351_v7  ;;  %v8392_v6 = vcombine.low %v2100_v56, %v2104_v58  ;;  %v8399_v7 = vcombine.high %v2107_v1, %v2111_v39  ;;  %v2152_v54 = vld [vmem:[%s13012_s3 + $0x538] sm:$0xff]  ;;  %v8430_v56 = vcombine.low %v2139_v24, %v2143_v45 }
 0x255   :  { %5609 = vmatprep.subr.bf16.mxu1 %v8353_v10  ;;  %v8401_v10 = vcombine.high %v2108_v4, %v2112_v51 }
 0x257   :  { %5446 = vmatpush1.bf16.msra.mxu0 %v8350_v19  ;;  %v8398_v19 = vcombine.low %v2107_v1, %v2111_v39  ;;  %v2156_v1 = vld [vmem:[%s13012_s3 + $0x558] sm:$0xff] }
 0x258   :  { %5610 = vmatpush1.bf16.msra.mxu1 %v8352_v20  ;;  %5447 = vmatprep.subr.bf16.mxu0 %v8359_v21  ;;  %v8400_v20 = vcombine.low %v2108_v4, %v2112_v51  ;;  %v8407_v21 = vcombine.high %v2115_v11, %v2119_v14  ;;  %v2160_v39 = vld [vmem:[%s13012_s3 + $0x578] sm:$0xff]  ;;  %v8440_v51 = vcombine.low %v2148_v52, %v2152_v54 }
 0x259   :  { %5611 = vmatprep.subr.bf16.mxu1 %v8361_v22  ;;  %v8409_v22 = vcombine.high %v2116_v16, %v2120_v18  ;;  %v2164_v11 = vld [vmem:[%s13012_s3 + $0x598] sm:$0xff] }
 0x25a   :  { %v2168_v14 = vld [vmem:[%s13012_s3 + $0x5b8] sm:$0xff] }
 0x25b   :  { %5448 = vmatpush1.bf16.msra.mxu0 %v8358_v29  ;;  %v2128_v29 = vld [vmem:[%s13012_s3 + $0x478] sm:$0xff] }
 0x25c   :  { %5612 = vmatpush1.bf16.msra.mxu1 %v8360_v34  ;;  %5449 = vmatprep.subr.bf16.mxu0 %v8367_v35  ;;  %v8408_v34 = vcombine.low %v2116_v16, %v2120_v18  ;;  %v8415_v35 = vcombine.high %v2123_v25, %v2127_v26  ;;  %v8417_v38 = vcombine.high %v2124_v28, %v2128_v29 }
 0x25d   :  { %5613 = vmatprep.subr.bf16.mxu1 %v8369_v36  ;;  %v2131_v36 = vld [vmem:[%s13012_s3 + $0x490] sm:$0xff]  ;;  %v8448_v18 = vcombine.low %v2156_v1, %v2160_v39 }
 0x25f   :  { %5450 = vmatpush1.bf16.msra.mxu0 %v8366_v31  ;;  %v8414_v31 = vcombine.low %v2123_v25, %v2127_v26  ;;  %v2172_v25 = vld [vmem:[%s13012_s3 + $0x5d8] sm:$0xff] }
 0x260   :  { %5614 = vmatpush1.bf16.msra.mxu1 %v8368_v42  ;;  %5451 = vmatprep.subr.bf16.mxu0 %v8375_v12  ;;  %v8416_v42 = vcombine.low %v2124_v28, %v2128_v29  ;;  %v8423_v12 = vcombine.high %v2131_v36, %v2135_v37  ;;  %v2176_v26 = vld [vmem:[%s13012_s3 + $0x5f8] sm:$0xff]  ;;  %v8456_v28 = vcombine.low %v2164_v11, %v2168_v14 }
 0x261   :  { %5615 = vmatprep.subr.bf16.mxu1 %v8377_v44  ;;  %v8425_v44 = vcombine.high %v2132_v41, %v2136_v40  ;;  %v8464_v40 = vcombine.low %v2172_v25, %v2176_v26 }
 0x263   :  { %5452 = vmatpush1.bf16.msra.mxu0 %v8374_v47  ;;  %v8431_v47 = vcombine.high %v2139_v24, %v2143_v45  ;;  %v2188_v24 = vld [vmem:[%s13012_s3 + $0x658] sm:$0xff] }
 0x264   :  { %5616 = vmatpush1.bf16.msra.mxu1 %v8376_v49  ;;  %5453 = vmatprep.subr.bf16.mxu0 %v8383_v23  ;;  %v2147_v23 = vld [vmem:[%s13012_s3 + $0x510] sm:$0xff]  ;;  %v2192_v45 = vld [vmem:[%s13012_s3 + $0x678] sm:$0xff] }
 0x265   :  { %5617 = vmatprep.subr.bf16.mxu1 %v8385_v50  ;;  %v2151_v50 = vld [vmem:[%s13012_s3 + $0x530] sm:$0xff] }
 0x266   :  { %v8438_v4 = vcombine.low %v2147_v23, %v2151_v50 }
 0x267   :  { %5454 = vmatpush1.bf16.msra.mxu0 %v8382_v59  ;;  %v8439_v59 = vcombine.high %v2147_v23, %v2151_v50  ;;  %v2196_v23 = vld [vmem:[%s13012_s3 + $0x698] sm:$0xff] }
 0x268   :  { %5618 = vmatpush1.bf16.msra.mxu1 %v8384_v60  ;;  %5455 = vmatprep.subr.bf16.mxu0 %v8391_v61  ;;  %v8441_v60 = vcombine.high %v2148_v52, %v2152_v54  ;;  %v2155_v61 = vld [vmem:[%s13012_s3 + $0x550] sm:$0xff]  ;;  %v2200_v50 = vld [vmem:[%s13012_s3 + $0x6b8] sm:$0xff]  ;;  %v8480_v54 = vcombine.low %v2188_v24, %v2192_v45 }
 0x269   :  { %5619 = vmatprep.subr.bf16.mxu1 %v8393_v0  ;;  %v2159_v0 = vld [vmem:[%s13012_s3 + $0x570] sm:$0xff] }
 0x26a   :  { %v8446_v16 = vcombine.low %v2155_v61, %v2159_v0 }
 0x26b   :  { %5456 = vmatpush1.bf16.msra.mxu0 %v8390_v5  ;;  %v8447_v5 = vcombine.high %v2155_v61, %v2159_v0  ;;  %v2204_v61 = vld [vmem:[%s13012_s3 + $0x6d8] sm:$0xff] }
 0x26c   :  { %5620 = vmatpush1.bf16.msra.mxu1 %v8392_v6  ;;  %5457 = vmatprep.subr.bf16.mxu0 %v8399_v7  ;;  %v8449_v6 = vcombine.high %v2156_v1, %v2160_v39  ;;  %v2163_v7 = vld [vmem:[%s13012_s3 + $0x590] sm:$0xff]  ;;  %v2208_v0 = vld [vmem:[%s13012_s3 + $0x6f8] sm:$0xff]  ;;  %v8488_v39 = vcombine.low %v2196_v23, %v2200_v50 }
 0x26d   :  { %5621 = vmatprep.subr.bf16.mxu1 %v8401_v10  ;;  %v2167_v10 = vld [vmem:[%s13012_s3 + $0x5b0] sm:$0xff] }
 0x26f   :  { %5458 = vmatpush1.bf16.msra.mxu0 %v8398_v19  ;;  %v8455_v19 = vcombine.high %v2163_v7, %v2167_v10 }
 0x270   :  { %5622 = vmatpush1.bf16.msra.mxu1 %v8400_v20  ;;  %5468 = vmatprep.subr.bf16.mxu0 %v8407_v21  ;;  %v8457_v20 = vcombine.high %v2164_v11, %v2168_v14  ;;  %v2171_v21 = vld [vmem:[%s13012_s3 + $0x5d0] sm:$0xff]  ;;  %v8496_v14 = vcombine.low %v2204_v61, %v2208_v0 }
 0x271   :  { %5632 = vmatprep.subr.bf16.mxu1 %v8409_v22  ;;  %v2175_v22 = vld [vmem:[%s13012_s3 + $0x5f0] sm:$0xff] }
 0x272   :  { %5460 = vmatmul.mubr.bf16.vlgmr.msra.gmra.mrb[12].mxu0 %v10793_v55  ;;  %v8463_v29 = vcombine.high %v2171_v21, %v2175_v22  ;;  %v8462_v41 = vcombine.low %v2171_v21, %v2175_v22  ;;  %v2220_v21 = vld [vmem:[%s13012_s3 + $0x758] sm:$0xff] }
 0x273   :  { %5624 = vmatmul.mubr.bf16.vlgmr.msra.gmra.mrb[12].mxu1 %v10793_v55  ;;  %5469 = vmatpush1.bf16.msra.mxu0 %v8406_v27  ;;  %v2140_v55 = vld [vmem:[%s13012_s3 + $0x4d8] sm:$0xff]  ;;  %v8454_v27 = vcombine.low %v2163_v7, %v2167_v10 }
 0x274   :  { %5500 = vmatprep.mubr.bf16.mxu0 %v10809_v63  ;;  %5633 = vmatpush1.bf16.msra.mxu1 %v8408_v34  ;;  %v8433_v49 = vcombine.high %v2140_v55, %v2144_v57  ;;  %v8432_v58 = vcombine.low %v2140_v55, %v2144_v57  ;;  %v8465_v34 = vcombine.high %v2172_v25, %v2176_v26  ;;  %v2212_v7 = vld [vmem:[%s13012_s3 + $0x718] sm:$0xff] }
 0x275   :  { %5664 = vmatprep.mubr.bf16.mxu1 %v10809_v63  ;;  %5470 = vmatprep.subr.bf16.mxu0 %v8415_v35  ;;  %v8422_v63 = vcombine.low %v2131_v36, %v2135_v37  ;;  %v2179_v35 = vld [vmem:[%s13012_s3 + $0x610] sm:$0xff]  ;;  %v2180_v37 = vld [vmem:[%s13012_s3 + $0x618] sm:$0xff] }
 0x276   :  { %5634 = vmatprep.subr.bf16.mxu1 %v8417_v38  ;;  %v2183_v36 = vld [vmem:[%s13012_s3 + $0x630] sm:$0xff]  ;;  %v2184_v38 = vld [vmem:[%s13012_s3 + $0x638] sm:$0xff] }
 0x277   :  { %5471 = vmatpush1.bf16.msra.mxu0 %v8414_v31  ;;  %v8471_v31 = vcombine.high %v2179_v35, %v2183_v36  ;;  %v8470_v55 = vcombine.low %v2179_v35, %v2183_v36  ;;  %v8472_v57 = vcombine.low %v2180_v37, %v2184_v38  ;;  %v2216_v10 = vld [vmem:[%s13012_s3 + $0x738] sm:$0xff] }
 0x278   :  { %5635 = vmatpush1.bf16.msra.mxu1 %v8416_v42  ;;  %5472 = vmatprep.subr.bf16.mxu0 %v8423_v12  ;;  %v8473_v42 = vcombine.high %v2180_v37, %v2184_v38  ;;  %v2187_v12 = vld [vmem:[%s13012_s3 + $0x650] sm:$0xff]  ;;  %v2224_v22 = vld [vmem:[%s13012_s3 + $0x778] sm:$0xff]  ;;  %v8504_v26 = vcombine.low %v2212_v7, %v2216_v10 }
 0x279   :  { %5636 = vmatprep.subr.bf16.mxu1 %v8425_v44  ;;  %v2191_v44 = vld [vmem:[%s13012_s3 + $0x670] sm:$0xff]  ;;  %v2228_v35 = vld [vmem:[%s13012_s3 + $0x798] sm:$0xff]  ;;  %v8512_v38 = vcombine.low %v2220_v21, %v2224_v22 }
 0x27a   :  { %v8478_v52 = vcombine.low %v2187_v12, %v2191_v44  ;;  %v2232_v36 = vld [vmem:[%s13012_s3 + $0x7b8] sm:$0xff] }
 0x27b   :  { %5473 = vmatpush1.bf16.msra.mxu0 %v8422_v63  ;;  %v8479_v63 = vcombine.high %v2187_v12, %v2191_v44  ;;  %v2236_v12 = vld [vmem:[%s13012_s3 + $0x7d8] sm:$0xff] }
 0x27c   :  { %5637 = vmatpush1.bf16.msra.mxu1 %v8424_v46  ;;  %5474 = vmatprep.subr.bf16.mxu0 %v8431_v47  ;;  %v8481_v46 = vcombine.high %v2188_v24, %v2192_v45  ;;  %v2195_v47 = vld [vmem:[%s13012_s3 + $0x690] sm:$0xff]  ;;  %v2240_v44 = vld [vmem:[%s13012_s3 + $0x7f8] sm:$0xff]  ;;  %v8520_v45 = vcombine.low %v2228_v35, %v2232_v36 }
 0x27d   :  { %5638 = vmatprep.subr.bf16.mxu1 %v8433_v49  ;;  %v2199_v49 = vld [vmem:[%s13012_s3 + $0x6b0] sm:$0xff] }
 0x27e   :  { %v8486_v1 = vcombine.low %v2195_v47, %v2199_v49 }
 0x27f   :  { %5475 = vmatpush1.bf16.msra.mxu0 %v8430_v56  ;;  %v8487_v56 = vcombine.high %v2195_v47, %v2199_v49  ;;  %v2244_v47 = vld [vmem:[%s13012_s3 + $0x818] sm:$0xff] }
 0x280   :  { %5639 = vmatpush1.bf16.msra.mxu1 %v8432_v58  ;;  %5476 = vmatprep.subr.bf16.mxu0 %v8439_v59  ;;  %v8489_v58 = vcombine.high %v2196_v23, %v2200_v50  ;;  %v2203_v59 = vld [vmem:[%s13012_s3 + $0x6d0] sm:$0xff]  ;;  %v2248_v49 = vld [vmem:[%s13012_s3 + $0x838] sm:$0xff]  ;;  %v8528_v50 = vcombine.low %v2236_v12, %v2240_v44 }
 0x281   :  { %5640 = vmatprep.subr.bf16.mxu1 %v8441_v60  ;;  %v2207_v60 = vld [vmem:[%s13012_s3 + $0x6f0] sm:$0xff] }
 0x282   :  { %v8494_v11 = vcombine.low %v2203_v59, %v2207_v60 }
 0x283   :  { %5477 = vmatpush1.bf16.msra.mxu0 %v8438_v4  ;;  %v8495_v4 = vcombine.high %v2203_v59, %v2207_v60  ;;  %v2252_v60 = vld [vmem:[%s13012_s3 + $0x858] sm:$0xff] }
 0x284   :  { %5641 = vmatpush1.bf16.msra.mxu1 %v8440_v51  ;;  %5478 = vmatprep.subr.bf16.mxu0 %v8447_v5  ;;  %v8497_v51 = vcombine.high %v2204_v61, %v2208_v0  ;;  %v2211_v5 = vld [vmem:[%s13012_s3 + $0x710] sm:$0xff]  ;;  %v2256_v61 = vld [vmem:[%s13012_s3 + $0x878] sm:$0xff]  ;;  %v8536_v0 = vcombine.low %v2244_v47, %v2248_v49 }
 0x285   :  { %5642 = vmatprep.subr.bf16.mxu1 %v8449_v6  ;;  %v2215_v6 = vld [vmem:[%s13012_s3 + $0x730] sm:$0xff] }
 0x286   :  { %v8502_v25 = vcombine.low %v2211_v5, %v2215_v6 }
 0x287   :  { %5479 = vmatpush1.bf16.msra.mxu0 %v8446_v16  ;;  %v8503_v16 = vcombine.high %v2211_v5, %v2215_v6  ;;  %v2260_v5 = vld [vmem:[%s13012_s3 + $0x898] sm:$0xff] }
 0x288   :  { %5643 = vmatpush1.bf16.msra.mxu1 %v8448_v18  ;;  %5480 = vmatprep.subr.bf16.mxu0 %v8455_v19  ;;  %v8505_v18 = vcombine.high %v2212_v7, %v2216_v10  ;;  %v2219_v19 = vld [vmem:[%s13012_s3 + $0x750] sm:$0xff]  ;;  %v2264_v6 = vld [vmem:[%s13012_s3 + $0x8b8] sm:$0xff]  ;;  %v8544_v10 = vcombine.low %v2252_v60, %v2256_v61 }
 0x289   :  { %5644 = vmatprep.subr.bf16.mxu1 %v8457_v20  ;;  %v2223_v20 = vld [vmem:[%s13012_s3 + $0x770] sm:$0xff] }
 0x28a   :  { %v8510_v37 = vcombine.low %v2219_v19, %v2223_v20 }
 0x28b   :  { %5481 = vmatpush1.bf16.msra.mxu0 %v8454_v27  ;;  %v8511_v27 = vcombine.high %v2219_v19, %v2223_v20  ;;  %v2272_v19 = vld [vmem:[%s13012_s3 + $0x8f8] sm:$0xff]  ;;  %v8552_v20 = vcombine.low %v2260_v5, %v2264_v6 }
 0x28c   :  { %5645 = vmatpush1.bf16.msra.mxu1 %v8456_v28  ;;  %5482 = vmatprep.subr.bf16.mxu0 %v8463_v29  ;;  %v8513_v28 = vcombine.high %v2220_v21, %v2224_v22  ;;  %v2227_v29 = vld [vmem:[%s13012_s3 + $0x790] sm:$0xff] }
 0x28d   :  { %5646 = vmatprep.subr.bf16.mxu1 %v8465_v34  ;;  %v2231_v34 = vld [vmem:[%s13012_s3 + $0x7b0] sm:$0xff] }
 0x28e   :  { %v8518_v24 = vcombine.low %v2227_v29, %v2231_v34 }
 0x28f   :  { %5483 = vmatpush1.bf16.msra.mxu0 %v8462_v41  ;;  %v8519_v41 = vcombine.high %v2227_v29, %v2231_v34 }
 0x290   :  { %5647 = vmatpush1.bf16.msra.mxu1 %v8464_v40  ;;  %5484 = vmatprep.subr.bf16.mxu0 %v8471_v31  ;;  %v8521_v40 = vcombine.high %v2228_v35, %v2232_v36  ;;  %v2235_v31 = vld [vmem:[%s13012_s3 + $0x7d0] sm:$0xff] }
 0x291   :  { %5648 = vmatprep.subr.bf16.mxu1 %v8473_v42  ;;  %v2239_v42 = vld [vmem:[%s13012_s3 + $0x7f0] sm:$0xff] }
 0x292   :  { %v8526_v23 = vcombine.low %v2235_v31, %v2239_v42 }
 0x293   :  { %5485 = vmatpush1.bf16.msra.mxu0 %v8470_v55  ;;  %v8527_v55 = vcombine.high %v2235_v31, %v2239_v42 }
 0x294   :  { %5649 = vmatpush1.bf16.msra.mxu1 %v8472_v57  ;;  %5486 = vmatprep.subr.bf16.mxu0 %v8479_v63  ;;  %v8529_v57 = vcombine.high %v2236_v12, %v2240_v44  ;;  %v2243_v63 = vld [vmem:[%s13012_s3 + $0x810] sm:$0xff] }
 0x295   :  { %5650 = vmatprep.subr.bf16.mxu1 %v8481_v46  ;;  %v2247_v46 = vld [vmem:[%s13012_s3 + $0x830] sm:$0xff] }
 0x296   :  { %v8534_v59 = vcombine.low %v2243_v63, %v2247_v46 }
 0x297   :  { %5487 = vmatpush1.bf16.msra.mxu0 %v8478_v52  ;;  %v8535_v52 = vcombine.high %v2243_v63, %v2247_v46 }
 0x298   :  { %5651 = vmatpush1.bf16.msra.mxu1 %v8480_v54  ;;  %5488 = vmatprep.subr.bf16.mxu0 %v8487_v56  ;;  %v8537_v54 = vcombine.high %v2244_v47, %v2248_v49  ;;  %v2251_v56 = vld [vmem:[%s13012_s3 + $0x850] sm:$0xff] }
 0x299   :  { %5652 = vmatprep.subr.bf16.mxu1 %v8489_v58  ;;  %v2255_v58 = vld [vmem:[%s13012_s3 + $0x870] sm:$0xff] }
 0x29a   :  { %v8542_v7 = vcombine.low %v2251_v56, %v2255_v58 }
 0x29b   :  { %5489 = vmatpush1.bf16.msra.mxu0 %v8486_v1  ;;  %v8543_v1 = vcombine.high %v2251_v56, %v2255_v58 }
 0x29c   :  { %5653 = vmatpush1.bf16.msra.mxu1 %v8488_v39  ;;  %5490 = vmatprep.subr.bf16.mxu0 %v8495_v4  ;;  %v2259_v39 = vld [vmem:[%s13012_s3 + $0x890] sm:$0xff] }
 0x29d   :  { %5654 = vmatprep.subr.bf16.mxu1 %v8497_v51  ;;  %v2263_v4 = vld [vmem:[%s13012_s3 + $0x8b0] sm:$0xff]  ;;  %v8545_v51 = vcombine.high %v2252_v60, %v2256_v61 }
 0x29e   :  { %v2307_v61 = vld [vmem:[%s13012_s3 + $0xa10] sm:$0xff] }
 0x29f   :  { %5491 = vmatpush1.bf16.msra.mxu0 %v8494_v11  ;;  %v8551_v11 = vcombine.high %v2259_v39, %v2263_v4 }
 0x2a0   :  { %5655 = vmatpush1.bf16.msra.mxu1 %v8496_v14  ;;  %5492 = vmatprep.subr.bf16.mxu0 %v8503_v16  ;;  %v8553_v14 = vcombine.high %v2260_v5, %v2264_v6  ;;  %v2267_v16 = vld [vmem:[%s13012_s3 + $0x8d0] sm:$0xff] }
 0x2a1   :  { %5656 = vmatprep.subr.bf16.mxu1 %v8505_v18  ;;  %v2271_v18 = vld [vmem:[%s13012_s3 + $0x8f0] sm:$0xff] }
 0x2a2   :  { %v8559_v21 = vcombine.high %v2267_v16, %v2271_v18  ;;  %v8558_v29 = vcombine.low %v2267_v16, %v2271_v18 }
 0x2a3   :  { %5493 = vmatpush1.bf16.msra.mxu0 %v8502_v25  ;;  %v2275_v25 = vld [vmem:[%s13012_s3 + $0x910] sm:$0xff] }
 0x2a4   :  { %5657 = vmatpush1.bf16.msra.mxu1 %v8504_v26  ;;  %5494 = vmatprep.subr.bf16.mxu0 %v8511_v27  ;;  %v2279_v26 = vld [vmem:[%s13012_s3 + $0x930] sm:$0xff]  ;;  %v2276_v27 = vld [vmem:[%s13012_s3 + $0x918] sm:$0xff] }
 0x2a5   :  { %5658 = vmatprep.subr.bf16.mxu1 %v8513_v28  ;;  %v2280_v28 = vld [vmem:[%s13012_s3 + $0x938] sm:$0xff]  ;;  %v8567_v35 = vcombine.high %v2275_v25, %v2279_v26  ;;  %v8566_v31 = vcombine.low %v2275_v25, %v2279_v26 }
 0x2a6   :  { %v8569_v36 = vcombine.high %v2276_v27, %v2280_v28  ;;  %v8568_v42 = vcombine.low %v2276_v27, %v2280_v28 }
 0x2a7   :  { %5495 = vmatpush1.bf16.msra.mxu0 %v8510_v37  ;;  %v2283_v37 = vld [vmem:[%s13012_s3 + $0x950] sm:$0xff] }
 0x2a8   :  { %5659 = vmatpush1.bf16.msra.mxu1 %v8512_v38  ;;  %5496 = vmatprep.subr.bf16.mxu0 %v8519_v41  ;;  %v2287_v38 = vld [vmem:[%s13012_s3 + $0x970] sm:$0xff]  ;;  %v2284_v41 = vld [vmem:[%s13012_s3 + $0x958] sm:$0xff] }
 0x2a9   :  { %5660 = vmatprep.subr.bf16.mxu1 %v8521_v40  ;;  %v2288_v40 = vld [vmem:[%s13012_s3 + $0x978] sm:$0xff]  ;;  %v8575_v12 = vcombine.high %v2283_v37, %v2287_v38  ;;  %v8574_v63 = vcombine.low %v2283_v37, %v2287_v38 }
 0x2aa   :  { %v8577_v44 = vcombine.high %v2284_v41, %v2288_v40  ;;  %v8576_v46 = vcombine.low %v2284_v41, %v2288_v40 }
 0x2ab   :  { %5497 = vmatpush1.bf16.msra.mxu0 %v8518_v24  ;;  %v2291_v24 = vld [vmem:[%s13012_s3 + $0x990] sm:$0xff] }
 0x2ac   :  { %5661 = vmatpush1.bf16.msra.mxu1 %v8520_v45  ;;  %5498 = vmatprep.subr.bf16.mxu0 %v8527_v55  ;;  %v2295_v45 = vld [vmem:[%s13012_s3 + $0x9b0] sm:$0xff]  ;;  %v2292_v55 = vld [vmem:[%s13012_s3 + $0x998] sm:$0xff] }
 0x2ad   :  { %5662 = vmatprep.subr.bf16.mxu1 %v8529_v57  ;;  %v2296_v57 = vld [vmem:[%s13012_s3 + $0x9b8] sm:$0xff]  ;;  %v8583_v47 = vcombine.high %v2291_v24, %v2295_v45  ;;  %v8582_v56 = vcombine.low %v2291_v24, %v2295_v45 }
 0x2ae   :  { %v8585_v49 = vcombine.high %v2292_v55, %v2296_v57  ;;  %v8584_v58 = vcombine.low %v2292_v55, %v2296_v57 }
 0x2af   :  { %5499 = vmatpush1.bf16.msra.mxu0 %v8526_v23  ;;  %v2299_v23 = vld [vmem:[%s13012_s3 + $0x9d0] sm:$0xff] }
 0x2b0   :  { %5663 = vmatpush1.bf16.msra.mxu1 %v8528_v50  ;;  %5509 = vmatprep.subr.bf16.mxu0 %v8535_v52  ;;  %v2303_v50 = vld [vmem:[%s13012_s3 + $0x9f0] sm:$0xff]  ;;  %v2300_v52 = vld [vmem:[%s13012_s3 + $0x9d8] sm:$0xff] }
 0x2b1   :  { %5673 = vmatprep.subr.bf16.mxu1 %v8537_v54  ;;  %v2304_v54 = vld [vmem:[%s13012_s3 + $0x9f8] sm:$0xff] }
 0x2b2   :  { %5501 = vmatmul.mubr.bf16.vlgmr.msra.gmra.mrb[12].mxu0 %v11001_v17  ;;  %v8593_v60 = vcombine.high %v2300_v52, %v2304_v54 }
 0x2b3   :  { %5665 = vmatmul.mubr.bf16.vlgmr.msra.gmra.mrb[12].mxu1 %v11001_v17  ;;  %5510 = vmatpush1.bf16.msra.mxu0 %v8534_v59  ;;  %v2268_v17 = vld [vmem:[%s13012_s3 + $0x8d8] sm:$0xff]  ;;  %v8591_v59 = vcombine.high %v2299_v23, %v2303_v50 }
 0x2b4   :  { %5541 = vmatprep.mubr.bf16.mxu0 %v11211_v62  ;;  %5674 = vmatpush1.bf16.msra.mxu1 %v8536_v0  ;;  %v8561_v22 = vcombine.high %v2268_v17, %v2272_v19  ;;  %v8560_v34 = vcombine.low %v2268_v17, %v2272_v19  ;;  %v2311_v0 = vld [vmem:[%s13012_s3 + $0xa30] sm:$0xff] }
 0x2b5   :  { %5705 = vmatprep.mubr.bf16.mxu1 %v11211_v62  ;;  %5511 = vmatprep.subr.bf16.mxu0 %v8543_v1  ;;  %v8550_v62 = vcombine.low %v2259_v39, %v2263_v4  ;;  %v2308_v1 = vld [vmem:[%s13012_s3 + $0xa18] sm:$0xff]  ;;  %v8590_v4 = vcombine.low %v2299_v23, %v2303_v50  ;;  %v8599_v5 = vcombine.high %v2307_v61, %v2311_v0 }
 0x2b6   :  { %5675 = vmatprep.subr.bf16.mxu1 %v8545_v51  ;;  %v2312_v39 = vld [vmem:[%s13012_s3 + $0xa38] sm:$0xff]  ;;  %v8592_v51 = vcombine.low %v2300_v52, %v2304_v54  ;;  %v8598_v16 = vcombine.low %v2307_v61, %v2311_v0 }
 0x2b7   :  { %5512 = vmatpush1.bf16.msra.mxu0 %v8542_v7  ;;  %v8601_v6 = vcombine.high %v2308_v1, %v2312_v39  ;;  %v2315_v7 = vld [vmem:[%s13012_s3 + $0xa50] sm:$0xff]  ;;  %v8600_v18 = vcombine.low %v2308_v1, %v2312_v39 }
 0x2b8   :  { %5676 = vmatpush1.bf16.msra.mxu1 %v8544_v10  ;;  %5513 = vmatprep.subr.bf16.mxu0 %v8551_v11  ;;  %v2319_v10 = vld [vmem:[%s13012_s3 + $0xa70] sm:$0xff]  ;;  %v2316_v11 = vld [vmem:[%s13012_s3 + $0xa58] sm:$0xff] }
 0x2b9   :  { %5677 = vmatprep.subr.bf16.mxu1 %v8553_v14  ;;  %v2320_v14 = vld [vmem:[%s13012_s3 + $0xa78] sm:$0xff]  ;;  %v8607_v17 = vcombine.high %v2315_v7, %v2319_v10  ;;  %v8606_v25 = vcombine.low %v2315_v7, %v2319_v10 }
 0x2ba   :  { %v8609_v19 = vcombine.high %v2316_v11, %v2320_v14  ;;  %v8608_v26 = vcombine.low %v2316_v11, %v2320_v14 }
 0x2bb   :  { %5514 = vmatpush1.bf16.msra.mxu0 %v8550_v62  ;;  %v2323_v62 = vld [vmem:[%s13012_s3 + $0xa90] sm:$0xff] }
 0x2bc   :  { %5678 = vmatpush1.bf16.msra.mxu1 %v8552_v20  ;;  %5515 = vmatprep.subr.bf16.mxu0 %v8559_v21  ;;  %v2327_v20 = vld [vmem:[%s13012_s3 + $0xab0] sm:$0xff]  ;;  %v2324_v21 = vld [vmem:[%s13012_s3 + $0xa98] sm:$0xff] }
 0x2bd   :  { %5679 = vmatprep.subr.bf16.mxu1 %v8561_v22  ;;  %v2328_v22 = vld [vmem:[%s13012_s3 + $0xab8] sm:$0xff]  ;;  %v8615_v27 = vcombine.high %v2323_v62, %v2327_v20  ;;  %v8614_v37 = vcombine.low %v2323_v62, %v2327_v20 }
 0x2be   :  { %v8617_v28 = vcombine.high %v2324_v21, %v2328_v22  ;;  %v8616_v38 = vcombine.low %v2324_v21, %v2328_v22 }
 0x2bf   :  { %5516 = vmatpush1.bf16.msra.mxu0 %v8558_v29  ;;  %v2331_v29 = vld [vmem:[%s13012_s3 + $0xad0] sm:$0xff] }
 0x2c0   :  { %5680 = vmatpush1.bf16.msra.mxu1 %v8560_v34  ;;  %5517 = vmatprep.subr.bf16.mxu0 %v8567_v35  ;;  %v2335_v34 = vld [vmem:[%s13012_s3 + $0xaf0] sm:$0xff]  ;;  %v2332_v35 = vld [vmem:[%s13012_s3 + $0xad8] sm:$0xff] }
 0x2c1   :  { %5681 = vmatprep.subr.bf16.mxu1 %v8569_v36  ;;  %v2336_v36 = vld [vmem:[%s13012_s3 + $0xaf8] sm:$0xff]  ;;  %v8623_v41 = vcombine.high %v2331_v29, %v2335_v34  ;;  %v8622_v24 = vcombine.low %v2331_v29, %v2335_v34 }
 0x2c2   :  { %v8625_v40 = vcombine.high %v2332_v35, %v2336_v36  ;;  %v8624_v45 = vcombine.low %v2332_v35, %v2336_v36  ;;  %v2384_v29 = vld [vmem:[%s13012_s3 + $0xc78] sm:$0xff]  ;;  %v2387_v36 = vld [vmem:[%s13012_s3 + $0xc90] sm:$0xff] }
 0x2c3   :  { %5518 = vmatpush1.bf16.msra.mxu0 %v8566_v31  ;;  %v2339_v31 = vld [vmem:[%s13012_s3 + $0xb10] sm:$0xff] }
 0x2c4   :  { %5682 = vmatpush1.bf16.msra.mxu1 %v8568_v42  ;;  %5519 = vmatprep.subr.bf16.mxu0 %v8575_v12  ;;  %v2343_v42 = vld [vmem:[%s13012_s3 + $0xb30] sm:$0xff]  ;;  %v2340_v12 = vld [vmem:[%s13012_s3 + $0xb18] sm:$0xff] }
 0x2c5   :  { %5683 = vmatprep.subr.bf16.mxu1 %v8577_v44  ;;  %v2344_v44 = vld [vmem:[%s13012_s3 + $0xb38] sm:$0xff]  ;;  %v8631_v55 = vcombine.high %v2339_v31, %v2343_v42  ;;  %v8630_v23 = vcombine.low %v2339_v31, %v2343_v42 }
 0x2c6   :  { %v8633_v57 = vcombine.high %v2340_v12, %v2344_v44  ;;  %v8632_v50 = vcombine.low %v2340_v12, %v2344_v44 }
 0x2c7   :  { %5520 = vmatpush1.bf16.msra.mxu0 %v8574_v63  ;;  %v2347_v63 = vld [vmem:[%s13012_s3 + $0xb50] sm:$0xff] }
 0x2c8   :  { %5684 = vmatpush1.bf16.msra.mxu1 %v8576_v46  ;;  %5521 = vmatprep.subr.bf16.mxu0 %v8583_v47  ;;  %v2351_v46 = vld [vmem:[%s13012_s3 + $0xb70] sm:$0xff]  ;;  %v2348_v47 = vld [vmem:[%s13012_s3 + $0xb58] sm:$0xff] }
 0x2c9   :  { %5685 = vmatprep.subr.bf16.mxu1 %v8585_v49  ;;  %v2352_v49 = vld [vmem:[%s13012_s3 + $0xb78] sm:$0xff]  ;;  %v8639_v52 = vcombine.high %v2347_v63, %v2351_v46  ;;  %v8638_v61 = vcombine.low %v2347_v63, %v2351_v46 }
 0x2ca   :  { %v8641_v54 = vcombine.high %v2348_v47, %v2352_v49  ;;  %v8640_v0 = vcombine.low %v2348_v47, %v2352_v49  ;;  %v2403_v47 = vld [vmem:[%s13012_s3 + $0xd10] sm:$0xff] }
 0x2cb   :  { %5522 = vmatpush1.bf16.msra.mxu0 %v8582_v56  ;;  %v2355_v56 = vld [vmem:[%s13012_s3 + $0xb90] sm:$0xff] }
 0x2cc   :  { %5686 = vmatpush1.bf16.msra.mxu1 %v8584_v58  ;;  %5523 = vmatprep.subr.bf16.mxu0 %v8591_v59  ;;  %v2359_v58 = vld [vmem:[%s13012_s3 + $0xbb0] sm:$0xff]  ;;  %v2356_v59 = vld [vmem:[%s13012_s3 + $0xb98] sm:$0xff] }
 0x2cd   :  { %5687 = vmatprep.subr.bf16.mxu1 %v8593_v60  ;;  %v2360_v60 = vld [vmem:[%s13012_s3 + $0xbb8] sm:$0xff]  ;;  %v8647_v1 = vcombine.high %v2355_v56, %v2359_v58  ;;  %v8646_v7 = vcombine.low %v2355_v56, %v2359_v58  ;;  %v2407_v49 = vld [vmem:[%s13012_s3 + $0xd30] sm:$0xff] }
 0x2ce   :  { %v8649_v39 = vcombine.high %v2356_v59, %v2360_v60  ;;  %v8648_v10 = vcombine.low %v2356_v59, %v2360_v60  ;;  %v8695_v56 = vcombine.high %v2403_v47, %v2407_v49  ;;  %v2411_v59 = vld [vmem:[%s13012_s3 + $0xd50] sm:$0xff] }
 0x2cf   :  { %5524 = vmatpush1.bf16.msra.mxu0 %v8590_v4  ;;  %v2363_v4 = vld [vmem:[%s13012_s3 + $0xbd0] sm:$0xff] }
 0x2d0   :  { %5688 = vmatpush1.bf16.msra.mxu1 %v8592_v51  ;;  %5525 = vmatprep.subr.bf16.mxu0 %v8599_v5  ;;  %v2367_v51 = vld [vmem:[%s13012_s3 + $0xbf0] sm:$0xff]  ;;  %v2364_v5 = vld [vmem:[%s13012_s3 + $0xbd8] sm:$0xff] }
 0x2d1   :  { %5689 = vmatprep.subr.bf16.mxu1 %v8601_v6  ;;  %v2368_v6 = vld [vmem:[%s13012_s3 + $0xbf8] sm:$0xff]  ;;  %v8655_v11 = vcombine.high %v2363_v4, %v2367_v51  ;;  %v8654_v62 = vcombine.low %v2363_v4, %v2367_v51  ;;  %v2415_v60 = vld [vmem:[%s13012_s3 + $0xd70] sm:$0xff] }
 0x2d2   :  { %v8657_v14 = vcombine.high %v2364_v5, %v2368_v6  ;;  %v8656_v20 = vcombine.low %v2364_v5, %v2368_v6  ;;  %v8703_v4 = vcombine.high %v2411_v59, %v2415_v60  ;;  %v2419_v5 = vld [vmem:[%s13012_s3 + $0xd90] sm:$0xff] }
 0x2d3   :  { %5526 = vmatpush1.bf16.msra.mxu0 %v8598_v16  ;;  %v2371_v16 = vld [vmem:[%s13012_s3 + $0xc10] sm:$0xff] }
 0x2d4   :  { %5690 = vmatpush1.bf16.msra.mxu1 %v8600_v18  ;;  %5527 = vmatprep.subr.bf16.mxu0 %v8607_v17  ;;  %v2375_v18 = vld [vmem:[%s13012_s3 + $0xc30] sm:$0xff]  ;;  %v2372_v17 = vld [vmem:[%s13012_s3 + $0xc18] sm:$0xff] }
 0x2d5   :  { %5691 = vmatprep.subr.bf16.mxu1 %v8609_v19  ;;  %v2376_v19 = vld [vmem:[%s13012_s3 + $0xc38] sm:$0xff]  ;;  %v8663_v21 = vcombine.high %v2371_v16, %v2375_v18  ;;  %v2423_v6 = vld [vmem:[%s13012_s3 + $0xdb0] sm:$0xff] }
 0x2d6   :  { %v8665_v22 = vcombine.high %v2372_v17, %v2376_v19  ;;  %v8664_v34 = vcombine.low %v2372_v17, %v2376_v19 }
 0x2d7   :  { %5528 = vmatpush1.bf16.msra.mxu0 %v8606_v25  ;;  %v2379_v25 = vld [vmem:[%s13012_s3 + $0xc50] sm:$0xff] }
 0x2d8   :  { %5692 = vmatpush1.bf16.msra.mxu1 %v8608_v26  ;;  %5529 = vmatprep.subr.bf16.mxu0 %v8615_v27  ;;  %v2383_v26 = vld [vmem:[%s13012_s3 + $0xc70] sm:$0xff]  ;;  %v8662_v27 = vcombine.low %v2371_v16, %v2375_v18  ;;  %v8711_v16 = vcombine.high %v2419_v5, %v2423_v6 }
 0x2d9   :  { %5693 = vmatprep.subr.bf16.mxu1 %v8617_v28  ;;  %v2380_v28 = vld [vmem:[%s13012_s3 + $0xc58] sm:$0xff]  ;;  %v8671_v35 = vcombine.high %v2379_v25, %v2383_v26  ;;  %v8670_v31 = vcombine.low %v2379_v25, %v2383_v26 }
 0x2da   :  { %v8672_v42 = vcombine.low %v2380_v28, %v2384_v29  ;;  %v2428_v25 = vld [vmem:[%s13012_s3 + $0xdd8] sm:$0xff] }
 0x2db   :  { %5530 = vmatpush1.bf16.msra.mxu0 %v8614_v37  ;;  %v2391_v37 = vld [vmem:[%s13012_s3 + $0xcb0] sm:$0xff]  ;;  %v2432_v26 = vld [vmem:[%s13012_s3 + $0xdf8] sm:$0xff] }
 0x2dc   :  { %5694 = vmatpush1.bf16.msra.mxu1 %v8616_v38  ;;  %5531 = vmatprep.subr.bf16.mxu0 %v8623_v41  ;;  %v8673_v38 = vcombine.high %v2380_v28, %v2384_v29  ;;  %v2388_v41 = vld [vmem:[%s13012_s3 + $0xc98] sm:$0xff]  ;;  %v8679_v12 = vcombine.high %v2387_v36, %v2391_v37  ;;  %v8710_v29 = vcombine.low %v2419_v5, %v2423_v6 }
 0x2dd   :  { %5695 = vmatprep.subr.bf16.mxu1 %v8625_v40  ;;  %v2392_v40 = vld [vmem:[%s13012_s3 + $0xcb8] sm:$0xff] }
 0x2de   :  { %v8681_v44 = vcombine.high %v2388_v41, %v2392_v40 }
 0x2df   :  { %5532 = vmatpush1.bf16.msra.mxu0 %v8622_v24  ;;  %v2395_v24 = vld [vmem:[%s13012_s3 + $0xcd0] sm:$0xff] }
 0x2e0   :  { %5696 = vmatpush1.bf16.msra.mxu1 %v8624_v45  ;;  %5533 = vmatprep.subr.bf16.mxu0 %v8631_v55  ;;  %v2399_v45 = vld [vmem:[%s13012_s3 + $0xcf0] sm:$0xff]  ;;  %v2400_v55 = vld [vmem:[%s13012_s3 + $0xcf8] sm:$0xff] }
 0x2e1   :  { %5697 = vmatprep.subr.bf16.mxu1 %v8633_v57  ;;  %v8680_v57 = vcombine.low %v2388_v41, %v2392_v40  ;;  %v8687_v63 = vcombine.high %v2395_v24, %v2399_v45  ;;  %v2435_v41 = vld [vmem:[%s13012_s3 + $0xe10] sm:$0xff] }
 0x2e2   :  { %v2439_v40 = vld [vmem:[%s13012_s3 + $0xe30] sm:$0xff] }
 0x2e3   :  { %5534 = vmatpush1.bf16.msra.mxu0 %v8630_v23  ;;  %v2404_v23 = vld [vmem:[%s13012_s3 + $0xd18] sm:$0xff] }
 0x2e4   :  { %5698 = vmatpush1.bf16.msra.mxu1 %v8632_v50  ;;  %5535 = vmatprep.subr.bf16.mxu0 %v8639_v52  ;;  %v2408_v50 = vld [vmem:[%s13012_s3 + $0xd38] sm:$0xff]  ;;  %v8686_v52 = vcombine.low %v2395_v24, %v2399_v45  ;;  %v8727_v24 = vcombine.high %v2435_v41, %v2439_v40 }
 0x2e5   :  { %5699 = vmatprep.subr.bf16.mxu1 %v8641_v54  ;;  %v8697_v58 = vcombine.high %v2404_v23, %v2408_v50 }
 0x2e7   :  { %5536 = vmatpush1.bf16.msra.mxu0 %v8638_v61  ;;  %v2412_v61 = vld [vmem:[%s13012_s3 + $0xd58] sm:$0xff] }
 0x2e8   :  { %5700 = vmatpush1.bf16.msra.mxu1 %v8640_v0  ;;  %5537 = vmatprep.subr.bf16.mxu0 %v8647_v1  ;;  %v2416_v0 = vld [vmem:[%s13012_s3 + $0xd78] sm:$0xff]  ;;  %v8694_v1 = vcombine.low %v2403_v47, %v2407_v49 }
 0x2e9   :  { %5701 = vmatprep.subr.bf16.mxu1 %v8649_v39  ;;  %v8696_v39 = vcombine.low %v2404_v23, %v2408_v50  ;;  %v8705_v51 = vcombine.high %v2412_v61, %v2416_v0  ;;  %v2451_v23 = vld [vmem:[%s13012_s3 + $0xe90] sm:$0xff] }
 0x2ea   :  { %v2455_v50 = vld [vmem:[%s13012_s3 + $0xeb0] sm:$0xff] }
 0x2eb   :  { %5538 = vmatpush1.bf16.msra.mxu0 %v8646_v7  ;;  %v2420_v7 = vld [vmem:[%s13012_s3 + $0xd98] sm:$0xff] }
 0x2ec   :  { %5702 = vmatpush1.bf16.msra.mxu1 %v8648_v10  ;;  %5539 = vmatprep.subr.bf16.mxu0 %v8655_v11  ;;  %v2424_v10 = vld [vmem:[%s13012_s3 + $0xdb8] sm:$0xff]  ;;  %v8702_v11 = vcombine.low %v2411_v59, %v2415_v60  ;;  %v8743_v59 = vcombine.high %v2451_v23, %v2455_v50 }
 0x2ed   :  { %5703 = vmatprep.subr.bf16.mxu1 %v8657_v14  ;;  %v8704_v14 = vcombine.low %v2412_v61, %v2416_v0  ;;  %v8713_v19 = vcombine.high %v2420_v7, %v2424_v10  ;;  %v2459_v61 = vld [vmem:[%s13012_s3 + $0xed0] sm:$0xff] }
 0x2ee   :  { %v2463_v0 = vld [vmem:[%s13012_s3 + $0xef0] sm:$0xff] }
 0x2ef   :  { %5540 = vmatpush1.bf16.msra.mxu0 %v8654_v62  ;;  %v2427_v62 = vld [vmem:[%s13012_s3 + $0xdd0] sm:$0xff]  ;;  %v8751_v5 = vcombine.high %v2459_v61, %v2463_v0 }
 0x2f0   :  { %5704 = vmatpush1.bf16.msra.mxu1 %v8656_v20  ;;  %5550 = vmatprep.subr.bf16.mxu0 %v8663_v21  ;;  %v2431_v20 = vld [vmem:[%s13012_s3 + $0xdf0] sm:$0xff] }
 0x2f1   :  { %5714 = vmatprep.subr.bf16.mxu1 %v8665_v22 }
 0x2f2   :  { %5542 = vmatmul.mubr.bf16.vlgmr.msra.gmra.mrb[12].mxu0 %v11213_v2 }
 0x2f3   :  { %5706 = vmatmul.mubr.bf16.vlgmr.msra.gmra.mrb[12].mxu1 %v11213_v2  ;;  %5551 = vmatpush1.bf16.msra.mxu0 %v8662_v27  ;;  %v2396_v2 = vld [vmem:[%s13012_s3 + $0xcd8] sm:$0xff] }
 0x2f4   :  { %5582 = vmatprep.mubr.bf16.mxu0 %v11229_v8  ;;  %5715 = vmatpush1.bf16.msra.mxu1 %v8664_v34  ;;  %v8689_v46 = vcombine.high %v2396_v2, %v2400_v55  ;;  %v8688_v54 = vcombine.low %v2396_v2, %v2400_v55  ;;  %v2443_v2 = vld [vmem:[%s13012_s3 + $0xe50] sm:$0xff] }
 0x2f5   :  { %5746 = vmatprep.mubr.bf16.mxu1 %v11229_v8  ;;  %5552 = vmatprep.subr.bf16.mxu0 %v8671_v35  ;;  %v8678_v8 = vcombine.low %v2387_v36, %v2391_v37  ;;  %v8712_v36 = vcombine.low %v2420_v7, %v2424_v10  ;;  %v8719_v37 = vcombine.high %v2427_v62, %v2431_v20  ;;  %v2447_v55 = vld [vmem:[%s13012_s3 + $0xe70] sm:$0xff] }
 0x2f6   :  { %5716 = vmatprep.subr.bf16.mxu1 %v8673_v38  ;;  %v8721_v38 = vcombine.high %v2428_v25, %v2432_v26  ;;  %v8735_v47 = vcombine.high %v2443_v2, %v2447_v55  ;;  %v2467_v7 = vld [vmem:[%s13012_s3 + $0xf10] sm:$0xff] }
 0x2f7   :  { %5553 = vmatpush1.bf16.msra.mxu0 %v8670_v31  ;;  %v2436_v31 = vld [vmem:[%s13012_s3 + $0xe18] sm:$0xff]  ;;  %v2471_v10 = vld [vmem:[%s13012_s3 + $0xf30] sm:$0xff] }
 0x2f8   :  { %5717 = vmatpush1.bf16.msra.mxu1 %v8672_v42  ;;  %5554 = vmatprep.subr.bf16.mxu0 %v8679_v12  ;;  %v2440_v42 = vld [vmem:[%s13012_s3 + $0xe38] sm:$0xff]  ;;  %v8718_v12 = vcombine.low %v2427_v62, %v2431_v20  ;;  %v8759_v62 = vcombine.high %v2467_v7, %v2471_v10 }
 0x2f9   :  { %5718 = vmatprep.subr.bf16.mxu1 %v8681_v44  ;;  %v8720_v44 = vcombine.low %v2428_v25, %v2432_v26  ;;  %v8729_v45 = vcombine.high %v2436_v31, %v2440_v42  ;;  %v2475_v25 = vld [vmem:[%s13012_s3 + $0xf50] sm:$0xff] }
 0x2fa   :  { %v2479_v26 = vld [vmem:[%s13012_s3 + $0xf70] sm:$0xff] }
 0x2fb   :  { %5555 = vmatpush1.bf16.msra.mxu0 %v8678_v8  ;;  %v2444_v8 = vld [vmem:[%s13012_s3 + $0xe58] sm:$0xff] }
 0x2fc   :  { %5719 = vmatpush1.bf16.msra.mxu1 %v8680_v57  ;;  %5556 = vmatprep.subr.bf16.mxu0 %v8687_v63  ;;  %v2448_v57 = vld [vmem:[%s13012_s3 + $0xe78] sm:$0xff]  ;;  %v8726_v63 = vcombine.low %v2435_v41, %v2439_v40 }
 0x2fd   :  { %5720 = vmatprep.subr.bf16.mxu1 %v8689_v46  ;;  %v8728_v46 = vcombine.low %v2436_v31, %v2440_v42  ;;  %v8737_v49 = vcombine.high %v2444_v8, %v2448_v57  ;;  %v2484_v41 = vld [vmem:[%s13012_s3 + $0xf98] sm:$0xff]  ;;  %v12183_v31 = vld [vmem:[%s13013_s4] sm:$0xff]  ;;  %v8766_v42 = vcombine.low %v2475_v25, %v2479_v26 }
 0x2fe   :  { %v2488_v40 = vld [vmem:[%s13012_s3 + $0xfb8] sm:$0xff] }
 0x2ff   :  { %5557 = vmatpush1.bf16.msra.mxu0 %v8686_v52  ;;  %v2452_v52 = vld [vmem:[%s13012_s3 + $0xe98] sm:$0xff] }
 0x300   :  { %5721 = vmatpush1.bf16.msra.mxu1 %v8688_v54  ;;  %5558 = vmatprep.subr.bf16.mxu0 %v8695_v56  ;;  %v2456_v54 = vld [vmem:[%s13012_s3 + $0xeb8] sm:$0xff]  ;;  %v8734_v56 = vcombine.low %v2443_v2, %v2447_v55  ;;  %v2495_v2 = vld [vmem:[%s13012_s3 + $0xff0] sm:$0xff]  ;;  %v2506_v55 = vrot.slane %v12183_v31, %v10766_v32 }
 0x301   :  { %5722 = vmatprep.subr.bf16.mxu1 %v8697_v58  ;;  %v8736_v58 = vcombine.low %v2444_v8, %v2448_v57  ;;  %v8745_v60 = vcombine.high %v2452_v52, %v2456_v54  ;;  %v2492_v8 = vld [vmem:[%s13012_s3 + $0xfd8] sm:$0xff] }
 0x302   :  { %v2496_v57 = vld [vmem:[%s13012_s3 + $0xff8] sm:$0xff] }
 0x303   :  { %5559 = vmatpush1.bf16.msra.mxu0 %v8694_v1  ;;  %v2460_v1 = vld [vmem:[%s13012_s3 + $0xed8] sm:$0xff] }
 0x304   :  { %5723 = vmatpush1.bf16.msra.mxu1 %v8696_v39  ;;  %5560 = vmatprep.subr.bf16.mxu0 %v8703_v4  ;;  %v2464_v39 = vld [vmem:[%s13012_s3 + $0xef8] sm:$0xff]  ;;  %v8742_v4 = vcombine.low %v2451_v23, %v2455_v50 }
 0x305   :  { %v12076_v18 = vpop.f32.mrb[8].mxu0  ;;  %v12078_v17 = vpop.f32.mrb[8].mxu1  ;;  %5724 = vmatprep.subr.bf16.mxu1 %v8705_v51  ;;  %v8744_v51 = vcombine.low %v2452_v52, %v2456_v54  ;;  %v8753_v6 = vcombine.high %v2460_v1, %v2464_v39  ;;  %v8784_v52 = vcombine.low %v2492_v8, %v2496_v57  ;;  %v9236_v54 = vld [vmem:[%s13014_s5 + $0x4] ss:$16 sps:$4 sm:$0xff]  }
 0x306   :  { %v12086_v21 = vpop.f32.mrb[9].mxu0  ;;  %v12088_v22 = vpop.f32.mrb[9].mxu1 }
 0x307   :  { %v5260_v27 = vpop.f32.mrb[10].mxu0  ;;  %v5424_v28 = vpop.f32.mrb[10].mxu1  ;;  %5561 = vmatpush1.bf16.msra.mxu0 %v8702_v11  ;;  %v2468_v11 = vld [vmem:[%s13012_s3 + $0xf18] sm:$0xff]  ;;  %v9128_v23 = vadd.f32 %v12086_v21, %v2506_v55  ;;  %v9234_v21 = vld [vmem:[%s13014_s5] ss:$16 sps:$4 sm:$0xff]  }
 0x308   :  { %5725 = vmatpush1.bf16.msra.mxu1 %v8704_v14  ;;  %v5261_v34 = vpop.f32.mrb[11].mxu0  ;;  %v5425_v35 = vpop.f32.mrb[11].mxu1  ;;  %5562 = vmatprep.subr.bf16.mxu0 %v8711_v16  ;;  %v2472_v14 = vld [vmem:[%s13012_s3 + $0xf38] sm:$0xff]  ;;  %v8750_v16 = vcombine.low %v2459_v61, %v2463_v0 }
 0x309   :  { %5726 = vmatprep.subr.bf16.mxu1 %v8713_v19  ;;  %v8752_v19 = vcombine.low %v2460_v1, %v2464_v39  ;;  %v8761_v20 = vcombine.high %v2468_v11, %v2472_v14  ;;  %v2476_v27 = vld [vmem:[%s13012_s3 + $0xf58] sm:$0xff]  ;;  %v8760_v34 = vcombine.low %v2468_v11, %v2472_v14  ;;  %v8767_v35 = vcombine.high %v2475_v25, %v2479_v26  ;;  %v9240_v1 = vld [vmem:[%s13014_s5 + $0x20] ss:$16 sps:$4 sm:$0xff]   ;;  %v9260_v14 = vld [vmem:[%s13014_s5 + $0x84] ss:$16 sps:$4 sm:$0xff]  }
 0x30a   :  { %v2480_v28 = vld [vmem:[%s13012_s3 + $0xf78] sm:$0xff]  ;;  %v9264_v26 = vld [vmem:[%s13014_s5 + $0xa0] ss:$16 sps:$4 sm:$0xff]  }
 0x30b   :  { %5563 = vmatpush1.bf16.msra.mxu0 %v8710_v29  ;;  %v8758_v29 = vcombine.low %v2467_v7, %v2471_v10  ;;  %v9245_v0 = vld [vmem:[%s13014_s5 + $0x2c] ss:$16 sps:$4 sm:$0xff]   ;;  %v9243_v39 = vld [vmem:[%s13014_s5 + $0x28] ss:$16 sps:$4 sm:$0xff]   ;;  %v9252_v10 = vld [vmem:[%s13014_s5 + $0x60] ss:$16 sps:$4 sm:$0xff]  }
 0x30c   :  { %5727 = vmatpush1.bf16.msra.mxu1 %v8712_v36  ;;  %5564 = vmatprep.subr.bf16.mxu0 %v8719_v37  ;;  %v8769_v36 = vcombine.high %v2476_v27, %v2480_v28  ;;  %v2483_v37 = vld [vmem:[%s13012_s3 + $0xf90] sm:$0xff]  ;;  %v9257_v7 = vld [vmem:[%s13014_s5 + $0x6c] ss:$16 sps:$4 sm:$0xff]   ;;  %v9255_v11 = vld [vmem:[%s13014_s5 + $0x68] ss:$16 sps:$4 sm:$0xff]  }
 0x30d   :  { %5728 = vmatprep.subr.bf16.mxu1 %v8721_v38  ;;  %v2487_v38 = vld [vmem:[%s13012_s3 + $0xfb0] sm:$0xff]  ;;  %v9269_v25 = vld [vmem:[%s13014_s5 + $0xac] ss:$16 sps:$4 sm:$0xff]   ;;  %v9291_v55 = vld [vmem:[%s13014_s5 + $0x128] ss:$16 sps:$4 sm:$0xff]  }
 0x30f   :  { %5565 = vmatpush1.bf16.msra.mxu0 %v8718_v12  ;;  %v8768_v12 = vcombine.low %v2476_v27, %v2480_v28  ;;  %v9267_v27 = vld [vmem:[%s13014_s5 + $0xa8] ss:$16 sps:$4 sm:$0xff]   ;;  %v9272_v28 = vld [vmem:[%s13014_s5 + $0xc4] ss:$16 sps:$4 sm:$0xff]  }
 0x310   :  { %5729 = vmatpush1.bf16.msra.mxu1 %v8720_v44  ;;  %5566 = vmatprep.subr.bf16.mxu0 %v8727_v24  ;;  %v8775_v44 = vcombine.high %v2483_v37, %v2487_v38  ;;  %v8777_v24 = vcombine.high %v2484_v41, %v2488_v40 }
 0x311   :  { %5730 = vmatprep.subr.bf16.mxu1 %v8729_v45  ;;  %v2491_v45 = vld [vmem:[%s13012_s3 + $0xfd0] sm:$0xff] }
 0x312   :  { %v8782_v50 = vcombine.low %v2491_v45, %v2495_v2 }
 0x313   :  { %5567 = vmatpush1.bf16.msra.mxu0 %v8726_v63  ;;  %v8774_v63 = vcombine.low %v2483_v37, %v2487_v38  ;;  %v9281_v37 = vld [vmem:[%s13014_s5 + $0xec] ss:$16 sps:$4 sm:$0xff]   ;;  %v9276_v38 = vld [vmem:[%s13014_s5 + $0xe0] ss:$16 sps:$4 sm:$0xff]  }
 0x314   :  { %5731 = vmatpush1.bf16.msra.mxu1 %v8728_v46  ;;  %5568 = vmatprep.subr.bf16.mxu0 %v8735_v47  ;;  %v8776_v46 = vcombine.low %v2484_v41, %v2488_v40  ;;  %v8783_v47 = vcombine.high %v2491_v45, %v2495_v2  ;;  %v9279_v41 = vld [vmem:[%s13014_s5 + $0xe8] ss:$16 sps:$4 sm:$0xff]   ;;  %v9284_v40 = vld [vmem:[%s13014_s5 + $0x104] ss:$16 sps:$4 sm:$0xff]   ;;  %v9293_v45 = vld [vmem:[%s13014_s5 + $0x12c] ss:$16 sps:$4 sm:$0xff]  }
 0x315   :  { %5732 = vmatprep.subr.bf16.mxu1 %v8737_v49  ;;  %v8785_v49 = vcombine.high %v2492_v8, %v2496_v57  ;;  %v9288_v2 = vld [vmem:[%s13014_s5 + $0x120] ss:$16 sps:$4 sm:$0xff]   ;;  %v9296_v8 = vld [vmem:[%s13014_s5 + $0x144] ss:$16 sps:$4 sm:$0xff]   ;;  %v9299_v57 = vld [vmem:[%s13014_s5 + $0x14c] ss:$16 sps:$4 sm:$0xff]  }
 0x317   :  { %5569 = vmatpush1.bf16.msra.mxu0 %v8734_v56  ;;  %v9239_v56 = vld [vmem:[%s13014_s5 + $0xc] ss:$16 sps:$4 sm:$0xff]  }
 0x318   :  { %5733 = vmatpush1.bf16.msra.mxu1 %v8736_v58  ;;  %5570 = vmatprep.subr.bf16.mxu0 %v8743_v59  ;;  %v5756_v58 = vmax.f32 %v9128_v23, 0.0  ;;  %v9237_v59 = vld [vmem:[%s13014_s5 + $0x8] ss:$16 sps:$4 sm:$0xff]   ;;  %v9300_v23 = vld [vmem:[%s13014_s5 + $0x160] ss:$16 sps:$4 sm:$0xff]  }
 0x319   :  { %5734 = vmatprep.subr.bf16.mxu1 %v8745_v60  ;;  %v9242_v60 = vld [vmem:[%s13014_s5 + $0x24] ss:$16 sps:$4 sm:$0xff]  }
 0x31a   :  { %v5764_v61 = vpack.c.bf16 %v5756_v58, %v5756_v58  ;;  %v9309_v58 = vld [vmem:[%s13014_s5 + $0x188] ss:$16 sps:$4 sm:$0xff]  }
 0x31b   :  { %5571 = vmatpush1.bf16.msra.mxu0 %v8742_v4  ;;  %v9248_v4 = vld [vmem:[%s13014_s5 + $0x44] ss:$16 sps:$4 sm:$0xff]  }
 0x31c   :  { %5735 = vmatpush1.bf16.msra.mxu1 %v8744_v51  ;;  %5572 = vmatprep.subr.bf16.mxu0 %v8751_v5  ;;  %v9246_v51 = vld [vmem:[%s13014_s5 + $0x40] ss:$16 sps:$4 sm:$0xff]   ;;  %v9249_v5 = vld [vmem:[%s13014_s5 + $0x48] ss:$16 sps:$4 sm:$0xff]  }
 0x31d   :  { %5736 = vmatprep.subr.bf16.mxu1 %v8753_v6  ;;  %v9254_v6 = vld [vmem:[%s13014_s5 + $0x64] ss:$16 sps:$4 sm:$0xff]  }
 0x31f   :  { %5573 = vmatpush1.bf16.msra.mxu0 %v8750_v16  ;;  %v9263_v16 = vld [vmem:[%s13014_s5 + $0x8c] ss:$16 sps:$4 sm:$0xff]  }
 0x320   :  { %5737 = vmatpush1.bf16.msra.mxu1 %v8752_v19  ;;  %5574 = vmatprep.subr.bf16.mxu0 %v8759_v62  ;;  %v9258_v19 = vld [vmem:[%s13014_s5 + $0x80] ss:$16 sps:$4 sm:$0xff]   ;;  %v9261_v62 = vld [vmem:[%s13014_s5 + $0x88] ss:$16 sps:$4 sm:$0xff]  }
 0x321   :  { %5738 = vmatprep.subr.bf16.mxu1 %v8761_v20  ;;  %v9266_v20 = vld [vmem:[%s13014_s5 + $0xa4] ss:$16 sps:$4 sm:$0xff]  }
 0x323   :  { %5575 = vmatpush1.bf16.msra.mxu0 %v8758_v29  ;;  %v9275_v29 = vld [vmem:[%s13014_s5 + $0xcc] ss:$16 sps:$4 sm:$0xff]  }
 0x324   :  { %5739 = vmatpush1.bf16.msra.mxu1 %v8760_v34  ;;  %5576 = vmatprep.subr.bf16.mxu0 %v8767_v35  ;;  %v9270_v34 = vld [vmem:[%s13014_s5 + $0xc0] ss:$16 sps:$4 sm:$0xff]   ;;  %v9273_v35 = vld [vmem:[%s13014_s5 + $0xc8] ss:$16 sps:$4 sm:$0xff]  }
 0x325   :  { %5740 = vmatprep.subr.bf16.mxu1 %v8769_v36  ;;  %v9278_v36 = vld [vmem:[%s13014_s5 + $0xe4] ss:$16 sps:$4 sm:$0xff]  }
 0x327   :  { %5577 = vmatpush1.bf16.msra.mxu0 %v8766_v42  ;;  %v9287_v42 = vld [vmem:[%s13014_s5 + $0x10c] ss:$16 sps:$4 sm:$0xff]  }
 0x328   :  { %5741 = vmatpush1.bf16.msra.mxu1 %v8768_v12  ;;  %5578 = vmatprep.subr.bf16.mxu0 %v8775_v44  ;;  %v9282_v12 = vld [vmem:[%s13014_s5 + $0x100] ss:$16 sps:$4 sm:$0xff]   ;;  %v9285_v44 = vld [vmem:[%s13014_s5 + $0x108] ss:$16 sps:$4 sm:$0xff]  }
 0x329   :  { %5742 = vmatprep.subr.bf16.mxu1 %v8777_v24  ;;  %v9290_v24 = vld [vmem:[%s13014_s5 + $0x124] ss:$16 sps:$4 sm:$0xff]  }
 0x32b   :  { %5579 = vmatpush1.bf16.msra.mxu0 %v8774_v63  ;;  %v9294_v63 = vld [vmem:[%s13014_s5 + $0x140] ss:$16 sps:$4 sm:$0xff]  }
 0x32c   :  { %5743 = vmatpush1.bf16.msra.mxu1 %v8776_v46  ;;  %5580 = vmatprep.subr.bf16.mxu0 %v8783_v47  ;;  %v9297_v46 = vld [vmem:[%s13014_s5 + $0x148] ss:$16 sps:$4 sm:$0xff]   ;;  %v9302_v47 = vld [vmem:[%s13014_s5 + $0x164] ss:$16 sps:$4 sm:$0xff]  }
 0x32d   :  { %5744 = vmatprep.subr.bf16.mxu1 %v8785_v49  ;;  %v9305_v49 = vld [vmem:[%s13014_s5 + $0x16c] ss:$16 sps:$4 sm:$0xff]  }
 0x32f   :  { %5581 = vmatpush1.bf16.msra.mxu0 %v8782_v50  ;;  %v9303_v50 = vld [vmem:[%s13014_s5 + $0x168] ss:$16 sps:$4 sm:$0xff]  }
 0x330   :  { %5745 = vmatpush1.bf16.msra.mxu1 %v8784_v52  ;;  %7329 = vmatprep.subr.bf16.mxu0 %v9236_v54  ;;  %v9308_v52 = vld [vmem:[%s13014_s5 + $0x184] ss:$16 sps:$4 sm:$0xff]   ;;  %v9311_v54 = vld [vmem:[%s13014_s5 + $0x18c] ss:$16 sps:$4 sm:$0xff]  }
 0x331   :  { %7493 = vmatprep.subr.bf16.mxu1 %v9239_v56  ;;  %v9306_v56 = vld [vmem:[%s13014_s5 + $0x180] ss:$16 sps:$4 sm:$0xff]  }
 0x332   :  { %5583 = vmatmul.mubr.bf16.vlgmr.msra.gmra.mrb[12].mxu0 %v11422_v48 }
 0x333   :  { %5747 = vmatmul.mubr.bf16.vlgmr.msra.gmra.mrb[12].mxu1 %v11422_v48  ;;  %7330 = vmatpush1.bf16.msra.mxu0 %v9234_v21  ;;  %v9251_v48 = vld [vmem:[%s13014_s5 + $0x4c] ss:$16 sps:$4 sm:$0xff]   ;;  %v9314_v21 = vld [vmem:[%s13014_s5 + $0x1a4] ss:$16 sps:$4 sm:$0xff]  }
 0x334   :  { %7361 = vmatprep.mubr.bf16.mxu0 %v5764_v61  ;;  %7494 = vmatpush1.bf16.msra.mxu1 %v9237_v59  ;;  %v9317_v59 = vld [vmem:[%s13014_s5 + $0x1ac] ss:$16 sps:$4 sm:$0xff]  }
 0x335   :  { %7525 = vmatprep.mubr.bf16.mxu1 %v5764_v61  ;;  %7331 = vmatprep.subr.bf16.mxu0 %v9242_v60  ;;  %v9312_v60 = vld [vmem:[%s13014_s5 + $0x1a0] ss:$16 sps:$4 sm:$0xff]   ;;  %v2502_v61 = vrot.slane %v12183_v31, %v10758_v15 }
 0x336   :  { %7495 = vmatprep.subr.bf16.mxu1 %v9245_v0  ;;  %v9315_v0 = vld [vmem:[%s13014_s5 + $0x1a8] ss:$16 sps:$4 sm:$0xff]  }
 0x337   :  { %7332 = vmatpush1.bf16.msra.mxu0 %v9240_v1  ;;  %v9320_v1 = vld [vmem:[%s13014_s5 + $0x1c4] ss:$16 sps:$4 sm:$0xff]  }
 0x338   :  { %7496 = vmatpush1.bf16.msra.mxu1 %v9243_v39  ;;  %7333 = vmatprep.subr.bf16.mxu0 %v9248_v4  ;;  %v9323_v39 = vld [vmem:[%s13014_s5 + $0x1cc] ss:$16 sps:$4 sm:$0xff]   ;;  %v2514_v4 = vrot.slane %v12183_v31, %v10769_v33 }
 0x339   :  { %7497 = vmatprep.subr.bf16.mxu1 %v9251_v48  ;;  %v9318_v48 = vld [vmem:[%s13014_s5 + $0x1c0] ss:$16 sps:$4 sm:$0xff]  }
 0x33b   :  { %7334 = vmatpush1.bf16.msra.mxu0 %v9246_v51  ;;  %v9127_v51 = vadd.f32 %v12076_v18, %v2502_v61  ;;  %v9324_v18 = vld [vmem:[%s13014_s5 + $0x1e0] ss:$16 sps:$4 sm:$0xff]   ;;  %v9386_v61 = vld [vmem:[%s13014_s5 + $0x324] ss:$16 sps:$4 sm:$0xff]  }
 0x33c   :  { %7498 = vmatpush1.bf16.msra.mxu1 %v9249_v5  ;;  %7335 = vmatprep.subr.bf16.mxu0 %v9254_v6  ;;  %v9321_v5 = vld [vmem:[%s13014_s5 + $0x1c8] ss:$16 sps:$4 sm:$0xff]   ;;  %v9326_v6 = vld [vmem:[%s13014_s5 + $0x1e4] ss:$16 sps:$4 sm:$0xff]  }
 0x33d   :  { %7499 = vmatprep.subr.bf16.mxu1 %v9257_v7  ;;  %v9329_v7 = vld [vmem:[%s13014_s5 + $0x1ec] ss:$16 sps:$4 sm:$0xff]  }
 0x33f   :  { %7336 = vmatpush1.bf16.msra.mxu0 %v9252_v10  ;;  %v9130_v10 = vadd.f32 %v12088_v22, %v2514_v4  ;;  %v9335_v22 = vld [vmem:[%s13014_s5 + $0x20c] ss:$16 sps:$4 sm:$0xff]   ;;  %v9392_v4 = vld [vmem:[%s13014_s5 + $0x344] ss:$16 sps:$4 sm:$0xff]  }
 0x340   :  { %7500 = vmatpush1.bf16.msra.mxu1 %v9255_v11  ;;  %7337 = vmatprep.subr.bf16.mxu0 %v9260_v14  ;;  %v5755_v11 = vmax.f32 %v9127_v51, 0.0  ;;  %v9327_v14 = vld [vmem:[%s13014_s5 + $0x1e8] ss:$16 sps:$4 sm:$0xff]   ;;  %v9390_v51 = vld [vmem:[%s13014_s5 + $0x340] ss:$16 sps:$4 sm:$0xff]  }
 0x341   :  { %7501 = vmatprep.subr.bf16.mxu1 %v9263_v16  ;;  %v9332_v16 = vld [vmem:[%s13014_s5 + $0x204] ss:$16 sps:$4 sm:$0xff]  }
 0x343   :  { %7338 = vmatpush1.bf16.msra.mxu0 %v9258_v19  ;;  %v5758_v19 = vmax.f32 %v9130_v10, 0.0  ;;  %v9396_v10 = vld [vmem:[%s13014_s5 + $0x360] ss:$16 sps:$4 sm:$0xff]  }
 0x344   :  { %7502 = vmatpush1.bf16.msra.mxu1 %v9261_v62  ;;  %7339 = vmatprep.subr.bf16.mxu0 %v9266_v20  ;;  %v9330_v62 = vld [vmem:[%s13014_s5 + $0x200] ss:$16 sps:$4 sm:$0xff]   ;;  %v5763_v20 = vpack.c.bf16 %v5755_v11, %v5755_v11  ;;  %v9404_v11 = vld [vmem:[%s13014_s5 + $0x384] ss:$16 sps:$4 sm:$0xff]  }
 0x345   :  { %7503 = vmatprep.subr.bf16.mxu1 %v9269_v25  ;;  %v9333_v25 = vld [vmem:[%s13014_s5 + $0x208] ss:$16 sps:$4 sm:$0xff]  }
 0x347   :  { %7340 = vmatpush1.bf16.msra.mxu0 %v9264_v26  ;;  %v9338_v26 = vld [vmem:[%s13014_s5 + $0x224] ss:$16 sps:$4 sm:$0xff]  }
 0x348   :  { %7504 = vmatpush1.bf16.msra.mxu1 %v9267_v27  ;;  %7341 = vmatprep.subr.bf16.mxu0 %v9272_v28  ;;  %v5766_v27 = vpack.c.bf16 %v5758_v19, %v5758_v19  ;;  %v9341_v28 = vld [vmem:[%s13014_s5 + $0x22c] ss:$16 sps:$4 sm:$0xff]   ;;  %v9410_v19 = vld [vmem:[%s13014_s5 + $0x3a4] ss:$16 sps:$4 sm:$0xff]  }
 0x349   :  { %7505 = vmatprep.subr.bf16.mxu1 %v9275_v29  ;;  %v9336_v29 = vld [vmem:[%s13014_s5 + $0x220] ss:$16 sps:$4 sm:$0xff]  }
 0x34b   :  { %7342 = vmatpush1.bf16.msra.mxu0 %v9270_v34  ;;  %v9339_v34 = vld [vmem:[%s13014_s5 + $0x228] ss:$16 sps:$4 sm:$0xff]  }
 0x34c   :  { %7506 = vmatpush1.bf16.msra.mxu1 %v9273_v35  ;;  %7343 = vmatprep.subr.bf16.mxu0 %v9278_v36  ;;  %v9344_v35 = vld [vmem:[%s13014_s5 + $0x244] ss:$16 sps:$4 sm:$0xff]   ;;  %v9347_v36 = vld [vmem:[%s13014_s5 + $0x24c] ss:$16 sps:$4 sm:$0xff]  }
 0x34d   :  { %7507 = vmatprep.subr.bf16.mxu1 %v9281_v37  ;;  %v9342_v37 = vld [vmem:[%s13014_s5 + $0x240] ss:$16 sps:$4 sm:$0xff]  }
 0x34f   :  { %7344 = vmatpush1.bf16.msra.mxu0 %v9276_v38  ;;  %v9345_v38 = vld [vmem:[%s13014_s5 + $0x248] ss:$16 sps:$4 sm:$0xff]  }
 0x350   :  { %7508 = vmatpush1.bf16.msra.mxu1 %v9279_v41  ;;  %7345 = vmatprep.subr.bf16.mxu0 %v9284_v40  ;;  %v9350_v41 = vld [vmem:[%s13014_s5 + $0x264] ss:$16 sps:$4 sm:$0xff]   ;;  %v9353_v40 = vld [vmem:[%s13014_s5 + $0x26c] ss:$16 sps:$4 sm:$0xff]  }
 0x351   :  { %7509 = vmatprep.subr.bf16.mxu1 %v9287_v42  ;;  %v9348_v42 = vld [vmem:[%s13014_s5 + $0x260] ss:$16 sps:$4 sm:$0xff]  }
 0x353   :  { %7346 = vmatpush1.bf16.msra.mxu0 %v9282_v12  ;;  %v9351_v12 = vld [vmem:[%s13014_s5 + $0x268] ss:$16 sps:$4 sm:$0xff]  }
 0x354   :  { %7510 = vmatpush1.bf16.msra.mxu1 %v9285_v44  ;;  %7347 = vmatprep.subr.bf16.mxu0 %v9290_v24  ;;  %v9356_v44 = vld [vmem:[%s13014_s5 + $0x284] ss:$16 sps:$4 sm:$0xff]   ;;  %v9359_v24 = vld [vmem:[%s13014_s5 + $0x28c] ss:$16 sps:$4 sm:$0xff]  }
 0x355   :  { %7511 = vmatprep.subr.bf16.mxu1 %v9293_v45  ;;  %v9354_v45 = vld [vmem:[%s13014_s5 + $0x280] ss:$16 sps:$4 sm:$0xff]  }
 0x357   :  { %7348 = vmatpush1.bf16.msra.mxu0 %v9288_v2  ;;  %v9357_v2 = vld [vmem:[%s13014_s5 + $0x288] ss:$16 sps:$4 sm:$0xff]  }
 0x358   :  { %7512 = vmatpush1.bf16.msra.mxu1 %v9291_v55  ;;  %7349 = vmatprep.subr.bf16.mxu0 %v9296_v8  ;;  %v9362_v55 = vld [vmem:[%s13014_s5 + $0x2a4] ss:$16 sps:$4 sm:$0xff]   ;;  %v9365_v8 = vld [vmem:[%s13014_s5 + $0x2ac] ss:$16 sps:$4 sm:$0xff]  }
 0x359   :  { %7513 = vmatprep.subr.bf16.mxu1 %v9299_v57  ;;  %v9360_v57 = vld [vmem:[%s13014_s5 + $0x2a0] ss:$16 sps:$4 sm:$0xff]  }
 0x35b   :  { %7350 = vmatpush1.bf16.msra.mxu0 %v9294_v63  ;;  %v9363_v63 = vld [vmem:[%s13014_s5 + $0x2a8] ss:$16 sps:$4 sm:$0xff]  }
 0x35c   :  { %7514 = vmatpush1.bf16.msra.mxu1 %v9297_v46  ;;  %7351 = vmatprep.subr.bf16.mxu0 %v9302_v47  ;;  %v9368_v46 = vld [vmem:[%s13014_s5 + $0x2c4] ss:$16 sps:$4 sm:$0xff]   ;;  %v9371_v47 = vld [vmem:[%s13014_s5 + $0x2cc] ss:$16 sps:$4 sm:$0xff]  }
 0x35d   :  { %7515 = vmatprep.subr.bf16.mxu1 %v9305_v49  ;;  %v9366_v49 = vld [vmem:[%s13014_s5 + $0x2c0] ss:$16 sps:$4 sm:$0xff]  }
 0x35f   :  { %7352 = vmatpush1.bf16.msra.mxu0 %v9300_v23  ;;  %v9369_v23 = vld [vmem:[%s13014_s5 + $0x2c8] ss:$16 sps:$4 sm:$0xff]  }
 0x360   :  { %7516 = vmatpush1.bf16.msra.mxu1 %v9303_v50  ;;  %7353 = vmatprep.subr.bf16.mxu0 %v9308_v52  ;;  %v9374_v50 = vld [vmem:[%s13014_s5 + $0x2e4] ss:$16 sps:$4 sm:$0xff]   ;;  %v9377_v52 = vld [vmem:[%s13014_s5 + $0x2ec] ss:$16 sps:$4 sm:$0xff]  }
 0x361   :  { %7517 = vmatprep.subr.bf16.mxu1 %v9311_v54  ;;  %v9372_v54 = vld [vmem:[%s13014_s5 + $0x2e0] ss:$16 sps:$4 sm:$0xff]  }
 0x363   :  { %7354 = vmatpush1.bf16.msra.mxu0 %v9306_v56  ;;  %v9375_v56 = vld [vmem:[%s13014_s5 + $0x2e8] ss:$16 sps:$4 sm:$0xff]  }
 0x364   :  { %7518 = vmatpush1.bf16.msra.mxu1 %v9309_v58  ;;  %7355 = vmatprep.subr.bf16.mxu0 %v9314_v21  ;;  %v9380_v58 = vld [vmem:[%s13014_s5 + $0x304] ss:$16 sps:$4 sm:$0xff]   ;;  %v9383_v21 = vld [vmem:[%s13014_s5 + $0x30c] ss:$16 sps:$4 sm:$0xff]  }
 0x365   :  { %7519 = vmatprep.subr.bf16.mxu1 %v9317_v59  ;;  %v9378_v59 = vld [vmem:[%s13014_s5 + $0x300] ss:$16 sps:$4 sm:$0xff]  }
 0x367   :  { %7356 = vmatpush1.bf16.msra.mxu0 %v9312_v60  ;;  %v9381_v60 = vld [vmem:[%s13014_s5 + $0x308] ss:$16 sps:$4 sm:$0xff]  }
 0x368   :  { %7520 = vmatpush1.bf16.msra.mxu1 %v9315_v0  ;;  %7357 = vmatprep.subr.bf16.mxu0 %v9320_v1  ;;  %v9389_v0 = vld [vmem:[%s13014_s5 + $0x32c] ss:$16 sps:$4 sm:$0xff]   ;;  %v9384_v1 = vld [vmem:[%s13014_s5 + $0x320] ss:$16 sps:$4 sm:$0xff]  }
 0x369   :  { %7521 = vmatprep.subr.bf16.mxu1 %v9323_v39  ;;  %v9387_v39 = vld [vmem:[%s13014_s5 + $0x328] ss:$16 sps:$4 sm:$0xff]  }
 0x36b   :  { %7358 = vmatpush1.bf16.msra.mxu0 %v9318_v48  ;;  %v9395_v48 = vld [vmem:[%s13014_s5 + $0x34c] ss:$16 sps:$4 sm:$0xff]  }
 0x36c   :  { %7522 = vmatpush1.bf16.msra.mxu1 %v9321_v5  ;;  %7359 = vmatprep.subr.bf16.mxu0 %v9326_v6  ;;  %v9393_v5 = vld [vmem:[%s13014_s5 + $0x348] ss:$16 sps:$4 sm:$0xff]   ;;  %v9398_v6 = vld [vmem:[%s13014_s5 + $0x364] ss:$16 sps:$4 sm:$0xff]  }
 0x36d   :  { %7523 = vmatprep.subr.bf16.mxu1 %v9329_v7  ;;  %v9401_v7 = vld [vmem:[%s13014_s5 + $0x36c] ss:$16 sps:$4 sm:$0xff]  }
 0x36f   :  { %7360 = vmatpush1.bf16.msra.mxu0 %v9324_v18  ;;  %v9399_v18 = vld [vmem:[%s13014_s5 + $0x368] ss:$16 sps:$4 sm:$0xff]  }
 0x370   :  { %7524 = vmatpush1.bf16.msra.mxu1 %v9327_v14  ;;  %7370 = vmatprep.subr.bf16.mxu0 %v9332_v16  ;;  %v9407_v14 = vld [vmem:[%s13014_s5 + $0x38c] ss:$16 sps:$4 sm:$0xff]   ;;  %v9402_v16 = vld [vmem:[%s13014_s5 + $0x380] ss:$16 sps:$4 sm:$0xff]  }
 0x371   :  { %7534 = vmatprep.subr.bf16.mxu1 %v9335_v22  ;;  %v9405_v22 = vld [vmem:[%s13014_s5 + $0x388] ss:$16 sps:$4 sm:$0xff]  }
 0x372   :  { %7362 = vmatmul.mubr.bf16.vlgmr.msra.gmra.mrb[16].mxu0 %v5763_v20 }
 0x373   :  { %7526 = vmatmul.mubr.bf16.vlgmr.msra.gmra.mrb[16].mxu1 %v5763_v20  ;;  %7371 = vmatpush1.bf16.msra.mxu0 %v9330_v62  ;;  %v9413_v62 = vld [vmem:[%s13014_s5 + $0x3ac] ss:$16 sps:$4 sm:$0xff]   ;;  %v9408_v20 = vld [vmem:[%s13014_s5 + $0x3a0] ss:$16 sps:$4 sm:$0xff]  }
 0x374   :  { %7402 = vmatprep.mubr.bf16.mxu0 %v5766_v27  ;;  %7535 = vmatpush1.bf16.msra.mxu1 %v9333_v25  ;;  %v2510_v25 = vrot.slane %v12183_v31, %v10948_v43 }
 0x375   :  { %7566 = vmatprep.mubr.bf16.mxu1 %v5766_v27  ;;  %7372 = vmatprep.subr.bf16.mxu0 %v9338_v26  ;;  %v9411_v26 = vld [vmem:[%s13014_s5 + $0x3a8] ss:$16 sps:$4 sm:$0xff]   ;;  %v9416_v27 = vld [vmem:[%s13014_s5 + $0x3c4] ss:$16 sps:$4 sm:$0xff]  }
 0x376   :  { %7536 = vmatprep.subr.bf16.mxu1 %v9341_v28  ;;  %v9419_v28 = vld [vmem:[%s13014_s5 + $0x3cc] ss:$16 sps:$4 sm:$0xff]  }
 0x377   :  { %7373 = vmatpush1.bf16.msra.mxu0 %v9336_v29  ;;  %v9414_v29 = vld [vmem:[%s13014_s5 + $0x3c0] ss:$16 sps:$4 sm:$0xff]  }
 0x378   :  { %7537 = vmatpush1.bf16.msra.mxu1 %v9339_v34  ;;  %7374 = vmatprep.subr.bf16.mxu0 %v9344_v35  ;;  %v9129_v34 = vadd.f32 %v12078_v17, %v2510_v25  ;;  %v9417_v35 = vld [vmem:[%s13014_s5 + $0x3c8] ss:$16 sps:$4 sm:$0xff]   ;;  %v9420_v17 = vld [vmem:[%s13014_s5 + $0x3e0] ss:$16 sps:$4 sm:$0xff]   ;;  %v9491_v25 = vld [vmem:[%s13014_s5 + $0x54c] ss:$16 sps:$4 sm:$0xff]  }
 0x379   :  { %7538 = vmatprep.subr.bf16.mxu1 %v9347_v36  ;;  %v9422_v36 = vld [vmem:[%s13014_s5 + $0x3e4] ss:$16 sps:$4 sm:$0xff]  }
 0x37b   :  { %7375 = vmatpush1.bf16.msra.mxu0 %v9342_v37  ;;  %v9425_v37 = vld [vmem:[%s13014_s5 + $0x3ec] ss:$16 sps:$4 sm:$0xff]  }
 0x37c   :  { %7539 = vmatpush1.bf16.msra.mxu1 %v9345_v38  ;;  %7376 = vmatprep.subr.bf16.mxu0 %v9350_v41  ;;  %v5757_v38 = vmax.f32 %v9129_v34, 0.0  ;;  %v9423_v41 = vld [vmem:[%s13014_s5 + $0x3e8] ss:$16 sps:$4 sm:$0xff]   ;;  %v9492_v34 = vld [vmem:[%s13014_s5 + $0x560] ss:$16 sps:$4 sm:$0xff]  }
 0x37d   :  { %7540 = vmatprep.subr.bf16.mxu1 %v9353_v40  ;;  %v9428_v40 = vld [vmem:[%s13014_s5 + $0x404] ss:$16 sps:$4 sm:$0xff]  }
 0x37f   :  { %7377 = vmatpush1.bf16.msra.mxu0 %v9348_v42  ;;  %v9431_v42 = vld [vmem:[%s13014_s5 + $0x40c] ss:$16 sps:$4 sm:$0xff]  }
 0x380   :  { %7541 = vmatpush1.bf16.msra.mxu1 %v9351_v12  ;;  %7378 = vmatprep.subr.bf16.mxu0 %v9356_v44  ;;  %v9426_v12 = vld [vmem:[%s13014_s5 + $0x400] ss:$16 sps:$4 sm:$0xff]   ;;  %v5765_v44 = vpack.c.bf16 %v5757_v38, %v5757_v38  ;;  %v9501_v38 = vld [vmem:[%s13014_s5 + $0x588] ss:$16 sps:$4 sm:$0xff]  }
 0x381   :  { %7542 = vmatprep.subr.bf16.mxu1 %v9359_v24  ;;  %v9429_v24 = vld [vmem:[%s13014_s5 + $0x408] ss:$16 sps:$4 sm:$0xff]  }
 0x383   :  { %7379 = vmatpush1.bf16.msra.mxu0 %v9354_v45  ;;  %v9434_v45 = vld [vmem:[%s13014_s5 + $0x424] ss:$16 sps:$4 sm:$0xff]  }
 0x384   :  { %7543 = vmatpush1.bf16.msra.mxu1 %v9357_v2  ;;  %7380 = vmatprep.subr.bf16.mxu0 %v9362_v55  ;;  %v9437_v2 = vld [vmem:[%s13014_s5 + $0x42c] ss:$16 sps:$4 sm:$0xff]   ;;  %v9432_v55 = vld [vmem:[%s13014_s5 + $0x420] ss:$16 sps:$4 sm:$0xff]  }
 0x385   :  { %7544 = vmatprep.subr.bf16.mxu1 %v9365_v8  ;;  %v9435_v8 = vld [vmem:[%s13014_s5 + $0x428] ss:$16 sps:$4 sm:$0xff]  }
 0x387   :  { %7381 = vmatpush1.bf16.msra.mxu0 %v9360_v57  ;;  %v9440_v57 = vld [vmem:[%s13014_s5 + $0x444] ss:$16 sps:$4 sm:$0xff]  }
 0x388   :  { %7545 = vmatpush1.bf16.msra.mxu1 %v9363_v63  ;;  %7382 = vmatprep.subr.bf16.mxu0 %v9368_v46  ;;  %v9443_v63 = vld [vmem:[%s13014_s5 + $0x44c] ss:$16 sps:$4 sm:$0xff]   ;;  %v9438_v46 = vld [vmem:[%s13014_s5 + $0x440] ss:$16 sps:$4 sm:$0xff]  }
 0x389   :  { %7546 = vmatprep.subr.bf16.mxu1 %v9371_v47  ;;  %v9441_v47 = vld [vmem:[%s13014_s5 + $0x448] ss:$16 sps:$4 sm:$0xff]  }
 0x38b   :  { %7383 = vmatpush1.bf16.msra.mxu0 %v9366_v49  ;;  %v9446_v49 = vld [vmem:[%s13014_s5 + $0x464] ss:$16 sps:$4 sm:$0xff]  }
 0x38c   :  { %7547 = vmatpush1.bf16.msra.mxu1 %v9369_v23  ;;  %7384 = vmatprep.subr.bf16.mxu0 %v9374_v50  ;;  %v9449_v23 = vld [vmem:[%s13014_s5 + $0x46c] ss:$16 sps:$4 sm:$0xff]   ;;  %v9444_v50 = vld [vmem:[%s13014_s5 + $0x460] ss:$16 sps:$4 sm:$0xff]  }
 0x38d   :  { %7548 = vmatprep.subr.bf16.mxu1 %v9377_v52  ;;  %v9447_v52 = vld [vmem:[%s13014_s5 + $0x468] ss:$16 sps:$4 sm:$0xff]  }
 0x38f   :  { %7385 = vmatpush1.bf16.msra.mxu0 %v9372_v54  ;;  %v9452_v54 = vld [vmem:[%s13014_s5 + $0x484] ss:$16 sps:$4 sm:$0xff]  }
 0x390   :  { %7549 = vmatpush1.bf16.msra.mxu1 %v9375_v56  ;;  %7386 = vmatprep.subr.bf16.mxu0 %v9380_v58  ;;  %v9455_v56 = vld [vmem:[%s13014_s5 + $0x48c] ss:$16 sps:$4 sm:$0xff]   ;;  %v9450_v58 = vld [vmem:[%s13014_s5 + $0x480] ss:$16 sps:$4 sm:$0xff]  }
 0x391   :  { %7550 = vmatprep.subr.bf16.mxu1 %v9383_v21  ;;  %v9453_v21 = vld [vmem:[%s13014_s5 + $0x488] ss:$16 sps:$4 sm:$0xff]  }
 0x393   :  { %7387 = vmatpush1.bf16.msra.mxu0 %v9378_v59  ;;  %v9458_v59 = vld [vmem:[%s13014_s5 + $0x4a4] ss:$16 sps:$4 sm:$0xff]  }
 0x394   :  { %7551 = vmatpush1.bf16.msra.mxu1 %v9381_v60  ;;  %7388 = vmatprep.subr.bf16.mxu0 %v9386_v61  ;;  %v9461_v60 = vld [vmem:[%s13014_s5 + $0x4ac] ss:$16 sps:$4 sm:$0xff]   ;;  %v9456_v61 = vld [vmem:[%s13014_s5 + $0x4a0] ss:$16 sps:$4 sm:$0xff]  }
 0x395   :  { %7552 = vmatprep.subr.bf16.mxu1 %v9389_v0  ;;  %v9459_v0 = vld [vmem:[%s13014_s5 + $0x4a8] ss:$16 sps:$4 sm:$0xff]  }
 0x397   :  { %7389 = vmatpush1.bf16.msra.mxu0 %v9384_v1  ;;  %v9464_v1 = vld [vmem:[%s13014_s5 + $0x4c4] ss:$16 sps:$4 sm:$0xff]  }
 0x398   :  { %7553 = vmatpush1.bf16.msra.mxu1 %v9387_v39  ;;  %7390 = vmatprep.subr.bf16.mxu0 %v9392_v4  ;;  %v9467_v39 = vld [vmem:[%s13014_s5 + $0x4cc] ss:$16 sps:$4 sm:$0xff]   ;;  %v9462_v4 = vld [vmem:[%s13014_s5 + $0x4c0] ss:$16 sps:$4 sm:$0xff]  }
 0x399   :  { %7554 = vmatprep.subr.bf16.mxu1 %v9395_v48  ;;  %v9465_v48 = vld [vmem:[%s13014_s5 + $0x4c8] ss:$16 sps:$4 sm:$0xff]  }
 0x39b   :  { %7391 = vmatpush1.bf16.msra.mxu0 %v9390_v51  ;;  %v9470_v51 = vld [vmem:[%s13014_s5 + $0x4e4] ss:$16 sps:$4 sm:$0xff]  }
 0x39c   :  { %7555 = vmatpush1.bf16.msra.mxu1 %v9393_v5  ;;  %7392 = vmatprep.subr.bf16.mxu0 %v9398_v6  ;;  %v9473_v5 = vld [vmem:[%s13014_s5 + $0x4ec] ss:$16 sps:$4 sm:$0xff]   ;;  %v9468_v6 = vld [vmem:[%s13014_s5 + $0x4e0] ss:$16 sps:$4 sm:$0xff]  }
 0x39d   :  { %7556 = vmatprep.subr.bf16.mxu1 %v9401_v7  ;;  %v9471_v7 = vld [vmem:[%s13014_s5 + $0x4e8] ss:$16 sps:$4 sm:$0xff]  }
 0x39f   :  { %7393 = vmatpush1.bf16.msra.mxu0 %v9396_v10  ;;  %v9476_v10 = vld [vmem:[%s13014_s5 + $0x504] ss:$16 sps:$4 sm:$0xff]  }
 0x3a0   :  { %7557 = vmatpush1.bf16.msra.mxu1 %v9399_v18  ;;  %7394 = vmatprep.subr.bf16.mxu0 %v9404_v11  ;;  %v9479_v18 = vld [vmem:[%s13014_s5 + $0x50c] ss:$16 sps:$4 sm:$0xff]   ;;  %v9474_v11 = vld [vmem:[%s13014_s5 + $0x500] ss:$16 sps:$4 sm:$0xff]  }
 0x3a1   :  { %7558 = vmatprep.subr.bf16.mxu1 %v9407_v14  ;;  %v9477_v14 = vld [vmem:[%s13014_s5 + $0x508] ss:$16 sps:$4 sm:$0xff]  }
 0x3a3   :  { %7395 = vmatpush1.bf16.msra.mxu0 %v9402_v16  ;;  %v9482_v16 = vld [vmem:[%s13014_s5 + $0x524] ss:$16 sps:$4 sm:$0xff]  }
 0x3a4   :  { %7559 = vmatpush1.bf16.msra.mxu1 %v9405_v22  ;;  %7396 = vmatprep.subr.bf16.mxu0 %v9410_v19  ;;  %v9485_v22 = vld [vmem:[%s13014_s5 + $0x52c] ss:$16 sps:$4 sm:$0xff]   ;;  %v9480_v19 = vld [vmem:[%s13014_s5 + $0x520] ss:$16 sps:$4 sm:$0xff]  }
 0x3a5   :  { %7560 = vmatprep.subr.bf16.mxu1 %v9413_v62  ;;  %v9483_v62 = vld [vmem:[%s13014_s5 + $0x528] ss:$16 sps:$4 sm:$0xff]  }
 0x3a7   :  { %7397 = vmatpush1.bf16.msra.mxu0 %v9408_v20  ;;  %v9488_v20 = vld [vmem:[%s13014_s5 + $0x544] ss:$16 sps:$4 sm:$0xff]  }
 0x3a8   :  { %7561 = vmatpush1.bf16.msra.mxu1 %v9411_v26  ;;  %7398 = vmatprep.subr.bf16.mxu0 %v9416_v27  ;;  %v9486_v26 = vld [vmem:[%s13014_s5 + $0x540] ss:$16 sps:$4 sm:$0xff]   ;;  %v9489_v27 = vld [vmem:[%s13014_s5 + $0x548] ss:$16 sps:$4 sm:$0xff]  }
 0x3a9   :  { %7562 = vmatprep.subr.bf16.mxu1 %v9419_v28  ;;  %v9494_v28 = vld [vmem:[%s13014_s5 + $0x564] ss:$16 sps:$4 sm:$0xff]  }
 0x3ab   :  { %7399 = vmatpush1.bf16.msra.mxu0 %v9414_v29  ;;  %v9497_v29 = vld [vmem:[%s13014_s5 + $0x56c] ss:$16 sps:$4 sm:$0xff]  }
 0x3ac   :  { %7563 = vmatpush1.bf16.msra.mxu1 %v9417_v35  ;;  %7400 = vmatprep.subr.bf16.mxu0 %v9422_v36  ;;  %v9495_v35 = vld [vmem:[%s13014_s5 + $0x568] ss:$16 sps:$4 sm:$0xff]   ;;  %v9500_v36 = vld [vmem:[%s13014_s5 + $0x584] ss:$16 sps:$4 sm:$0xff]  }
 0x3ad   :  { %7564 = vmatprep.subr.bf16.mxu1 %v9425_v37  ;;  %v9503_v37 = vld [vmem:[%s13014_s5 + $0x58c] ss:$16 sps:$4 sm:$0xff]  }
 0x3af   :  { %7401 = vmatpush1.bf16.msra.mxu0 %v9420_v17  ;;  %v9498_v17 = vld [vmem:[%s13014_s5 + $0x580] ss:$16 sps:$4 sm:$0xff]  }
 0x3b0   :  { %7565 = vmatpush1.bf16.msra.mxu1 %v9423_v41  ;;  %7411 = vmatprep.subr.bf16.mxu0 %v9428_v40  ;;  %v9506_v41 = vld [vmem:[%s13014_s5 + $0x5a4] ss:$16 sps:$4 sm:$0xff]   ;;  %v9509_v40 = vld [vmem:[%s13014_s5 + $0x5ac] ss:$16 sps:$4 sm:$0xff]  }
 0x3b1   :  { %7575 = vmatprep.subr.bf16.mxu1 %v9431_v42  ;;  %v9504_v42 = vld [vmem:[%s13014_s5 + $0x5a0] ss:$16 sps:$4 sm:$0xff]  }
 0x3b2   :  { %7403 = vmatmul.mubr.bf16.vlgmr.msra.gmra.mrb[16].mxu0 %v5765_v44 }
 0x3b3   :  { %7567 = vmatmul.mubr.bf16.vlgmr.msra.gmra.mrb[16].mxu1 %v5765_v44  ;;  %7412 = vmatpush1.bf16.msra.mxu0 %v9426_v12  ;;  %v9507_v12 = vld [vmem:[%s13014_s5 + $0x5a8] ss:$16 sps:$4 sm:$0xff]   ;;  %v9512_v44 = vld [vmem:[%s13014_s5 + $0x5c4] ss:$16 sps:$4 sm:$0xff]  }
 0x3b4   :  { %7576 = vmatpush1.bf16.msra.mxu1 %v9429_v24  ;;  %7413 = vmatprep.subr.bf16.mxu0 %v9434_v45  ;;  %v9515_v24 = vld [vmem:[%s13014_s5 + $0x5cc] ss:$16 sps:$4 sm:$0xff]   ;;  %v9510_v45 = vld [vmem:[%s13014_s5 + $0x5c0] ss:$16 sps:$4 sm:$0xff]  }
 0x3b5   :  { %7577 = vmatprep.subr.bf16.mxu1 %v9437_v2  ;;  %v9513_v2 = vld [vmem:[%s13014_s5 + $0x5c8] ss:$16 sps:$4 sm:$0xff]  }
 0x3b7   :  { %7414 = vmatpush1.bf16.msra.mxu0 %v9432_v55  ;;  %v9518_v55 = vld [vmem:[%s13014_s5 + $0x5e4] ss:$16 sps:$4 sm:$0xff]  }
 0x3b8   :  { %7578 = vmatpush1.bf16.msra.mxu1 %v9435_v8  ;;  %7415 = vmatprep.subr.bf16.mxu0 %v9440_v57  ;;  %v9521_v8 = vld [vmem:[%s13014_s5 + $0x5ec] ss:$16 sps:$4 sm:$0xff]   ;;  %v9516_v57 = vld [vmem:[%s13014_s5 + $0x5e0] ss:$16 sps:$4 sm:$0xff]  }
 0x3b9   :  { %7579 = vmatprep.subr.bf16.mxu1 %v9443_v63  ;;  %v9519_v63 = vld [vmem:[%s13014_s5 + $0x5e8] ss:$16 sps:$4 sm:$0xff]  }
 0x3bb   :  { %7416 = vmatpush1.bf16.msra.mxu0 %v9438_v46  ;;  %v9524_v46 = vld [vmem:[%s13014_s5 + $0x604] ss:$16 sps:$4 sm:$0xff]  }
 0x3bc   :  { %7580 = vmatpush1.bf16.msra.mxu1 %v9441_v47  ;;  %7417 = vmatprep.subr.bf16.mxu0 %v9446_v49  ;;  %v9527_v47 = vld [vmem:[%s13014_s5 + $0x60c] ss:$16 sps:$4 sm:$0xff]   ;;  %v2518_v49 = vrot.slane %v12183_v31, %v325_v9 }
 0x3bd   :  { %7581 = vmatprep.subr.bf16.mxu1 %v9449_v23  ;;  %v2522_v23 = vrot.slane %v12183_v31, %v329_v13 }
 0x3bf   :  { %7418 = vmatpush1.bf16.msra.mxu0 %v9444_v50  ;;  %v2530_v50 = vrot.slane %v12183_v31, %v337_v53  ;;  %v9522_v53 = vld [vmem:[%s13014_s5 + $0x600] ss:$16 sps:$4 sm:$0xff]   ;;  %v9525_v31 = vld [vmem:[%s13014_s5 + $0x608] ss:$16 sps:$4 sm:$0xff]  }
 0x3c0   :  { %7582 = vmatpush1.bf16.msra.mxu1 %v9447_v52  ;;  %7419 = vmatprep.subr.bf16.mxu0 %v9452_v54 }
 0x3c1   :  { %7583 = vmatprep.subr.bf16.mxu1 %v9455_v56 }
 0x3c3   :  { %7420 = vmatpush1.bf16.msra.mxu0 %v9450_v58 }
 0x3c4   :  { %7584 = vmatpush1.bf16.msra.mxu1 %v9453_v21  ;;  %7421 = vmatprep.subr.bf16.mxu0 %v9458_v59 }
 0x3c5   :  { %7585 = vmatprep.subr.bf16.mxu1 %v9461_v60 }
 0x3c7   :  { %7422 = vmatpush1.bf16.msra.mxu0 %v9456_v61 }
 0x3c8   :  { %7586 = vmatpush1.bf16.msra.mxu1 %v9459_v0  ;;  %7423 = vmatprep.subr.bf16.mxu0 %v9464_v1 }
 0x3c9   :  { %7587 = vmatprep.subr.bf16.mxu1 %v9467_v39 }
 0x3cb   :  { %7424 = vmatpush1.bf16.msra.mxu0 %v9462_v4 }
 0x3cc   :  { %7588 = vmatpush1.bf16.msra.mxu1 %v9465_v48  ;;  %7425 = vmatprep.subr.bf16.mxu0 %v9470_v51 }
 0x3cd   :  { %7589 = vmatprep.subr.bf16.mxu1 %v9473_v5  ;;  %v9530_v5 = vld [vmem:[%s13014_s5 + $0x624] ss:$16 sps:$4 sm:$0xff]  }
 0x3cf   :  { %7426 = vmatpush1.bf16.msra.mxu0 %v9468_v6  ;;  %v9533_v6 = vld [vmem:[%s13014_s5 + $0x62c] ss:$16 sps:$4 sm:$0xff]  }
 0x3d0   :  { %7590 = vmatpush1.bf16.msra.mxu1 %v9471_v7  ;;  %7427 = vmatprep.subr.bf16.mxu0 %v9476_v10  ;;  %v9528_v10 = vld [vmem:[%s13014_s5 + $0x620] ss:$16 sps:$4 sm:$0xff]  }
 0x3d1   :  { %7591 = vmatprep.subr.bf16.mxu1 %v9479_v18  ;;  %v9531_v18 = vld [vmem:[%s13014_s5 + $0x628] ss:$16 sps:$4 sm:$0xff]  }
 0x3d3   :  { %7428 = vmatpush1.bf16.msra.mxu0 %v9474_v11  ;;  %v9536_v11 = vld [vmem:[%s13014_s5 + $0x644] ss:$16 sps:$4 sm:$0xff]  }
 0x3d4   :  { %7592 = vmatpush1.bf16.msra.mxu1 %v9477_v14  ;;  %7429 = vmatprep.subr.bf16.mxu0 %v9482_v16  ;;  %v9539_v14 = vld [vmem:[%s13014_s5 + $0x64c] ss:$16 sps:$4 sm:$0xff]   ;;  %v9534_v16 = vld [vmem:[%s13014_s5 + $0x640] ss:$16 sps:$4 sm:$0xff]  }
 0x3d5   :  { %7593 = vmatprep.subr.bf16.mxu1 %v9485_v22  ;;  %v9537_v22 = vld [vmem:[%s13014_s5 + $0x648] ss:$16 sps:$4 sm:$0xff]  }
 0x3d7   :  { %7430 = vmatpush1.bf16.msra.mxu0 %v9480_v19  ;;  %v9542_v19 = vld [vmem:[%s13014_s5 + $0x664] ss:$16 sps:$4 sm:$0xff]  }
 0x3d8   :  { %7594 = vmatpush1.bf16.msra.mxu1 %v9483_v62  ;;  %7431 = vmatprep.subr.bf16.mxu0 %v9488_v20  ;;  %v9545_v62 = vld [vmem:[%s13014_s5 + $0x66c] ss:$16 sps:$4 sm:$0xff]   ;;  %v9540_v20 = vld [vmem:[%s13014_s5 + $0x660] ss:$16 sps:$4 sm:$0xff]  }
 0x3d9   :  { %7595 = vmatprep.subr.bf16.mxu1 %v9491_v25  ;;  %v9543_v25 = vld [vmem:[%s13014_s5 + $0x668] ss:$16 sps:$4 sm:$0xff]  }
 0x3db   :  { %7432 = vmatpush1.bf16.msra.mxu0 %v9486_v26  ;;  %v9548_v26 = vld [vmem:[%s13014_s5 + $0x684] ss:$16 sps:$4 sm:$0xff]  }
 0x3dc   :  { %7596 = vmatpush1.bf16.msra.mxu1 %v9489_v27  ;;  %7433 = vmatprep.subr.bf16.mxu0 %v9494_v28  ;;  %v9551_v27 = vld [vmem:[%s13014_s5 + $0x68c] ss:$16 sps:$4 sm:$0xff]   ;;  %v9546_v28 = vld [vmem:[%s13014_s5 + $0x680] ss:$16 sps:$4 sm:$0xff]  }
 0x3dd   :  { %7597 = vmatprep.subr.bf16.mxu1 %v9497_v29  ;;  %v9549_v29 = vld [vmem:[%s13014_s5 + $0x688] ss:$16 sps:$4 sm:$0xff]  }
 0x3df   :  { %7434 = vmatpush1.bf16.msra.mxu0 %v9492_v34  ;;  %v9554_v34 = vld [vmem:[%s13014_s5 + $0x6a4] ss:$16 sps:$4 sm:$0xff]  }
 0x3e0   :  { %7598 = vmatpush1.bf16.msra.mxu1 %v9495_v35  ;;  %7435 = vmatprep.subr.bf16.mxu0 %v9500_v36  ;;  %v9557_v35 = vld [vmem:[%s13014_s5 + $0x6ac] ss:$16 sps:$4 sm:$0xff]   ;;  %v9552_v36 = vld [vmem:[%s13014_s5 + $0x6a0] ss:$16 sps:$4 sm:$0xff]  }
 0x3e1   :  { %7599 = vmatprep.subr.bf16.mxu1 %v9503_v37  ;;  %v9555_v37 = vld [vmem:[%s13014_s5 + $0x6a8] ss:$16 sps:$4 sm:$0xff]  }
 0x3e3   :  { %7436 = vmatpush1.bf16.msra.mxu0 %v9498_v17  ;;  %v9560_v17 = vld [vmem:[%s13014_s5 + $0x6c4] ss:$16 sps:$4 sm:$0xff]  }
 0x3e4   :  { %7600 = vmatpush1.bf16.msra.mxu1 %v9501_v38  ;;  %7437 = vmatprep.subr.bf16.mxu0 %v9506_v41  ;;  %v9563_v38 = vld [vmem:[%s13014_s5 + $0x6cc] ss:$16 sps:$4 sm:$0xff]   ;;  %v9558_v41 = vld [vmem:[%s13014_s5 + $0x6c0] ss:$16 sps:$4 sm:$0xff]  }
 0x3e5   :  { %7601 = vmatprep.subr.bf16.mxu1 %v9509_v40  ;;  %v9561_v40 = vld [vmem:[%s13014_s5 + $0x6c8] ss:$16 sps:$4 sm:$0xff]  }
 0x3e7   :  { %7438 = vmatpush1.bf16.msra.mxu0 %v9504_v42  ;;  %v9566_v42 = vld [vmem:[%s13014_s5 + $0x6e4] ss:$16 sps:$4 sm:$0xff]  }
 0x3e8   :  { %7602 = vmatpush1.bf16.msra.mxu1 %v9507_v12  ;;  %7439 = vmatprep.subr.bf16.mxu0 %v9512_v44  ;;  %v9569_v12 = vld [vmem:[%s13014_s5 + $0x6ec] ss:$16 sps:$4 sm:$0xff]   ;;  %v9564_v44 = vld [vmem:[%s13014_s5 + $0x6e0] ss:$16 sps:$4 sm:$0xff]  }
 0x3e9   :  { %7603 = vmatprep.subr.bf16.mxu1 %v9515_v24  ;;  %v9567_v24 = vld [vmem:[%s13014_s5 + $0x6e8] ss:$16 sps:$4 sm:$0xff]  }
 0x3eb   :  { %7440 = vmatpush1.bf16.msra.mxu0 %v9510_v45  ;;  %v9572_v45 = vld [vmem:[%s13014_s5 + $0x704] ss:$16 sps:$4 sm:$0xff]  }
 0x3ec   :  { %7604 = vmatpush1.bf16.msra.mxu1 %v9513_v2  ;;  %7441 = vmatprep.subr.bf16.mxu0 %v9518_v55  ;;  %v9575_v2 = vld [vmem:[%s13014_s5 + $0x70c] ss:$16 sps:$4 sm:$0xff]   ;;  %v9570_v55 = vld [vmem:[%s13014_s5 + $0x700] ss:$16 sps:$4 sm:$0xff]  }
 0x3ed   :  { %7605 = vmatprep.subr.bf16.mxu1 %v9521_v8  ;;  %v9573_v8 = vld [vmem:[%s13014_s5 + $0x708] ss:$16 sps:$4 sm:$0xff]  }
 0x3ef   :  { %7442 = vmatpush1.bf16.msra.mxu0 %v9516_v57  ;;  %v9578_v57 = vld [vmem:[%s13014_s5 + $0x724] ss:$16 sps:$4 sm:$0xff]  }
 0x3f0   :  { %7606 = vmatpush1.bf16.msra.mxu1 %v9519_v63  ;;  %7452 = vmatprep.subr.bf16.mxu0 %v9524_v46  ;;  %v9581_v63 = vld [vmem:[%s13014_s5 + $0x72c] ss:$16 sps:$4 sm:$0xff]   ;;  %v9576_v46 = vld [vmem:[%s13014_s5 + $0x720] ss:$16 sps:$4 sm:$0xff]  }
 0x3f1   :  { %7616 = vmatprep.subr.bf16.mxu1 %v9527_v47  ;;  %v9579_v47 = vld [vmem:[%s13014_s5 + $0x728] ss:$16 sps:$4 sm:$0xff]  }
 0x405   :  { %v5584_v52 = vpop.f32.mrb[12].mxu0 }
 0x406   :  { %v9131_v54 = vadd.f32 %v5584_v52, %v2518_v49  ;;  %v12802_v56 = vpop.f32.mrb[12].mxu1  ;;  %v5586_v58 = vpop.f32.mrb[13].mxu0  ;;  %v9584_v49 = vld [vmem:[%s13014_s5 + $0x744] ss:$16 sps:$4 sm:$0xff]   ;;  %v9585_v52 = vld [vmem:[%s13014_s5 + $0x748] ss:$16 sps:$4 sm:$0xff]  }
 0x407   :  { %v9132_v21 = vadd.f32 %v5586_v58, %v2522_v23  ;;  %v5750_v59 = vpop.f32.mrb[13].mxu1  ;;  %v5588_v60 = vpop.f32.mrb[14].mxu0  ;;  %v9587_v23 = vld [vmem:[%s13014_s5 + $0x74c] ss:$16 sps:$4 sm:$0xff]  }
 0x408   :  { %v5759_v61 = vmax.f32 %v9131_v54, 0.0  ;;  %v9134_v0 = vadd.f32 %v5750_v59, %v2530_v50  ;;  %v5752_v1 = vpop.f32.mrb[14].mxu1  ;;  %v5589_v9 = vpop.f32.mrb[15].mxu0  ;;  %v9582_v50 = vld [vmem:[%s13014_s5 + $0x740] ss:$16 sps:$4 sm:$0xff]  }
 0x409   :  { %v5760_v39 = vmax.f32 %v9132_v21, 0.0  ;;  %v5753_v4 = vpop.f32.mrb[15].mxu1  ;;  %v9590_v54 = vld [vmem:[%s13014_s5 + $0x764] ss:$16 sps:$4 sm:$0xff]   ;;  %v9593_v58 = vld [vmem:[%s13014_s5 + $0x76c] ss:$16 sps:$4 sm:$0xff]  }
 0x40a   :  { %v5762_v48 = vmax.f32 %v9134_v0, 0.0  ;;  %v5767_v51 = vpack.c.bf16 %v5759_v61, %v5759_v61  ;;  %v9588_v21 = vld [vmem:[%s13014_s5 + $0x760] ss:$16 sps:$4 sm:$0xff]   ;;  %v9591_v59 = vld [vmem:[%s13014_s5 + $0x768] ss:$16 sps:$4 sm:$0xff]  }
 0x40b   :  { %v5768_v13 = vpack.c.bf16 %v5760_v39, %v5760_v39  ;;  %v9596_v60 = vld [vmem:[%s13014_s5 + $0x784] ss:$16 sps:$4 sm:$0xff]   ;;  %v9599_v61 = vld [vmem:[%s13014_s5 + $0x78c] ss:$16 sps:$4 sm:$0xff]   ;;  %v9594_v0 = vld [vmem:[%s13014_s5 + $0x780] ss:$16 sps:$4 sm:$0xff]  }
 0x40c   :  { %v5770_v7 = vpack.c.bf16 %v5762_v48, %v5762_v48  ;;  %v9597_v1 = vld [vmem:[%s13014_s5 + $0x788] ss:$16 sps:$4 sm:$0xff]   ;;  %v9602_v9 = vld [vmem:[%s13014_s5 + $0x7a4] ss:$16 sps:$4 sm:$0xff]   ;;  %v9605_v39 = vld [vmem:[%s13014_s5 + $0x7ac] ss:$16 sps:$4 sm:$0xff]  }
 0x40d   :  { %7443 = vmatprep.mubr.bf16.mxu0 %v5768_v13  ;;  %7607 = vmatprep.mubr.bf16.mxu1 %v5768_v13  ;;  %v9600_v4 = vld [vmem:[%s13014_s5 + $0x7a0] ss:$16 sps:$4 sm:$0xff]   ;;  %v9603_v48 = vld [vmem:[%s13014_s5 + $0x7a8] ss:$16 sps:$4 sm:$0xff]  }
 0x40e   :  { %7444 = vmatmul.mubr.bf16.vlgmr.msra.gmra.mrb[16].mxu0 %v5767_v51  ;;  %7608 = vmatmul.mubr.bf16.vlgmr.msra.gmra.mrb[16].mxu1 %v5767_v51  ;;  %v9651_v13 = vld [vmem:[%s13013_s4] sm:$0xff]  ;;  %v9611_v51 = vld [vmem:[%s13014_s5 + $0x7cc] ss:$16 sps:$4 sm:$0xff]  }
 0x40f   :  { %7453 = vmatpush1.bf16.msra.mxu0 %v9522_v53  ;;  %7617 = vmatpush1.bf16.msra.mxu1 %v9525_v31  ;;  %v2526_v53 = vrot.slane %v9651_v13, %v333_v3  ;;  %v9608_v31 = vld [vmem:[%s13014_s5 + $0x7c4] ss:$16 sps:$4 sm:$0xff]  }
 0x410   :  { %7484 = vmatprep.mubr.bf16.mxu0 %v5770_v7  ;;  %7648 = vmatprep.mubr.bf16.mxu1 %v5770_v7  ;;  %v9617_v7 = vld [vmem:[%s13014_s5 + $0x7ec] ss:$16 sps:$4 sm:$0xff]  }
 0x411   :  { %7454 = vmatprep.subr.bf16.mxu0 %v9530_v5  ;;  %7618 = vmatprep.subr.bf16.mxu1 %v9533_v6  ;;  %v9606_v5 = vld [vmem:[%s13014_s5 + $0x7c0] ss:$16 sps:$4 sm:$0xff]   ;;  %v9133_v3 = vadd.f32 %v12802_v56, %v2526_v53  ;;  %v9614_v6 = vld [vmem:[%s13014_s5 + $0x7e4] ss:$16 sps:$4 sm:$0xff]   ;;  %v9615_v56 = vld [vmem:[%s13014_s5 + $0x7e8] ss:$16 sps:$4 sm:$0xff]  }
 0x413   :  { %7455 = vmatpush1.bf16.msra.mxu0 %v9528_v10  ;;  %7619 = vmatpush1.bf16.msra.mxu1 %v9531_v18  ;;  %v9612_v10 = vld [vmem:[%s13014_s5 + $0x7e0] ss:$16 sps:$4 sm:$0xff]   ;;  %v5761_v18 = vmax.f32 %v9133_v3, 0.0 }
 0x414   :  { %7456 = vmatprep.subr.bf16.mxu0 %v9536_v11  ;;  %7620 = vmatprep.subr.bf16.mxu1 %v9539_v14  ;;  %v9618_v11 = vld [vmem:[#allocation2 + $0x40] sm:$0xff]  }
 0x415   :  { %v9619_v14 = vld [vmem:[#allocation2 + $0xc0] sm:$0xff]  }
 0x417   :  { %7457 = vmatpush1.bf16.msra.mxu0 %v9534_v16  ;;  %7621 = vmatpush1.bf16.msra.mxu1 %v9537_v22  ;;  %v9620_v16 = vld [vmem:[#allocation2] sm:$0xff]  }
 0x418   :  { %7458 = vmatprep.subr.bf16.mxu0 %v9542_v19  ;;  %7622 = vmatprep.subr.bf16.mxu1 %v9545_v62  ;;  %v9621_v22 = vld [vmem:[#allocation2 + $0x80] sm:$0xff]   ;;  %v5769_v19 = vpack.c.bf16 %v5761_v18, %v5761_v18  ;;  %v9622_v62 = vld [vmem:[#allocation2 + $0x48] sm:$0xff]  }
 0x41b   :  { %7459 = vmatpush1.bf16.msra.mxu0 %v9540_v20  ;;  %7623 = vmatpush1.bf16.msra.mxu1 %v9543_v25  ;;  %v9623_v20 = vld [vmem:[#allocation2 + $0xc8] sm:$0xff]  }
 0x41c   :  { %7460 = vmatprep.subr.bf16.mxu0 %v9548_v26  ;;  %7624 = vmatprep.subr.bf16.mxu1 %v9551_v27  ;;  %v9624_v25 = vld [vmem:[#allocation2 + $0x8] sm:$0xff]   ;;  %v9626_v27 = vld [vmem:[#allocation2 + $0x50] sm:$0xff]  }
 0x41d   :  { %v9625_v26 = vld [vmem:[#allocation2 + $0x88] sm:$0xff]  }
 0x41f   :  { %7461 = vmatpush1.bf16.msra.mxu0 %v9546_v28  ;;  %7625 = vmatpush1.bf16.msra.mxu1 %v9549_v29  ;;  %v9627_v28 = vld [vmem:[#allocation2 + $0xd0] sm:$0xff]  }
 0x420   :  { %7462 = vmatprep.subr.bf16.mxu0 %v9554_v34  ;;  %7626 = vmatprep.subr.bf16.mxu1 %v9557_v35  ;;  %v9628_v29 = vld [vmem:[#allocation2 + $0x10] sm:$0xff]   ;;  %v9630_v35 = vld [vmem:[#allocation2 + $0x58] sm:$0xff]  }
 0x421   :  { %v9629_v34 = vld [vmem:[#allocation2 + $0x90] sm:$0xff]  }
 0x423   :  { %7463 = vmatpush1.bf16.msra.mxu0 %v9552_v36  ;;  %7627 = vmatpush1.bf16.msra.mxu1 %v9555_v37  ;;  %v9631_v36 = vld [vmem:[#allocation2 + $0xd8] sm:$0xff]  }
 0x424   :  { %7464 = vmatprep.subr.bf16.mxu0 %v9560_v17  ;;  %7628 = vmatprep.subr.bf16.mxu1 %v9563_v38  ;;  %v9632_v37 = vld [vmem:[#allocation2 + $0x18] sm:$0xff]   ;;  %v9634_v38 = vld [vmem:[#allocation2 + $0x60] sm:$0xff]  }
 0x425   :  { %v9633_v17 = vld [vmem:[#allocation2 + $0x98] sm:$0xff]  }
 0x427   :  { %7465 = vmatpush1.bf16.msra.mxu0 %v9558_v41  ;;  %7629 = vmatpush1.bf16.msra.mxu1 %v9561_v40  ;;  %v9635_v41 = vld [vmem:[#allocation2 + $0xe0] sm:$0xff]  }
 0x428   :  { %7466 = vmatprep.subr.bf16.mxu0 %v9566_v42  ;;  %7630 = vmatprep.subr.bf16.mxu1 %v9569_v12  ;;  %v9636_v40 = vld [vmem:[#allocation2 + $0x20] sm:$0xff]   ;;  %v9638_v12 = vld [vmem:[#allocation2 + $0x68] sm:$0xff]  }
 0x429   :  { %v9637_v42 = vld [vmem:[#allocation2 + $0xa0] sm:$0xff]  }
 0x42b   :  { %7467 = vmatpush1.bf16.msra.mxu0 %v9564_v44  ;;  %7631 = vmatpush1.bf16.msra.mxu1 %v9567_v24  ;;  %v9639_v44 = vld [vmem:[#allocation2 + $0xe8] sm:$0xff]  }
 0x42c   :  { %7468 = vmatprep.subr.bf16.mxu0 %v9572_v45  ;;  %7632 = vmatprep.subr.bf16.mxu1 %v9575_v2  ;;  %v9640_v24 = vld [vmem:[#allocation2 + $0x28] sm:$0xff]   ;;  %v9642_v2 = vld [vmem:[#allocation2 + $0x70] sm:$0xff]  }
 0x42d   :  { %v9641_v45 = vld [vmem:[#allocation2 + $0xa8] sm:$0xff]  }
 0x42f   :  { %7469 = vmatpush1.bf16.msra.mxu0 %v9570_v55  ;;  %7633 = vmatpush1.bf16.msra.mxu1 %v9573_v8  ;;  %v9643_v55 = vld [vmem:[#allocation2 + $0xf0] sm:$0xff]  }
 0x430   :  { %7470 = vmatprep.subr.bf16.mxu0 %v9578_v57  ;;  %7634 = vmatprep.subr.bf16.mxu1 %v9581_v63  ;;  %v9644_v8 = vld [vmem:[#allocation2 + $0x30] sm:$0xff]   ;;  %v9646_v63 = vld [vmem:[#allocation2 + $0x78] sm:$0xff]  }
 0x431   :  { %v9645_v57 = vld [vmem:[#allocation2 + $0xb0] sm:$0xff]  }
 0x433   :  { %7471 = vmatpush1.bf16.msra.mxu0 %v9576_v46  ;;  %7635 = vmatpush1.bf16.msra.mxu1 %v9579_v47  ;;  %v9647_v46 = vld [vmem:[#allocation2 + $0xf8] sm:$0xff]  }
 0x434   :  { %7472 = vmatprep.subr.bf16.mxu0 %v9584_v49  ;;  %7636 = vmatprep.subr.bf16.mxu1 %v9587_v23  ;;  %v9648_v47 = vld [vmem:[#allocation2 + $0x38] sm:$0xff]   ;;  %v6027_v23 = vld [vmem:[%s13015_s6] sm:$0xf] }
 0x435   :  { %v9649_v49 = vld [vmem:[#allocation2 + $0xb8] sm:$0xff]  }
 0x437   :  { %7473 = vmatpush1.bf16.msra.mxu0 %v9582_v50  ;;  %7637 = vmatpush1.bf16.msra.mxu1 %v9585_v52  ;;  %v6032_v50 = vrot.slane %v6027_v23, %v10758_v15  ;;  %v6040_v52 = vrot.slane %v6027_v23, %v10948_v43 }
 0x438   :  { %7474 = vmatprep.subr.bf16.mxu0 %v9590_v54  ;;  %7638 = vmatprep.subr.bf16.mxu1 %v9593_v58  ;;  %v6036_v54 = vrot.slane %v6027_v23, %v10766_v32  ;;  %v6044_v58 = vrot.slane %v6027_v23, %v10769_v33 }
 0x43b   :  { %7475 = vmatpush1.bf16.msra.mxu0 %v9588_v21  ;;  %7639 = vmatpush1.bf16.msra.mxu1 %v9591_v59 }
 0x43c   :  { %7476 = vmatprep.subr.bf16.mxu0 %v9596_v60  ;;  %7640 = vmatprep.subr.bf16.mxu1 %v9599_v61 }
 0x43f   :  { %7477 = vmatpush1.bf16.msra.mxu0 %v9594_v0  ;;  %7641 = vmatpush1.bf16.msra.mxu1 %v9597_v1 }
 0x440   :  { %7478 = vmatprep.subr.bf16.mxu0 %v9602_v9  ;;  %7642 = vmatprep.subr.bf16.mxu1 %v9605_v39 }
 0x443   :  { %7479 = vmatpush1.bf16.msra.mxu0 %v9600_v4  ;;  %7643 = vmatpush1.bf16.msra.mxu1 %v9603_v48 }
 0x444   :  { %7480 = vmatprep.subr.bf16.mxu0 %v9608_v31  ;;  %7644 = vmatprep.subr.bf16.mxu1 %v9611_v51 }
 0x447   :  { %7481 = vmatpush1.bf16.msra.mxu0 %v9606_v5  ;;  %7645 = vmatpush1.bf16.msra.mxu1 %v9609_v30 }
 0x448   :  { %7482 = vmatprep.subr.bf16.mxu0 %v9614_v6  ;;  %7646 = vmatprep.subr.bf16.mxu1 %v9617_v7  ;;  %v9042_v7 = vld [vmem:[%s13017_s8] ss:$0 sm:$0xff] }
 0x44b   :  { %7483 = vmatpush1.bf16.msra.mxu0 %v9612_v10  ;;  %7647 = vmatpush1.bf16.msra.mxu1 %v9615_v56 }
 0x44c   :  { %9075 = vmatprep.subr.bf16.mxu0 %v9618_v11  ;;  %9097 = vmatprep.subr.bf16.mxu1 %v9619_v14 }
 0x44e   :  { %7485 = vmatmul.mubr.bf16.vlgmr.msra.gmra.mrb[16].mxu0 %v5769_v19  ;;  %7649 = vmatmul.mubr.bf16.vlgmr.msra.gmra.mrb[16].mxu1 %v5769_v19 }
 0x44f   :  { %9076 = vmatpush3.bf16.msra.mxu0 %v9620_v16  ;;  %9098 = vmatpush3.bf16.msra.mxu1 %v9621_v22 }
 0x450   :  { %9077 = vmatprep.subr.bf16.mxu0 %v9622_v62  ;;  %9099 = vmatprep.subr.bf16.mxu1 %v9623_v20 }
 0x453   :  { %9078 = vmatpush3.bf16.msra.mxu0 %v9624_v25  ;;  %9100 = vmatpush3.bf16.msra.mxu1 %v9625_v26 }
 0x454   :  { %9079 = vmatprep.subr.bf16.mxu0 %v9626_v27  ;;  %9101 = vmatprep.subr.bf16.mxu1 %v9627_v28 }
 0x457   :  { %9080 = vmatpush3.bf16.msra.mxu0 %v9628_v29  ;;  %9102 = vmatpush3.bf16.msra.mxu1 %v9629_v34 }
 0x458   :  { %9081 = vmatprep.subr.bf16.mxu0 %v9630_v35  ;;  %9103 = vmatprep.subr.bf16.mxu1 %v9631_v36 }
 0x45b   :  { %9082 = vmatpush3.bf16.msra.mxu0 %v9632_v37  ;;  %9104 = vmatpush3.bf16.msra.mxu1 %v9633_v17 }
 0x45c   :  { %9083 = vmatprep.subr.bf16.mxu0 %v9634_v38  ;;  %9105 = vmatprep.subr.bf16.mxu1 %v9635_v41 }
 0x45f   :  { %9084 = vmatpush3.bf16.msra.mxu0 %v9636_v40  ;;  %9106 = vmatpush3.bf16.msra.mxu1 %v9637_v42 }
 0x460   :  { %9085 = vmatprep.subr.bf16.mxu0 %v9638_v12  ;;  %9107 = vmatprep.subr.bf16.mxu1 %v9639_v44 }
 0x463   :  { %9086 = vmatpush3.bf16.msra.mxu0 %v9640_v24  ;;  %9108 = vmatpush3.bf16.msra.mxu1 %v9641_v45 }
 0x464   :  { %9087 = vmatprep.subr.bf16.mxu0 %v9642_v2  ;;  %9109 = vmatprep.subr.bf16.mxu1 %v9643_v55 }
 0x467   :  { %9088 = vmatpush3.bf16.msra.mxu0 %v9644_v8  ;;  %9110 = vmatpush3.bf16.msra.mxu1 %v9645_v57 }
 0x468   :  { %9089 = vmatprep.subr.bf16.mxu0 %v9646_v63  ;;  %9111 = vmatprep.subr.bf16.mxu1 %v9647_v46 }
 0x46b   :  { %9090 = vmatpush3.bf16.msra.mxu0 %v9648_v47  ;;  %9112 = vmatpush3.bf16.msra.mxu1 %v9649_v49 }
 0x521   :  { %v7486_v21 = vpop.f32.mrb[16].mxu0  ;;  %v7650_v59 = vpop.f32.mrb[16].mxu1 }
 0x522   :  { %v9135_v60 = vadd.f32 %v7486_v21, %v6032_v50  ;;  %v9137_v61 = vadd.f32 %v7650_v59, %v6040_v52  ;;  %v7488_v0 = vpop.f32.mrb[17].mxu0  ;;  %v7652_v1 = vpop.f32.mrb[17].mxu1 }
 0x523   :  { %v9136_v9 = vadd.f32 %v7488_v0, %v6036_v54  ;;  %v9138_v39 = vadd.f32 %v7652_v1, %v6044_v58  ;;  %v7490_v4 = vpop.f32.mrb[18].mxu0  ;;  %v7654_v48 = vpop.f32.mrb[18].mxu1 }
 0x524   :  { %v7657_v13 = vmax.f32 %v9135_v60, 0.0  ;;  %v7659_v53 = vmax.f32 %v9137_v61, 0.0  ;;  %v7491_v31 = vpop.f32.mrb[19].mxu0  ;;  %v7655_v15 = vpop.f32.mrb[19].mxu1 }
 0x525   :  { %v7658_v51 = vmax.f32 %v9136_v9, 0.0  ;;  %v7660_v43 = vmax.f32 %v9138_v39, 0.0 }
 0x526   :  { %v7661_v30 = vpack.c.bf16 %v7657_v13, %v7657_v13  ;;  %v7663_v33 = vpack.c.bf16 %v7659_v53, %v7659_v53 }
 0x527   :  { %v7662_v5 = vpack.c.bf16 %v7658_v51, %v7658_v51  ;;  %v7664_v32 = vpack.c.bf16 %v7660_v43, %v7660_v43 }
 0x529   :  { %7960 = vmatprep.mubr.bf16.mxu0 %v7662_v5  ;;  %8000 = vmatprep.mubr.bf16.mxu1 %v7664_v32 }
 0x52a   :  { %7961 = vmatmul.mubr.bf16.vlgmr.msra.gmra.mrb[20].mxu0 %v7661_v30  ;;  %8001 = vmatmul.mubr.bf16.vlgmr.msra.gmra.mrb[20].mxu1 %v7663_v33 }
 0x5fd   :  { %v9091_v3 = vpop.f32.mrb[20].mxu0  ;;  %v9113_v6 = vpop.f32.mrb[20].mxu1 }
 0x5fe   :  { %v9092_v10 = vpop.f32.mrb[21].mxu0  ;;  %v9114_v56 = vpop.f32.mrb[21].mxu1 }
 0x5ff   :  { %v9093_v18 = vadd.f32 %v9092_v10, %v9091_v3  ;;  %v9115_v11 = vadd.f32 %v9114_v56, %v9113_v6  ;;  %v9094_v14 = vpop.f32.mrb[22].mxu0  ;;  %v9116_v16 = vpop.f32.mrb[22].mxu1 }
 0x600   :  { %v9095_v22 = vpop.f32.mrb[23].mxu0  ;;  %v9117_v19 = vpop.f32.mrb[23].mxu1 }
 0x601   :  { %v7963_v62 = vadd.f32 %v9093_v18, %v9042_v7 }
 0x603   :  { %v8003_v20 = vadd.f32 %v9115_v11, %v7963_v62 }
 0x605   :  { %8008 = vst [vmem:[%s13018_s9] sm:$0xff] %v8003_v20 }
 0x606   :  { %8013 = vsyncpa [#allocation3], 1 }

</bundles_post_ra>
